<compile_context>
chip_gen: v7x
topology: tpu7x:2x2x1
jax: 0.10.0
libtpu: 0.0.40
codegen_flags: <defaults>
</compile_context>

<pallas_src>
import math

import jax
import jax.numpy as jnp
from jax import lax
from jax.experimental import pallas as pl
from jax.experimental.pallas import tpu as pltpu

EMBED = 128
HEADS = 8
HEAD_DIM = EMBED // HEADS
FF_HIDDEN = 256
NUM_LAYERS = 3
STOCK_DIM = 22
MARKET_DIM = 24
PAD_IN = 128              # input feature dims zero-padded to a full lane width
SMALL_W = 3 * EMBED       # small-param slab row width (384)
LN_EPS = 1e-5
ATTN_SCALE = 1.0 / math.sqrt(HEAD_DIM)


# --------------------------- fused Pallas kernel -----------------------------

def _mcst_kernel(stock_ref, market_ref, pe_ref, proj_w_ref, attn_w_ref,
                 attn_b_ref, w1_ref, w2_ref, esm_ref, cross_w_ref,
                 cross_b_ref, chs_ref, out_ref):
    f32, bf16 = jnp.float32, jnp.bfloat16

    def mm(x, w):
        # x: f32 (M, K); w: bf16 (K, N) pre-transposed -> f32 (M, N), MXU f32 acc
        return jnp.dot(x.astype(bf16), w, preferred_element_type=f32)

    def layernorm(x, g, b):
        mu = jnp.mean(x, axis=-1, keepdims=True)
        c = x - mu
        var = jnp.mean(c * c, axis=-1, keepdims=True)
        return c * lax.rsqrt(var + LN_EPS) * g + b

    def softmax_last(s):
        m = jnp.max(s, axis=-1, keepdims=True)
        e = jnp.exp(s - m)
        return e * pl.reciprocal(jnp.sum(e, axis=-1, keepdims=True), approx=True)

    def esm(e, r, c, w):        # encoder small-param slab, (1, w) row chunk
        return esm_ref[e, pl.ds(r, 1), pl.ds(c, w)]

    def chs(r, c, w):           # cross+head small-param slab
        return chs_ref[pl.ds(r, 1), pl.ds(c, w)]

    def mha(xq, xkv, wq, bq, wk, bk, wv, bv, wo, bo):
        # xq/xkv: f32 (S, E); w*: bf16 (H, D, E); b*: f32 (H, 1, D); bo: (1, E)
        # Head-batched SDPA: no slices / concats / transposes, only batched
        # matmuls in the canonical 'bqd,bkd' / 'bqk,bkd' forms.
        xq_b = jnp.broadcast_to(xq.astype(bf16)[None], (HEADS,) + xq.shape)
        xkv_b = jnp.broadcast_to(xkv.astype(bf16)[None], (HEADS,) + xkv.shape)
        qh = jnp.einsum("hse,hde->hsd", xq_b, wq,
                        preferred_element_type=f32) + bq     # scale pre-folded
        kh = jnp.einsum("hse,hde->hsd", xkv_b, wk,
                        preferred_element_type=f32) + bk
        vh = jnp.einsum("hse,hde->hsd", xkv_b, wv,
                        preferred_element_type=f32) + bv
        s = jnp.einsum("hqd,hkd->hqk", qh.astype(bf16), kh.astype(bf16),
                       preferred_element_type=f32)           # (H, S, S)
        p = softmax_last(s).astype(bf16)
        o = jnp.einsum("hqk,hkd->hqd", p, vh.astype(bf16),
                       preferred_element_type=f32)           # (H, S, D)
        # output projection fused with the head concat: batched matmul + sum(h)
        y = jnp.einsum("hqd,hde->hqe", o.astype(bf16), wo,
                       preferred_element_type=f32)           # (H, S, E)
        return jnp.sum(y, axis=0) + bo                       # (S, E)

    pe = pe_ref[...]                                         # (S, E)

    def encoder(x_in, e):
        h = mm(x_in, proj_w_ref[e]) + esm(e, 0, 0, EMBED)    # input projection
        h = h + pe                                           # dropout = identity
        for l in range(NUM_LAYERS):
            sb = 1 + 3 * l
            aw = (e * NUM_LAYERS + l) * 4
            ab = (e * NUM_LAYERS + l) * 3
            fi = e * NUM_LAYERS + l
            a = mha(h, h,
                    attn_w_ref[aw + 0], attn_b_ref[ab + 0],
                    attn_w_ref[aw + 1], attn_b_ref[ab + 1],
                    attn_w_ref[aw + 2], attn_b_ref[ab + 2],
                    attn_w_ref[aw + 3], esm(e, sb, 0, EMBED))
            h = layernorm(h + a, esm(e, sb, EMBED, EMBED),
                          esm(e, sb, 2 * EMBED, EMBED))
            f = jnp.maximum(mm(h, w1_ref[fi]) + esm(e, sb + 1, 0, FF_HIDDEN), 0.0)
            f = mm(f, w2_ref[fi]) + esm(e, sb + 1, FF_HIDDEN, EMBED)
            h = layernorm(h + f, esm(e, sb + 2, 0, EMBED),
                          esm(e, sb + 2, EMBED, EMBED))
        return h

    xs = encoder(stock_ref[0], 0)                            # (S, E)
    xm = encoder(market_ref[0], 1)                           # (S, E)

    # Fusion: cross-attention (query = stock, key/value = market); tanh(x+attn)
    a = mha(xs, xm,
            cross_w_ref[0], cross_b_ref[0],
            cross_w_ref[1], cross_b_ref[1],
            cross_w_ref[2], cross_b_ref[2],
            cross_w_ref[3], chs(0, 0, EMBED))
    fused = jnp.tanh(xs + a)                                  # (S, E)

    # Prediction head: attention pooling over seq + final linear -> scalar.
    # (attn_vector bias omitted: softmax over seq is invariant to a constant.)
    attn_vec = chs(0, EMBED, EMBED)                           # (1, E)
    scores = jnp.sum(fused * attn_vec, axis=-1, keepdims=True)  # (S, 1)
    m = jnp.max(scores, axis=0, keepdims=True)
    ex = jnp.exp(scores - m)
    w = ex * pl.reciprocal(jnp.sum(ex, axis=0, keepdims=True), approx=True)
    pooled = jnp.sum(w * fused, axis=0, keepdims=True)        # (1, E)
    y = (jnp.sum(pooled * chs(0, 2 * EMBED, EMBED), axis=-1, keepdims=True)
         + chs(1, 0, 1))                                      # (1, 1)
    out_ref[...] = jnp.broadcast_to(y[None], (1, 1, EMBED))


# --------------------------- wrappers ----------------------------------------

def positional_encoding(seq_len, embed_dim):
    position = jnp.arange(seq_len, dtype=jnp.float32)[:, None]
    div_term = jnp.exp(jnp.arange(0, embed_dim, 2, dtype=jnp.float32)
                       * (-math.log(10000.0) / embed_dim))
    pe = jnp.zeros((seq_len, embed_dim), jnp.float32)
    pe = pe.at[:, 0::2].set(jnp.sin(position * div_term))
    pe = pe.at[:, 1::2].set(jnp.cos(position * div_term))
    return pe


def prepare_kernel_params(params):
    """Repack PyTorch-layout params into fused, head-major, pre-scaled slabs."""
    bf16 = jnp.bfloat16

    def head_w(w):          # (E_out, E_in) -> (H, D, E_in)
        return w.reshape(HEADS, HEAD_DIM, EMBED)

    def head_b(b):          # (E,) -> (H, 1, D)
        return b.reshape(HEADS, 1, HEAD_DIM)

    def row(*chunks):       # pack 1-D chunks into one SMALL_W-wide f32 row
        r = jnp.zeros((SMALL_W,), jnp.float32)
        off = 0
        for c in chunks:
            c = c.reshape(-1)
            r = r.at[off:off + c.shape[0]].set(c)
            off += c.shape[0]
        return r

    proj_w, attn_w, attn_b, ffn_w1, ffn_w2, small = [], [], [], [], [], []
    for enc, in_dim in ((params["stock_encoder"], STOCK_DIM),
                        (params["market_encoder"], MARKET_DIM)):
        pw = jnp.zeros((PAD_IN, EMBED), jnp.float32).at[:in_dim].set(enc["proj_w"].T)
        proj_w.append(pw)
        rows = [row(enc["proj_b"])]
        for blk in enc["blocks"]:
            m = blk["mha"]
            # fold 1/sqrt(head_dim) into Q weight + bias (f32, before bf16 cast)
            attn_w += [head_w(m["wq"] * ATTN_SCALE), head_w(m["wk"]),
                       head_w(m["wv"]),
                       m["wo"].T.reshape(HEADS, HEAD_DIM, EMBED)]
            attn_b += [head_b(m["bq"] * ATTN_SCALE), head_b(m["bk"]),
                       head_b(m["bv"])]
            ffn_w1.append(blk["ffn_w1"].T)
            ffn_w2.append(blk["ffn_w2"].T)
            rows += [row(m["bo"], blk["ln1_g"], blk["ln1_b"]),
                     row(blk["ffn_b1"], blk["ffn_b2"]),
                     row(blk["ln2_g"], blk["ln2_b"])]
        small.append(jnp.stack(rows))

    ca = params["cross_attn"]
    cross_w = jnp.stack([head_w(ca["wq"] * ATTN_SCALE), head_w(ca["wk"]),
                         head_w(ca["wv"]),
                         ca["wo"].T.reshape(HEADS, HEAD_DIM, EMBED)]).astype(bf16)
    cross_b = jnp.stack([head_b(ca["bq"] * ATTN_SCALE), head_b(ca["bk"]),
                         head_b(ca["bv"])])
    hd = params["head"]
    # NOTE: head attn_b dropped — softmax over seq is shift-invariant (exact).
    chs = jnp.stack([row(ca["bo"], hd["attn_w"], hd["fc1_w"]),
                     row(hd["fc1_b"])])

    return dict(
        proj_w=jnp.stack(proj_w).astype(bf16),      # (2, PAD_IN, E)
        attn_w=jnp.stack(attn_w).astype(bf16),      # (2*L*4, H, D, E)
        attn_b=jnp.stack(attn_b),                   # (2*L*3, H, 1, D) f32
        ffn_w1=jnp.stack(ffn_w1).astype(bf16),      # (2*L, E, FF)
        ffn_w2=jnp.stack(ffn_w2).astype(bf16),      # (2*L, FF, E)
        enc_small=jnp.stack(small),                 # (2, 10, 384) f32
        cross_w=cross_w,                            # (4, H, D, E)
        cross_b=cross_b,                            # (3, H, 1, D)
        chs=chs,                                    # (2, 384) f32
    )


def _full_spec(arr):
    nd = arr.ndim
    return pl.BlockSpec(arr.shape, lambda b, _nd=nd: (0,) * _nd)


def mcst_forward(kparams, stock, market):
    B, S, _ = stock.shape
    sp = jnp.zeros((B, S, PAD_IN), jnp.float32).at[..., :STOCK_DIM].set(stock)
    mp = jnp.zeros((B, S, PAD_IN), jnp.float32).at[..., :MARKET_DIM].set(market)
    pe = positional_encoding(S, EMBED)

    weights = (kparams["proj_w"], kparams["attn_w"], kparams["attn_b"],
               kparams["ffn_w1"], kparams["ffn_w2"], kparams["enc_small"],
               kparams["cross_w"], kparams["cross_b"], kparams["chs"])

    out = pl.pallas_call(
        _mcst_kernel,
        grid=(B,),                                   # one batch element per step
        out_shape=jax.ShapeDtypeStruct((B, 1, EMBED), jnp.float32),
        in_specs=[
            pl.BlockSpec((1, S, PAD_IN), lambda b: (b, 0, 0)),   # stock
            pl.BlockSpec((1, S, PAD_IN), lambda b: (b, 0, 0)),   # market
            _full_spec(pe),
        ] + [_full_spec(w) for w in weights],
        out_specs=pl.BlockSpec((1, 1, EMBED), lambda b: (b, 0, 0)),
        compiler_params=pltpu.CompilerParams(
            dimension_semantics=("parallel",),
            vmem_limit_bytes=32 * 1024 * 1024),
    )(sp, mp, pe, *weights)
    return out[:, 0, :1]                             # (B, 1)


# --------------------------- deterministic parameter init --------------------

def init_params(key):
    keys = iter(jax.random.split(key, 256))

    def nk():
        return next(keys)

    def dense(out_dim, in_dim, scale=0.05):
        w = jax.random.normal(nk(), (out_dim, in_dim), jnp.float32) * scale
        b = jnp.zeros((out_dim,), jnp.float32)
        return w, b

    def mha_params():
        wq, bq = dense(EMBED, EMBED)
        wk, bk = dense(EMBED, EMBED)
        wv, bv = dense(EMBED, EMBED)
        wo, bo = dense(EMBED, EMBED)
        return dict(wq=wq, bq=bq, wk=wk, bk=bk, wv=wv, bv=bv, wo=wo, bo=bo)

    def block_params():
        w1, b1 = dense(FF_HIDDEN, EMBED)
        w2, b2 = dense(EMBED, FF_HIDDEN)
        return dict(
            mha=mha_params(),
            ln1_g=jnp.ones((EMBED,), jnp.float32),
            ln1_b=jnp.zeros((EMBED,), jnp.float32),
            ffn_w1=w1, ffn_b1=b1, ffn_w2=w2, ffn_b2=b2,
            ln2_g=jnp.ones((EMBED,), jnp.float32),
            ln2_b=jnp.zeros((EMBED,), jnp.float32),
        )

    def encoder_params(input_dim):
        pw, pb = dense(EMBED, input_dim)
        return dict(proj_w=pw, proj_b=pb,
                    blocks=[block_params() for _ in range(NUM_LAYERS)])

    attn_w, attn_b = dense(1, EMBED)
    fc1_w, fc1_b = dense(1, EMBED)
    return dict(
        stock_encoder=encoder_params(STOCK_DIM),
        market_encoder=encoder_params(MARKET_DIM),
        cross_attn=mha_params(),
        head=dict(attn_w=attn_w, attn_b=attn_b, fc1_w=fc1_w, fc1_b=fc1_b),
    )


# --------------------------- main --------------------------------------------

if __name__ == "__main__":
    key = jax.random.PRNGKey(0)
    kp, ks, km = jax.random.split(key, 3)
    params = init_params(kp)
    kparams = prepare_kernel_params(params)   # one-time weight repack (host side)

    B, S = 2, 8
    stock = jax.random.normal(ks, (B, S, STOCK_DIM), jnp.float32)
    market = jax.random.normal(km, (B, S, MARKET_DIM), jnp.float32)

    out = jax.jit(mcst_forward)(kparams, stock, market)
    out = jax.block_until_ready(out)
    assert out.shape == (B, 1) and out.dtype == jnp.float32
    # TODO(synk): dropout layers are treated as identity (inference / eval mode).
    print("KERNEL_OK")
</pallas_src>

<mosaic_0001>
module attributes {stable_mosaic.version = 11 : i64} {
  func.func @_mcst_kernel(%arg0: i32, %arg1: memref<1x8x128xf32, #tpu.memory_space<vmem>>, %arg2: memref<1x8x128xf32, #tpu.memory_space<vmem>>, %arg3: memref<8x128xf32, #tpu.memory_space<vmem>>, %arg4: memref<2x128x128xbf16, #tpu.memory_space<vmem>>, %arg5: memref<24x8x16x128xbf16, #tpu.memory_space<vmem>>, %arg6: memref<18x8x1x16xf32, #tpu.memory_space<vmem>>, %arg7: memref<6x128x256xbf16, #tpu.memory_space<vmem>>, %arg8: memref<6x256x128xbf16, #tpu.memory_space<vmem>>, %arg9: memref<2x10x384xf32, #tpu.memory_space<vmem>>, %arg10: memref<4x8x16x128xbf16, #tpu.memory_space<vmem>>, %arg11: memref<3x8x1x16xf32, #tpu.memory_space<vmem>>, %arg12: memref<2x384xf32, #tpu.memory_space<vmem>>, %arg13: memref<1x1x128xf32, #tpu.memory_space<vmem>>) attributes {dimension_semantics = [#tpu.dimension_semantics<parallel>], iteration_bounds = array<i64: 2>, scalar_prefetch = 0 : i64, scratch_operands = 0 : i64, tpu.core_type = #tpu.core_type<tc>, window_params = [{transform_indices = @transform_0, window_bounds = array<i64: 1, 8, 128>}, {transform_indices = @transform_1, window_bounds = array<i64: 1, 8, 128>}, {pipeline_mode = #tpu.pipeline_mode<synchronous>, transform_indices = @transform_2, window_bounds = array<i64: 8, 128>}, {pipeline_mode = #tpu.pipeline_mode<synchronous>, transform_indices = @transform_3, window_bounds = array<i64: 2, 128, 128>}, {pipeline_mode = #tpu.pipeline_mode<synchronous>, transform_indices = @transform_4, window_bounds = array<i64: 24, 8, 16, 128>}, {pipeline_mode = #tpu.pipeline_mode<synchronous>, transform_indices = @transform_5, window_bounds = array<i64: 18, 8, 1, 16>}, {pipeline_mode = #tpu.pipeline_mode<synchronous>, transform_indices = @transform_6, window_bounds = array<i64: 6, 128, 256>}, {pipeline_mode = #tpu.pipeline_mode<synchronous>, transform_indices = @transform_7, window_bounds = array<i64: 6, 256, 128>}, {pipeline_mode = #tpu.pipeline_mode<synchronous>, transform_indices = @transform_8, window_bounds = array<i64: 2, 10, 384>}, {pipeline_mode = #tpu.pipeline_mode<synchronous>, transform_indices = @transform_9, window_bounds = array<i64: 4, 8, 16, 128>}, {pipeline_mode = #tpu.pipeline_mode<synchronous>, transform_indices = @transform_10, window_bounds = array<i64: 3, 8, 1, 16>}, {pipeline_mode = #tpu.pipeline_mode<synchronous>, transform_indices = @transform_11, window_bounds = array<i64: 2, 384>}, {transform_indices = @transform_12, window_bounds = array<i64: 1, 1, 128>}]} {
    %c0 = arith.constant 0 : index
    %c0_0 = arith.constant 0 : index
    %0 = vector.load %arg3[%c0, %c0_0] : memref<8x128xf32, #tpu.memory_space<vmem>>, vector<8x128xf32>
    %c0_1 = arith.constant 0 : index
    %c0_2 = arith.constant 0 : index
    %c0_3 = arith.constant 0 : index
    %1 = vector.load %arg1[%c0_1, %c0_2, %c0_3] : memref<1x8x128xf32, #tpu.memory_space<vmem>>, vector<1x8x128xf32>
    %2 = vector.shape_cast %1 : vector<1x8x128xf32> to vector<8x128xf32>
    %c0_4 = arith.constant 0 : index
    %c0_5 = arith.constant 0 : index
    %c0_6 = arith.constant 0 : index
    %3 = vector.load %arg4[%c0_4, %c0_5, %c0_6] : memref<2x128x128xbf16, #tpu.memory_space<vmem>>, vector<1x128x128xbf16>
    %4 = vector.shape_cast %3 : vector<1x128x128xbf16> to vector<128x128xbf16>
    %5 = arith.truncf %2 : vector<8x128xf32> to vector<8x128xbf16>
    %cst = arith.constant dense<0.000000e+00> : vector<8x128xf32>
    %6 = tpu.matmul %5, %4, %cst {dimension_numbers = #tpu.dot_dimension_numbers<[1], [0], [0], [1], [0, 0, 1, 1], [], []>} : vector<8x128xbf16>, vector<128x128xbf16>, vector<8x128xf32> -> vector<8x128xf32>
    %c0_7 = arith.constant 0 : index
    %c0_8 = arith.constant 0 : index
    %c0_9 = arith.constant 0 : index
    %7 = vector.load %arg9[%c0_7, %c0_8, %c0_9] : memref<2x10x384xf32, #tpu.memory_space<vmem>>, vector<1x1x128xf32>
    %8 = vector.shape_cast %7 : vector<1x1x128xf32> to vector<1x128xf32>
    %9 = vector.broadcast %8 : vector<1x128xf32> to vector<8x128xf32>
    %10 = arith.addf %6, %9 : vector<8x128xf32>
    %11 = arith.addf %10, %0 : vector<8x128xf32>
    %c0_10 = arith.constant 0 : index
    %c0_11 = arith.constant 0 : index
    %c0_12 = arith.constant 0 : index
    %c0_13 = arith.constant 0 : index
    %12 = vector.load %arg5[%c0_10, %c0_11, %c0_12, %c0_13] : memref<24x8x16x128xbf16, #tpu.memory_space<vmem>>, vector<1x8x16x128xbf16>
    %13 = vector.shape_cast %12 : vector<1x8x16x128xbf16> to vector<8x16x128xbf16>
    %c0_14 = arith.constant 0 : index
    %c0_15 = arith.constant 0 : index
    %c0_16 = arith.constant 0 : index
    %c0_17 = arith.constant 0 : index
    %14 = vector.load %arg6[%c0_14, %c0_15, %c0_16, %c0_17] : memref<18x8x1x16xf32, #tpu.memory_space<vmem>>, vector<1x8x1x16xf32>
    %15 = vector.shape_cast %14 : vector<1x8x1x16xf32> to vector<8x1x16xf32>
    %c1 = arith.constant 1 : index
    %c0_18 = arith.constant 0 : index
    %c0_19 = arith.constant 0 : index
    %c0_20 = arith.constant 0 : index
    %16 = vector.load %arg5[%c1, %c0_18, %c0_19, %c0_20] : memref<24x8x16x128xbf16, #tpu.memory_space<vmem>>, vector<1x8x16x128xbf16>
    %17 = vector.shape_cast %16 : vector<1x8x16x128xbf16> to vector<8x16x128xbf16>
    %c1_21 = arith.constant 1 : index
    %c0_22 = arith.constant 0 : index
    %c0_23 = arith.constant 0 : index
    %c0_24 = arith.constant 0 : index
    %18 = vector.load %arg6[%c1_21, %c0_22, %c0_23, %c0_24] : memref<18x8x1x16xf32, #tpu.memory_space<vmem>>, vector<1x8x1x16xf32>
    %19 = vector.shape_cast %18 : vector<1x8x1x16xf32> to vector<8x1x16xf32>
    %c2 = arith.constant 2 : index
    %c0_25 = arith.constant 0 : index
    %c0_26 = arith.constant 0 : index
    %c0_27 = arith.constant 0 : index
    %20 = vector.load %arg5[%c2, %c0_25, %c0_26, %c0_27] : memref<24x8x16x128xbf16, #tpu.memory_space<vmem>>, vector<1x8x16x128xbf16>
    %21 = vector.shape_cast %20 : vector<1x8x16x128xbf16> to vector<8x16x128xbf16>
    %c2_28 = arith.constant 2 : index
    %c0_29 = arith.constant 0 : index
    %c0_30 = arith.constant 0 : index
    %c0_31 = arith.constant 0 : index
    %22 = vector.load %arg6[%c2_28, %c0_29, %c0_30, %c0_31] : memref<18x8x1x16xf32, #tpu.memory_space<vmem>>, vector<1x8x1x16xf32>
    %23 = vector.shape_cast %22 : vector<1x8x1x16xf32> to vector<8x1x16xf32>
    %c3 = arith.constant 3 : index
    %c0_32 = arith.constant 0 : index
    %c0_33 = arith.constant 0 : index
    %c0_34 = arith.constant 0 : index
    %24 = vector.load %arg5[%c3, %c0_32, %c0_33, %c0_34] : memref<24x8x16x128xbf16, #tpu.memory_space<vmem>>, vector<1x8x16x128xbf16>
    %25 = vector.shape_cast %24 : vector<1x8x16x128xbf16> to vector<8x16x128xbf16>
    %c0_35 = arith.constant 0 : index
    %c1_36 = arith.constant 1 : index
    %c0_37 = arith.constant 0 : index
    %26 = vector.load %arg9[%c0_35, %c1_36, %c0_37] : memref<2x10x384xf32, #tpu.memory_space<vmem>>, vector<1x1x128xf32>
    %27 = vector.shape_cast %26 : vector<1x1x128xf32> to vector<1x128xf32>
    %28 = arith.truncf %11 : vector<8x128xf32> to vector<8x128xbf16>
    %29 = vector.shape_cast %28 : vector<8x128xbf16> to vector<1x8x128xbf16>
    %30 = vector.shape_cast %29 : vector<1x8x128xbf16> to vector<1x8x128xbf16>
    %31 = vector.broadcast %30 : vector<1x8x128xbf16> to vector<8x8x128xbf16>
    %32 = arith.truncf %11 : vector<8x128xf32> to vector<8x128xbf16>
    %33 = vector.shape_cast %32 : vector<8x128xbf16> to vector<1x8x128xbf16>
    %34 = vector.shape_cast %33 : vector<1x8x128xbf16> to vector<1x8x128xbf16>
    %35 = vector.broadcast %34 : vector<1x8x128xbf16> to vector<8x8x128xbf16>
    "tpu.trace_start"() <{level = 10 : i32, message = "hse,hde->hsd"}> : () -> ()
    %cst_38 = arith.constant dense<0.000000e+00> : vector<8x8x16xf32>
    %36 = tpu.matmul %31, %13, %cst_38 {dimension_numbers = #tpu.dot_dimension_numbers<[2], [2], [1], [1], [0, 0, 0, 1, 1, 1], [0], [0]>} : vector<8x8x128xbf16>, vector<8x16x128xbf16>, vector<8x8x16xf32> -> vector<8x8x16xf32>
    "tpu.trace_stop"() : () -> ()
    %37 = vector.broadcast %15 : vector<8x1x16xf32> to vector<8x8x16xf32>
    %38 = arith.addf %36, %37 : vector<8x8x16xf32>
    "tpu.trace_start"() <{level = 10 : i32, message = "hse,hde->hsd"}> : () -> ()
    %cst_39 = arith.constant dense<0.000000e+00> : vector<8x8x16xf32>
    %39 = tpu.matmul %35, %17, %cst_39 {dimension_numbers = #tpu.dot_dimension_numbers<[2], [2], [1], [1], [0, 0, 0, 1, 1, 1], [0], [0]>} : vector<8x8x128xbf16>, vector<8x16x128xbf16>, vector<8x8x16xf32> -> vector<8x8x16xf32>
    "tpu.trace_stop"() : () -> ()
    %40 = vector.broadcast %19 : vector<8x1x16xf32> to vector<8x8x16xf32>
    %41 = arith.addf %39, %40 : vector<8x8x16xf32>
    "tpu.trace_start"() <{level = 10 : i32, message = "hse,hde->hsd"}> : () -> ()
    %cst_40 = arith.constant dense<0.000000e+00> : vector<8x8x16xf32>
    %42 = tpu.matmul %35, %21, %cst_40 {dimension_numbers = #tpu.dot_dimension_numbers<[2], [2], [1], [1], [0, 0, 0, 1, 1, 1], [0], [0]>} : vector<8x8x128xbf16>, vector<8x16x128xbf16>, vector<8x8x16xf32> -> vector<8x8x16xf32>
    "tpu.trace_stop"() : () -> ()
    %43 = vector.broadcast %23 : vector<8x1x16xf32> to vector<8x8x16xf32>
    %44 = arith.addf %42, %43 : vector<8x8x16xf32>
    %45 = arith.truncf %38 : vector<8x8x16xf32> to vector<8x8x16xbf16>
    %46 = arith.truncf %41 : vector<8x8x16xf32> to vector<8x8x16xbf16>
    "tpu.trace_start"() <{level = 10 : i32, message = "hqd,hkd->hqk"}> : () -> ()
    %cst_41 = arith.constant dense<0.000000e+00> : vector<8x8x8xf32>
    %47 = tpu.matmul %45, %46, %cst_41 {dimension_numbers = #tpu.dot_dimension_numbers<[2], [2], [1], [1], [0, 0, 0, 1, 1, 1], [0], [0]>} : vector<8x8x16xbf16>, vector<8x8x16xbf16>, vector<8x8x8xf32> -> vector<8x8x8xf32>
    "tpu.trace_stop"() : () -> ()
    %cst_42 = arith.constant dense<0xFF800000> : vector<8x8xf32>
    %48 = vector.multi_reduction <maximumf>, %47, %cst_42 [2] : vector<8x8x8xf32> to vector<8x8xf32>
    %49 = vector.shape_cast %48 : vector<8x8xf32> to vector<8x8x1xf32>
    %50 = vector.broadcast %49 : vector<8x8x1xf32> to vector<8x8x8xf32>
    %51 = arith.subf %47, %50 : vector<8x8x8xf32>
    %52 = math.exp %51 : vector<8x8x8xf32>
    %cst_43 = arith.constant dense<0.000000e+00> : vector<8x8xf32>
    %53 = vector.multi_reduction <add>, %52, %cst_43 [2] : vector<8x8x8xf32> to vector<8x8xf32>
    %54 = vector.shape_cast %53 : vector<8x8xf32> to vector<8x8x1xf32>
    %55 = tpu.reciprocal %54 {approx = true} : vector<8x8x1xf32> -> vector<8x8x1xf32>
    %56 = vector.broadcast %55 : vector<8x8x1xf32> to vector<8x8x8xf32>
    %57 = arith.mulf %52, %56 : vector<8x8x8xf32>
    %58 = arith.truncf %57 : vector<8x8x8xf32> to vector<8x8x8xbf16>
    %59 = arith.truncf %44 : vector<8x8x16xf32> to vector<8x8x16xbf16>
    "tpu.trace_start"() <{level = 10 : i32, message = "hqk,hkd->hqd"}> : () -> ()
    %cst_44 = arith.constant dense<0.000000e+00> : vector<8x8x16xf32>
    %60 = tpu.matmul %58, %59, %cst_44 {dimension_numbers = #tpu.dot_dimension_numbers<[2], [1], [1], [2], [0, 0, 0, 1, 1, 2], [0], [0]>} : vector<8x8x8xbf16>, vector<8x8x16xbf16>, vector<8x8x16xf32> -> vector<8x8x16xf32>
    "tpu.trace_stop"() : () -> ()
    %61 = arith.truncf %60 : vector<8x8x16xf32> to vector<8x8x16xbf16>
    "tpu.trace_start"() <{level = 10 : i32, message = "hqd,hde->hqe"}> : () -> ()
    %cst_45 = arith.constant dense<0.000000e+00> : vector<8x8x128xf32>
    %62 = tpu.matmul %61, %25, %cst_45 {dimension_numbers = #tpu.dot_dimension_numbers<[2], [1], [1], [2], [0, 0, 0, 1, 1, 2], [0], [0]>} : vector<8x8x16xbf16>, vector<8x16x128xbf16>, vector<8x8x128xf32> -> vector<8x8x128xf32>
    "tpu.trace_stop"() : () -> ()
    %cst_46 = arith.constant dense<0.000000e+00> : vector<8x128xf32>
    %63 = vector.multi_reduction <add>, %62, %cst_46 [0] : vector<8x8x128xf32> to vector<8x128xf32>
    %64 = vector.broadcast %27 : vector<1x128xf32> to vector<8x128xf32>
    %65 = arith.addf %63, %64 : vector<8x128xf32>
    %66 = arith.addf %11, %65 : vector<8x128xf32>
    %c0_47 = arith.constant 0 : index
    %c1_48 = arith.constant 1 : index
    %c128 = arith.constant 128 : index
    %67 = vector.load %arg9[%c0_47, %c1_48, %c128] : memref<2x10x384xf32, #tpu.memory_space<vmem>>, vector<1x1x128xf32>
    %68 = vector.shape_cast %67 : vector<1x1x128xf32> to vector<1x128xf32>
    %c0_49 = arith.constant 0 : index
    %c1_50 = arith.constant 1 : index
    %c256 = arith.constant 256 : index
    %69 = vector.load %arg9[%c0_49, %c1_50, %c256] : memref<2x10x384xf32, #tpu.memory_space<vmem>>, vector<1x1x128xf32>
    %70 = vector.shape_cast %69 : vector<1x1x128xf32> to vector<1x128xf32>
    %cst_51 = arith.constant dense<0.000000e+00> : vector<8xf32>
    %71 = vector.multi_reduction <add>, %66, %cst_51 [1] : vector<8x128xf32> to vector<8xf32>
    %72 = vector.shape_cast %71 : vector<8xf32> to vector<8x1xf32>
    %cst_52 = arith.constant 1.280000e+02 : f32
    %73 = vector.broadcast %cst_52 : f32 to vector<8x1xf32>
    %74 = arith.divf %72, %73 : vector<8x1xf32>
    %75 = vector.broadcast %74 : vector<8x1xf32> to vector<8x128xf32>
    %76 = arith.subf %66, %75 : vector<8x128xf32>
    %77 = arith.mulf %76, %76 : vector<8x128xf32>
    %cst_53 = arith.constant dense<0.000000e+00> : vector<8xf32>
    %78 = vector.multi_reduction <add>, %77, %cst_53 [1] : vector<8x128xf32> to vector<8xf32>
    %79 = vector.shape_cast %78 : vector<8xf32> to vector<8x1xf32>
    %cst_54 = arith.constant 1.280000e+02 : f32
    %80 = vector.broadcast %cst_54 : f32 to vector<8x1xf32>
    %81 = arith.divf %79, %80 : vector<8x1xf32>
    %cst_55 = arith.constant 9.99999974E-6 : f32
    %82 = vector.broadcast %cst_55 : f32 to vector<8x1xf32>
    %83 = arith.addf %81, %82 : vector<8x1xf32>
    %84 = math.rsqrt %83 : vector<8x1xf32>
    %85 = vector.broadcast %84 : vector<8x1xf32> to vector<8x128xf32>
    %86 = arith.mulf %76, %85 : vector<8x128xf32>
    %87 = vector.broadcast %68 : vector<1x128xf32> to vector<8x128xf32>
    %88 = arith.mulf %86, %87 : vector<8x128xf32>
    %89 = vector.broadcast %70 : vector<1x128xf32> to vector<8x128xf32>
    %90 = arith.addf %88, %89 : vector<8x128xf32>
    %c0_56 = arith.constant 0 : index
    %c0_57 = arith.constant 0 : index
    %c0_58 = arith.constant 0 : index
    %91 = vector.load %arg7[%c0_56, %c0_57, %c0_58] : memref<6x128x256xbf16, #tpu.memory_space<vmem>>, vector<1x128x256xbf16>
    %92 = vector.shape_cast %91 : vector<1x128x256xbf16> to vector<128x256xbf16>
    %93 = arith.truncf %90 : vector<8x128xf32> to vector<8x128xbf16>
    %cst_59 = arith.constant dense<0.000000e+00> : vector<8x256xf32>
    %94 = tpu.matmul %93, %92, %cst_59 {dimension_numbers = #tpu.dot_dimension_numbers<[1], [0], [0], [1], [0, 0, 1, 1], [], []>} : vector<8x128xbf16>, vector<128x256xbf16>, vector<8x256xf32> -> vector<8x256xf32>
    %c0_60 = arith.constant 0 : index
    %c2_61 = arith.constant 2 : index
    %c0_62 = arith.constant 0 : index
    %95 = vector.load %arg9[%c0_60, %c2_61, %c0_62] : memref<2x10x384xf32, #tpu.memory_space<vmem>>, vector<1x1x256xf32>
    %96 = vector.shape_cast %95 : vector<1x1x256xf32> to vector<1x256xf32>
    %97 = vector.broadcast %96 : vector<1x256xf32> to vector<8x256xf32>
    %98 = arith.addf %94, %97 : vector<8x256xf32>
    %cst_63 = arith.constant 0.000000e+00 : f32
    %99 = vector.broadcast %cst_63 : f32 to vector<8x256xf32>
    %100 = arith.maximumf %98, %99 : vector<8x256xf32>
    %c0_64 = arith.constant 0 : index
    %c0_65 = arith.constant 0 : index
    %c0_66 = arith.constant 0 : index
    %101 = vector.load %arg8[%c0_64, %c0_65, %c0_66] : memref<6x256x128xbf16, #tpu.memory_space<vmem>>, vector<1x256x128xbf16>
    %102 = vector.shape_cast %101 : vector<1x256x128xbf16> to vector<256x128xbf16>
    %103 = arith.truncf %100 : vector<8x256xf32> to vector<8x256xbf16>
    %cst_67 = arith.constant dense<0.000000e+00> : vector<8x128xf32>
    %104 = tpu.matmul %103, %102, %cst_67 {dimension_numbers = #tpu.dot_dimension_numbers<[1], [0], [0], [1], [0, 0, 1, 1], [], []>} : vector<8x256xbf16>, vector<256x128xbf16>, vector<8x128xf32> -> vector<8x128xf32>
    %c0_68 = arith.constant 0 : index
    %c2_69 = arith.constant 2 : index
    %c256_70 = arith.constant 256 : index
    %105 = vector.load %arg9[%c0_68, %c2_69, %c256_70] : memref<2x10x384xf32, #tpu.memory_space<vmem>>, vector<1x1x128xf32>
    %106 = vector.shape_cast %105 : vector<1x1x128xf32> to vector<1x128xf32>
    %107 = vector.broadcast %106 : vector<1x128xf32> to vector<8x128xf32>
    %108 = arith.addf %104, %107 : vector<8x128xf32>
    %109 = arith.addf %90, %108 : vector<8x128xf32>
    %c0_71 = arith.constant 0 : index
    %c3_72 = arith.constant 3 : index
    %c0_73 = arith.constant 0 : index
    %110 = vector.load %arg9[%c0_71, %c3_72, %c0_73] : memref<2x10x384xf32, #tpu.memory_space<vmem>>, vector<1x1x128xf32>
    %111 = vector.shape_cast %110 : vector<1x1x128xf32> to vector<1x128xf32>
    %c0_74 = arith.constant 0 : index
    %c3_75 = arith.constant 3 : index
    %c128_76 = arith.constant 128 : index
    %112 = vector.load %arg9[%c0_74, %c3_75, %c128_76] : memref<2x10x384xf32, #tpu.memory_space<vmem>>, vector<1x1x128xf32>
    %113 = vector.shape_cast %112 : vector<1x1x128xf32> to vector<1x128xf32>
    %cst_77 = arith.constant dense<0.000000e+00> : vector<8xf32>
    %114 = vector.multi_reduction <add>, %109, %cst_77 [1] : vector<8x128xf32> to vector<8xf32>
    %115 = vector.shape_cast %114 : vector<8xf32> to vector<8x1xf32>
    %cst_78 = arith.constant 1.280000e+02 : f32
    %116 = vector.broadcast %cst_78 : f32 to vector<8x1xf32>
    %117 = arith.divf %115, %116 : vector<8x1xf32>
    %118 = vector.broadcast %117 : vector<8x1xf32> to vector<8x128xf32>
    %119 = arith.subf %109, %118 : vector<8x128xf32>
    %120 = arith.mulf %119, %119 : vector<8x128xf32>
    %cst_79 = arith.constant dense<0.000000e+00> : vector<8xf32>
    %121 = vector.multi_reduction <add>, %120, %cst_79 [1] : vector<8x128xf32> to vector<8xf32>
    %122 = vector.shape_cast %121 : vector<8xf32> to vector<8x1xf32>
    %cst_80 = arith.constant 1.280000e+02 : f32
    %123 = vector.broadcast %cst_80 : f32 to vector<8x1xf32>
    %124 = arith.divf %122, %123 : vector<8x1xf32>
    %cst_81 = arith.constant 9.99999974E-6 : f32
    %125 = vector.broadcast %cst_81 : f32 to vector<8x1xf32>
    %126 = arith.addf %124, %125 : vector<8x1xf32>
    %127 = math.rsqrt %126 : vector<8x1xf32>
    %128 = vector.broadcast %127 : vector<8x1xf32> to vector<8x128xf32>
    %129 = arith.mulf %119, %128 : vector<8x128xf32>
    %130 = vector.broadcast %111 : vector<1x128xf32> to vector<8x128xf32>
    %131 = arith.mulf %129, %130 : vector<8x128xf32>
    %132 = vector.broadcast %113 : vector<1x128xf32> to vector<8x128xf32>
    %133 = arith.addf %131, %132 : vector<8x128xf32>
    %c4 = arith.constant 4 : index
    %c0_82 = arith.constant 0 : index
    %c0_83 = arith.constant 0 : index
    %c0_84 = arith.constant 0 : index
    %134 = vector.load %arg5[%c4, %c0_82, %c0_83, %c0_84] : memref<24x8x16x128xbf16, #tpu.memory_space<vmem>>, vector<1x8x16x128xbf16>
    %135 = vector.shape_cast %134 : vector<1x8x16x128xbf16> to vector<8x16x128xbf16>
    %c3_85 = arith.constant 3 : index
    %c0_86 = arith.constant 0 : index
    %c0_87 = arith.constant 0 : index
    %c0_88 = arith.constant 0 : index
    %136 = vector.load %arg6[%c3_85, %c0_86, %c0_87, %c0_88] : memref<18x8x1x16xf32, #tpu.memory_space<vmem>>, vector<1x8x1x16xf32>
    %137 = vector.shape_cast %136 : vector<1x8x1x16xf32> to vector<8x1x16xf32>
    %c5 = arith.constant 5 : index
    %c0_89 = arith.constant 0 : index
    %c0_90 = arith.constant 0 : index
    %c0_91 = arith.constant 0 : index
    %138 = vector.load %arg5[%c5, %c0_89, %c0_90, %c0_91] : memref<24x8x16x128xbf16, #tpu.memory_space<vmem>>, vector<1x8x16x128xbf16>
    %139 = vector.shape_cast %138 : vector<1x8x16x128xbf16> to vector<8x16x128xbf16>
    %c4_92 = arith.constant 4 : index
    %c0_93 = arith.constant 0 : index
    %c0_94 = arith.constant 0 : index
    %c0_95 = arith.constant 0 : index
    %140 = vector.load %arg6[%c4_92, %c0_93, %c0_94, %c0_95] : memref<18x8x1x16xf32, #tpu.memory_space<vmem>>, vector<1x8x1x16xf32>
    %141 = vector.shape_cast %140 : vector<1x8x1x16xf32> to vector<8x1x16xf32>
    %c6 = arith.constant 6 : index
    %c0_96 = arith.constant 0 : index
    %c0_97 = arith.constant 0 : index
    %c0_98 = arith.constant 0 : index
    %142 = vector.load %arg5[%c6, %c0_96, %c0_97, %c0_98] : memref<24x8x16x128xbf16, #tpu.memory_space<vmem>>, vector<1x8x16x128xbf16>
    %143 = vector.shape_cast %142 : vector<1x8x16x128xbf16> to vector<8x16x128xbf16>
    %c5_99 = arith.constant 5 : index
    %c0_100 = arith.constant 0 : index
    %c0_101 = arith.constant 0 : index
    %c0_102 = arith.constant 0 : index
    %144 = vector.load %arg6[%c5_99, %c0_100, %c0_101, %c0_102] : memref<18x8x1x16xf32, #tpu.memory_space<vmem>>, vector<1x8x1x16xf32>
    %145 = vector.shape_cast %144 : vector<1x8x1x16xf32> to vector<8x1x16xf32>
    %c7 = arith.constant 7 : index
    %c0_103 = arith.constant 0 : index
    %c0_104 = arith.constant 0 : index
    %c0_105 = arith.constant 0 : index
    %146 = vector.load %arg5[%c7, %c0_103, %c0_104, %c0_105] : memref<24x8x16x128xbf16, #tpu.memory_space<vmem>>, vector<1x8x16x128xbf16>
    %147 = vector.shape_cast %146 : vector<1x8x16x128xbf16> to vector<8x16x128xbf16>
    %c0_106 = arith.constant 0 : index
    %c4_107 = arith.constant 4 : index
    %c0_108 = arith.constant 0 : index
    %148 = vector.load %arg9[%c0_106, %c4_107, %c0_108] : memref<2x10x384xf32, #tpu.memory_space<vmem>>, vector<1x1x128xf32>
    %149 = vector.shape_cast %148 : vector<1x1x128xf32> to vector<1x128xf32>
    %150 = arith.truncf %133 : vector<8x128xf32> to vector<8x128xbf16>
    %151 = vector.shape_cast %150 : vector<8x128xbf16> to vector<1x8x128xbf16>
    %152 = vector.shape_cast %151 : vector<1x8x128xbf16> to vector<1x8x128xbf16>
    %153 = vector.broadcast %152 : vector<1x8x128xbf16> to vector<8x8x128xbf16>
    %154 = arith.truncf %133 : vector<8x128xf32> to vector<8x128xbf16>
    %155 = vector.shape_cast %154 : vector<8x128xbf16> to vector<1x8x128xbf16>
    %156 = vector.shape_cast %155 : vector<1x8x128xbf16> to vector<1x8x128xbf16>
    %157 = vector.broadcast %156 : vector<1x8x128xbf16> to vector<8x8x128xbf16>
    "tpu.trace_start"() <{level = 10 : i32, message = "hse,hde->hsd"}> : () -> ()
    %cst_109 = arith.constant dense<0.000000e+00> : vector<8x8x16xf32>
    %158 = tpu.matmul %153, %135, %cst_109 {dimension_numbers = #tpu.dot_dimension_numbers<[2], [2], [1], [1], [0, 0, 0, 1, 1, 1], [0], [0]>} : vector<8x8x128xbf16>, vector<8x16x128xbf16>, vector<8x8x16xf32> -> vector<8x8x16xf32>
    "tpu.trace_stop"() : () -> ()
    %159 = vector.broadcast %137 : vector<8x1x16xf32> to vector<8x8x16xf32>
    %160 = arith.addf %158, %159 : vector<8x8x16xf32>
    "tpu.trace_start"() <{level = 10 : i32, message = "hse,hde->hsd"}> : () -> ()
    %cst_110 = arith.constant dense<0.000000e+00> : vector<8x8x16xf32>
    %161 = tpu.matmul %157, %139, %cst_110 {dimension_numbers = #tpu.dot_dimension_numbers<[2], [2], [1], [1], [0, 0, 0, 1, 1, 1], [0], [0]>} : vector<8x8x128xbf16>, vector<8x16x128xbf16>, vector<8x8x16xf32> -> vector<8x8x16xf32>
    "tpu.trace_stop"() : () -> ()
    %162 = vector.broadcast %141 : vector<8x1x16xf32> to vector<8x8x16xf32>
    %163 = arith.addf %161, %162 : vector<8x8x16xf32>
    "tpu.trace_start"() <{level = 10 : i32, message = "hse,hde->hsd"}> : () -> ()
    %cst_111 = arith.constant dense<0.000000e+00> : vector<8x8x16xf32>
    %164 = tpu.matmul %157, %143, %cst_111 {dimension_numbers = #tpu.dot_dimension_numbers<[2], [2], [1], [1], [0, 0, 0, 1, 1, 1], [0], [0]>} : vector<8x8x128xbf16>, vector<8x16x128xbf16>, vector<8x8x16xf32> -> vector<8x8x16xf32>
    "tpu.trace_stop"() : () -> ()
    %165 = vector.broadcast %145 : vector<8x1x16xf32> to vector<8x8x16xf32>
    %166 = arith.addf %164, %165 : vector<8x8x16xf32>
    %167 = arith.truncf %160 : vector<8x8x16xf32> to vector<8x8x16xbf16>
    %168 = arith.truncf %163 : vector<8x8x16xf32> to vector<8x8x16xbf16>
    "tpu.trace_start"() <{level = 10 : i32, message = "hqd,hkd->hqk"}> : () -> ()
    %cst_112 = arith.constant dense<0.000000e+00> : vector<8x8x8xf32>
    %169 = tpu.matmul %167, %168, %cst_112 {dimension_numbers = #tpu.dot_dimension_numbers<[2], [2], [1], [1], [0, 0, 0, 1, 1, 1], [0], [0]>} : vector<8x8x16xbf16>, vector<8x8x16xbf16>, vector<8x8x8xf32> -> vector<8x8x8xf32>
    "tpu.trace_stop"() : () -> ()
    %cst_113 = arith.constant dense<0xFF800000> : vector<8x8xf32>
    %170 = vector.multi_reduction <maximumf>, %169, %cst_113 [2] : vector<8x8x8xf32> to vector<8x8xf32>
    %171 = vector.shape_cast %170 : vector<8x8xf32> to vector<8x8x1xf32>
    %172 = vector.broadcast %171 : vector<8x8x1xf32> to vector<8x8x8xf32>
    %173 = arith.subf %169, %172 : vector<8x8x8xf32>
    %174 = math.exp %173 : vector<8x8x8xf32>
    %cst_114 = arith.constant dense<0.000000e+00> : vector<8x8xf32>
    %175 = vector.multi_reduction <add>, %174, %cst_114 [2] : vector<8x8x8xf32> to vector<8x8xf32>
    %176 = vector.shape_cast %175 : vector<8x8xf32> to vector<8x8x1xf32>
    %177 = tpu.reciprocal %176 {approx = true} : vector<8x8x1xf32> -> vector<8x8x1xf32>
    %178 = vector.broadcast %177 : vector<8x8x1xf32> to vector<8x8x8xf32>
    %179 = arith.mulf %174, %178 : vector<8x8x8xf32>
    %180 = arith.truncf %179 : vector<8x8x8xf32> to vector<8x8x8xbf16>
    %181 = arith.truncf %166 : vector<8x8x16xf32> to vector<8x8x16xbf16>
    "tpu.trace_start"() <{level = 10 : i32, message = "hqk,hkd->hqd"}> : () -> ()
    %cst_115 = arith.constant dense<0.000000e+00> : vector<8x8x16xf32>
    %182 = tpu.matmul %180, %181, %cst_115 {dimension_numbers = #tpu.dot_dimension_numbers<[2], [1], [1], [2], [0, 0, 0, 1, 1, 2], [0], [0]>} : vector<8x8x8xbf16>, vector<8x8x16xbf16>, vector<8x8x16xf32> -> vector<8x8x16xf32>
    "tpu.trace_stop"() : () -> ()
    %183 = arith.truncf %182 : vector<8x8x16xf32> to vector<8x8x16xbf16>
    "tpu.trace_start"() <{level = 10 : i32, message = "hqd,hde->hqe"}> : () -> ()
    %cst_116 = arith.constant dense<0.000000e+00> : vector<8x8x128xf32>
    %184 = tpu.matmul %183, %147, %cst_116 {dimension_numbers = #tpu.dot_dimension_numbers<[2], [1], [1], [2], [0, 0, 0, 1, 1, 2], [0], [0]>} : vector<8x8x16xbf16>, vector<8x16x128xbf16>, vector<8x8x128xf32> -> vector<8x8x128xf32>
    "tpu.trace_stop"() : () -> ()
    %cst_117 = arith.constant dense<0.000000e+00> : vector<8x128xf32>
    %185 = vector.multi_reduction <add>, %184, %cst_117 [0] : vector<8x8x128xf32> to vector<8x128xf32>
    %186 = vector.broadcast %149 : vector<1x128xf32> to vector<8x128xf32>
    %187 = arith.addf %185, %186 : vector<8x128xf32>
    %188 = arith.addf %133, %187 : vector<8x128xf32>
    %c0_118 = arith.constant 0 : index
    %c4_119 = arith.constant 4 : index
    %c128_120 = arith.constant 128 : index
    %189 = vector.load %arg9[%c0_118, %c4_119, %c128_120] : memref<2x10x384xf32, #tpu.memory_space<vmem>>, vector<1x1x128xf32>
    %190 = vector.shape_cast %189 : vector<1x1x128xf32> to vector<1x128xf32>
    %c0_121 = arith.constant 0 : index
    %c4_122 = arith.constant 4 : index
    %c256_123 = arith.constant 256 : index
    %191 = vector.load %arg9[%c0_121, %c4_122, %c256_123] : memref<2x10x384xf32, #tpu.memory_space<vmem>>, vector<1x1x128xf32>
    %192 = vector.shape_cast %191 : vector<1x1x128xf32> to vector<1x128xf32>
    %cst_124 = arith.constant dense<0.000000e+00> : vector<8xf32>
    %193 = vector.multi_reduction <add>, %188, %cst_124 [1] : vector<8x128xf32> to vector<8xf32>
    %194 = vector.shape_cast %193 : vector<8xf32> to vector<8x1xf32>
    %cst_125 = arith.constant 1.280000e+02 : f32
    %195 = vector.broadcast %cst_125 : f32 to vector<8x1xf32>
    %196 = arith.divf %194, %195 : vector<8x1xf32>
    %197 = vector.broadcast %196 : vector<8x1xf32> to vector<8x128xf32>
    %198 = arith.subf %188, %197 : vector<8x128xf32>
    %199 = arith.mulf %198, %198 : vector<8x128xf32>
    %cst_126 = arith.constant dense<0.000000e+00> : vector<8xf32>
    %200 = vector.multi_reduction <add>, %199, %cst_126 [1] : vector<8x128xf32> to vector<8xf32>
    %201 = vector.shape_cast %200 : vector<8xf32> to vector<8x1xf32>
    %cst_127 = arith.constant 1.280000e+02 : f32
    %202 = vector.broadcast %cst_127 : f32 to vector<8x1xf32>
    %203 = arith.divf %201, %202 : vector<8x1xf32>
    %cst_128 = arith.constant 9.99999974E-6 : f32
    %204 = vector.broadcast %cst_128 : f32 to vector<8x1xf32>
    %205 = arith.addf %203, %204 : vector<8x1xf32>
    %206 = math.rsqrt %205 : vector<8x1xf32>
    %207 = vector.broadcast %206 : vector<8x1xf32> to vector<8x128xf32>
    %208 = arith.mulf %198, %207 : vector<8x128xf32>
    %209 = vector.broadcast %190 : vector<1x128xf32> to vector<8x128xf32>
    %210 = arith.mulf %208, %209 : vector<8x128xf32>
    %211 = vector.broadcast %192 : vector<1x128xf32> to vector<8x128xf32>
    %212 = arith.addf %210, %211 : vector<8x128xf32>
    %c1_129 = arith.constant 1 : index
    %c0_130 = arith.constant 0 : index
    %c0_131 = arith.constant 0 : index
    %213 = vector.load %arg7[%c1_129, %c0_130, %c0_131] : memref<6x128x256xbf16, #tpu.memory_space<vmem>>, vector<1x128x256xbf16>
    %214 = vector.shape_cast %213 : vector<1x128x256xbf16> to vector<128x256xbf16>
    %215 = arith.truncf %212 : vector<8x128xf32> to vector<8x128xbf16>
    %cst_132 = arith.constant dense<0.000000e+00> : vector<8x256xf32>
    %216 = tpu.matmul %215, %214, %cst_132 {dimension_numbers = #tpu.dot_dimension_numbers<[1], [0], [0], [1], [0, 0, 1, 1], [], []>} : vector<8x128xbf16>, vector<128x256xbf16>, vector<8x256xf32> -> vector<8x256xf32>
    %c0_133 = arith.constant 0 : index
    %c5_134 = arith.constant 5 : index
    %c0_135 = arith.constant 0 : index
    %217 = vector.load %arg9[%c0_133, %c5_134, %c0_135] : memref<2x10x384xf32, #tpu.memory_space<vmem>>, vector<1x1x256xf32>
    %218 = vector.shape_cast %217 : vector<1x1x256xf32> to vector<1x256xf32>
    %219 = vector.broadcast %218 : vector<1x256xf32> to vector<8x256xf32>
    %220 = arith.addf %216, %219 : vector<8x256xf32>
    %cst_136 = arith.constant 0.000000e+00 : f32
    %221 = vector.broadcast %cst_136 : f32 to vector<8x256xf32>
    %222 = arith.maximumf %220, %221 : vector<8x256xf32>
    %c1_137 = arith.constant 1 : index
    %c0_138 = arith.constant 0 : index
    %c0_139 = arith.constant 0 : index
    %223 = vector.load %arg8[%c1_137, %c0_138, %c0_139] : memref<6x256x128xbf16, #tpu.memory_space<vmem>>, vector<1x256x128xbf16>
    %224 = vector.shape_cast %223 : vector<1x256x128xbf16> to vector<256x128xbf16>
    %225 = arith.truncf %222 : vector<8x256xf32> to vector<8x256xbf16>
    %cst_140 = arith.constant dense<0.000000e+00> : vector<8x128xf32>
    %226 = tpu.matmul %225, %224, %cst_140 {dimension_numbers = #tpu.dot_dimension_numbers<[1], [0], [0], [1], [0, 0, 1, 1], [], []>} : vector<8x256xbf16>, vector<256x128xbf16>, vector<8x128xf32> -> vector<8x128xf32>
    %c0_141 = arith.constant 0 : index
    %c5_142 = arith.constant 5 : index
    %c256_143 = arith.constant 256 : index
    %227 = vector.load %arg9[%c0_141, %c5_142, %c256_143] : memref<2x10x384xf32, #tpu.memory_space<vmem>>, vector<1x1x128xf32>
    %228 = vector.shape_cast %227 : vector<1x1x128xf32> to vector<1x128xf32>
    %229 = vector.broadcast %228 : vector<1x128xf32> to vector<8x128xf32>
    %230 = arith.addf %226, %229 : vector<8x128xf32>
    %231 = arith.addf %212, %230 : vector<8x128xf32>
    %c0_144 = arith.constant 0 : index
    %c6_145 = arith.constant 6 : index
    %c0_146 = arith.constant 0 : index
    %232 = vector.load %arg9[%c0_144, %c6_145, %c0_146] : memref<2x10x384xf32, #tpu.memory_space<vmem>>, vector<1x1x128xf32>
    %233 = vector.shape_cast %232 : vector<1x1x128xf32> to vector<1x128xf32>
    %c0_147 = arith.constant 0 : index
    %c6_148 = arith.constant 6 : index
    %c128_149 = arith.constant 128 : index
    %234 = vector.load %arg9[%c0_147, %c6_148, %c128_149] : memref<2x10x384xf32, #tpu.memory_space<vmem>>, vector<1x1x128xf32>
    %235 = vector.shape_cast %234 : vector<1x1x128xf32> to vector<1x128xf32>
    %cst_150 = arith.constant dense<0.000000e+00> : vector<8xf32>
    %236 = vector.multi_reduction <add>, %231, %cst_150 [1] : vector<8x128xf32> to vector<8xf32>
    %237 = vector.shape_cast %236 : vector<8xf32> to vector<8x1xf32>
    %cst_151 = arith.constant 1.280000e+02 : f32
    %238 = vector.broadcast %cst_151 : f32 to vector<8x1xf32>
    %239 = arith.divf %237, %238 : vector<8x1xf32>
    %240 = vector.broadcast %239 : vector<8x1xf32> to vector<8x128xf32>
    %241 = arith.subf %231, %240 : vector<8x128xf32>
    %242 = arith.mulf %241, %241 : vector<8x128xf32>
    %cst_152 = arith.constant dense<0.000000e+00> : vector<8xf32>
    %243 = vector.multi_reduction <add>, %242, %cst_152 [1] : vector<8x128xf32> to vector<8xf32>
    %244 = vector.shape_cast %243 : vector<8xf32> to vector<8x1xf32>
    %cst_153 = arith.constant 1.280000e+02 : f32
    %245 = vector.broadcast %cst_153 : f32 to vector<8x1xf32>
    %246 = arith.divf %244, %245 : vector<8x1xf32>
    %cst_154 = arith.constant 9.99999974E-6 : f32
    %247 = vector.broadcast %cst_154 : f32 to vector<8x1xf32>
    %248 = arith.addf %246, %247 : vector<8x1xf32>
    %249 = math.rsqrt %248 : vector<8x1xf32>
    %250 = vector.broadcast %249 : vector<8x1xf32> to vector<8x128xf32>
    %251 = arith.mulf %241, %250 : vector<8x128xf32>
    %252 = vector.broadcast %233 : vector<1x128xf32> to vector<8x128xf32>
    %253 = arith.mulf %251, %252 : vector<8x128xf32>
    %254 = vector.broadcast %235 : vector<1x128xf32> to vector<8x128xf32>
    %255 = arith.addf %253, %254 : vector<8x128xf32>
    %c8 = arith.constant 8 : index
    %c0_155 = arith.constant 0 : index
    %c0_156 = arith.constant 0 : index
    %c0_157 = arith.constant 0 : index
    %256 = vector.load %arg5[%c8, %c0_155, %c0_156, %c0_157] : memref<24x8x16x128xbf16, #tpu.memory_space<vmem>>, vector<1x8x16x128xbf16>
    %257 = vector.shape_cast %256 : vector<1x8x16x128xbf16> to vector<8x16x128xbf16>
    %c6_158 = arith.constant 6 : index
    %c0_159 = arith.constant 0 : index
    %c0_160 = arith.constant 0 : index
    %c0_161 = arith.constant 0 : index
    %258 = vector.load %arg6[%c6_158, %c0_159, %c0_160, %c0_161] : memref<18x8x1x16xf32, #tpu.memory_space<vmem>>, vector<1x8x1x16xf32>
    %259 = vector.shape_cast %258 : vector<1x8x1x16xf32> to vector<8x1x16xf32>
    %c9 = arith.constant 9 : index
    %c0_162 = arith.constant 0 : index
    %c0_163 = arith.constant 0 : index
    %c0_164 = arith.constant 0 : index
    %260 = vector.load %arg5[%c9, %c0_162, %c0_163, %c0_164] : memref<24x8x16x128xbf16, #tpu.memory_space<vmem>>, vector<1x8x16x128xbf16>
    %261 = vector.shape_cast %260 : vector<1x8x16x128xbf16> to vector<8x16x128xbf16>
    %c7_165 = arith.constant 7 : index
    %c0_166 = arith.constant 0 : index
    %c0_167 = arith.constant 0 : index
    %c0_168 = arith.constant 0 : index
    %262 = vector.load %arg6[%c7_165, %c0_166, %c0_167, %c0_168] : memref<18x8x1x16xf32, #tpu.memory_space<vmem>>, vector<1x8x1x16xf32>
    %263 = vector.shape_cast %262 : vector<1x8x1x16xf32> to vector<8x1x16xf32>
    %c10 = arith.constant 10 : index
    %c0_169 = arith.constant 0 : index
    %c0_170 = arith.constant 0 : index
    %c0_171 = arith.constant 0 : index
    %264 = vector.load %arg5[%c10, %c0_169, %c0_170, %c0_171] : memref<24x8x16x128xbf16, #tpu.memory_space<vmem>>, vector<1x8x16x128xbf16>
    %265 = vector.shape_cast %264 : vector<1x8x16x128xbf16> to vector<8x16x128xbf16>
    %c8_172 = arith.constant 8 : index
    %c0_173 = arith.constant 0 : index
    %c0_174 = arith.constant 0 : index
    %c0_175 = arith.constant 0 : index
    %266 = vector.load %arg6[%c8_172, %c0_173, %c0_174, %c0_175] : memref<18x8x1x16xf32, #tpu.memory_space<vmem>>, vector<1x8x1x16xf32>
    %267 = vector.shape_cast %266 : vector<1x8x1x16xf32> to vector<8x1x16xf32>
    %c11 = arith.constant 11 : index
    %c0_176 = arith.constant 0 : index
    %c0_177 = arith.constant 0 : index
    %c0_178 = arith.constant 0 : index
    %268 = vector.load %arg5[%c11, %c0_176, %c0_177, %c0_178] : memref<24x8x16x128xbf16, #tpu.memory_space<vmem>>, vector<1x8x16x128xbf16>
    %269 = vector.shape_cast %268 : vector<1x8x16x128xbf16> to vector<8x16x128xbf16>
    %c0_179 = arith.constant 0 : index
    %c7_180 = arith.constant 7 : index
    %c0_181 = arith.constant 0 : index
    %270 = vector.load %arg9[%c0_179, %c7_180, %c0_181] : memref<2x10x384xf32, #tpu.memory_space<vmem>>, vector<1x1x128xf32>
    %271 = vector.shape_cast %270 : vector<1x1x128xf32> to vector<1x128xf32>
    %272 = arith.truncf %255 : vector<8x128xf32> to vector<8x128xbf16>
    %273 = vector.shape_cast %272 : vector<8x128xbf16> to vector<1x8x128xbf16>
    %274 = vector.shape_cast %273 : vector<1x8x128xbf16> to vector<1x8x128xbf16>
    %275 = vector.broadcast %274 : vector<1x8x128xbf16> to vector<8x8x128xbf16>
    %276 = arith.truncf %255 : vector<8x128xf32> to vector<8x128xbf16>
    %277 = vector.shape_cast %276 : vector<8x128xbf16> to vector<1x8x128xbf16>
    %278 = vector.shape_cast %277 : vector<1x8x128xbf16> to vector<1x8x128xbf16>
    %279 = vector.broadcast %278 : vector<1x8x128xbf16> to vector<8x8x128xbf16>
    "tpu.trace_start"() <{level = 10 : i32, message = "hse,hde->hsd"}> : () -> ()
    %cst_182 = arith.constant dense<0.000000e+00> : vector<8x8x16xf32>
    %280 = tpu.matmul %275, %257, %cst_182 {dimension_numbers = #tpu.dot_dimension_numbers<[2], [2], [1], [1], [0, 0, 0, 1, 1, 1], [0], [0]>} : vector<8x8x128xbf16>, vector<8x16x128xbf16>, vector<8x8x16xf32> -> vector<8x8x16xf32>
    "tpu.trace_stop"() : () -> ()
    %281 = vector.broadcast %259 : vector<8x1x16xf32> to vector<8x8x16xf32>
    %282 = arith.addf %280, %281 : vector<8x8x16xf32>
    "tpu.trace_start"() <{level = 10 : i32, message = "hse,hde->hsd"}> : () -> ()
    %cst_183 = arith.constant dense<0.000000e+00> : vector<8x8x16xf32>
    %283 = tpu.matmul %279, %261, %cst_183 {dimension_numbers = #tpu.dot_dimension_numbers<[2], [2], [1], [1], [0, 0, 0, 1, 1, 1], [0], [0]>} : vector<8x8x128xbf16>, vector<8x16x128xbf16>, vector<8x8x16xf32> -> vector<8x8x16xf32>
    "tpu.trace_stop"() : () -> ()
    %284 = vector.broadcast %263 : vector<8x1x16xf32> to vector<8x8x16xf32>
    %285 = arith.addf %283, %284 : vector<8x8x16xf32>
    "tpu.trace_start"() <{level = 10 : i32, message = "hse,hde->hsd"}> : () -> ()
    %cst_184 = arith.constant dense<0.000000e+00> : vector<8x8x16xf32>
    %286 = tpu.matmul %279, %265, %cst_184 {dimension_numbers = #tpu.dot_dimension_numbers<[2], [2], [1], [1], [0, 0, 0, 1, 1, 1], [0], [0]>} : vector<8x8x128xbf16>, vector<8x16x128xbf16>, vector<8x8x16xf32> -> vector<8x8x16xf32>
    "tpu.trace_stop"() : () -> ()
    %287 = vector.broadcast %267 : vector<8x1x16xf32> to vector<8x8x16xf32>
    %288 = arith.addf %286, %287 : vector<8x8x16xf32>
    %289 = arith.truncf %282 : vector<8x8x16xf32> to vector<8x8x16xbf16>
    %290 = arith.truncf %285 : vector<8x8x16xf32> to vector<8x8x16xbf16>
    "tpu.trace_start"() <{level = 10 : i32, message = "hqd,hkd->hqk"}> : () -> ()
    %cst_185 = arith.constant dense<0.000000e+00> : vector<8x8x8xf32>
    %291 = tpu.matmul %289, %290, %cst_185 {dimension_numbers = #tpu.dot_dimension_numbers<[2], [2], [1], [1], [0, 0, 0, 1, 1, 1], [0], [0]>} : vector<8x8x16xbf16>, vector<8x8x16xbf16>, vector<8x8x8xf32> -> vector<8x8x8xf32>
    "tpu.trace_stop"() : () -> ()
    %cst_186 = arith.constant dense<0xFF800000> : vector<8x8xf32>
    %292 = vector.multi_reduction <maximumf>, %291, %cst_186 [2] : vector<8x8x8xf32> to vector<8x8xf32>
    %293 = vector.shape_cast %292 : vector<8x8xf32> to vector<8x8x1xf32>
    %294 = vector.broadcast %293 : vector<8x8x1xf32> to vector<8x8x8xf32>
    %295 = arith.subf %291, %294 : vector<8x8x8xf32>
    %296 = math.exp %295 : vector<8x8x8xf32>
    %cst_187 = arith.constant dense<0.000000e+00> : vector<8x8xf32>
    %297 = vector.multi_reduction <add>, %296, %cst_187 [2] : vector<8x8x8xf32> to vector<8x8xf32>
    %298 = vector.shape_cast %297 : vector<8x8xf32> to vector<8x8x1xf32>
    %299 = tpu.reciprocal %298 {approx = true} : vector<8x8x1xf32> -> vector<8x8x1xf32>
    %300 = vector.broadcast %299 : vector<8x8x1xf32> to vector<8x8x8xf32>
    %301 = arith.mulf %296, %300 : vector<8x8x8xf32>
    %302 = arith.truncf %301 : vector<8x8x8xf32> to vector<8x8x8xbf16>
    %303 = arith.truncf %288 : vector<8x8x16xf32> to vector<8x8x16xbf16>
    "tpu.trace_start"() <{level = 10 : i32, message = "hqk,hkd->hqd"}> : () -> ()
    %cst_188 = arith.constant dense<0.000000e+00> : vector<8x8x16xf32>
    %304 = tpu.matmul %302, %303, %cst_188 {dimension_numbers = #tpu.dot_dimension_numbers<[2], [1], [1], [2], [0, 0, 0, 1, 1, 2], [0], [0]>} : vector<8x8x8xbf16>, vector<8x8x16xbf16>, vector<8x8x16xf32> -> vector<8x8x16xf32>
    "tpu.trace_stop"() : () -> ()
    %305 = arith.truncf %304 : vector<8x8x16xf32> to vector<8x8x16xbf16>
    "tpu.trace_start"() <{level = 10 : i32, message = "hqd,hde->hqe"}> : () -> ()
    %cst_189 = arith.constant dense<0.000000e+00> : vector<8x8x128xf32>
    %306 = tpu.matmul %305, %269, %cst_189 {dimension_numbers = #tpu.dot_dimension_numbers<[2], [1], [1], [2], [0, 0, 0, 1, 1, 2], [0], [0]>} : vector<8x8x16xbf16>, vector<8x16x128xbf16>, vector<8x8x128xf32> -> vector<8x8x128xf32>
    "tpu.trace_stop"() : () -> ()
    %cst_190 = arith.constant dense<0.000000e+00> : vector<8x128xf32>
    %307 = vector.multi_reduction <add>, %306, %cst_190 [0] : vector<8x8x128xf32> to vector<8x128xf32>
    %308 = vector.broadcast %271 : vector<1x128xf32> to vector<8x128xf32>
    %309 = arith.addf %307, %308 : vector<8x128xf32>
    %310 = arith.addf %255, %309 : vector<8x128xf32>
    %c0_191 = arith.constant 0 : index
    %c7_192 = arith.constant 7 : index
    %c128_193 = arith.constant 128 : index
    %311 = vector.load %arg9[%c0_191, %c7_192, %c128_193] : memref<2x10x384xf32, #tpu.memory_space<vmem>>, vector<1x1x128xf32>
    %312 = vector.shape_cast %311 : vector<1x1x128xf32> to vector<1x128xf32>
    %c0_194 = arith.constant 0 : index
    %c7_195 = arith.constant 7 : index
    %c256_196 = arith.constant 256 : index
    %313 = vector.load %arg9[%c0_194, %c7_195, %c256_196] : memref<2x10x384xf32, #tpu.memory_space<vmem>>, vector<1x1x128xf32>
    %314 = vector.shape_cast %313 : vector<1x1x128xf32> to vector<1x128xf32>
    %cst_197 = arith.constant dense<0.000000e+00> : vector<8xf32>
    %315 = vector.multi_reduction <add>, %310, %cst_197 [1] : vector<8x128xf32> to vector<8xf32>
    %316 = vector.shape_cast %315 : vector<8xf32> to vector<8x1xf32>
    %cst_198 = arith.constant 1.280000e+02 : f32
    %317 = vector.broadcast %cst_198 : f32 to vector<8x1xf32>
    %318 = arith.divf %316, %317 : vector<8x1xf32>
    %319 = vector.broadcast %318 : vector<8x1xf32> to vector<8x128xf32>
    %320 = arith.subf %310, %319 : vector<8x128xf32>
    %321 = arith.mulf %320, %320 : vector<8x128xf32>
    %cst_199 = arith.constant dense<0.000000e+00> : vector<8xf32>
    %322 = vector.multi_reduction <add>, %321, %cst_199 [1] : vector<8x128xf32> to vector<8xf32>
    %323 = vector.shape_cast %322 : vector<8xf32> to vector<8x1xf32>
    %cst_200 = arith.constant 1.280000e+02 : f32
    %324 = vector.broadcast %cst_200 : f32 to vector<8x1xf32>
    %325 = arith.divf %323, %324 : vector<8x1xf32>
    %cst_201 = arith.constant 9.99999974E-6 : f32
    %326 = vector.broadcast %cst_201 : f32 to vector<8x1xf32>
    %327 = arith.addf %325, %326 : vector<8x1xf32>
    %328 = math.rsqrt %327 : vector<8x1xf32>
    %329 = vector.broadcast %328 : vector<8x1xf32> to vector<8x128xf32>
    %330 = arith.mulf %320, %329 : vector<8x128xf32>
    %331 = vector.broadcast %312 : vector<1x128xf32> to vector<8x128xf32>
    %332 = arith.mulf %330, %331 : vector<8x128xf32>
    %333 = vector.broadcast %314 : vector<1x128xf32> to vector<8x128xf32>
    %334 = arith.addf %332, %333 : vector<8x128xf32>
    %c2_202 = arith.constant 2 : index
    %c0_203 = arith.constant 0 : index
    %c0_204 = arith.constant 0 : index
    %335 = vector.load %arg7[%c2_202, %c0_203, %c0_204] : memref<6x128x256xbf16, #tpu.memory_space<vmem>>, vector<1x128x256xbf16>
    %336 = vector.shape_cast %335 : vector<1x128x256xbf16> to vector<128x256xbf16>
    %337 = arith.truncf %334 : vector<8x128xf32> to vector<8x128xbf16>
    %cst_205 = arith.constant dense<0.000000e+00> : vector<8x256xf32>
    %338 = tpu.matmul %337, %336, %cst_205 {dimension_numbers = #tpu.dot_dimension_numbers<[1], [0], [0], [1], [0, 0, 1, 1], [], []>} : vector<8x128xbf16>, vector<128x256xbf16>, vector<8x256xf32> -> vector<8x256xf32>
    %c0_206 = arith.constant 0 : index
    %c8_207 = arith.constant 8 : index
    %c0_208 = arith.constant 0 : index
    %339 = vector.load %arg9[%c0_206, %c8_207, %c0_208] : memref<2x10x384xf32, #tpu.memory_space<vmem>>, vector<1x1x256xf32>
    %340 = vector.shape_cast %339 : vector<1x1x256xf32> to vector<1x256xf32>
    %341 = vector.broadcast %340 : vector<1x256xf32> to vector<8x256xf32>
    %342 = arith.addf %338, %341 : vector<8x256xf32>
    %cst_209 = arith.constant 0.000000e+00 : f32
    %343 = vector.broadcast %cst_209 : f32 to vector<8x256xf32>
    %344 = arith.maximumf %342, %343 : vector<8x256xf32>
    %c2_210 = arith.constant 2 : index
    %c0_211 = arith.constant 0 : index
    %c0_212 = arith.constant 0 : index
    %345 = vector.load %arg8[%c2_210, %c0_211, %c0_212] : memref<6x256x128xbf16, #tpu.memory_space<vmem>>, vector<1x256x128xbf16>
    %346 = vector.shape_cast %345 : vector<1x256x128xbf16> to vector<256x128xbf16>
    %347 = arith.truncf %344 : vector<8x256xf32> to vector<8x256xbf16>
    %cst_213 = arith.constant dense<0.000000e+00> : vector<8x128xf32>
    %348 = tpu.matmul %347, %346, %cst_213 {dimension_numbers = #tpu.dot_dimension_numbers<[1], [0], [0], [1], [0, 0, 1, 1], [], []>} : vector<8x256xbf16>, vector<256x128xbf16>, vector<8x128xf32> -> vector<8x128xf32>
    %c0_214 = arith.constant 0 : index
    %c8_215 = arith.constant 8 : index
    %c256_216 = arith.constant 256 : index
    %349 = vector.load %arg9[%c0_214, %c8_215, %c256_216] : memref<2x10x384xf32, #tpu.memory_space<vmem>>, vector<1x1x128xf32>
    %350 = vector.shape_cast %349 : vector<1x1x128xf32> to vector<1x128xf32>
    %351 = vector.broadcast %350 : vector<1x128xf32> to vector<8x128xf32>
    %352 = arith.addf %348, %351 : vector<8x128xf32>
    %353 = arith.addf %334, %352 : vector<8x128xf32>
    %c0_217 = arith.constant 0 : index
    %c9_218 = arith.constant 9 : index
    %c0_219 = arith.constant 0 : index
    %354 = vector.load %arg9[%c0_217, %c9_218, %c0_219] : memref<2x10x384xf32, #tpu.memory_space<vmem>>, vector<1x1x128xf32>
    %355 = vector.shape_cast %354 : vector<1x1x128xf32> to vector<1x128xf32>
    %c0_220 = arith.constant 0 : index
    %c9_221 = arith.constant 9 : index
    %c128_222 = arith.constant 128 : index
    %356 = vector.load %arg9[%c0_220, %c9_221, %c128_222] : memref<2x10x384xf32, #tpu.memory_space<vmem>>, vector<1x1x128xf32>
    %357 = vector.shape_cast %356 : vector<1x1x128xf32> to vector<1x128xf32>
    %cst_223 = arith.constant dense<0.000000e+00> : vector<8xf32>
    %358 = vector.multi_reduction <add>, %353, %cst_223 [1] : vector<8x128xf32> to vector<8xf32>
    %359 = vector.shape_cast %358 : vector<8xf32> to vector<8x1xf32>
    %cst_224 = arith.constant 1.280000e+02 : f32
    %360 = vector.broadcast %cst_224 : f32 to vector<8x1xf32>
    %361 = arith.divf %359, %360 : vector<8x1xf32>
    %362 = vector.broadcast %361 : vector<8x1xf32> to vector<8x128xf32>
    %363 = arith.subf %353, %362 : vector<8x128xf32>
    %364 = arith.mulf %363, %363 : vector<8x128xf32>
    %cst_225 = arith.constant dense<0.000000e+00> : vector<8xf32>
    %365 = vector.multi_reduction <add>, %364, %cst_225 [1] : vector<8x128xf32> to vector<8xf32>
    %366 = vector.shape_cast %365 : vector<8xf32> to vector<8x1xf32>
    %cst_226 = arith.constant 1.280000e+02 : f32
    %367 = vector.broadcast %cst_226 : f32 to vector<8x1xf32>
    %368 = arith.divf %366, %367 : vector<8x1xf32>
    %cst_227 = arith.constant 9.99999974E-6 : f32
    %369 = vector.broadcast %cst_227 : f32 to vector<8x1xf32>
    %370 = arith.addf %368, %369 : vector<8x1xf32>
    %371 = math.rsqrt %370 : vector<8x1xf32>
    %372 = vector.broadcast %371 : vector<8x1xf32> to vector<8x128xf32>
    %373 = arith.mulf %363, %372 : vector<8x128xf32>
    %374 = vector.broadcast %355 : vector<1x128xf32> to vector<8x128xf32>
    %375 = arith.mulf %373, %374 : vector<8x128xf32>
    %376 = vector.broadcast %357 : vector<1x128xf32> to vector<8x128xf32>
    %377 = arith.addf %375, %376 : vector<8x128xf32>
    %c0_228 = arith.constant 0 : index
    %c0_229 = arith.constant 0 : index
    %c0_230 = arith.constant 0 : index
    %378 = vector.load %arg2[%c0_228, %c0_229, %c0_230] : memref<1x8x128xf32, #tpu.memory_space<vmem>>, vector<1x8x128xf32>
    %379 = vector.shape_cast %378 : vector<1x8x128xf32> to vector<8x128xf32>
    %c1_231 = arith.constant 1 : index
    %c0_232 = arith.constant 0 : index
    %c0_233 = arith.constant 0 : index
    %380 = vector.load %arg4[%c1_231, %c0_232, %c0_233] : memref<2x128x128xbf16, #tpu.memory_space<vmem>>, vector<1x128x128xbf16>
    %381 = vector.shape_cast %380 : vector<1x128x128xbf16> to vector<128x128xbf16>
    %382 = arith.truncf %379 : vector<8x128xf32> to vector<8x128xbf16>
    %cst_234 = arith.constant dense<0.000000e+00> : vector<8x128xf32>
    %383 = tpu.matmul %382, %381, %cst_234 {dimension_numbers = #tpu.dot_dimension_numbers<[1], [0], [0], [1], [0, 0, 1, 1], [], []>} : vector<8x128xbf16>, vector<128x128xbf16>, vector<8x128xf32> -> vector<8x128xf32>
    %c1_235 = arith.constant 1 : index
    %c0_236 = arith.constant 0 : index
    %c0_237 = arith.constant 0 : index
    %384 = vector.load %arg9[%c1_235, %c0_236, %c0_237] : memref<2x10x384xf32, #tpu.memory_space<vmem>>, vector<1x1x128xf32>
    %385 = vector.shape_cast %384 : vector<1x1x128xf32> to vector<1x128xf32>
    %386 = vector.broadcast %385 : vector<1x128xf32> to vector<8x128xf32>
    %387 = arith.addf %383, %386 : vector<8x128xf32>
    %388 = arith.addf %387, %0 : vector<8x128xf32>
    %c12 = arith.constant 12 : index
    %c0_238 = arith.constant 0 : index
    %c0_239 = arith.constant 0 : index
    %c0_240 = arith.constant 0 : index
    %389 = vector.load %arg5[%c12, %c0_238, %c0_239, %c0_240] : memref<24x8x16x128xbf16, #tpu.memory_space<vmem>>, vector<1x8x16x128xbf16>
    %390 = vector.shape_cast %389 : vector<1x8x16x128xbf16> to vector<8x16x128xbf16>
    %c9_241 = arith.constant 9 : index
    %c0_242 = arith.constant 0 : index
    %c0_243 = arith.constant 0 : index
    %c0_244 = arith.constant 0 : index
    %391 = vector.load %arg6[%c9_241, %c0_242, %c0_243, %c0_244] : memref<18x8x1x16xf32, #tpu.memory_space<vmem>>, vector<1x8x1x16xf32>
    %392 = vector.shape_cast %391 : vector<1x8x1x16xf32> to vector<8x1x16xf32>
    %c13 = arith.constant 13 : index
    %c0_245 = arith.constant 0 : index
    %c0_246 = arith.constant 0 : index
    %c0_247 = arith.constant 0 : index
    %393 = vector.load %arg5[%c13, %c0_245, %c0_246, %c0_247] : memref<24x8x16x128xbf16, #tpu.memory_space<vmem>>, vector<1x8x16x128xbf16>
    %394 = vector.shape_cast %393 : vector<1x8x16x128xbf16> to vector<8x16x128xbf16>
    %c10_248 = arith.constant 10 : index
    %c0_249 = arith.constant 0 : index
    %c0_250 = arith.constant 0 : index
    %c0_251 = arith.constant 0 : index
    %395 = vector.load %arg6[%c10_248, %c0_249, %c0_250, %c0_251] : memref<18x8x1x16xf32, #tpu.memory_space<vmem>>, vector<1x8x1x16xf32>
    %396 = vector.shape_cast %395 : vector<1x8x1x16xf32> to vector<8x1x16xf32>
    %c14 = arith.constant 14 : index
    %c0_252 = arith.constant 0 : index
    %c0_253 = arith.constant 0 : index
    %c0_254 = arith.constant 0 : index
    %397 = vector.load %arg5[%c14, %c0_252, %c0_253, %c0_254] : memref<24x8x16x128xbf16, #tpu.memory_space<vmem>>, vector<1x8x16x128xbf16>
    %398 = vector.shape_cast %397 : vector<1x8x16x128xbf16> to vector<8x16x128xbf16>
    %c11_255 = arith.constant 11 : index
    %c0_256 = arith.constant 0 : index
    %c0_257 = arith.constant 0 : index
    %c0_258 = arith.constant 0 : index
    %399 = vector.load %arg6[%c11_255, %c0_256, %c0_257, %c0_258] : memref<18x8x1x16xf32, #tpu.memory_space<vmem>>, vector<1x8x1x16xf32>
    %400 = vector.shape_cast %399 : vector<1x8x1x16xf32> to vector<8x1x16xf32>
    %c15 = arith.constant 15 : index
    %c0_259 = arith.constant 0 : index
    %c0_260 = arith.constant 0 : index
    %c0_261 = arith.constant 0 : index
    %401 = vector.load %arg5[%c15, %c0_259, %c0_260, %c0_261] : memref<24x8x16x128xbf16, #tpu.memory_space<vmem>>, vector<1x8x16x128xbf16>
    %402 = vector.shape_cast %401 : vector<1x8x16x128xbf16> to vector<8x16x128xbf16>
    %c1_262 = arith.constant 1 : index
    %c1_263 = arith.constant 1 : index
    %c0_264 = arith.constant 0 : index
    %403 = vector.load %arg9[%c1_262, %c1_263, %c0_264] : memref<2x10x384xf32, #tpu.memory_space<vmem>>, vector<1x1x128xf32>
    %404 = vector.shape_cast %403 : vector<1x1x128xf32> to vector<1x128xf32>
    %405 = arith.truncf %388 : vector<8x128xf32> to vector<8x128xbf16>
    %406 = vector.shape_cast %405 : vector<8x128xbf16> to vector<1x8x128xbf16>
    %407 = vector.shape_cast %406 : vector<1x8x128xbf16> to vector<1x8x128xbf16>
    %408 = vector.broadcast %407 : vector<1x8x128xbf16> to vector<8x8x128xbf16>
    %409 = arith.truncf %388 : vector<8x128xf32> to vector<8x128xbf16>
    %410 = vector.shape_cast %409 : vector<8x128xbf16> to vector<1x8x128xbf16>
    %411 = vector.shape_cast %410 : vector<1x8x128xbf16> to vector<1x8x128xbf16>
    %412 = vector.broadcast %411 : vector<1x8x128xbf16> to vector<8x8x128xbf16>
    "tpu.trace_start"() <{level = 10 : i32, message = "hse,hde->hsd"}> : () -> ()
    %cst_265 = arith.constant dense<0.000000e+00> : vector<8x8x16xf32>
    %413 = tpu.matmul %408, %390, %cst_265 {dimension_numbers = #tpu.dot_dimension_numbers<[2], [2], [1], [1], [0, 0, 0, 1, 1, 1], [0], [0]>} : vector<8x8x128xbf16>, vector<8x16x128xbf16>, vector<8x8x16xf32> -> vector<8x8x16xf32>
    "tpu.trace_stop"() : () -> ()
    %414 = vector.broadcast %392 : vector<8x1x16xf32> to vector<8x8x16xf32>
    %415 = arith.addf %413, %414 : vector<8x8x16xf32>
    "tpu.trace_start"() <{level = 10 : i32, message = "hse,hde->hsd"}> : () -> ()
    %cst_266 = arith.constant dense<0.000000e+00> : vector<8x8x16xf32>
    %416 = tpu.matmul %412, %394, %cst_266 {dimension_numbers = #tpu.dot_dimension_numbers<[2], [2], [1], [1], [0, 0, 0, 1, 1, 1], [0], [0]>} : vector<8x8x128xbf16>, vector<8x16x128xbf16>, vector<8x8x16xf32> -> vector<8x8x16xf32>
    "tpu.trace_stop"() : () -> ()
    %417 = vector.broadcast %396 : vector<8x1x16xf32> to vector<8x8x16xf32>
    %418 = arith.addf %416, %417 : vector<8x8x16xf32>
    "tpu.trace_start"() <{level = 10 : i32, message = "hse,hde->hsd"}> : () -> ()
    %cst_267 = arith.constant dense<0.000000e+00> : vector<8x8x16xf32>
    %419 = tpu.matmul %412, %398, %cst_267 {dimension_numbers = #tpu.dot_dimension_numbers<[2], [2], [1], [1], [0, 0, 0, 1, 1, 1], [0], [0]>} : vector<8x8x128xbf16>, vector<8x16x128xbf16>, vector<8x8x16xf32> -> vector<8x8x16xf32>
    "tpu.trace_stop"() : () -> ()
    %420 = vector.broadcast %400 : vector<8x1x16xf32> to vector<8x8x16xf32>
    %421 = arith.addf %419, %420 : vector<8x8x16xf32>
    %422 = arith.truncf %415 : vector<8x8x16xf32> to vector<8x8x16xbf16>
    %423 = arith.truncf %418 : vector<8x8x16xf32> to vector<8x8x16xbf16>
    "tpu.trace_start"() <{level = 10 : i32, message = "hqd,hkd->hqk"}> : () -> ()
    %cst_268 = arith.constant dense<0.000000e+00> : vector<8x8x8xf32>
    %424 = tpu.matmul %422, %423, %cst_268 {dimension_numbers = #tpu.dot_dimension_numbers<[2], [2], [1], [1], [0, 0, 0, 1, 1, 1], [0], [0]>} : vector<8x8x16xbf16>, vector<8x8x16xbf16>, vector<8x8x8xf32> -> vector<8x8x8xf32>
    "tpu.trace_stop"() : () -> ()
    %cst_269 = arith.constant dense<0xFF800000> : vector<8x8xf32>
    %425 = vector.multi_reduction <maximumf>, %424, %cst_269 [2] : vector<8x8x8xf32> to vector<8x8xf32>
    %426 = vector.shape_cast %425 : vector<8x8xf32> to vector<8x8x1xf32>
    %427 = vector.broadcast %426 : vector<8x8x1xf32> to vector<8x8x8xf32>
    %428 = arith.subf %424, %427 : vector<8x8x8xf32>
    %429 = math.exp %428 : vector<8x8x8xf32>
    %cst_270 = arith.constant dense<0.000000e+00> : vector<8x8xf32>
    %430 = vector.multi_reduction <add>, %429, %cst_270 [2] : vector<8x8x8xf32> to vector<8x8xf32>
    %431 = vector.shape_cast %430 : vector<8x8xf32> to vector<8x8x1xf32>
    %432 = tpu.reciprocal %431 {approx = true} : vector<8x8x1xf32> -> vector<8x8x1xf32>
    %433 = vector.broadcast %432 : vector<8x8x1xf32> to vector<8x8x8xf32>
    %434 = arith.mulf %429, %433 : vector<8x8x8xf32>
    %435 = arith.truncf %434 : vector<8x8x8xf32> to vector<8x8x8xbf16>
    %436 = arith.truncf %421 : vector<8x8x16xf32> to vector<8x8x16xbf16>
    "tpu.trace_start"() <{level = 10 : i32, message = "hqk,hkd->hqd"}> : () -> ()
    %cst_271 = arith.constant dense<0.000000e+00> : vector<8x8x16xf32>
    %437 = tpu.matmul %435, %436, %cst_271 {dimension_numbers = #tpu.dot_dimension_numbers<[2], [1], [1], [2], [0, 0, 0, 1, 1, 2], [0], [0]>} : vector<8x8x8xbf16>, vector<8x8x16xbf16>, vector<8x8x16xf32> -> vector<8x8x16xf32>
    "tpu.trace_stop"() : () -> ()
    %438 = arith.truncf %437 : vector<8x8x16xf32> to vector<8x8x16xbf16>
    "tpu.trace_start"() <{level = 10 : i32, message = "hqd,hde->hqe"}> : () -> ()
    %cst_272 = arith.constant dense<0.000000e+00> : vector<8x8x128xf32>
    %439 = tpu.matmul %438, %402, %cst_272 {dimension_numbers = #tpu.dot_dimension_numbers<[2], [1], [1], [2], [0, 0, 0, 1, 1, 2], [0], [0]>} : vector<8x8x16xbf16>, vector<8x16x128xbf16>, vector<8x8x128xf32> -> vector<8x8x128xf32>
    "tpu.trace_stop"() : () -> ()
    %cst_273 = arith.constant dense<0.000000e+00> : vector<8x128xf32>
    %440 = vector.multi_reduction <add>, %439, %cst_273 [0] : vector<8x8x128xf32> to vector<8x128xf32>
    %441 = vector.broadcast %404 : vector<1x128xf32> to vector<8x128xf32>
    %442 = arith.addf %440, %441 : vector<8x128xf32>
    %443 = arith.addf %388, %442 : vector<8x128xf32>
    %c1_274 = arith.constant 1 : index
    %c1_275 = arith.constant 1 : index
    %c128_276 = arith.constant 128 : index
    %444 = vector.load %arg9[%c1_274, %c1_275, %c128_276] : memref<2x10x384xf32, #tpu.memory_space<vmem>>, vector<1x1x128xf32>
    %445 = vector.shape_cast %444 : vector<1x1x128xf32> to vector<1x128xf32>
    %c1_277 = arith.constant 1 : index
    %c1_278 = arith.constant 1 : index
    %c256_279 = arith.constant 256 : index
    %446 = vector.load %arg9[%c1_277, %c1_278, %c256_279] : memref<2x10x384xf32, #tpu.memory_space<vmem>>, vector<1x1x128xf32>
    %447 = vector.shape_cast %446 : vector<1x1x128xf32> to vector<1x128xf32>
    %cst_280 = arith.constant dense<0.000000e+00> : vector<8xf32>
    %448 = vector.multi_reduction <add>, %443, %cst_280 [1] : vector<8x128xf32> to vector<8xf32>
    %449 = vector.shape_cast %448 : vector<8xf32> to vector<8x1xf32>
    %cst_281 = arith.constant 1.280000e+02 : f32
    %450 = vector.broadcast %cst_281 : f32 to vector<8x1xf32>
    %451 = arith.divf %449, %450 : vector<8x1xf32>
    %452 = vector.broadcast %451 : vector<8x1xf32> to vector<8x128xf32>
    %453 = arith.subf %443, %452 : vector<8x128xf32>
    %454 = arith.mulf %453, %453 : vector<8x128xf32>
    %cst_282 = arith.constant dense<0.000000e+00> : vector<8xf32>
    %455 = vector.multi_reduction <add>, %454, %cst_282 [1] : vector<8x128xf32> to vector<8xf32>
    %456 = vector.shape_cast %455 : vector<8xf32> to vector<8x1xf32>
    %cst_283 = arith.constant 1.280000e+02 : f32
    %457 = vector.broadcast %cst_283 : f32 to vector<8x1xf32>
    %458 = arith.divf %456, %457 : vector<8x1xf32>
    %cst_284 = arith.constant 9.99999974E-6 : f32
    %459 = vector.broadcast %cst_284 : f32 to vector<8x1xf32>
    %460 = arith.addf %458, %459 : vector<8x1xf32>
    %461 = math.rsqrt %460 : vector<8x1xf32>
    %462 = vector.broadcast %461 : vector<8x1xf32> to vector<8x128xf32>
    %463 = arith.mulf %453, %462 : vector<8x128xf32>
    %464 = vector.broadcast %445 : vector<1x128xf32> to vector<8x128xf32>
    %465 = arith.mulf %463, %464 : vector<8x128xf32>
    %466 = vector.broadcast %447 : vector<1x128xf32> to vector<8x128xf32>
    %467 = arith.addf %465, %466 : vector<8x128xf32>
    %c3_285 = arith.constant 3 : index
    %c0_286 = arith.constant 0 : index
    %c0_287 = arith.constant 0 : index
    %468 = vector.load %arg7[%c3_285, %c0_286, %c0_287] : memref<6x128x256xbf16, #tpu.memory_space<vmem>>, vector<1x128x256xbf16>
    %469 = vector.shape_cast %468 : vector<1x128x256xbf16> to vector<128x256xbf16>
    %470 = arith.truncf %467 : vector<8x128xf32> to vector<8x128xbf16>
    %cst_288 = arith.constant dense<0.000000e+00> : vector<8x256xf32>
    %471 = tpu.matmul %470, %469, %cst_288 {dimension_numbers = #tpu.dot_dimension_numbers<[1], [0], [0], [1], [0, 0, 1, 1], [], []>} : vector<8x128xbf16>, vector<128x256xbf16>, vector<8x256xf32> -> vector<8x256xf32>
    %c1_289 = arith.constant 1 : index
    %c2_290 = arith.constant 2 : index
    %c0_291 = arith.constant 0 : index
    %472 = vector.load %arg9[%c1_289, %c2_290, %c0_291] : memref<2x10x384xf32, #tpu.memory_space<vmem>>, vector<1x1x256xf32>
    %473 = vector.shape_cast %472 : vector<1x1x256xf32> to vector<1x256xf32>
    %474 = vector.broadcast %473 : vector<1x256xf32> to vector<8x256xf32>
    %475 = arith.addf %471, %474 : vector<8x256xf32>
    %cst_292 = arith.constant 0.000000e+00 : f32
    %476 = vector.broadcast %cst_292 : f32 to vector<8x256xf32>
    %477 = arith.maximumf %475, %476 : vector<8x256xf32>
    %c3_293 = arith.constant 3 : index
    %c0_294 = arith.constant 0 : index
    %c0_295 = arith.constant 0 : index
    %478 = vector.load %arg8[%c3_293, %c0_294, %c0_295] : memref<6x256x128xbf16, #tpu.memory_space<vmem>>, vector<1x256x128xbf16>
    %479 = vector.shape_cast %478 : vector<1x256x128xbf16> to vector<256x128xbf16>
    %480 = arith.truncf %477 : vector<8x256xf32> to vector<8x256xbf16>
    %cst_296 = arith.constant dense<0.000000e+00> : vector<8x128xf32>
    %481 = tpu.matmul %480, %479, %cst_296 {dimension_numbers = #tpu.dot_dimension_numbers<[1], [0], [0], [1], [0, 0, 1, 1], [], []>} : vector<8x256xbf16>, vector<256x128xbf16>, vector<8x128xf32> -> vector<8x128xf32>
    %c1_297 = arith.constant 1 : index
    %c2_298 = arith.constant 2 : index
    %c256_299 = arith.constant 256 : index
    %482 = vector.load %arg9[%c1_297, %c2_298, %c256_299] : memref<2x10x384xf32, #tpu.memory_space<vmem>>, vector<1x1x128xf32>
    %483 = vector.shape_cast %482 : vector<1x1x128xf32> to vector<1x128xf32>
    %484 = vector.broadcast %483 : vector<1x128xf32> to vector<8x128xf32>
    %485 = arith.addf %481, %484 : vector<8x128xf32>
    %486 = arith.addf %467, %485 : vector<8x128xf32>
    %c1_300 = arith.constant 1 : index
    %c3_301 = arith.constant 3 : index
    %c0_302 = arith.constant 0 : index
    %487 = vector.load %arg9[%c1_300, %c3_301, %c0_302] : memref<2x10x384xf32, #tpu.memory_space<vmem>>, vector<1x1x128xf32>
    %488 = vector.shape_cast %487 : vector<1x1x128xf32> to vector<1x128xf32>
    %c1_303 = arith.constant 1 : index
    %c3_304 = arith.constant 3 : index
    %c128_305 = arith.constant 128 : index
    %489 = vector.load %arg9[%c1_303, %c3_304, %c128_305] : memref<2x10x384xf32, #tpu.memory_space<vmem>>, vector<1x1x128xf32>
    %490 = vector.shape_cast %489 : vector<1x1x128xf32> to vector<1x128xf32>
    %cst_306 = arith.constant dense<0.000000e+00> : vector<8xf32>
    %491 = vector.multi_reduction <add>, %486, %cst_306 [1] : vector<8x128xf32> to vector<8xf32>
    %492 = vector.shape_cast %491 : vector<8xf32> to vector<8x1xf32>
    %cst_307 = arith.constant 1.280000e+02 : f32
    %493 = vector.broadcast %cst_307 : f32 to vector<8x1xf32>
    %494 = arith.divf %492, %493 : vector<8x1xf32>
    %495 = vector.broadcast %494 : vector<8x1xf32> to vector<8x128xf32>
    %496 = arith.subf %486, %495 : vector<8x128xf32>
    %497 = arith.mulf %496, %496 : vector<8x128xf32>
    %cst_308 = arith.constant dense<0.000000e+00> : vector<8xf32>
    %498 = vector.multi_reduction <add>, %497, %cst_308 [1] : vector<8x128xf32> to vector<8xf32>
    %499 = vector.shape_cast %498 : vector<8xf32> to vector<8x1xf32>
    %cst_309 = arith.constant 1.280000e+02 : f32
    %500 = vector.broadcast %cst_309 : f32 to vector<8x1xf32>
    %501 = arith.divf %499, %500 : vector<8x1xf32>
    %cst_310 = arith.constant 9.99999974E-6 : f32
    %502 = vector.broadcast %cst_310 : f32 to vector<8x1xf32>
    %503 = arith.addf %501, %502 : vector<8x1xf32>
    %504 = math.rsqrt %503 : vector<8x1xf32>
    %505 = vector.broadcast %504 : vector<8x1xf32> to vector<8x128xf32>
    %506 = arith.mulf %496, %505 : vector<8x128xf32>
    %507 = vector.broadcast %488 : vector<1x128xf32> to vector<8x128xf32>
    %508 = arith.mulf %506, %507 : vector<8x128xf32>
    %509 = vector.broadcast %490 : vector<1x128xf32> to vector<8x128xf32>
    %510 = arith.addf %508, %509 : vector<8x128xf32>
    %c16 = arith.constant 16 : index
    %c0_311 = arith.constant 0 : index
    %c0_312 = arith.constant 0 : index
    %c0_313 = arith.constant 0 : index
    %511 = vector.load %arg5[%c16, %c0_311, %c0_312, %c0_313] : memref<24x8x16x128xbf16, #tpu.memory_space<vmem>>, vector<1x8x16x128xbf16>
    %512 = vector.shape_cast %511 : vector<1x8x16x128xbf16> to vector<8x16x128xbf16>
    %c12_314 = arith.constant 12 : index
    %c0_315 = arith.constant 0 : index
    %c0_316 = arith.constant 0 : index
    %c0_317 = arith.constant 0 : index
    %513 = vector.load %arg6[%c12_314, %c0_315, %c0_316, %c0_317] : memref<18x8x1x16xf32, #tpu.memory_space<vmem>>, vector<1x8x1x16xf32>
    %514 = vector.shape_cast %513 : vector<1x8x1x16xf32> to vector<8x1x16xf32>
    %c17 = arith.constant 17 : index
    %c0_318 = arith.constant 0 : index
    %c0_319 = arith.constant 0 : index
    %c0_320 = arith.constant 0 : index
    %515 = vector.load %arg5[%c17, %c0_318, %c0_319, %c0_320] : memref<24x8x16x128xbf16, #tpu.memory_space<vmem>>, vector<1x8x16x128xbf16>
    %516 = vector.shape_cast %515 : vector<1x8x16x128xbf16> to vector<8x16x128xbf16>
    %c13_321 = arith.constant 13 : index
    %c0_322 = arith.constant 0 : index
    %c0_323 = arith.constant 0 : index
    %c0_324 = arith.constant 0 : index
    %517 = vector.load %arg6[%c13_321, %c0_322, %c0_323, %c0_324] : memref<18x8x1x16xf32, #tpu.memory_space<vmem>>, vector<1x8x1x16xf32>
    %518 = vector.shape_cast %517 : vector<1x8x1x16xf32> to vector<8x1x16xf32>
    %c18 = arith.constant 18 : index
    %c0_325 = arith.constant 0 : index
    %c0_326 = arith.constant 0 : index
    %c0_327 = arith.constant 0 : index
    %519 = vector.load %arg5[%c18, %c0_325, %c0_326, %c0_327] : memref<24x8x16x128xbf16, #tpu.memory_space<vmem>>, vector<1x8x16x128xbf16>
    %520 = vector.shape_cast %519 : vector<1x8x16x128xbf16> to vector<8x16x128xbf16>
    %c14_328 = arith.constant 14 : index
    %c0_329 = arith.constant 0 : index
    %c0_330 = arith.constant 0 : index
    %c0_331 = arith.constant 0 : index
    %521 = vector.load %arg6[%c14_328, %c0_329, %c0_330, %c0_331] : memref<18x8x1x16xf32, #tpu.memory_space<vmem>>, vector<1x8x1x16xf32>
    %522 = vector.shape_cast %521 : vector<1x8x1x16xf32> to vector<8x1x16xf32>
    %c19 = arith.constant 19 : index
    %c0_332 = arith.constant 0 : index
    %c0_333 = arith.constant 0 : index
    %c0_334 = arith.constant 0 : index
    %523 = vector.load %arg5[%c19, %c0_332, %c0_333, %c0_334] : memref<24x8x16x128xbf16, #tpu.memory_space<vmem>>, vector<1x8x16x128xbf16>
    %524 = vector.shape_cast %523 : vector<1x8x16x128xbf16> to vector<8x16x128xbf16>
    %c1_335 = arith.constant 1 : index
    %c4_336 = arith.constant 4 : index
    %c0_337 = arith.constant 0 : index
    %525 = vector.load %arg9[%c1_335, %c4_336, %c0_337] : memref<2x10x384xf32, #tpu.memory_space<vmem>>, vector<1x1x128xf32>
    %526 = vector.shape_cast %525 : vector<1x1x128xf32> to vector<1x128xf32>
    %527 = arith.truncf %510 : vector<8x128xf32> to vector<8x128xbf16>
    %528 = vector.shape_cast %527 : vector<8x128xbf16> to vector<1x8x128xbf16>
    %529 = vector.shape_cast %528 : vector<1x8x128xbf16> to vector<1x8x128xbf16>
    %530 = vector.broadcast %529 : vector<1x8x128xbf16> to vector<8x8x128xbf16>
    %531 = arith.truncf %510 : vector<8x128xf32> to vector<8x128xbf16>
    %532 = vector.shape_cast %531 : vector<8x128xbf16> to vector<1x8x128xbf16>
    %533 = vector.shape_cast %532 : vector<1x8x128xbf16> to vector<1x8x128xbf16>
    %534 = vector.broadcast %533 : vector<1x8x128xbf16> to vector<8x8x128xbf16>
    "tpu.trace_start"() <{level = 10 : i32, message = "hse,hde->hsd"}> : () -> ()
    %cst_338 = arith.constant dense<0.000000e+00> : vector<8x8x16xf32>
    %535 = tpu.matmul %530, %512, %cst_338 {dimension_numbers = #tpu.dot_dimension_numbers<[2], [2], [1], [1], [0, 0, 0, 1, 1, 1], [0], [0]>} : vector<8x8x128xbf16>, vector<8x16x128xbf16>, vector<8x8x16xf32> -> vector<8x8x16xf32>
    "tpu.trace_stop"() : () -> ()
    %536 = vector.broadcast %514 : vector<8x1x16xf32> to vector<8x8x16xf32>
    %537 = arith.addf %535, %536 : vector<8x8x16xf32>
    "tpu.trace_start"() <{level = 10 : i32, message = "hse,hde->hsd"}> : () -> ()
    %cst_339 = arith.constant dense<0.000000e+00> : vector<8x8x16xf32>
    %538 = tpu.matmul %534, %516, %cst_339 {dimension_numbers = #tpu.dot_dimension_numbers<[2], [2], [1], [1], [0, 0, 0, 1, 1, 1], [0], [0]>} : vector<8x8x128xbf16>, vector<8x16x128xbf16>, vector<8x8x16xf32> -> vector<8x8x16xf32>
    "tpu.trace_stop"() : () -> ()
    %539 = vector.broadcast %518 : vector<8x1x16xf32> to vector<8x8x16xf32>
    %540 = arith.addf %538, %539 : vector<8x8x16xf32>
    "tpu.trace_start"() <{level = 10 : i32, message = "hse,hde->hsd"}> : () -> ()
    %cst_340 = arith.constant dense<0.000000e+00> : vector<8x8x16xf32>
    %541 = tpu.matmul %534, %520, %cst_340 {dimension_numbers = #tpu.dot_dimension_numbers<[2], [2], [1], [1], [0, 0, 0, 1, 1, 1], [0], [0]>} : vector<8x8x128xbf16>, vector<8x16x128xbf16>, vector<8x8x16xf32> -> vector<8x8x16xf32>
    "tpu.trace_stop"() : () -> ()
    %542 = vector.broadcast %522 : vector<8x1x16xf32> to vector<8x8x16xf32>
    %543 = arith.addf %541, %542 : vector<8x8x16xf32>
    %544 = arith.truncf %537 : vector<8x8x16xf32> to vector<8x8x16xbf16>
    %545 = arith.truncf %540 : vector<8x8x16xf32> to vector<8x8x16xbf16>
    "tpu.trace_start"() <{level = 10 : i32, message = "hqd,hkd->hqk"}> : () -> ()
    %cst_341 = arith.constant dense<0.000000e+00> : vector<8x8x8xf32>
    %546 = tpu.matmul %544, %545, %cst_341 {dimension_numbers = #tpu.dot_dimension_numbers<[2], [2], [1], [1], [0, 0, 0, 1, 1, 1], [0], [0]>} : vector<8x8x16xbf16>, vector<8x8x16xbf16>, vector<8x8x8xf32> -> vector<8x8x8xf32>
    "tpu.trace_stop"() : () -> ()
    %cst_342 = arith.constant dense<0xFF800000> : vector<8x8xf32>
    %547 = vector.multi_reduction <maximumf>, %546, %cst_342 [2] : vector<8x8x8xf32> to vector<8x8xf32>
    %548 = vector.shape_cast %547 : vector<8x8xf32> to vector<8x8x1xf32>
    %549 = vector.broadcast %548 : vector<8x8x1xf32> to vector<8x8x8xf32>
    %550 = arith.subf %546, %549 : vector<8x8x8xf32>
    %551 = math.exp %550 : vector<8x8x8xf32>
    %cst_343 = arith.constant dense<0.000000e+00> : vector<8x8xf32>
    %552 = vector.multi_reduction <add>, %551, %cst_343 [2] : vector<8x8x8xf32> to vector<8x8xf32>
    %553 = vector.shape_cast %552 : vector<8x8xf32> to vector<8x8x1xf32>
    %554 = tpu.reciprocal %553 {approx = true} : vector<8x8x1xf32> -> vector<8x8x1xf32>
    %555 = vector.broadcast %554 : vector<8x8x1xf32> to vector<8x8x8xf32>
    %556 = arith.mulf %551, %555 : vector<8x8x8xf32>
    %557 = arith.truncf %556 : vector<8x8x8xf32> to vector<8x8x8xbf16>
    %558 = arith.truncf %543 : vector<8x8x16xf32> to vector<8x8x16xbf16>
    "tpu.trace_start"() <{level = 10 : i32, message = "hqk,hkd->hqd"}> : () -> ()
    %cst_344 = arith.constant dense<0.000000e+00> : vector<8x8x16xf32>
    %559 = tpu.matmul %557, %558, %cst_344 {dimension_numbers = #tpu.dot_dimension_numbers<[2], [1], [1], [2], [0, 0, 0, 1, 1, 2], [0], [0]>} : vector<8x8x8xbf16>, vector<8x8x16xbf16>, vector<8x8x16xf32> -> vector<8x8x16xf32>
    "tpu.trace_stop"() : () -> ()
    %560 = arith.truncf %559 : vector<8x8x16xf32> to vector<8x8x16xbf16>
    "tpu.trace_start"() <{level = 10 : i32, message = "hqd,hde->hqe"}> : () -> ()
    %cst_345 = arith.constant dense<0.000000e+00> : vector<8x8x128xf32>
    %561 = tpu.matmul %560, %524, %cst_345 {dimension_numbers = #tpu.dot_dimension_numbers<[2], [1], [1], [2], [0, 0, 0, 1, 1, 2], [0], [0]>} : vector<8x8x16xbf16>, vector<8x16x128xbf16>, vector<8x8x128xf32> -> vector<8x8x128xf32>
    "tpu.trace_stop"() : () -> ()
    %cst_346 = arith.constant dense<0.000000e+00> : vector<8x128xf32>
    %562 = vector.multi_reduction <add>, %561, %cst_346 [0] : vector<8x8x128xf32> to vector<8x128xf32>
    %563 = vector.broadcast %526 : vector<1x128xf32> to vector<8x128xf32>
    %564 = arith.addf %562, %563 : vector<8x128xf32>
    %565 = arith.addf %510, %564 : vector<8x128xf32>
    %c1_347 = arith.constant 1 : index
    %c4_348 = arith.constant 4 : index
    %c128_349 = arith.constant 128 : index
    %566 = vector.load %arg9[%c1_347, %c4_348, %c128_349] : memref<2x10x384xf32, #tpu.memory_space<vmem>>, vector<1x1x128xf32>
    %567 = vector.shape_cast %566 : vector<1x1x128xf32> to vector<1x128xf32>
    %c1_350 = arith.constant 1 : index
    %c4_351 = arith.constant 4 : index
    %c256_352 = arith.constant 256 : index
    %568 = vector.load %arg9[%c1_350, %c4_351, %c256_352] : memref<2x10x384xf32, #tpu.memory_space<vmem>>, vector<1x1x128xf32>
    %569 = vector.shape_cast %568 : vector<1x1x128xf32> to vector<1x128xf32>
    %cst_353 = arith.constant dense<0.000000e+00> : vector<8xf32>
    %570 = vector.multi_reduction <add>, %565, %cst_353 [1] : vector<8x128xf32> to vector<8xf32>
    %571 = vector.shape_cast %570 : vector<8xf32> to vector<8x1xf32>
    %cst_354 = arith.constant 1.280000e+02 : f32
    %572 = vector.broadcast %cst_354 : f32 to vector<8x1xf32>
    %573 = arith.divf %571, %572 : vector<8x1xf32>
    %574 = vector.broadcast %573 : vector<8x1xf32> to vector<8x128xf32>
    %575 = arith.subf %565, %574 : vector<8x128xf32>
    %576 = arith.mulf %575, %575 : vector<8x128xf32>
    %cst_355 = arith.constant dense<0.000000e+00> : vector<8xf32>
    %577 = vector.multi_reduction <add>, %576, %cst_355 [1] : vector<8x128xf32> to vector<8xf32>
    %578 = vector.shape_cast %577 : vector<8xf32> to vector<8x1xf32>
    %cst_356 = arith.constant 1.280000e+02 : f32
    %579 = vector.broadcast %cst_356 : f32 to vector<8x1xf32>
    %580 = arith.divf %578, %579 : vector<8x1xf32>
    %cst_357 = arith.constant 9.99999974E-6 : f32
    %581 = vector.broadcast %cst_357 : f32 to vector<8x1xf32>
    %582 = arith.addf %580, %581 : vector<8x1xf32>
    %583 = math.rsqrt %582 : vector<8x1xf32>
    %584 = vector.broadcast %583 : vector<8x1xf32> to vector<8x128xf32>
    %585 = arith.mulf %575, %584 : vector<8x128xf32>
    %586 = vector.broadcast %567 : vector<1x128xf32> to vector<8x128xf32>
    %587 = arith.mulf %585, %586 : vector<8x128xf32>
    %588 = vector.broadcast %569 : vector<1x128xf32> to vector<8x128xf32>
    %589 = arith.addf %587, %588 : vector<8x128xf32>
    %c4_358 = arith.constant 4 : index
    %c0_359 = arith.constant 0 : index
    %c0_360 = arith.constant 0 : index
    %590 = vector.load %arg7[%c4_358, %c0_359, %c0_360] : memref<6x128x256xbf16, #tpu.memory_space<vmem>>, vector<1x128x256xbf16>
    %591 = vector.shape_cast %590 : vector<1x128x256xbf16> to vector<128x256xbf16>
    %592 = arith.truncf %589 : vector<8x128xf32> to vector<8x128xbf16>
    %cst_361 = arith.constant dense<0.000000e+00> : vector<8x256xf32>
    %593 = tpu.matmul %592, %591, %cst_361 {dimension_numbers = #tpu.dot_dimension_numbers<[1], [0], [0], [1], [0, 0, 1, 1], [], []>} : vector<8x128xbf16>, vector<128x256xbf16>, vector<8x256xf32> -> vector<8x256xf32>
    %c1_362 = arith.constant 1 : index
    %c5_363 = arith.constant 5 : index
    %c0_364 = arith.constant 0 : index
    %594 = vector.load %arg9[%c1_362, %c5_363, %c0_364] : memref<2x10x384xf32, #tpu.memory_space<vmem>>, vector<1x1x256xf32>
    %595 = vector.shape_cast %594 : vector<1x1x256xf32> to vector<1x256xf32>
    %596 = vector.broadcast %595 : vector<1x256xf32> to vector<8x256xf32>
    %597 = arith.addf %593, %596 : vector<8x256xf32>
    %cst_365 = arith.constant 0.000000e+00 : f32
    %598 = vector.broadcast %cst_365 : f32 to vector<8x256xf32>
    %599 = arith.maximumf %597, %598 : vector<8x256xf32>
    %c4_366 = arith.constant 4 : index
    %c0_367 = arith.constant 0 : index
    %c0_368 = arith.constant 0 : index
    %600 = vector.load %arg8[%c4_366, %c0_367, %c0_368] : memref<6x256x128xbf16, #tpu.memory_space<vmem>>, vector<1x256x128xbf16>
    %601 = vector.shape_cast %600 : vector<1x256x128xbf16> to vector<256x128xbf16>
    %602 = arith.truncf %599 : vector<8x256xf32> to vector<8x256xbf16>
    %cst_369 = arith.constant dense<0.000000e+00> : vector<8x128xf32>
    %603 = tpu.matmul %602, %601, %cst_369 {dimension_numbers = #tpu.dot_dimension_numbers<[1], [0], [0], [1], [0, 0, 1, 1], [], []>} : vector<8x256xbf16>, vector<256x128xbf16>, vector<8x128xf32> -> vector<8x128xf32>
    %c1_370 = arith.constant 1 : index
    %c5_371 = arith.constant 5 : index
    %c256_372 = arith.constant 256 : index
    %604 = vector.load %arg9[%c1_370, %c5_371, %c256_372] : memref<2x10x384xf32, #tpu.memory_space<vmem>>, vector<1x1x128xf32>
    %605 = vector.shape_cast %604 : vector<1x1x128xf32> to vector<1x128xf32>
    %606 = vector.broadcast %605 : vector<1x128xf32> to vector<8x128xf32>
    %607 = arith.addf %603, %606 : vector<8x128xf32>
    %608 = arith.addf %589, %607 : vector<8x128xf32>
    %c1_373 = arith.constant 1 : index
    %c6_374 = arith.constant 6 : index
    %c0_375 = arith.constant 0 : index
    %609 = vector.load %arg9[%c1_373, %c6_374, %c0_375] : memref<2x10x384xf32, #tpu.memory_space<vmem>>, vector<1x1x128xf32>
    %610 = vector.shape_cast %609 : vector<1x1x128xf32> to vector<1x128xf32>
    %c1_376 = arith.constant 1 : index
    %c6_377 = arith.constant 6 : index
    %c128_378 = arith.constant 128 : index
    %611 = vector.load %arg9[%c1_376, %c6_377, %c128_378] : memref<2x10x384xf32, #tpu.memory_space<vmem>>, vector<1x1x128xf32>
    %612 = vector.shape_cast %611 : vector<1x1x128xf32> to vector<1x128xf32>
    %cst_379 = arith.constant dense<0.000000e+00> : vector<8xf32>
    %613 = vector.multi_reduction <add>, %608, %cst_379 [1] : vector<8x128xf32> to vector<8xf32>
    %614 = vector.shape_cast %613 : vector<8xf32> to vector<8x1xf32>
    %cst_380 = arith.constant 1.280000e+02 : f32
    %615 = vector.broadcast %cst_380 : f32 to vector<8x1xf32>
    %616 = arith.divf %614, %615 : vector<8x1xf32>
    %617 = vector.broadcast %616 : vector<8x1xf32> to vector<8x128xf32>
    %618 = arith.subf %608, %617 : vector<8x128xf32>
    %619 = arith.mulf %618, %618 : vector<8x128xf32>
    %cst_381 = arith.constant dense<0.000000e+00> : vector<8xf32>
    %620 = vector.multi_reduction <add>, %619, %cst_381 [1] : vector<8x128xf32> to vector<8xf32>
    %621 = vector.shape_cast %620 : vector<8xf32> to vector<8x1xf32>
    %cst_382 = arith.constant 1.280000e+02 : f32
    %622 = vector.broadcast %cst_382 : f32 to vector<8x1xf32>
    %623 = arith.divf %621, %622 : vector<8x1xf32>
    %cst_383 = arith.constant 9.99999974E-6 : f32
    %624 = vector.broadcast %cst_383 : f32 to vector<8x1xf32>
    %625 = arith.addf %623, %624 : vector<8x1xf32>
    %626 = math.rsqrt %625 : vector<8x1xf32>
    %627 = vector.broadcast %626 : vector<8x1xf32> to vector<8x128xf32>
    %628 = arith.mulf %618, %627 : vector<8x128xf32>
    %629 = vector.broadcast %610 : vector<1x128xf32> to vector<8x128xf32>
    %630 = arith.mulf %628, %629 : vector<8x128xf32>
    %631 = vector.broadcast %612 : vector<1x128xf32> to vector<8x128xf32>
    %632 = arith.addf %630, %631 : vector<8x128xf32>
    %c20 = arith.constant 20 : index
    %c0_384 = arith.constant 0 : index
    %c0_385 = arith.constant 0 : index
    %c0_386 = arith.constant 0 : index
    %633 = vector.load %arg5[%c20, %c0_384, %c0_385, %c0_386] : memref<24x8x16x128xbf16, #tpu.memory_space<vmem>>, vector<1x8x16x128xbf16>
    %634 = vector.shape_cast %633 : vector<1x8x16x128xbf16> to vector<8x16x128xbf16>
    %c15_387 = arith.constant 15 : index
    %c0_388 = arith.constant 0 : index
    %c0_389 = arith.constant 0 : index
    %c0_390 = arith.constant 0 : index
    %635 = vector.load %arg6[%c15_387, %c0_388, %c0_389, %c0_390] : memref<18x8x1x16xf32, #tpu.memory_space<vmem>>, vector<1x8x1x16xf32>
    %636 = vector.shape_cast %635 : vector<1x8x1x16xf32> to vector<8x1x16xf32>
    %c21 = arith.constant 21 : index
    %c0_391 = arith.constant 0 : index
    %c0_392 = arith.constant 0 : index
    %c0_393 = arith.constant 0 : index
    %637 = vector.load %arg5[%c21, %c0_391, %c0_392, %c0_393] : memref<24x8x16x128xbf16, #tpu.memory_space<vmem>>, vector<1x8x16x128xbf16>
    %638 = vector.shape_cast %637 : vector<1x8x16x128xbf16> to vector<8x16x128xbf16>
    %c16_394 = arith.constant 16 : index
    %c0_395 = arith.constant 0 : index
    %c0_396 = arith.constant 0 : index
    %c0_397 = arith.constant 0 : index
    %639 = vector.load %arg6[%c16_394, %c0_395, %c0_396, %c0_397] : memref<18x8x1x16xf32, #tpu.memory_space<vmem>>, vector<1x8x1x16xf32>
    %640 = vector.shape_cast %639 : vector<1x8x1x16xf32> to vector<8x1x16xf32>
    %c22 = arith.constant 22 : index
    %c0_398 = arith.constant 0 : index
    %c0_399 = arith.constant 0 : index
    %c0_400 = arith.constant 0 : index
    %641 = vector.load %arg5[%c22, %c0_398, %c0_399, %c0_400] : memref<24x8x16x128xbf16, #tpu.memory_space<vmem>>, vector<1x8x16x128xbf16>
    %642 = vector.shape_cast %641 : vector<1x8x16x128xbf16> to vector<8x16x128xbf16>
    %c17_401 = arith.constant 17 : index
    %c0_402 = arith.constant 0 : index
    %c0_403 = arith.constant 0 : index
    %c0_404 = arith.constant 0 : index
    %643 = vector.load %arg6[%c17_401, %c0_402, %c0_403, %c0_404] : memref<18x8x1x16xf32, #tpu.memory_space<vmem>>, vector<1x8x1x16xf32>
    %644 = vector.shape_cast %643 : vector<1x8x1x16xf32> to vector<8x1x16xf32>
    %c23 = arith.constant 23 : index
    %c0_405 = arith.constant 0 : index
    %c0_406 = arith.constant 0 : index
    %c0_407 = arith.constant 0 : index
    %645 = vector.load %arg5[%c23, %c0_405, %c0_406, %c0_407] : memref<24x8x16x128xbf16, #tpu.memory_space<vmem>>, vector<1x8x16x128xbf16>
    %646 = vector.shape_cast %645 : vector<1x8x16x128xbf16> to vector<8x16x128xbf16>
    %c1_408 = arith.constant 1 : index
    %c7_409 = arith.constant 7 : index
    %c0_410 = arith.constant 0 : index
    %647 = vector.load %arg9[%c1_408, %c7_409, %c0_410] : memref<2x10x384xf32, #tpu.memory_space<vmem>>, vector<1x1x128xf32>
    %648 = vector.shape_cast %647 : vector<1x1x128xf32> to vector<1x128xf32>
    %649 = arith.truncf %632 : vector<8x128xf32> to vector<8x128xbf16>
    %650 = vector.shape_cast %649 : vector<8x128xbf16> to vector<1x8x128xbf16>
    %651 = vector.shape_cast %650 : vector<1x8x128xbf16> to vector<1x8x128xbf16>
    %652 = vector.broadcast %651 : vector<1x8x128xbf16> to vector<8x8x128xbf16>
    %653 = arith.truncf %632 : vector<8x128xf32> to vector<8x128xbf16>
    %654 = vector.shape_cast %653 : vector<8x128xbf16> to vector<1x8x128xbf16>
    %655 = vector.shape_cast %654 : vector<1x8x128xbf16> to vector<1x8x128xbf16>
    %656 = vector.broadcast %655 : vector<1x8x128xbf16> to vector<8x8x128xbf16>
    "tpu.trace_start"() <{level = 10 : i32, message = "hse,hde->hsd"}> : () -> ()
    %cst_411 = arith.constant dense<0.000000e+00> : vector<8x8x16xf32>
    %657 = tpu.matmul %652, %634, %cst_411 {dimension_numbers = #tpu.dot_dimension_numbers<[2], [2], [1], [1], [0, 0, 0, 1, 1, 1], [0], [0]>} : vector<8x8x128xbf16>, vector<8x16x128xbf16>, vector<8x8x16xf32> -> vector<8x8x16xf32>
    "tpu.trace_stop"() : () -> ()
    %658 = vector.broadcast %636 : vector<8x1x16xf32> to vector<8x8x16xf32>
    %659 = arith.addf %657, %658 : vector<8x8x16xf32>
    "tpu.trace_start"() <{level = 10 : i32, message = "hse,hde->hsd"}> : () -> ()
    %cst_412 = arith.constant dense<0.000000e+00> : vector<8x8x16xf32>
    %660 = tpu.matmul %656, %638, %cst_412 {dimension_numbers = #tpu.dot_dimension_numbers<[2], [2], [1], [1], [0, 0, 0, 1, 1, 1], [0], [0]>} : vector<8x8x128xbf16>, vector<8x16x128xbf16>, vector<8x8x16xf32> -> vector<8x8x16xf32>
    "tpu.trace_stop"() : () -> ()
    %661 = vector.broadcast %640 : vector<8x1x16xf32> to vector<8x8x16xf32>
    %662 = arith.addf %660, %661 : vector<8x8x16xf32>
    "tpu.trace_start"() <{level = 10 : i32, message = "hse,hde->hsd"}> : () -> ()
    %cst_413 = arith.constant dense<0.000000e+00> : vector<8x8x16xf32>
    %663 = tpu.matmul %656, %642, %cst_413 {dimension_numbers = #tpu.dot_dimension_numbers<[2], [2], [1], [1], [0, 0, 0, 1, 1, 1], [0], [0]>} : vector<8x8x128xbf16>, vector<8x16x128xbf16>, vector<8x8x16xf32> -> vector<8x8x16xf32>
    "tpu.trace_stop"() : () -> ()
    %664 = vector.broadcast %644 : vector<8x1x16xf32> to vector<8x8x16xf32>
    %665 = arith.addf %663, %664 : vector<8x8x16xf32>
    %666 = arith.truncf %659 : vector<8x8x16xf32> to vector<8x8x16xbf16>
    %667 = arith.truncf %662 : vector<8x8x16xf32> to vector<8x8x16xbf16>
    "tpu.trace_start"() <{level = 10 : i32, message = "hqd,hkd->hqk"}> : () -> ()
    %cst_414 = arith.constant dense<0.000000e+00> : vector<8x8x8xf32>
    %668 = tpu.matmul %666, %667, %cst_414 {dimension_numbers = #tpu.dot_dimension_numbers<[2], [2], [1], [1], [0, 0, 0, 1, 1, 1], [0], [0]>} : vector<8x8x16xbf16>, vector<8x8x16xbf16>, vector<8x8x8xf32> -> vector<8x8x8xf32>
    "tpu.trace_stop"() : () -> ()
    %cst_415 = arith.constant dense<0xFF800000> : vector<8x8xf32>
    %669 = vector.multi_reduction <maximumf>, %668, %cst_415 [2] : vector<8x8x8xf32> to vector<8x8xf32>
    %670 = vector.shape_cast %669 : vector<8x8xf32> to vector<8x8x1xf32>
    %671 = vector.broadcast %670 : vector<8x8x1xf32> to vector<8x8x8xf32>
    %672 = arith.subf %668, %671 : vector<8x8x8xf32>
    %673 = math.exp %672 : vector<8x8x8xf32>
    %cst_416 = arith.constant dense<0.000000e+00> : vector<8x8xf32>
    %674 = vector.multi_reduction <add>, %673, %cst_416 [2] : vector<8x8x8xf32> to vector<8x8xf32>
    %675 = vector.shape_cast %674 : vector<8x8xf32> to vector<8x8x1xf32>
    %676 = tpu.reciprocal %675 {approx = true} : vector<8x8x1xf32> -> vector<8x8x1xf32>
    %677 = vector.broadcast %676 : vector<8x8x1xf32> to vector<8x8x8xf32>
    %678 = arith.mulf %673, %677 : vector<8x8x8xf32>
    %679 = arith.truncf %678 : vector<8x8x8xf32> to vector<8x8x8xbf16>
    %680 = arith.truncf %665 : vector<8x8x16xf32> to vector<8x8x16xbf16>
    "tpu.trace_start"() <{level = 10 : i32, message = "hqk,hkd->hqd"}> : () -> ()
    %cst_417 = arith.constant dense<0.000000e+00> : vector<8x8x16xf32>
    %681 = tpu.matmul %679, %680, %cst_417 {dimension_numbers = #tpu.dot_dimension_numbers<[2], [1], [1], [2], [0, 0, 0, 1, 1, 2], [0], [0]>} : vector<8x8x8xbf16>, vector<8x8x16xbf16>, vector<8x8x16xf32> -> vector<8x8x16xf32>
    "tpu.trace_stop"() : () -> ()
    %682 = arith.truncf %681 : vector<8x8x16xf32> to vector<8x8x16xbf16>
    "tpu.trace_start"() <{level = 10 : i32, message = "hqd,hde->hqe"}> : () -> ()
    %cst_418 = arith.constant dense<0.000000e+00> : vector<8x8x128xf32>
    %683 = tpu.matmul %682, %646, %cst_418 {dimension_numbers = #tpu.dot_dimension_numbers<[2], [1], [1], [2], [0, 0, 0, 1, 1, 2], [0], [0]>} : vector<8x8x16xbf16>, vector<8x16x128xbf16>, vector<8x8x128xf32> -> vector<8x8x128xf32>
    "tpu.trace_stop"() : () -> ()
    %cst_419 = arith.constant dense<0.000000e+00> : vector<8x128xf32>
    %684 = vector.multi_reduction <add>, %683, %cst_419 [0] : vector<8x8x128xf32> to vector<8x128xf32>
    %685 = vector.broadcast %648 : vector<1x128xf32> to vector<8x128xf32>
    %686 = arith.addf %684, %685 : vector<8x128xf32>
    %687 = arith.addf %632, %686 : vector<8x128xf32>
    %c1_420 = arith.constant 1 : index
    %c7_421 = arith.constant 7 : index
    %c128_422 = arith.constant 128 : index
    %688 = vector.load %arg9[%c1_420, %c7_421, %c128_422] : memref<2x10x384xf32, #tpu.memory_space<vmem>>, vector<1x1x128xf32>
    %689 = vector.shape_cast %688 : vector<1x1x128xf32> to vector<1x128xf32>
    %c1_423 = arith.constant 1 : index
    %c7_424 = arith.constant 7 : index
    %c256_425 = arith.constant 256 : index
    %690 = vector.load %arg9[%c1_423, %c7_424, %c256_425] : memref<2x10x384xf32, #tpu.memory_space<vmem>>, vector<1x1x128xf32>
    %691 = vector.shape_cast %690 : vector<1x1x128xf32> to vector<1x128xf32>
    %cst_426 = arith.constant dense<0.000000e+00> : vector<8xf32>
    %692 = vector.multi_reduction <add>, %687, %cst_426 [1] : vector<8x128xf32> to vector<8xf32>
    %693 = vector.shape_cast %692 : vector<8xf32> to vector<8x1xf32>
    %cst_427 = arith.constant 1.280000e+02 : f32
    %694 = vector.broadcast %cst_427 : f32 to vector<8x1xf32>
    %695 = arith.divf %693, %694 : vector<8x1xf32>
    %696 = vector.broadcast %695 : vector<8x1xf32> to vector<8x128xf32>
    %697 = arith.subf %687, %696 : vector<8x128xf32>
    %698 = arith.mulf %697, %697 : vector<8x128xf32>
    %cst_428 = arith.constant dense<0.000000e+00> : vector<8xf32>
    %699 = vector.multi_reduction <add>, %698, %cst_428 [1] : vector<8x128xf32> to vector<8xf32>
    %700 = vector.shape_cast %699 : vector<8xf32> to vector<8x1xf32>
    %cst_429 = arith.constant 1.280000e+02 : f32
    %701 = vector.broadcast %cst_429 : f32 to vector<8x1xf32>
    %702 = arith.divf %700, %701 : vector<8x1xf32>
    %cst_430 = arith.constant 9.99999974E-6 : f32
    %703 = vector.broadcast %cst_430 : f32 to vector<8x1xf32>
    %704 = arith.addf %702, %703 : vector<8x1xf32>
    %705 = math.rsqrt %704 : vector<8x1xf32>
    %706 = vector.broadcast %705 : vector<8x1xf32> to vector<8x128xf32>
    %707 = arith.mulf %697, %706 : vector<8x128xf32>
    %708 = vector.broadcast %689 : vector<1x128xf32> to vector<8x128xf32>
    %709 = arith.mulf %707, %708 : vector<8x128xf32>
    %710 = vector.broadcast %691 : vector<1x128xf32> to vector<8x128xf32>
    %711 = arith.addf %709, %710 : vector<8x128xf32>
    %c5_431 = arith.constant 5 : index
    %c0_432 = arith.constant 0 : index
    %c0_433 = arith.constant 0 : index
    %712 = vector.load %arg7[%c5_431, %c0_432, %c0_433] : memref<6x128x256xbf16, #tpu.memory_space<vmem>>, vector<1x128x256xbf16>
    %713 = vector.shape_cast %712 : vector<1x128x256xbf16> to vector<128x256xbf16>
    %714 = arith.truncf %711 : vector<8x128xf32> to vector<8x128xbf16>
    %cst_434 = arith.constant dense<0.000000e+00> : vector<8x256xf32>
    %715 = tpu.matmul %714, %713, %cst_434 {dimension_numbers = #tpu.dot_dimension_numbers<[1], [0], [0], [1], [0, 0, 1, 1], [], []>} : vector<8x128xbf16>, vector<128x256xbf16>, vector<8x256xf32> -> vector<8x256xf32>
    %c1_435 = arith.constant 1 : index
    %c8_436 = arith.constant 8 : index
    %c0_437 = arith.constant 0 : index
    %716 = vector.load %arg9[%c1_435, %c8_436, %c0_437] : memref<2x10x384xf32, #tpu.memory_space<vmem>>, vector<1x1x256xf32>
    %717 = vector.shape_cast %716 : vector<1x1x256xf32> to vector<1x256xf32>
    %718 = vector.broadcast %717 : vector<1x256xf32> to vector<8x256xf32>
    %719 = arith.addf %715, %718 : vector<8x256xf32>
    %cst_438 = arith.constant 0.000000e+00 : f32
    %720 = vector.broadcast %cst_438 : f32 to vector<8x256xf32>
    %721 = arith.maximumf %719, %720 : vector<8x256xf32>
    %c5_439 = arith.constant 5 : index
    %c0_440 = arith.constant 0 : index
    %c0_441 = arith.constant 0 : index
    %722 = vector.load %arg8[%c5_439, %c0_440, %c0_441] : memref<6x256x128xbf16, #tpu.memory_space<vmem>>, vector<1x256x128xbf16>
    %723 = vector.shape_cast %722 : vector<1x256x128xbf16> to vector<256x128xbf16>
    %724 = arith.truncf %721 : vector<8x256xf32> to vector<8x256xbf16>
    %cst_442 = arith.constant dense<0.000000e+00> : vector<8x128xf32>
    %725 = tpu.matmul %724, %723, %cst_442 {dimension_numbers = #tpu.dot_dimension_numbers<[1], [0], [0], [1], [0, 0, 1, 1], [], []>} : vector<8x256xbf16>, vector<256x128xbf16>, vector<8x128xf32> -> vector<8x128xf32>
    %c1_443 = arith.constant 1 : index
    %c8_444 = arith.constant 8 : index
    %c256_445 = arith.constant 256 : index
    %726 = vector.load %arg9[%c1_443, %c8_444, %c256_445] : memref<2x10x384xf32, #tpu.memory_space<vmem>>, vector<1x1x128xf32>
    %727 = vector.shape_cast %726 : vector<1x1x128xf32> to vector<1x128xf32>
    %728 = vector.broadcast %727 : vector<1x128xf32> to vector<8x128xf32>
    %729 = arith.addf %725, %728 : vector<8x128xf32>
    %730 = arith.addf %711, %729 : vector<8x128xf32>
    %c1_446 = arith.constant 1 : index
    %c9_447 = arith.constant 9 : index
    %c0_448 = arith.constant 0 : index
    %731 = vector.load %arg9[%c1_446, %c9_447, %c0_448] : memref<2x10x384xf32, #tpu.memory_space<vmem>>, vector<1x1x128xf32>
    %732 = vector.shape_cast %731 : vector<1x1x128xf32> to vector<1x128xf32>
    %c1_449 = arith.constant 1 : index
    %c9_450 = arith.constant 9 : index
    %c128_451 = arith.constant 128 : index
    %733 = vector.load %arg9[%c1_449, %c9_450, %c128_451] : memref<2x10x384xf32, #tpu.memory_space<vmem>>, vector<1x1x128xf32>
    %734 = vector.shape_cast %733 : vector<1x1x128xf32> to vector<1x128xf32>
    %cst_452 = arith.constant dense<0.000000e+00> : vector<8xf32>
    %735 = vector.multi_reduction <add>, %730, %cst_452 [1] : vector<8x128xf32> to vector<8xf32>
    %736 = vector.shape_cast %735 : vector<8xf32> to vector<8x1xf32>
    %cst_453 = arith.constant 1.280000e+02 : f32
    %737 = vector.broadcast %cst_453 : f32 to vector<8x1xf32>
    %738 = arith.divf %736, %737 : vector<8x1xf32>
    %739 = vector.broadcast %738 : vector<8x1xf32> to vector<8x128xf32>
    %740 = arith.subf %730, %739 : vector<8x128xf32>
    %741 = arith.mulf %740, %740 : vector<8x128xf32>
    %cst_454 = arith.constant dense<0.000000e+00> : vector<8xf32>
    %742 = vector.multi_reduction <add>, %741, %cst_454 [1] : vector<8x128xf32> to vector<8xf32>
    %743 = vector.shape_cast %742 : vector<8xf32> to vector<8x1xf32>
    %cst_455 = arith.constant 1.280000e+02 : f32
    %744 = vector.broadcast %cst_455 : f32 to vector<8x1xf32>
    %745 = arith.divf %743, %744 : vector<8x1xf32>
    %cst_456 = arith.constant 9.99999974E-6 : f32
    %746 = vector.broadcast %cst_456 : f32 to vector<8x1xf32>
    %747 = arith.addf %745, %746 : vector<8x1xf32>
    %748 = math.rsqrt %747 : vector<8x1xf32>
    %749 = vector.broadcast %748 : vector<8x1xf32> to vector<8x128xf32>
    %750 = arith.mulf %740, %749 : vector<8x128xf32>
    %751 = vector.broadcast %732 : vector<1x128xf32> to vector<8x128xf32>
    %752 = arith.mulf %750, %751 : vector<8x128xf32>
    %753 = vector.broadcast %734 : vector<1x128xf32> to vector<8x128xf32>
    %754 = arith.addf %752, %753 : vector<8x128xf32>
    %c0_457 = arith.constant 0 : index
    %c0_458 = arith.constant 0 : index
    %c0_459 = arith.constant 0 : index
    %c0_460 = arith.constant 0 : index
    %755 = vector.load %arg10[%c0_457, %c0_458, %c0_459, %c0_460] : memref<4x8x16x128xbf16, #tpu.memory_space<vmem>>, vector<1x8x16x128xbf16>
    %756 = vector.shape_cast %755 : vector<1x8x16x128xbf16> to vector<8x16x128xbf16>
    %c0_461 = arith.constant 0 : index
    %c0_462 = arith.constant 0 : index
    %c0_463 = arith.constant 0 : index
    %c0_464 = arith.constant 0 : index
    %757 = vector.load %arg11[%c0_461, %c0_462, %c0_463, %c0_464] : memref<3x8x1x16xf32, #tpu.memory_space<vmem>>, vector<1x8x1x16xf32>
    %758 = vector.shape_cast %757 : vector<1x8x1x16xf32> to vector<8x1x16xf32>
    %c1_465 = arith.constant 1 : index
    %c0_466 = arith.constant 0 : index
    %c0_467 = arith.constant 0 : index
    %c0_468 = arith.constant 0 : index
    %759 = vector.load %arg10[%c1_465, %c0_466, %c0_467, %c0_468] : memref<4x8x16x128xbf16, #tpu.memory_space<vmem>>, vector<1x8x16x128xbf16>
    %760 = vector.shape_cast %759 : vector<1x8x16x128xbf16> to vector<8x16x128xbf16>
    %c1_469 = arith.constant 1 : index
    %c0_470 = arith.constant 0 : index
    %c0_471 = arith.constant 0 : index
    %c0_472 = arith.constant 0 : index
    %761 = vector.load %arg11[%c1_469, %c0_470, %c0_471, %c0_472] : memref<3x8x1x16xf32, #tpu.memory_space<vmem>>, vector<1x8x1x16xf32>
    %762 = vector.shape_cast %761 : vector<1x8x1x16xf32> to vector<8x1x16xf32>
    %c2_473 = arith.constant 2 : index
    %c0_474 = arith.constant 0 : index
    %c0_475 = arith.constant 0 : index
    %c0_476 = arith.constant 0 : index
    %763 = vector.load %arg10[%c2_473, %c0_474, %c0_475, %c0_476] : memref<4x8x16x128xbf16, #tpu.memory_space<vmem>>, vector<1x8x16x128xbf16>
    %764 = vector.shape_cast %763 : vector<1x8x16x128xbf16> to vector<8x16x128xbf16>
    %c2_477 = arith.constant 2 : index
    %c0_478 = arith.constant 0 : index
    %c0_479 = arith.constant 0 : index
    %c0_480 = arith.constant 0 : index
    %765 = vector.load %arg11[%c2_477, %c0_478, %c0_479, %c0_480] : memref<3x8x1x16xf32, #tpu.memory_space<vmem>>, vector<1x8x1x16xf32>
    %766 = vector.shape_cast %765 : vector<1x8x1x16xf32> to vector<8x1x16xf32>
    %c3_481 = arith.constant 3 : index
    %c0_482 = arith.constant 0 : index
    %c0_483 = arith.constant 0 : index
    %c0_484 = arith.constant 0 : index
    %767 = vector.load %arg10[%c3_481, %c0_482, %c0_483, %c0_484] : memref<4x8x16x128xbf16, #tpu.memory_space<vmem>>, vector<1x8x16x128xbf16>
    %768 = vector.shape_cast %767 : vector<1x8x16x128xbf16> to vector<8x16x128xbf16>
    %c0_485 = arith.constant 0 : index
    %c0_486 = arith.constant 0 : index
    %769 = vector.load %arg12[%c0_485, %c0_486] : memref<2x384xf32, #tpu.memory_space<vmem>>, vector<1x128xf32>
    %770 = arith.truncf %377 : vector<8x128xf32> to vector<8x128xbf16>
    %771 = vector.shape_cast %770 : vector<8x128xbf16> to vector<1x8x128xbf16>
    %772 = vector.shape_cast %771 : vector<1x8x128xbf16> to vector<1x8x128xbf16>
    %773 = vector.broadcast %772 : vector<1x8x128xbf16> to vector<8x8x128xbf16>
    %774 = arith.truncf %754 : vector<8x128xf32> to vector<8x128xbf16>
    %775 = vector.shape_cast %774 : vector<8x128xbf16> to vector<1x8x128xbf16>
    %776 = vector.shape_cast %775 : vector<1x8x128xbf16> to vector<1x8x128xbf16>
    %777 = vector.broadcast %776 : vector<1x8x128xbf16> to vector<8x8x128xbf16>
    "tpu.trace_start"() <{level = 10 : i32, message = "hse,hde->hsd"}> : () -> ()
    %cst_487 = arith.constant dense<0.000000e+00> : vector<8x8x16xf32>
    %778 = tpu.matmul %773, %756, %cst_487 {dimension_numbers = #tpu.dot_dimension_numbers<[2], [2], [1], [1], [0, 0, 0, 1, 1, 1], [0], [0]>} : vector<8x8x128xbf16>, vector<8x16x128xbf16>, vector<8x8x16xf32> -> vector<8x8x16xf32>
    "tpu.trace_stop"() : () -> ()
    %779 = vector.broadcast %758 : vector<8x1x16xf32> to vector<8x8x16xf32>
    %780 = arith.addf %778, %779 : vector<8x8x16xf32>
    "tpu.trace_start"() <{level = 10 : i32, message = "hse,hde->hsd"}> : () -> ()
    %cst_488 = arith.constant dense<0.000000e+00> : vector<8x8x16xf32>
    %781 = tpu.matmul %777, %760, %cst_488 {dimension_numbers = #tpu.dot_dimension_numbers<[2], [2], [1], [1], [0, 0, 0, 1, 1, 1], [0], [0]>} : vector<8x8x128xbf16>, vector<8x16x128xbf16>, vector<8x8x16xf32> -> vector<8x8x16xf32>
    "tpu.trace_stop"() : () -> ()
    %782 = vector.broadcast %762 : vector<8x1x16xf32> to vector<8x8x16xf32>
    %783 = arith.addf %781, %782 : vector<8x8x16xf32>
    "tpu.trace_start"() <{level = 10 : i32, message = "hse,hde->hsd"}> : () -> ()
    %cst_489 = arith.constant dense<0.000000e+00> : vector<8x8x16xf32>
    %784 = tpu.matmul %777, %764, %cst_489 {dimension_numbers = #tpu.dot_dimension_numbers<[2], [2], [1], [1], [0, 0, 0, 1, 1, 1], [0], [0]>} : vector<8x8x128xbf16>, vector<8x16x128xbf16>, vector<8x8x16xf32> -> vector<8x8x16xf32>
    "tpu.trace_stop"() : () -> ()
    %785 = vector.broadcast %766 : vector<8x1x16xf32> to vector<8x8x16xf32>
    %786 = arith.addf %784, %785 : vector<8x8x16xf32>
    %787 = arith.truncf %780 : vector<8x8x16xf32> to vector<8x8x16xbf16>
    %788 = arith.truncf %783 : vector<8x8x16xf32> to vector<8x8x16xbf16>
    "tpu.trace_start"() <{level = 10 : i32, message = "hqd,hkd->hqk"}> : () -> ()
    %cst_490 = arith.constant dense<0.000000e+00> : vector<8x8x8xf32>
    %789 = tpu.matmul %787, %788, %cst_490 {dimension_numbers = #tpu.dot_dimension_numbers<[2], [2], [1], [1], [0, 0, 0, 1, 1, 1], [0], [0]>} : vector<8x8x16xbf16>, vector<8x8x16xbf16>, vector<8x8x8xf32> -> vector<8x8x8xf32>
    "tpu.trace_stop"() : () -> ()
    %cst_491 = arith.constant dense<0xFF800000> : vector<8x8xf32>
    %790 = vector.multi_reduction <maximumf>, %789, %cst_491 [2] : vector<8x8x8xf32> to vector<8x8xf32>
    %791 = vector.shape_cast %790 : vector<8x8xf32> to vector<8x8x1xf32>
    %792 = vector.broadcast %791 : vector<8x8x1xf32> to vector<8x8x8xf32>
    %793 = arith.subf %789, %792 : vector<8x8x8xf32>
    %794 = math.exp %793 : vector<8x8x8xf32>
    %cst_492 = arith.constant dense<0.000000e+00> : vector<8x8xf32>
    %795 = vector.multi_reduction <add>, %794, %cst_492 [2] : vector<8x8x8xf32> to vector<8x8xf32>
    %796 = vector.shape_cast %795 : vector<8x8xf32> to vector<8x8x1xf32>
    %797 = tpu.reciprocal %796 {approx = true} : vector<8x8x1xf32> -> vector<8x8x1xf32>
    %798 = vector.broadcast %797 : vector<8x8x1xf32> to vector<8x8x8xf32>
    %799 = arith.mulf %794, %798 : vector<8x8x8xf32>
    %800 = arith.truncf %799 : vector<8x8x8xf32> to vector<8x8x8xbf16>
    %801 = arith.truncf %786 : vector<8x8x16xf32> to vector<8x8x16xbf16>
    "tpu.trace_start"() <{level = 10 : i32, message = "hqk,hkd->hqd"}> : () -> ()
    %cst_493 = arith.constant dense<0.000000e+00> : vector<8x8x16xf32>
    %802 = tpu.matmul %800, %801, %cst_493 {dimension_numbers = #tpu.dot_dimension_numbers<[2], [1], [1], [2], [0, 0, 0, 1, 1, 2], [0], [0]>} : vector<8x8x8xbf16>, vector<8x8x16xbf16>, vector<8x8x16xf32> -> vector<8x8x16xf32>
    "tpu.trace_stop"() : () -> ()
    %803 = arith.truncf %802 : vector<8x8x16xf32> to vector<8x8x16xbf16>
    "tpu.trace_start"() <{level = 10 : i32, message = "hqd,hde->hqe"}> : () -> ()
    %cst_494 = arith.constant dense<0.000000e+00> : vector<8x8x128xf32>
    %804 = tpu.matmul %803, %768, %cst_494 {dimension_numbers = #tpu.dot_dimension_numbers<[2], [1], [1], [2], [0, 0, 0, 1, 1, 2], [0], [0]>} : vector<8x8x16xbf16>, vector<8x16x128xbf16>, vector<8x8x128xf32> -> vector<8x8x128xf32>
    "tpu.trace_stop"() : () -> ()
    %cst_495 = arith.constant dense<0.000000e+00> : vector<8x128xf32>
    %805 = vector.multi_reduction <add>, %804, %cst_495 [0] : vector<8x8x128xf32> to vector<8x128xf32>
    %806 = vector.broadcast %769 : vector<1x128xf32> to vector<8x128xf32>
    %807 = arith.addf %805, %806 : vector<8x128xf32>
    %808 = arith.addf %377, %807 : vector<8x128xf32>
    %809 = math.tanh %808 : vector<8x128xf32>
    %c0_496 = arith.constant 0 : index
    %c128_497 = arith.constant 128 : index
    %810 = vector.load %arg12[%c0_496, %c128_497] : memref<2x384xf32, #tpu.memory_space<vmem>>, vector<1x128xf32>
    %811 = vector.broadcast %810 : vector<1x128xf32> to vector<8x128xf32>
    %812 = arith.mulf %809, %811 : vector<8x128xf32>
    %cst_498 = arith.constant dense<0.000000e+00> : vector<8xf32>
    %813 = vector.multi_reduction <add>, %812, %cst_498 [1] : vector<8x128xf32> to vector<8xf32>
    %814 = vector.shape_cast %813 : vector<8xf32> to vector<8x1xf32>
    %cst_499 = arith.constant dense<0xFF800000> : vector<1xf32>
    %815 = vector.multi_reduction <maximumf>, %814, %cst_499 [0] : vector<8x1xf32> to vector<1xf32>
    %816 = vector.shape_cast %815 : vector<1xf32> to vector<1x1xf32>
    %817 = vector.broadcast %816 : vector<1x1xf32> to vector<8x1xf32>
    %818 = arith.subf %814, %817 : vector<8x1xf32>
    %819 = math.exp %818 : vector<8x1xf32>
    %cst_500 = arith.constant dense<0.000000e+00> : vector<1xf32>
    %820 = vector.multi_reduction <add>, %819, %cst_500 [0] : vector<8x1xf32> to vector<1xf32>
    %821 = vector.shape_cast %820 : vector<1xf32> to vector<1x1xf32>
    %822 = tpu.reciprocal %821 {approx = true} : vector<1x1xf32> -> vector<1x1xf32>
    %823 = vector.broadcast %822 : vector<1x1xf32> to vector<8x1xf32>
    %824 = arith.mulf %819, %823 : vector<8x1xf32>
    %825 = vector.broadcast %824 : vector<8x1xf32> to vector<8x128xf32>
    %826 = arith.mulf %825, %809 : vector<8x128xf32>
    %cst_501 = arith.constant dense<0.000000e+00> : vector<128xf32>
    %827 = vector.multi_reduction <add>, %826, %cst_501 [0] : vector<8x128xf32> to vector<128xf32>
    %828 = vector.shape_cast %827 : vector<128xf32> to vector<1x128xf32>
    %c0_502 = arith.constant 0 : index
    %c256_503 = arith.constant 256 : index
    %829 = vector.load %arg12[%c0_502, %c256_503] : memref<2x384xf32, #tpu.memory_space<vmem>>, vector<1x128xf32>
    %830 = arith.mulf %828, %829 : vector<1x128xf32>
    %cst_504 = arith.constant dense<0.000000e+00> : vector<1xf32>
    %831 = vector.multi_reduction <add>, %830, %cst_504 [1] : vector<1x128xf32> to vector<1xf32>
    %832 = vector.shape_cast %831 : vector<1xf32> to vector<1x1xf32>
    %c1_505 = arith.constant 1 : index
    %c0_506 = arith.constant 0 : index
    %833 = vector.load %arg12[%c1_505, %c0_506] : memref<2x384xf32, #tpu.memory_space<vmem>>, vector<1x1xf32>
    %834 = arith.addf %832, %833 : vector<1x1xf32>
    %835 = vector.shape_cast %834 : vector<1x1xf32> to vector<1x1x1xf32>
    %836 = vector.shape_cast %835 : vector<1x1x1xf32> to vector<1x1x1xf32>
    %837 = vector.broadcast %836 : vector<1x1x1xf32> to vector<1x1x128xf32>
    %c0_507 = arith.constant 0 : index
    %c0_508 = arith.constant 0 : index
    %c0_509 = arith.constant 0 : index
    %838 = vector.load %arg13[%c0_507, %c0_508, %c0_509] : memref<1x1x128xf32, #tpu.memory_space<vmem>>, vector<1x1x128xf32>
    tpu.vector_store %arg13[%c0_507, %c0_508, %c0_509], %837 {strides = array<i32>} : memref<1x1x128xf32, #tpu.memory_space<vmem>>, vector<1x1x128xf32>,
    return
  }
  func.func @transform_0(%arg0: i32) -> (i32, i32, i32) {
    %c0_i32 = arith.constant 0 : i32
    %c0_i32_0 = arith.constant 0 : i32
    %c0_i32_1 = arith.constant 0 : i32
    return %arg0, %c0_i32, %c0_i32_0 : i32, i32, i32
  }
  func.func @transform_1(%arg0: i32) -> (i32, i32, i32) {
    %c0_i32 = arith.constant 0 : i32
    %c0_i32_0 = arith.constant 0 : i32
    %c0_i32_1 = arith.constant 0 : i32
    return %arg0, %c0_i32, %c0_i32_0 : i32, i32, i32
  }
  func.func @transform_2(%arg0: i32) -> (i32, i32) {
    %c0_i32 = arith.constant 0 : i32
    %c0_i32_0 = arith.constant 0 : i32
    %c0_i32_1 = arith.constant 0 : i32
    return %c0_i32, %c0_i32_0 : i32, i32
  }
  func.func @transform_3(%arg0: i32) -> (i32, i32, i32) {
    %c0_i32 = arith.constant 0 : i32
    %c0_i32_0 = arith.constant 0 : i32
    %c0_i32_1 = arith.constant 0 : i32
    %c0_i32_2 = arith.constant 0 : i32
    return %c0_i32, %c0_i32_0, %c0_i32_1 : i32, i32, i32
  }
  func.func @transform_4(%arg0: i32) -> (i32, i32, i32, i32) {
    %c0_i32 = arith.constant 0 : i32
    %c0_i32_0 = arith.constant 0 : i32
    %c0_i32_1 = arith.constant 0 : i32
    %c0_i32_2 = arith.constant 0 : i32
    %c0_i32_3 = arith.constant 0 : i32
    return %c0_i32, %c0_i32_0, %c0_i32_1, %c0_i32_2 : i32, i32, i32, i32
  }
  func.func @transform_5(%arg0: i32) -> (i32, i32, i32, i32) {
    %c0_i32 = arith.constant 0 : i32
    %c0_i32_0 = arith.constant 0 : i32
    %c0_i32_1 = arith.constant 0 : i32
    %c0_i32_2 = arith.constant 0 : i32
    %c0_i32_3 = arith.constant 0 : i32
    return %c0_i32, %c0_i32_0, %c0_i32_1, %c0_i32_2 : i32, i32, i32, i32
  }
  func.func @transform_6(%arg0: i32) -> (i32, i32, i32) {
    %c0_i32 = arith.constant 0 : i32
    %c0_i32_0 = arith.constant 0 : i32
    %c0_i32_1 = arith.constant 0 : i32
    %c0_i32_2 = arith.constant 0 : i32
    return %c0_i32, %c0_i32_0, %c0_i32_1 : i32, i32, i32
  }
  func.func @transform_7(%arg0: i32) -> (i32, i32, i32) {
    %c0_i32 = arith.constant 0 : i32
    %c0_i32_0 = arith.constant 0 : i32
    %c0_i32_1 = arith.constant 0 : i32
    %c0_i32_2 = arith.constant 0 : i32
    return %c0_i32, %c0_i32_0, %c0_i32_1 : i32, i32, i32
  }
  func.func @transform_8(%arg0: i32) -> (i32, i32, i32) {
    %c0_i32 = arith.constant 0 : i32
    %c0_i32_0 = arith.constant 0 : i32
    %c0_i32_1 = arith.constant 0 : i32
    %c0_i32_2 = arith.constant 0 : i32
    return %c0_i32, %c0_i32_0, %c0_i32_1 : i32, i32, i32
  }
  func.func @transform_9(%arg0: i32) -> (i32, i32, i32, i32) {
    %c0_i32 = arith.constant 0 : i32
    %c0_i32_0 = arith.constant 0 : i32
    %c0_i32_1 = arith.constant 0 : i32
    %c0_i32_2 = arith.constant 0 : i32
    %c0_i32_3 = arith.constant 0 : i32
    return %c0_i32, %c0_i32_0, %c0_i32_1, %c0_i32_2 : i32, i32, i32, i32
  }
  func.func @transform_10(%arg0: i32) -> (i32, i32, i32, i32) {
    %c0_i32 = arith.constant 0 : i32
    %c0_i32_0 = arith.constant 0 : i32
    %c0_i32_1 = arith.constant 0 : i32
    %c0_i32_2 = arith.constant 0 : i32
    %c0_i32_3 = arith.constant 0 : i32
    return %c0_i32, %c0_i32_0, %c0_i32_1, %c0_i32_2 : i32, i32, i32, i32
  }
  func.func @transform_11(%arg0: i32) -> (i32, i32) {
    %c0_i32 = arith.constant 0 : i32
    %c0_i32_0 = arith.constant 0 : i32
    %c0_i32_1 = arith.constant 0 : i32
    return %c0_i32, %c0_i32_0 : i32, i32
  }
  func.func @transform_12(%arg0: i32) -> (i32, i32, i32) {
    %c0_i32 = arith.constant 0 : i32
    %c0_i32_0 = arith.constant 0 : i32
    %c0_i32_1 = arith.constant 0 : i32
    return %arg0, %c0_i32, %c0_i32_0 : i32, i32, i32
  }
}

</mosaic_0001>

<bundles_post_ra>
// kernel: mcst_forward.1
= control target key start
LH: loop header
LB: loop body
LE: loop exit
PB: predicated region body
PF: predicated region fallthrough
CT: control target
= control target key end

     0   :  { %s29492_s0 = inlined_call_operand.vmem [shape: f32[2,8,128], index: 0, kind: input, shape index: {}]   ;;  %s29493_s1 = inlined_call_operand.vmem [shape: f32[2,8,128], index: 1, kind: input, shape index: {}]   ;;  %s29494_s2 = inlined_call_operand.vmem [shape: f32[8,128], index: 2, kind: input, shape index: {}]   ;;  %s29495_s3 = inlined_call_operand.hbm [shape: bf16[2,128,128], index: 3, kind: input, shape index: {}]   ;;  %s29496_s4 = inlined_call_operand.hbm [shape: bf16[24,8,16,128], index: 4, kind: input, shape index: {}]   ;;  %s29497_s5 = inlined_call_operand.vmem [shape: f32[18,8,1,16], index: 5, kind: input, shape index: {}]   ;;  %s29498_s6 = inlined_call_operand.vmem [shape: bf16[6,128,256], index: 6, kind: input, shape index: {}]   ;;  %s29499_s7 = inlined_call_operand.hbm [shape: bf16[6,256,128], index: 7, kind: input, shape index: {}]   ;;  %s29500_s8 = inlined_call_operand.vmem [shape: f32[2,10,384], index: 8, kind: input, shape index: {}]   ;;  %s29501_s9 = inlined_call_operand.hbm [shape: bf16[4,8,16,128], index: 9, kind: input, shape index: {}]   ;;  %s29502_s10 = inlined_call_operand.hbm [shape: f32[3,8,1,16], index: 10, kind: input, shape index: {}]   ;;  %s29503_s11 = inlined_call_operand.hbm [shape: f32[2,384], index: 11, kind: input, shape index: {}]   ;;  %s29504_s12 = inlined_call_operand.vmem [shape: f32[2,1,128], index: 12, kind: output, shape index: {}]  }
   0x1   :  { %29508 = sst [smem:[#allocation17_spill]] %s29504_s12 }
   0x2   :  { %17 = vsyncpa [#allocation3], 0 }
   0x3   :  { %18 = vsyncpa [#allocation5], 0 }
   0x4   :  { %19 = vsyncpa [#allocation8], 0 }
   0x5   :  { %20 = vsyncpa [#allocation11], 0  ;;  %s26306_s21 = smov 0  }
   0x6 LB: > { %29509 = sst [smem:[#allocation16_spill]] %s26226_s21  ;;  %s26312_s22 = sadd.s32 4294967295, %s26226_s21   ;;  %s26226_s21 = sphi %s26306_s21, %s26_s21  }
   0x7   : > { %p21316_p0 = scmp.ge.s32.totalorder %s26226_s21, 1  ;;  %p319_p1 = scmp.lt.s32.totalorder %s26226_s21, 3 }
   0x8   : > { %p29506_p2 = scmp.eq.s32.totalorder %s26312_s22, 0  ;;  %s26228_s24 = smov [#allocation4]  }
   0x9   : > { %p26317_p3 = pnand %p21316_p0, %p319_p1  ;;  %s347_s25 = sshll.u32 %s26228_s24, 4  ;;  %s26321_s25 = int_to_ptr.vmem [resolvable:$true] %s347_s25 }
   0xa   : > { %s26229_s26 = smov [#allocation7]   ;;  %s26230_s29 = smov [#allocation2]  }
   0xb   : > { %s29510_s23 = scalar_select %p26317_p3, 1, 0 }
   0xc   : > { %p25248_p4 = pneg %p26317_p3  ;;  %s382_s27 = sshll.u32 %s26229_s26, 4  ;;  %s26325_s27 = int_to_ptr.vmem [resolvable:$true] %s382_s27 }
   0xd   : > { %s334_s30 = sshll.u32 %s26230_s29, 4  ;;  %s26231_s13 = smov [#allocation6]   ;;  %s26333_s30 = int_to_ptr.vmem [resolvable:$true] %s334_s30 }
   0xe   : > { %p26329_p5 = pnand %p29506_p2, %p25248_p4  ;;  %s26335_s14 = sshll.u32 %s26231_s13, 4  ;;  %s367_s14 = int_to_ptr.vmem [resolvable:$true] %s26335_s14 }
   0xf   : > { %s26036_s17 = scalar_lea.hbm %s29496_s4, 24576 }
  0x10   : > { %p26037_p6 = scmp.ne.s32.totalorder %s29496_s4, %s26036_s17  ;;  %p26345_p7 = pneg %p26329_p5 }
  0x11   : > { %p26043_p10 = scmp.lt.u32.totalorder %s26036_s17, %s29496_s4 }
  0x12   : > { %p26039_p8 = pnand %p26345_p7, %p26037_p6 }
  0x14   : > { %p26040_p9 = pneg %p26039_p8 }
  0x16   : > { %p26045_p11 = pnand %p26043_p10, %p26040_p9 }
  0x18   : > { %26048 = shalt.err (!%p26045_p11)
}
  0x19   : > { %s26049_s29 = scalar_lea.vmem %s26321_s25, 24576  ;;  %p26057_p1 = scmp.lt.s32.totalorder %s26321_s25, %s26321_s25 }
  0x1a   : > { %p26050_p12 = scmp.ne.s32.totalorder %s26321_s25, %s26049_s29  ;;  %p26058_p4 = scmp.lt.s32.totalorder %s26049_s29, %s26049_s29 }
  0x1c   : > { %p26052_p13 = pnand %p26050_p12, %p26345_p7  ;;  %p26059_p6 = por %p26058_p4, %p26057_p1 }
  0x1e   : > { %p26053_p0 = pneg %p26052_p13 }
  0x20   : > { %p26060_p8 = pnand %p26059_p6, %p26053_p0 }
  0x22   : > { %26063 = shalt.err (!%p26060_p8)
}
  0x23   : > { %s26232_s13 = smov 64   ;;  %s26233_s15 = smov 4  }
  0x24   : > { %25254 = dma.hbm_to_vmem [thread:$0]  (!%p26329_p5), %s29496_s4, 24576, %s26321_s25, [#allocation5], %s26232_s13, %s26232_s13, %s26233_s15  }
  0x25   : > { %s26064_s24 = scalar_lea.hbm %s29501_s9, 4096 }
  0x26   : > { %p26065_p9 = scmp.ne.s32.totalorder %s29501_s9, %s26064_s24  ;;  %p26071_p12 = scmp.lt.u32.totalorder %s26064_s24, %s29501_s9 }
  0x28   : > { %p26067_p10 = pnand %p26065_p9, %p26345_p7 }
  0x2a   : > { %p26068_p11 = pneg %p26067_p10 }
  0x2c   : > { %p26073_p13 = pnand %p26071_p12, %p26068_p11 }
  0x2e   : > { %26076 = shalt.err (!%p26073_p13)
}
  0x2f   : > { %s26077_s25 = scalar_lea.vmem %s26325_s27, 4096  ;;  %p26085_p6 = scmp.lt.s32.totalorder %s26325_s27, %s26325_s27 }
  0x30   : > { %p26078_p0 = scmp.ne.s32.totalorder %s26325_s27, %s26077_s25  ;;  %p26086_p8 = scmp.lt.s32.totalorder %s26077_s25, %s26077_s25 }
  0x32   : > { %p26080_p1 = pnand %p26078_p0, %p26345_p7  ;;  %p26087_p9 = por %p26086_p8, %p26085_p6 }
  0x34   : > { %p26081_p4 = pneg %p26080_p1 }
  0x36   : > { %p26088_p10 = pnand %p26087_p9, %p26081_p4 }
  0x38   : > { %26091 = shalt.err (!%p26088_p10)
}
  0x39   : > { %25260 = dma.hbm_to_vmem [thread:$0]  (!%p26329_p5), %s29501_s9, 4096, %s26325_s27, [#allocation8], %s26232_s13, %s26232_s13, %s26233_s15  }
  0x3a   : > { %s26092_s18 = scalar_lea.hbm %s29495_s3, 2048 }
  0x3b   : > { %p26093_p11 = scmp.ne.s32.totalorder %s29495_s3, %s26092_s18  ;;  %p26099_p0 = scmp.lt.u32.totalorder %s26092_s18, %s29495_s3 }
  0x3d   : > { %p26095_p12 = pnand %p26093_p11, %p26345_p7 }
  0x3f   : > { %p26096_p13 = pneg %p26095_p12 }
  0x41   : > { %p26101_p1 = pnand %p26099_p0, %p26096_p13 }
  0x43   : > { %26104 = shalt.err (!%p26101_p1)
}
  0x44   : > { %s26105_s27 = scalar_lea.vmem %s26333_s30, 2048  ;;  %p26113_p9 = scmp.lt.s32.totalorder %s26333_s30, %s26333_s30 }
  0x45   : > { %p26106_p4 = scmp.ne.s32.totalorder %s26333_s30, %s26105_s27  ;;  %p26114_p10 = scmp.lt.s32.totalorder %s26105_s27, %s26105_s27 }
  0x47   : > { %p26108_p6 = pnand %p26106_p4, %p26345_p7  ;;  %p26115_p11 = por %p26114_p10, %p26113_p9 }
  0x49   : > { %p26109_p8 = pneg %p26108_p6 }
  0x4b   : > { %p26116_p12 = pnand %p26115_p11, %p26109_p8 }
  0x4d   : > { %26119 = shalt.err (!%p26116_p12)
}
  0x4e   : > { %25251 = dma.hbm_to_vmem [thread:$0]  (!%p26329_p5), %s29495_s3, 2048, %s26333_s30, [#allocation3], %s26232_s13, %s26232_s13, %s26233_s15  }
  0x4f   : > { %s26120_s17 = scalar_lea.hbm %s29499_s7, 12288 }
  0x50   : > { %p26121_p13 = scmp.ne.s32.totalorder %s29499_s7, %s26120_s17  ;;  %p26127_p4 = scmp.lt.u32.totalorder %s26120_s17, %s29499_s7 }
  0x52   : > { %p26123_p0 = pnand %p26121_p13, %p26345_p7 }
  0x54   : > { %p26124_p1 = pneg %p26123_p0 }
  0x56   : > { %p26129_p6 = pnand %p26127_p4, %p26124_p1 }
  0x58   : > { %26132 = shalt.err (!%p26129_p6)
}
  0x59   : > { %s26133_s29 = scalar_lea.vmem %s367_s14, 12288  ;;  %p26141_p11 = scmp.lt.s32.totalorder %s367_s14, %s367_s14 }
  0x5a   : > { %p26134_p8 = scmp.ne.s32.totalorder %s367_s14, %s26133_s29  ;;  %p26142_p12 = scmp.lt.s32.totalorder %s26133_s29, %s26133_s29 }
  0x5c   : > { %p26136_p9 = pnand %p26134_p8, %p26345_p7  ;;  %p26143_p2 = por %p26142_p12, %p26141_p11 }
  0x5e   : > { %p26137_p10 = pneg %p26136_p9 }
  0x60   : > { %p26144_p3 = pnand %p26143_p2, %p26137_p10 }
  0x62   : > { %26147 = shalt.err (!%p26144_p3)
}
  0x63   : > { %25257 = dma.hbm_to_vmem [thread:$0]  (!%p26329_p5), %s29499_s7, 12288, %s367_s14, [#allocation5], %s26232_s13, %s26232_s13, %s26233_s15  }
  0x64   : > { %s26234_s25 = smov [#allocation9]   ;;  %s26148_s17 = scalar_lea.hbm %s29502_s10, 384 }
  0x65   : > { %s395_s12 = sshll.u32 %s26234_s25, 4  ;;  %p26149_p2 = scmp.ne.s32.totalorder %s29502_s10, %s26148_s17  ;;  %s396_s12 = int_to_ptr.vmem [resolvable:$true] %s395_s12 }
  0x66   : > { %p26155_p0 = scmp.lt.u32.totalorder %s26148_s17, %s29502_s10 }
  0x67   : > { %p26151_p3 = pnand %p26149_p2, %p26345_p7 }
  0x69   : > { %p26152_p13 = pneg %p26151_p3 }
  0x6b   : > { %p26157_p1 = pnand %p26155_p0, %p26152_p13 }
  0x6d   : > { %26160 = shalt.err (!%p26157_p1)
}
  0x6e   : > { %s26161_s14 = scalar_lea.vmem %s396_s12, 384  ;;  %p26169_p9 = scmp.lt.s32.totalorder %s396_s12, %s396_s12 }
  0x6f   : > { %p26162_p4 = scmp.ne.s32.totalorder %s396_s12, %s26161_s14  ;;  %p26170_p10 = scmp.lt.s32.totalorder %s26161_s14, %s26161_s14 }
  0x71   : > { %p26164_p6 = pnand %p26162_p4, %p26345_p7  ;;  %p26171_p11 = por %p26170_p10, %p26169_p9 }
  0x73   : > { %p26165_p8 = pneg %p26164_p6 }
  0x75   : > { %p26172_p12 = pnand %p26171_p11, %p26165_p8 }
  0x77   : > { %26175 = shalt.err (!%p26172_p12)
}
  0x78   : > { %s26235_s13 = smov 16   ;;  %s26236_s15 = smov 1  }
  0x79   : > { %25263 = dma.hbm_to_vmem [thread:$0]  (!%p26329_p5), %s29502_s10, 384, %s396_s12, [#allocation8], %s26235_s13, %s26235_s13, %s26236_s15  }
  0x7a   : > { %s26237_s27 = smov [#allocation10]   ;;  %s26176_s17 = scalar_lea.hbm %s29503_s11, 96 }
  0x7b   : > { %s409_s25 = sshll.u32 %s26237_s27, 4  ;;  %p26177_p2 = scmp.ne.s32.totalorder %s29503_s11, %s26176_s17  ;;  %s410_s25 = int_to_ptr.vmem [resolvable:$true] %s409_s25 }
  0x7c   : > { %p26183_p0 = scmp.lt.u32.totalorder %s26176_s17, %s29503_s11 }
  0x7d   : > { %p26179_p3 = pnand %p26177_p2, %p26345_p7 }
  0x7f   : > { %p26180_p13 = pneg %p26179_p3 }
  0x81   : > { %p26185_p1 = pnand %p26183_p0, %p26180_p13 }
  0x83   : > { %26188 = shalt.err (!%p26185_p1)
}
  0x84   : > { %s26189_s12 = scalar_lea.vmem %s410_s25, 96  ;;  %p26197_p9 = scmp.lt.s32.totalorder %s410_s25, %s410_s25 }
  0x85   : > { %p26190_p4 = scmp.ne.s32.totalorder %s410_s25, %s26189_s12  ;;  %p26198_p10 = scmp.lt.s32.totalorder %s26189_s12, %s26189_s12 }
  0x87   : > { %p26192_p6 = pnand %p26190_p4, %p26345_p7  ;;  %p26199_p11 = por %p26198_p10, %p26197_p9 }
  0x89   : > { %p26193_p8 = pneg %p26192_p6 }
  0x8b   : > { %p26200_p12 = pnand %p26199_p11, %p26193_p8 }
  0x8d   : > { %26203 = shalt.err (!%p26200_p12)
}
  0x8e   : > { %25266 = dma.hbm_to_vmem [thread:$0]  (!%p26329_p5), %s29503_s11, 96, %s410_s25, [#allocation11]  }
  0x8f   : > { %p29513_p2 = scmp.ne.s32.totalorder %s29510_s23, 0 }
  0x90   : > { %p29514_p3 = scmp.eq.s32.totalorder (!%p29513_p2), %s26312_s22, 0 }
  0x91   : > { %436 = sbr.rel (%p29513_p2) target bundleno = 15496 (0x3c88), region = 68 }
  0x98   : > { %26209 = dma.done.wait (%p29514_p3), [#allocation3], 2048   ;;  %p29515_p7 = pmov %p29514_p3 }
  0x99   : > { %p29516_p13 = pmov %p29514_p3 }
  0x9a   : > { %26211 = vsyncadd (%p29515_p7), [#allocation3], 4294965248 }
  0x9b   : > { %26213 = dma.done.wait (%p29516_p13), [#allocation5], 36864   ;;  %p29517_p0 = pmov %p29514_p3 }
  0x9d   : > { %26215 = vsyncadd (%p29517_p0), [#allocation5], 4294930432  ;;  %p29518_p1 = pmov %p29517_p0 }
  0x9e   : > { %p29519_p5 = pmov %p29517_p0 }
  0x9f   : > { %26217 = dma.done.wait (%p29518_p1), [#allocation8], 4480  }
  0xa0   : > { %26219 = vsyncadd (%p29519_p5), [#allocation8], 4294962816  ;;  %p29520_p4 = pmov %p29517_p0 }
  0xa1   : > { %p29521_p6 = pmov %p29517_p0 }
  0xa2   : > { %26221 = dma.done.wait (%p29520_p4), [#allocation11], 96  }
  0xa3   : > { %26223 = vsyncadd (%p29521_p6), [#allocation11], 4294967200  ;;  %v26238_v0 = vmov 0.0   ;;  %vm26239_vm0 = vmmov 0   ;;  %v25301_v1 = vld [vmem:[#allocation2] sm:$0xff]   ;;  %p499_p8 = scmp.lt.s32.totalorder %s26312_s22, 1 }
  0xa4   : > { %23168 = vmatprep.subr.bf16.mxu0 %v26238_v0  ;;  %23184 = vmatprep.mubr.msk.bf16.mxu0 %vm26239_vm0, %v26238_v0  ;;  %v25302_v2 = vld [vmem:[#allocation2 + $0x8] sm:$0xff]   ;;  %v25303_v3 = vld [vmem:[#allocation2 + $0x10] sm:$0xff]   ;;  %v25304_v4 = vld [vmem:[#allocation2 + $0x18] sm:$0xff]   ;;  %vm1979_vm1 = vcmask 130048   ;;  %vm2456_vm2 = vcmask 1043456   ;;  %vm2348_vm3 = vcmask 64512  }
  0xa5   : > { %23188 = vmatprep.subr.bf16.mxu1 %v26238_v0  ;;  %23190 = vmatprep.mubr.msk.bf16.mxu1 %vm26239_vm0, %v26238_v0  ;;  %s29525_s22 = smov (!%p499_p8, %s26312_s22), 1  ;;  %v25305_v5 = vld [vmem:[#allocation2 + $0x20] sm:$0xff]   ;;  %v25306_v6 = vld [vmem:[#allocation2 + $0x28] sm:$0xff]   ;;  %v25307_v7 = vld [vmem:[#allocation2 + $0x30] sm:$0xff]   ;;  %vm21180_vm4 = vcmask 1040384  }
  0xa6   : > { %23169 = vmatpush3.bf16.msra.mxu0 %v25301_v1  ;;  %s21331_s23 = sshll.u32 %s29525_s22, 3  ;;  %v25308_v8 = vld [vmem:[#allocation2 + $0x38] sm:$0xff]   ;;  %v25309_v11 = vld [vmem:[#allocation4] sm:$0xff]   ;;  %v25311_v19 = vld [vmem:[#allocation4 + $0x8] sm:$0xff]  }
  0xa7   : > { %23170 = vmatprep.subr.bf16.mxu0 %v26238_v0  ;;  %s502_s15 = scalar_lea.vmem %s29492_s0, %s21331_s23  ;;  %v25310_v12 = vld [vmem:[#allocation4 + $0x20] sm:$0xff]   ;;  %23189 = vmatpush3.bf16.xpose.msra.mxu1 %v25309_v11  ;;  %v25312_v22 = vld [vmem:[#allocation4 + $0x30] sm:$0xff]   ;;  %v25315_v26 = vld [vmem:[#allocation4 + $0x18] sm:$0xff]   ;;  %s506_s19 = scalar_lea.vmem %s29493_s1, %s21331_s23 }
  0xa8   : > { %v512_v9 = vld [vmem:[%s502_s15] sm:$0xff]  ;;  %23194 = vmatprep.subr.bf16.mxu1 %v26238_v0  ;;  %v25313_v24 = vld [vmem:[#allocation4 + $0x10] sm:$0xff]   ;;  %v25317_v28 = vld [vmem:[#allocation4 + $0x28] sm:$0xff]   ;;  %s29522_s15 = sld [smem:[#allocation17_spill]] }
  0xa9   : > { %v529_v10 = vpack.c.bf16 %v512_v9, %v512_v9  ;;  %v530_v13 = vld [vmem:[%s29500_s8] ss:$0 sm:$0xff]  ;;  %v25316_v27 = vld [vmem:[#allocation4 + $0x50] sm:$0xff]   ;;  %v25319_v30 = vld [vmem:[#allocation4 + $0x38] sm:$0xff]  }
  0xaa   : > { %23171 = vmatpush3.bf16.msra.mxu0 %v25302_v2  ;;  %v511_v14 = vld [vmem:[%s29494_s2] sm:$0xff]  ;;  %v25320_v31 = vld [vmem:[#allocation4 + $0x70] sm:$0xff]   ;;  %v25321_v32 = vld [vmem:[#allocation4 + $0x48] sm:$0xff]  }
  0xab   : > { %23172 = vmatprep.subr.bf16.mxu0 %v26238_v0  ;;  %v25314_v25 = vld [vmem:[#allocation4 + $0x40] sm:$0xff]   ;;  %v25323_v34 = vld [vmem:[#allocation4 + $0x58] sm:$0xff]   ;;  %v25324_v35 = vld [vmem:[#allocation4 + $0x90] sm:$0xff]  }
  0xac   : > { %v25318_v29 = vld [vmem:[#allocation4 + $0x60] sm:$0xff]   ;;  %v25325_v36 = vld [vmem:[#allocation4 + $0x68] sm:$0xff]   ;;  %v25327_v38 = vld [vmem:[#allocation4 + $0x78] sm:$0xff]  }
  0xad   : > { %v25322_v33 = vld [vmem:[#allocation4 + $0x80] sm:$0xff]   ;;  %v25328_v39 = vld [vmem:[#allocation4 + $0xb0] sm:$0xff]   ;;  %v25329_v40 = vld [vmem:[#allocation4 + $0x88] sm:$0xff]  }
  0xae   : > { %23173 = vmatpush3.bf16.msra.mxu0 %v25303_v3  ;;  %v25326_v37 = vld [vmem:[#allocation4 + $0xa0] sm:$0xff]   ;;  %v25330_v41 = vld [vmem:[#allocation4 + $0x98] sm:$0xff]   ;;  %v25331_v42 = vld [vmem:[#allocation4 + $0xa8] sm:$0xff]   ;;  %s509_s29 = scalar_lea.vmem %s29522_s15, %s29525_s22 }
  0xaf   : > { %23174 = vmatprep.subr.bf16.mxu0 %v26238_v0  ;;  %v25332_v43 = vld [vmem:[#allocation4 + $0xb8] sm:$0xff]   ;;  %v21373_v60 = vld [vmem:[%s29497_s5 + $0x8] ss:$0 sm:$0xff] }
  0xb2   : > { %23175 = vmatpush3.bf16.msra.mxu0 %v25304_v4 }
  0xb3   : > { %23176 = vmatprep.subr.bf16.mxu0 %v26238_v0 }
  0xb6   : > { %23177 = vmatpush3.bf16.msra.mxu0 %v25305_v5 }
  0xb7   : > { %23178 = vmatprep.subr.bf16.mxu0 %v26238_v0 }
  0xba   : > { %23179 = vmatpush3.bf16.msra.mxu0 %v25306_v6 }
  0xbb   : > { %23180 = vmatprep.subr.bf16.mxu0 %v26238_v0 }
  0xbe   : > { %23181 = vmatpush3.bf16.msra.mxu0 %v25307_v7 }
  0xbf   : > { %23182 = vmatprep.subr.bf16.mxu0 %v26238_v0 }
  0xc2   : > { %23183 = vmatpush3.bf16.msra.mxu0 %v25308_v8  ;;  %v21357_v8 = vld [vmem:[%s29497_s5] ss:$0 sm:$0xff] }
  0xc3   : > { %23212 = vmatprep.subr.bf16.mxu0 %v26238_v0 }
  0xc5   : > { %23185 = vmatmul.mubr.bf16.vlgmr.msra.gmra.mrb[0].mxu0 %v529_v10  ;;  %v21375_v10 = vld [vmem:[%s29497_s5 + $0xa] ss:$0 sm:$0xff] }
  0xc6   : > { %23214 = vmatprep.mubr.msk.bf16.mxu0 %vm26239_vm0, %v26238_v0 }
  0xcb   : > { %23213 = vmatpush3.bf16.xpose.msra.mxu0 %v25310_v12 }
  0xcc   : > { %23224 = vmatprep.subr.bf16.mxu0 %v26238_v0 }
 0x198   : > { %v613_v15 = vpop.f32.mrb[0].mxu0 }
 0x199   : > { %v614_v16 = vadd.f32 %v613_v15, %v530_v13  ;;  %v23186_v17 = vpop.f32.mrb[1].mxu0 }
 0x19a   : > { %v616_v18 = vpop.f32.mrb[2].mxu0 }
 0x19b   : > { %v26531_v20 = vadd.f32 %v614_v16, %v511_v14  ;;  %v23187_v21 = vpop.f32.mrb[3].mxu0 }
 0x19d   : > { %v26535_v23 = vpack.c.bf16 %v26531_v20, %v26531_v20 }
 0x19f   : > { %23191 = vmatmul.mubr.bf16.vlgmr.msra.gmra.mrb[0].mxu1 %v26535_v23  ;;  %23215 = vmatmul.mubr.bf16.vlgmr.msra.gmra.mrb[4].mxu0 %v26535_v23 }
 0x1a0   : > { %23195 = vmatpush3.bf16.xpose.msra.mxu1 %v25311_v19  ;;  %23225 = vmatpush3.bf16.xpose.msra.mxu0 %v25312_v22 }
 0x1a1   : > { %23196 = vmatprep.mubr.msk.bf16.mxu1 %vm26239_vm0, %v26238_v0  ;;  %23226 = vmatprep.mubr.msk.bf16.mxu0 %vm26239_vm0, %v26238_v0 }
 0x1a2   : > { %23200 = vmatprep.subr.bf16.mxu1 %v26238_v0  ;;  %23236 = vmatprep.subr.bf16.mxu0 %v26238_v0 }
 0x1a7   : > { %23197 = vmatmul.mubr.bf16.vlgmr.msra.gmra.mrb[4].mxu1 %v26535_v23  ;;  %23227 = vmatmul.mubr.bf16.vlgmr.msra.gmra.mrb[8].mxu0 %v26535_v23 }
 0x1a8   : > { %23201 = vmatpush3.bf16.xpose.msra.mxu1 %v25313_v24  ;;  %23237 = vmatpush3.bf16.xpose.msra.mxu0 %v25314_v25  ;;  %v21359_v24 = vld [vmem:[%s29497_s5 + $0x2] ss:$0 sm:$0xff] }
 0x1a9   : > { %23202 = vmatprep.mubr.msk.bf16.mxu1 %vm26239_vm0, %v26238_v0  ;;  %23238 = vmatprep.mubr.msk.bf16.mxu0 %vm26239_vm0, %v26238_v0 }
 0x1aa   : > { %23206 = vmatprep.subr.bf16.mxu1 %v26238_v0  ;;  %23248 = vmatprep.subr.bf16.mxu0 %v26238_v0 }
 0x1af   : > { %23203 = vmatmul.mubr.bf16.vlgmr.msra.gmra.mrb[8].mxu1 %v26535_v23  ;;  %23239 = vmatmul.mubr.bf16.vlgmr.msra.gmra.mrb[12].mxu0 %v26535_v23 }
 0x1b0   : > { %23207 = vmatpush3.bf16.xpose.msra.mxu1 %v25315_v26  ;;  %23249 = vmatpush3.bf16.xpose.msra.mxu0 %v25316_v27  ;;  %v21377_v26 = vld [vmem:[%s29497_s5 + $0xc] ss:$0 sm:$0xff] }
 0x1b1   : > { %23208 = vmatprep.mubr.msk.bf16.mxu1 %vm26239_vm0, %v26238_v0  ;;  %23250 = vmatprep.mubr.msk.bf16.mxu0 %vm26239_vm0, %v26238_v0 }
 0x1b2   : > { %23218 = vmatprep.subr.bf16.mxu1 %v26238_v0  ;;  %23260 = vmatprep.subr.bf16.mxu0 %v26238_v0 }
 0x1b7   : > { %23209 = vmatmul.mubr.bf16.vlgmr.msra.gmra.mrb[12].mxu1 %v26535_v23  ;;  %23251 = vmatmul.mubr.bf16.vlgmr.msra.gmra.mrb[16].mxu0 %v26535_v23 }
 0x1b8   : > { %23219 = vmatpush3.bf16.xpose.msra.mxu1 %v25317_v28  ;;  %23261 = vmatpush3.bf16.xpose.msra.mxu0 %v25318_v29 }
 0x1b9   : > { %23220 = vmatprep.mubr.msk.bf16.mxu1 %vm26239_vm0, %v26238_v0  ;;  %23262 = vmatprep.mubr.msk.bf16.mxu0 %vm26239_vm0, %v26238_v0 }
 0x1ba   : > { %23230 = vmatprep.subr.bf16.mxu1 %v26238_v0  ;;  %23272 = vmatprep.subr.bf16.mxu0 %v26238_v0 }
 0x1bf   : > { %23221 = vmatmul.mubr.bf16.vlgmr.msra.gmra.mrb[16].mxu1 %v26535_v23  ;;  %23263 = vmatmul.mubr.bf16.vlgmr.msra.gmra.mrb[20].mxu0 %v26535_v23 }
 0x1c0   : > { %23231 = vmatpush3.bf16.xpose.msra.mxu1 %v25319_v30  ;;  %23273 = vmatpush3.bf16.xpose.msra.mxu0 %v25320_v31 }
 0x1c1   : > { %23232 = vmatprep.mubr.msk.bf16.mxu1 %vm26239_vm0, %v26238_v0  ;;  %23274 = vmatprep.mubr.msk.bf16.mxu0 %vm26239_vm0, %v26238_v0 }
 0x1c2   : > { %23242 = vmatprep.subr.bf16.mxu1 %v26238_v0  ;;  %23284 = vmatprep.subr.bf16.mxu0 %v26238_v0 }
 0x1c7   : > { %23233 = vmatmul.mubr.bf16.vlgmr.msra.gmra.mrb[20].mxu1 %v26535_v23  ;;  %23275 = vmatmul.mubr.bf16.vlgmr.msra.gmra.mrb[24].mxu0 %v26535_v23 }
 0x1c8   : > { %23243 = vmatpush3.bf16.xpose.msra.mxu1 %v25321_v32  ;;  %23285 = vmatpush3.bf16.xpose.msra.mxu0 %v25322_v33 }
 0x1c9   : > { %23244 = vmatprep.mubr.msk.bf16.mxu1 %vm26239_vm0, %v26238_v0  ;;  %23286 = vmatprep.mubr.msk.bf16.mxu0 %vm26239_vm0, %v26238_v0 }
 0x1ca   : > { %23254 = vmatprep.subr.bf16.mxu1 %v26238_v0  ;;  %23296 = vmatprep.subr.bf16.mxu0 %v26238_v0 }
 0x1cf   : > { %23245 = vmatmul.mubr.bf16.vlgmr.msra.gmra.mrb[24].mxu1 %v26535_v23  ;;  %23287 = vmatmul.mubr.bf16.vlgmr.msra.gmra.mrb[28].mxu0 %v26535_v23 }
 0x1d0   : > { %23255 = vmatpush3.bf16.xpose.msra.mxu1 %v25323_v34  ;;  %23297 = vmatpush3.bf16.xpose.msra.mxu0 %v25324_v35 }
 0x1d1   : > { %23256 = vmatprep.mubr.msk.bf16.mxu1 %vm26239_vm0, %v26238_v0  ;;  %23298 = vmatprep.mubr.msk.bf16.mxu0 %vm26239_vm0, %v26238_v0 }
 0x1d2   : > { %23266 = vmatprep.subr.bf16.mxu1 %v26238_v0  ;;  %23308 = vmatprep.subr.bf16.mxu0 %v26238_v0 }
 0x1d7   : > { %23257 = vmatmul.mubr.bf16.vlgmr.msra.gmra.mrb[28].mxu1 %v26535_v23  ;;  %23299 = vmatmul.mubr.bf16.vlgmr.msra.gmra.mrb[32].mxu0 %v26535_v23 }
 0x1d8   : > { %23267 = vmatpush3.bf16.xpose.msra.mxu1 %v25325_v36  ;;  %23309 = vmatpush3.bf16.xpose.msra.mxu0 %v25326_v37 }
 0x1d9   : > { %23268 = vmatprep.mubr.msk.bf16.mxu1 %vm26239_vm0, %v26238_v0  ;;  %23310 = vmatprep.mubr.msk.bf16.mxu0 %vm26239_vm0, %v26238_v0 }
 0x1da   : > { %23278 = vmatprep.subr.bf16.mxu1 %v26238_v0  ;;  %23320 = vmatprep.subr.bf16.mxu0 %v26238_v0 }
 0x1df   : > { %23269 = vmatmul.mubr.bf16.vlgmr.msra.gmra.mrb[32].mxu1 %v26535_v23  ;;  %23311 = vmatmul.mubr.bf16.vlgmr.msra.gmra.mrb[36].mxu0 %v26535_v23 }
 0x1e0   : > { %23279 = vmatpush3.bf16.xpose.msra.mxu1 %v25327_v38  ;;  %23321 = vmatpush3.bf16.xpose.msra.mxu0 %v25328_v39  ;;  %v21361_v39 = vld [vmem:[%s29497_s5 + $0x4] ss:$0 sm:$0xff] }
 0x1e1   : > { %23280 = vmatprep.mubr.msk.bf16.mxu1 %vm26239_vm0, %v26238_v0  ;;  %23322 = vmatprep.mubr.msk.bf16.mxu0 %vm26239_vm0, %v26238_v0 }
 0x1e2   : > { %23290 = vmatprep.subr.bf16.mxu1 %v26238_v0  ;;  %23332 = vmatprep.subr.bf16.mxu0 %v26238_v0 }
 0x1e7   : > { %23281 = vmatmul.mubr.bf16.vlgmr.msra.gmra.mrb[36].mxu1 %v26535_v23  ;;  %23323 = vmatmul.mubr.bf16.vlgmr.msra.gmra.mrb[40].mxu0 %v26535_v23 }
 0x1e8   : > { %23291 = vmatpush3.bf16.xpose.msra.mxu1 %v25329_v40  ;;  %23292 = vmatprep.mubr.msk.bf16.mxu1 %vm26239_vm0, %v26238_v0 }
 0x1e9   : > { %23302 = vmatprep.subr.bf16.mxu1 %v26238_v0  ;;  %23334 = vmatprep.mubr.msk.bf16.mxu0 %vm26239_vm0, %v26238_v0 }
 0x1ef   : > { %23293 = vmatmul.mubr.bf16.vlgmr.msra.gmra.mrb[40].mxu1 %v26535_v23 }
 0x1f0   : > { %23303 = vmatpush3.bf16.xpose.msra.mxu1 %v25330_v41  ;;  %23304 = vmatprep.mubr.msk.bf16.mxu1 %vm26239_vm0, %v26238_v0  ;;  %v21379_v41 = vld [vmem:[%s29497_s5 + $0xe] ss:$0 sm:$0xff] }
 0x1f1   : > { %23314 = vmatprep.subr.bf16.mxu1 %v26238_v0 }
 0x1f7   : > { %23305 = vmatmul.mubr.bf16.vlgmr.msra.gmra.mrb[44].mxu1 %v26535_v23 }
 0x1f8   : > { %23315 = vmatpush3.bf16.xpose.msra.mxu1 %v25331_v42  ;;  %23316 = vmatprep.mubr.msk.bf16.mxu1 %vm26239_vm0, %v26238_v0 }
 0x1f9   : > { %23326 = vmatprep.subr.bf16.mxu1 %v26238_v0 }
 0x1ff   : > { %23317 = vmatmul.mubr.bf16.vlgmr.msra.gmra.mrb[48].mxu1 %v26535_v23 }
 0x200   : > { %23327 = vmatpush3.bf16.xpose.msra.mxu1 %v25332_v43  ;;  %23328 = vmatprep.mubr.msk.bf16.mxu1 %vm26239_vm0, %v26238_v0 }
 0x201   : > { %23338 = vmatprep.subr.bf16.mxu1 %v26238_v0 }
 0x207   : > { %23329 = vmatmul.mubr.bf16.vlgmr.msra.gmra.mrb[52].mxu1 %v26535_v23 }
 0x208   : > { %23340 = vmatprep.mubr.msk.bf16.mxu1 %vm26239_vm0, %v26238_v0 }
 0x272   : > { %v803_v44 = vpop.f32.mrb[0].mxu1  ;;  %v26631_v45 = vpop.f32.mrb[4].mxu0 }
 0x273   : > { %v23192_v46 = vpop.f32.mrb[1].mxu1  ;;  %v23216_v47 = vpop.f32.mrb[5].mxu0  ;;  %v804_v11 = vadd.f32 %v21357_v8, %v803_v44  ;;  %v988_v42 = vadd.f32 %v21361_v39, %v26631_v45 }
 0x274   : > { %v806_v48 = vpop.f32.mrb[2].mxu1  ;;  %v990_v49 = vpop.f32.mrb[6].mxu0 }
 0x275   : > { %v23193_v50 = vpop.f32.mrb[3].mxu1  ;;  %v23217_v51 = vpop.f32.mrb[7].mxu0  ;;  %v1963_v19 = vpack.c.bf16 %v804_v11, %v804_v11 }
 0x276   : > { %v1967_v51 = vpack.c.bf16 %v988_v42, %v988_v42 }
 0x27a   : > { %v26633_v52 = vpop.f32.mrb[4].mxu1  ;;  %v26635_v53 = vpop.f32.mrb[8].mxu0 }
 0x27b   : > { %v23198_v54 = vpop.f32.mrb[5].mxu1  ;;  %v23228_v55 = vpop.f32.mrb[9].mxu0 }
 0x27c   : > { %v852_v56 = vpop.f32.mrb[6].mxu1  ;;  %v1082_v57 = vpop.f32.mrb[10].mxu0 }
 0x27d   : > { %v23199_v58 = vpop.f32.mrb[7].mxu1  ;;  %v23229_v59 = vpop.f32.mrb[11].mxu0  ;;  %v21363_v57 = vld [vmem:[%s29497_s5 + $0x6] ss:$0 sm:$0xff] }
 0x27e   : > { %v21374_v58 = vld [vmem:[%s29497_s5 + $0x9] ss:$0 sm:$0xff]  ;;  %v21389_v59 = vld [vmem:[%s29497_s5 + $0x10] ss:$0 sm:$0xff] }
 0x282   : > { %v895_v61 = vpop.f32.mrb[8].mxu1  ;;  %v1219_v62 = vpop.f32.mrb[12].mxu0 }
 0x283   : > { %v1220_v63 = vadd.f32 %v21373_v60, %v1219_v62  ;;  %v23204_v1 = vpop.f32.mrb[9].mxu1  ;;  %v23240_v2 = vpop.f32.mrb[13].mxu0  ;;  %v896_v27 = vadd.f32 %v21359_v24, %v895_v61  ;;  %v1080_v60 = vadd.f32 %v21363_v57, %v26635_v53  ;;  %v21358_v53 = vld [vmem:[%s29497_s5 + $0x1] ss:$0 sm:$0xff] }
 0x284   : > { %v898_v3 = vpop.f32.mrb[10].mxu1  ;;  %v1222_v4 = vpop.f32.mrb[14].mxu0 }
 0x285   : > { %v1971_v5 = vpack.c.bf16 %v1220_v63, %v1220_v63  ;;  %v23205_v6 = vpop.f32.mrb[11].mxu1  ;;  %v23241_v7 = vpop.f32.mrb[15].mxu0  ;;  %v1965_v35 = vpack.c.bf16 %v896_v27, %v896_v27 }
 0x286   : > { %v1969_v6 = vpack.c.bf16 %v1080_v60, %v1080_v60  ;;  %v21364_v60 = vld [vmem:[%s29497_s5 + $0x7] ss:$0 sm:$0xff] }
 0x287   : > { %v1984_v9 = vsel %vm1979_vm1, %v1971_v5, 0 }
 0x288   : > { %23333 = vmatpush3.bf16.xpose.msra.mxu0 %v1984_v9 }
 0x289   : > { %23344 = vmatprep.subr.bf16.mxu0 %v26238_v0 }
 0x28a   : > { %v26648_v12 = vpop.f32.mrb[12].mxu1  ;;  %v1311_v13 = vpop.f32.mrb[16].mxu0 }
 0x28b   : > { %v1312_v14 = vadd.f32 %v21375_v10, %v1311_v13  ;;  %v23210_v15 = vpop.f32.mrb[13].mxu1  ;;  %v23252_v16 = vpop.f32.mrb[17].mxu0 }
 0x28c   : > { %v944_v17 = vpop.f32.mrb[14].mxu1  ;;  %v1314_v18 = vpop.f32.mrb[18].mxu0  ;;  %v850_v15 = vadd.f32 %v21358_v53, %v26633_v52  ;;  %v21360_v52 = vld [vmem:[%s29497_s5 + $0x3] ss:$0 sm:$0xff] }
 0x28d   : > { %v1973_v21 = vpack.c.bf16 %v1312_v14, %v1312_v14  ;;  %v23211_v22 = vpop.f32.mrb[15].mxu1  ;;  %v23253_v23 = vpop.f32.mrb[19].mxu0  ;;  %v21376_v14 = vld [vmem:[%s29497_s5 + $0xb] ss:$0 sm:$0xff] }
 0x28e   : > { %v1964_v24 = vpack.c.bf16 %v850_v15, %v850_v15 }
 0x28f   : > { %23335 = vmatmul.mubr.msk.bf16.vlgmr.msra.gmra.mrb[44].mxu0 %vm1979_vm1, %v1963_v19  ;;  %v2076_v25 = vsel %vm1979_vm1, %v1973_v21, 0 }
 0x290   : > { %23345 = vmatpush3.bf16.xpose.msra.mxu0 %v2076_v25  ;;  %23346 = vmatprep.mubr.msk.bf16.mxu0 %vm26239_vm0, %v26238_v0 }
 0x291   : > { %23356 = vmatprep.subr.bf16.mxu0 %v26238_v0 }
 0x292   : > { %v26661_v28 = vpop.f32.mrb[16].mxu1  ;;  %v1403_v29 = vpop.f32.mrb[20].mxu0 }
 0x293   : > { %v1404_v30 = vadd.f32 %v21377_v26, %v1403_v29  ;;  %v23222_v31 = vpop.f32.mrb[17].mxu1  ;;  %v23264_v32 = vpop.f32.mrb[21].mxu0 }
 0x294   : > { %v1036_v33 = vpop.f32.mrb[18].mxu1  ;;  %v1406_v34 = vpop.f32.mrb[22].mxu0  ;;  %v942_v31 = vadd.f32 %v21360_v52, %v26648_v12 }
 0x295   : > { %v1975_v36 = vpack.c.bf16 %v1404_v30, %v1404_v30  ;;  %v23223_v37 = vpop.f32.mrb[19].mxu1  ;;  %v23265_v38 = vpop.f32.mrb[23].mxu0  ;;  %v21378_v30 = vld [vmem:[%s29497_s5 + $0xd] ss:$0 sm:$0xff] }
 0x296   : > { %v1966_v39 = vpack.c.bf16 %v942_v31, %v942_v31 }
 0x297   : > { %23347 = vmatmul.mubr.msk.bf16.vlgmr.msra.gmra.mrb[48].mxu0 %vm1979_vm1, %v1965_v35  ;;  %v2168_v40 = vsel %vm1979_vm1, %v1975_v36, 0 }
 0x298   : > { %23357 = vmatpush3.bf16.xpose.msra.mxu0 %v2168_v40  ;;  %23358 = vmatprep.mubr.msk.bf16.mxu0 %vm26239_vm0, %v26238_v0 }
 0x299   : > { %23368 = vmatprep.subr.bf16.mxu0 %v26238_v0 }
 0x29a   : > { %v26675_v43 = vpop.f32.mrb[20].mxu1  ;;  %v1495_v44 = vpop.f32.mrb[24].mxu0 }
 0x29b   : > { %v1496_v46 = vadd.f32 %v21379_v41, %v1495_v44  ;;  %v23234_v47 = vpop.f32.mrb[21].mxu1  ;;  %v23276_v48 = vpop.f32.mrb[25].mxu0  ;;  %v21362_v44 = vld [vmem:[%s29497_s5 + $0x5] ss:$0 sm:$0xff] }
 0x29c   : > { %v1128_v49 = vpop.f32.mrb[22].mxu1  ;;  %v1498_v50 = vpop.f32.mrb[26].mxu0  ;;  %v1034_v47 = vadd.f32 %v21362_v44, %v26661_v28 }
 0x29d   : > { %v1977_v54 = vpack.c.bf16 %v1496_v46, %v1496_v46  ;;  %v23235_v55 = vpop.f32.mrb[23].mxu1  ;;  %v23277_v56 = vpop.f32.mrb[27].mxu0  ;;  %v21380_v46 = vld [vmem:[%s29497_s5 + $0xf] ss:$0 sm:$0xff] }
 0x29e   : > { %v1968_v57 = vpack.c.bf16 %v1034_v47, %v1034_v47 }
 0x29f   : > { %23359 = vmatmul.mubr.msk.bf16.vlgmr.msra.gmra.mrb[52].mxu0 %vm1979_vm1, %v1967_v51  ;;  %v2260_v45 = vsel %vm1979_vm1, %v1977_v54, 0 }
 0x2a0   : > { %23369 = vmatpush3.bf16.xpose.msra.mxu0 %v2260_v45  ;;  %23370 = vmatprep.mubr.msk.bf16.mxu0 %vm26239_vm0, %v26238_v0 }
 0x2a1   : > { %23380 = vmatprep.subr.bf16.mxu0 %v26238_v0 }
 0x2a2   : > { %v1265_v61 = vpop.f32.mrb[24].mxu1  ;;  %v1635_v62 = vpop.f32.mrb[28].mxu0 }
 0x2a3   : > { %v1266_v63 = vadd.f32 %v21374_v58, %v1265_v61  ;;  %v1636_v1 = vadd.f32 %v21389_v59, %v1635_v62  ;;  %v23246_v2 = vpop.f32.mrb[25].mxu1  ;;  %v23288_v3 = vpop.f32.mrb[29].mxu0  ;;  %v21390_v61 = vld [vmem:[%s29497_s5 + $0x11] ss:$0 sm:$0xff]  ;;  %v1126_v62 = vadd.f32 %v21364_v60, %v26675_v43 }
 0x2a4   : > { %v1268_v4 = vpop.f32.mrb[26].mxu1  ;;  %v1638_v5 = vpop.f32.mrb[30].mxu0 }
 0x2a5   : > { %v1972_v7 = vpack.c.bf16 %v1266_v63, %v1266_v63  ;;  %v2445_v8 = vpack.c.bf16 %v1636_v1, %v1636_v1  ;;  %v23247_v9 = vpop.f32.mrb[27].mxu1  ;;  %v23289_v10 = vpop.f32.mrb[31].mxu0  ;;  %v1970_v4 = vpack.c.bf16 %v1126_v62, %v1126_v62 }
 0x2a7   : > { %23371 = vmatmul.mubr.msk.bf16.vlgmr.msra.gmra.mrb[56].mxu0 %vm1979_vm1, %v1969_v6  ;;  %v2030_v11 = vsel %vm1979_vm1, %v1972_v7, 0  ;;  %v2458_v13 = vsel %vm2456_vm2, %v2445_v8, 0 }
 0x2a8   : > { %23339 = vmatpush3.bf16.xpose.msra.mxu1 %v2030_v11  ;;  %23381 = vmatpush3.bf16.msra.mxu0 %v2458_v13 }
 0x2a9   : > { %23350 = vmatprep.subr.bf16.mxu1 %v26238_v0  ;;  %23382 = vmatprep.mubr.msk.bf16.mxu0 %vm26239_vm0, %v26238_v0 }
 0x2aa   : > { %v1357_v16 = vpop.f32.mrb[28].mxu1  ;;  %v26705_v17 = vpop.f32.mrb[32].mxu0  ;;  %23392 = vmatprep.subr.bf16.mxu0 %v26238_v0 }
 0x2ab   : > { %v1358_v18 = vadd.f32 %v21376_v14, %v1357_v16  ;;  %v23258_v19 = vpop.f32.mrb[29].mxu1  ;;  %v23300_v21 = vpop.f32.mrb[33].mxu0 }
 0x2ac   : > { %v1360_v22 = vpop.f32.mrb[30].mxu1  ;;  %v1730_v23 = vpop.f32.mrb[34].mxu0 }
 0x2ad   : > { %v1974_v25 = vpack.c.bf16 %v1358_v18, %v1358_v18  ;;  %v23259_v26 = vpop.f32.mrb[31].mxu1  ;;  %v23301_v27 = vpop.f32.mrb[35].mxu0 }
 0x2af   : > { %23341 = vmatmul.mubr.msk.bf16.vlgmr.msra.gmra.mrb[56].mxu1 %vm1979_vm1, %v1964_v24  ;;  %v2122_v29 = vsel %vm1979_vm1, %v1974_v25, 0 }
 0x2b0   : > { %23351 = vmatpush3.bf16.xpose.msra.mxu1 %v2122_v29  ;;  %23352 = vmatprep.mubr.msk.bf16.mxu1 %vm26239_vm0, %v26238_v0 }
 0x2b1   : > { %23362 = vmatprep.subr.bf16.mxu1 %v26238_v0 }
 0x2b2   : > { %v1449_v32 = vpop.f32.mrb[32].mxu1  ;;  %v26720_v33 = vpop.f32.mrb[36].mxu0 }
 0x2b3   : > { %v1450_v34 = vadd.f32 %v21378_v30, %v1449_v32  ;;  %v23270_v35 = vpop.f32.mrb[33].mxu1  ;;  %v23312_v36 = vpop.f32.mrb[37].mxu0 }
 0x2b4   : > { %v1452_v37 = vpop.f32.mrb[34].mxu1  ;;  %v1822_v38 = vpop.f32.mrb[38].mxu0 }
 0x2b5   : > { %v1976_v40 = vpack.c.bf16 %v1450_v34, %v1450_v34  ;;  %v23271_v41 = vpop.f32.mrb[35].mxu1  ;;  %v23313_v42 = vpop.f32.mrb[39].mxu0 }
 0x2b7   : > { %23353 = vmatmul.mubr.msk.bf16.vlgmr.msra.gmra.mrb[60].mxu1 %vm1979_vm1, %v1966_v39  ;;  %v2214_v12 = vsel %vm1979_vm1, %v1976_v40, 0 }
 0x2b8   : > { %23363 = vmatpush3.bf16.xpose.msra.mxu1 %v2214_v12  ;;  %23364 = vmatprep.mubr.msk.bf16.mxu1 %vm26239_vm0, %v26238_v0 }
 0x2b9   : > { %23374 = vmatprep.subr.bf16.mxu1 %v26238_v0 }
 0x2ba   : > { %v1541_v48 = vpop.f32.mrb[36].mxu1  ;;  %v26734_v49 = vpop.f32.mrb[40].mxu0 }
 0x2bb   : > { %v1542_v50 = vadd.f32 %v21380_v46, %v1541_v48  ;;  %v23282_v51 = vpop.f32.mrb[37].mxu1  ;;  %v23324_v54 = vpop.f32.mrb[41].mxu0 }
 0x2bc   : > { %v1544_v55 = vpop.f32.mrb[38].mxu1  ;;  %v1914_v56 = vpop.f32.mrb[42].mxu0 }
 0x2bd   : > { %v1978_v45 = vpack.c.bf16 %v1542_v50, %v1542_v50  ;;  %v23283_v58 = vpop.f32.mrb[39].mxu1  ;;  %v23325_v59 = vpop.f32.mrb[43].mxu0 }
 0x2bf   : > { %23365 = vmatmul.mubr.msk.bf16.vlgmr.msra.gmra.mrb[64].mxu1 %vm1979_vm1, %v1968_v57  ;;  %v2306_v28 = vsel %vm1979_vm1, %v1978_v45, 0 }
 0x2c0   : > { %23375 = vmatpush3.bf16.xpose.msra.mxu1 %v2306_v28  ;;  %23376 = vmatprep.mubr.msk.bf16.mxu1 %vm26239_vm0, %v26238_v0 }
 0x2c1   : > { %23386 = vmatprep.subr.bf16.mxu1 %v26238_v0 }
 0x2c2   : > { %v1681_v63 = vpop.f32.mrb[40].mxu1 }
 0x2c3   : > { %v1682_v1 = vadd.f32 %v21390_v61, %v1681_v63  ;;  %v23294_v2 = vpop.f32.mrb[41].mxu1 }
 0x2c4   : > { %v1684_v3 = vpop.f32.mrb[42].mxu1 }
 0x2c5   : > { %v2446_v5 = vpack.c.bf16 %v1682_v1, %v1682_v1  ;;  %v23295_v6 = vpop.f32.mrb[43].mxu1 }
 0x2c7   : > { %23377 = vmatmul.mubr.msk.bf16.vlgmr.msra.gmra.mrb[68].mxu1 %vm1979_vm1, %v1970_v4  ;;  %v2504_v7 = vsel %vm2456_vm2, %v2446_v5, 0 }
 0x2c8   : > { %23387 = vmatpush3.bf16.msra.mxu1 %v2504_v7  ;;  %23388 = vmatprep.mubr.msk.bf16.mxu1 %vm26239_vm0, %v26238_v0 }
 0x2c9   : > { %23398 = vmatprep.subr.bf16.mxu1 %v26238_v0 }
 0x2ca   : > { %v26753_v43 = vpop.f32.mrb[44].mxu1 }
 0x2cb   : > { %v23306_v8 = vpop.f32.mrb[45].mxu1 }
 0x2cc   : > { %v1776_v9 = vpop.f32.mrb[46].mxu1 }
 0x2cd   : > { %v23307_v10 = vpop.f32.mrb[47].mxu1 }
 0x2d2   : > { %v26755_v53 = vpop.f32.mrb[48].mxu1 }
 0x2d3   : > { %v23318_v11 = vpop.f32.mrb[49].mxu1 }
 0x2d4   : > { %v1868_v13 = vpop.f32.mrb[50].mxu1 }
 0x2d5   : > { %v23319_v14 = vpop.f32.mrb[51].mxu1 }
 0x2da   : > { %v26757_v15 = vpop.f32.mrb[52].mxu1 }
 0x2db   : > { %v23330_v16 = vpop.f32.mrb[53].mxu1 }
 0x2dc   : > { %v1960_v18 = vpop.f32.mrb[54].mxu1 }
 0x2dd   : > { %v23331_v19 = vpop.f32.mrb[55].mxu1 }
 0x362   : > { %v2020_v21 = vpop.f32.mrb[44].mxu0 }
 0x363   : > { %v23336_v22 = vpop.f32.mrb[45].mxu0  ;;  %v2349_v23 = vsel %vm2348_vm3, %v2020_v21, -inf }
 0x364   : > { %2350 = vmax.xlane.f32.xlu0 %v2349_v23  ;;  %v2023_v24 = vpop.f32.mrb[46].mxu0 }
 0x365   : > { %v23337_v25 = vpop.f32.mrb[47].mxu0 }
 0x36a   : > { %v2112_v26 = vpop.f32.mrb[48].mxu0 }
 0x36b   : > { %v23348_v27 = vpop.f32.mrb[49].mxu0  ;;  %v2355_v52 = vsel %vm2348_vm3, %v2112_v26, -inf }
 0x36c   : > { %2356 = vmax.xlane.f32.xlu1 %v2355_v52  ;;  %v2115_v29 = vpop.f32.mrb[50].mxu0 }
 0x36d   : > { %v23349_v30 = vpop.f32.mrb[51].mxu0 }
 0x372   : > { %v2204_v31 = vpop.f32.mrb[52].mxu0 }
 0x373   : > { %v23360_v32 = vpop.f32.mrb[53].mxu0  ;;  %v2361_v46 = vsel %vm2348_vm3, %v2204_v31, -inf }
 0x374   : > { %v2207_v34 = vpop.f32.mrb[54].mxu0 }
 0x375   : > { %v23361_v35 = vpop.f32.mrb[55].mxu0 }
 0x37a   : > { %v2296_v36 = vpop.f32.mrb[56].mxu0 }
 0x37b   : > { %v23372_v37 = vpop.f32.mrb[57].mxu0  ;;  %v2367_v50 = vsel %vm2348_vm3, %v2296_v36, -inf }
 0x37c   : > { %v2299_v38 = vpop.f32.mrb[58].mxu0 }
 0x37d   : > { %v23373_v39 = vpop.f32.mrb[59].mxu0 }
 0x382   : > { %v2066_v40 = vpop.f32.mrb[56].mxu1 }
 0x383   : > { %v23342_v41 = vpop.f32.mrb[57].mxu1  ;;  %v2352_v42 = vsel %vm2348_vm3, %v2066_v40, -inf }
 0x384   : > { %2353 = vmax.xlane.f32.xlu0 %v2352_v42  ;;  %v2069_v44 = vpop.f32.mrb[58].mxu1 }
 0x385   : > { %v23343_v12 = vpop.f32.mrb[59].mxu1 }
 0x388   : > { %2362 = vmax.xlane.f32.xlu0 %v2361_v46 }
 0x38a   : > { %v2158_v47 = vpop.f32.mrb[60].mxu1 }
 0x38b   : > { %v23354_v48 = vpop.f32.mrb[61].mxu1  ;;  %v2358_v51 = vsel %vm2348_vm3, %v2158_v47, -inf }
 0x38c   : > { %2368 = vmax.xlane.f32.xlu0 %v2367_v50  ;;  %2359 = vmax.xlane.f32.xlu1 %v2358_v51  ;;  %v2161_v54 = vpop.f32.mrb[62].mxu1  ;;  %v21391_v48 = vld [vmem:[%s29497_s5 + $0x12] ss:$0 sm:$0xff] }
 0x38d   : > { %v23355_v55 = vpop.f32.mrb[63].mxu1  ;;  %v1728_v50 = vadd.f32 %v21391_v48, %v26705_v17 }
 0x38f   : > { %v2447_v55 = vpack.c.bf16 %v1728_v50, %v1728_v50 }
 0x392   : > { %v2250_v56 = vpop.f32.mrb[64].mxu1 }
 0x393   : > { %v23366_v57 = vpop.f32.mrb[65].mxu1  ;;  %v2364_v45 = vsel %vm2348_vm3, %v2250_v56, -inf }
 0x394   : > { %2365 = vmax.xlane.f32.xlu1 %v2364_v45  ;;  %v2253_v58 = vpop.f32.mrb[66].mxu1  ;;  %v21393_v57 = vld [vmem:[%s29497_s5 + $0x14] ss:$0 sm:$0xff] }
 0x395   : > { %v23367_v59 = vpop.f32.mrb[67].mxu1  ;;  %v1820_v58 = vadd.f32 %v21393_v57, %v26720_v33 }
 0x396   : > { %v2550_v59 = vsel %vm2456_vm2, %v2447_v55, 0 }
 0x39a   : > { %v2342_v60 = vpop.f32.mrb[68].mxu1 }
 0x39b   : > { %v23378_v28 = vpop.f32.mrb[69].mxu1  ;;  %v2370_v61 = vsel %vm2348_vm3, %v2342_v60, -inf }
 0x39c   : > { %2371 = vmax.xlane.f32.xlu1 %v2370_v61  ;;  %v2345_v62 = vpop.f32.mrb[70].mxu1 }
 0x39d   : > { %v23379_v63 = vpop.f32.mrb[71].mxu1 }
 0x3f1   : > { %v2351_v1 = vpop.xlane.xlu0 %2350 }
 0x3f2   : > { %v2373_v2 = vsub.f32 %v2020_v21, %v2351_v1  ;;  %v21392_v1 = vld [vmem:[%s29497_s5 + $0x13] ss:$0 sm:$0xff] }
 0x3f4   : > { %v2381_v3 = vmul.f32 1.442695, %v2373_v2  ;;  %v1774_v2 = vadd.f32 %v21392_v1, %v26753_v43 }
 0x3f6   : > { %25781 = vpow2.f32 %v2381_v3 }
 0x3f9   : > { %v2357_v4 = vpop.xlane.xlu1 %2356 }
 0x3fa   : > { %v2375_v5 = vsub.f32 %v2112_v26, %v2357_v4  ;;  %v21395_v4 = vld [vmem:[%s29497_s5 + $0x16] ss:$0 sm:$0xff] }
 0x3fc   : > { %v2385_v6 = vmul.f32 1.442695, %v2375_v5 }
 0x3fe   : > { %25783 = vpow2.f32 %v2385_v6 }
 0x400   : > { %v25782_v7 = vpop.eup %25781 }
 0x401   : > { %v2397_v8 = vsel %vm2348_vm3, %v25782_v7, 0.0 }
 0x402   : > { %2398 = vadd.xlane.f32.xlu0 %v2397_v8  ;;  %v2448_v8 = vpack.c.bf16 %v1774_v2, %v1774_v2 }
 0x408   : > { %v26768_v9 = vpop.eup %25783 }
 0x409   : > { %v2403_v10 = vsel %vm2348_vm3, %v26768_v9, 0.0 }
 0x40a   : > { %2404 = vadd.xlane.f32.xlu0 %v2403_v10  ;;  %v21394_v10 = vld [vmem:[%s29497_s5 + $0x15] ss:$0 sm:$0xff] }
 0x411   : > { %v2354_v11 = vpop.xlane.xlu0 %2353 }
 0x412   : > { %v2374_v13 = vsub.f32 %v2066_v40, %v2354_v11 }
 0x414   : > { %v2383_v14 = vmul.f32 1.442695, %v2374_v13 }
 0x415   : > { %v2363_v16 = vpop.xlane.xlu0 %2362 }
 0x416   : > { %25785 = vpow2.f32 %v2383_v14  ;;  %v2377_v18 = vsub.f32 %v2204_v31, %v2363_v16  ;;  %v2596_v14 = vsel %vm2456_vm2, %v2448_v8, 0 }
 0x418   : > { %v2389_v19 = vmul.f32 1.442695, %v2377_v18 }
 0x419   : > { %v2369_v21 = vpop.xlane.xlu0 %2368  ;;  %v2360_v22 = vpop.xlane.xlu1 %2359 }
 0x41a   : > { %25787 = vpow2.f32 %v2389_v19  ;;  %v2379_v23 = vsub.f32 %v2296_v36, %v2369_v21  ;;  %v2376_v24 = vsub.f32 %v2158_v47, %v2360_v22  ;;  %v1866_v19 = vadd.f32 %v21394_v10, %v26755_v53  ;;  %v21396_v53 = vld [vmem:[%s29497_s5 + $0x17] ss:$0 sm:$0xff] }
 0x41c   : > { %v2393_v25 = vmul.f32 1.442695, %v2379_v23  ;;  %v2387_v26 = vmul.f32 1.442695, %v2376_v24  ;;  %v2450_v24 = vpack.c.bf16 %v1866_v19, %v1866_v19 }
 0x41e   : > { %25789 = vpow2.f32 %v2393_v25 }
 0x41f   : > { %25791 = vpow2.f32 %v2387_v26 }
 0x420   : > { %v26772_v27 = vpop.eup %25785 }
 0x421   : > { %v2366_v52 = vpop.xlane.xlu1 %2365  ;;  %v2400_v29 = vsel %vm2348_vm3, %v26772_v27, 0.0 }
 0x422   : > { %v2378_v30 = vsub.f32 %v2250_v56, %v2366_v52  ;;  %2401 = vadd.xlane.f32.xlu1 %v2400_v29  ;;  %v1958_v29 = vadd.f32 %v21396_v53, %v26757_v15 }
 0x424   : > { %v26776_v32 = vpop.eup %25787  ;;  %v2391_v31 = vmul.f32 1.442695, %v2378_v30  ;;  %v2688_v30 = vsel %vm2456_vm2, %v2450_v24, 0 }
 0x425   : > { %v2409_v34 = vsel %vm2348_vm3, %v26776_v32, 0.0 }
 0x426   : > { %25793 = vpow2.f32 %v2391_v31  ;;  %2410 = vadd.xlane.f32.xlu0 %v2409_v34 }
 0x428   : > { %v26780_v35 = vpop.eup %25789 }
 0x429   : > { %v26782_v36 = vpop.eup %25791  ;;  %v2372_v37 = vpop.xlane.xlu1 %2371  ;;  %v2415_v38 = vsel %vm2348_vm3, %v26780_v35, 0.0 }
 0x42a   : > { %v2380_v39 = vsub.f32 %v2342_v60, %v2372_v37  ;;  %2416 = vadd.xlane.f32.xlu0 %v2415_v38  ;;  %v2406_v40 = vsel %vm2348_vm3, %v26782_v36, 0.0  ;;  %v2449_v60 = vpack.c.bf16 %v1820_v58, %v1820_v58  ;;  %v25336_v58 = vld [vmem:[#allocation4 + $0xd8] sm:$0xff]  }
 0x42b   : > { %2407 = vadd.xlane.f32.xlu1 %v2406_v40  ;;  %v25333_v40 = vld [vmem:[#allocation4 + $0xc0] sm:$0xff]  }
 0x42c   : > { %v2395_v41 = vmul.f32 1.442695, %v2380_v39  ;;  %v2642_v62 = vsel %vm2456_vm2, %v2449_v60, 0 }
 0x42e   : > { %25795 = vpow2.f32 %v2395_v41  ;;  %v25335_v41 = vld [vmem:[#allocation4 + $0xc8] sm:$0xff]  }
 0x430   : > { %v26788_v42 = vpop.eup %25793 }
 0x431   : > { %v2412_v44 = vsel %vm2348_vm3, %v26788_v42, 0.0 }
 0x432   : > { %2413 = vadd.xlane.f32.xlu1 %v2412_v44  ;;  %v25334_v44 = vld [vmem:[#allocation4 + $0xd0] sm:$0xff]  }
 0x438   : > { %v26792_v12 = vpop.eup %25795 }
 0x439   : > { %v2418_v46 = vsel %vm2348_vm3, %v26792_v12, 0.0 }
 0x43a   : > { %2419 = vadd.xlane.f32.xlu1 %v2418_v46 }
 0x48f   : > { %v2399_v47 = vpop.xlane.xlu0 %2398 }
 0x490   : > { %25797 = vrcp.f32 %v2399_v47 }
 0x497   : > { %v2405_v51 = vpop.xlane.xlu0 %2404 }
 0x498   : > { %25799 = vrcp.f32 %v2405_v51  ;;  %v25337_v51 = vld [vmem:[#allocation4 + $0xe0] sm:$0xff]  }
 0x49a   : > { %v25798_v54 = vpop.eup %25797 }
 0x49b   : > { %v2429_v56 = vmul.f32 %v25798_v54, %v25782_v7  ;;  %v1912_v7 = vadd.f32 %v21395_v4, %v26734_v49  ;;  %v25338_v4 = vld [vmem:[#allocation4 + $0xe8] sm:$0xff]  }
 0x49d   : > { %v2437_v45 = vpack.c.bf16 %v2429_v56, %v2429_v56  ;;  %v2451_v13 = vpack.c.bf16 %v1912_v7, %v1912_v7 }
 0x49f   : > { %23383 = vmatmul.mubr.msk.bf16.vlgmr.msra.gmra.mrb[60].mxu0 %vm2348_vm3, %v2437_v45  ;;  %v2734_v23 = vsel %vm2456_vm2, %v2451_v13, 0 }
 0x4a0   : > { %23393 = vmatpush3.bf16.msra.mxu0 %v2550_v59  ;;  %23394 = vmatprep.mubr.msk.bf16.mxu0 %vm26239_vm0, %v26238_v0 }
 0x4a1   : > { %23404 = vmatprep.subr.bf16.mxu0 %v26238_v0 }
 0x4a2   : > { %v25800_v17 = vpop.eup %25799 }
 0x4a3   : > { %v2431_v28 = vmul.f32 %v25800_v17, %v26768_v9 }
 0x4a5   : > { %v2439_v61 = vpack.c.bf16 %v2431_v28, %v2431_v28 }
 0x4a7   : > { %23395 = vmatmul.mubr.msk.bf16.vlgmr.msra.gmra.mrb[64].mxu0 %vm2348_vm3, %v2439_v61 }
 0x4a8   : > { %23405 = vmatpush3.bf16.msra.mxu0 %v2642_v62  ;;  %23406 = vmatprep.mubr.msk.bf16.mxu0 %vm26239_vm0, %v26238_v0  ;;  %v25339_v62 = vld [vmem:[#allocation4 + $0xf0] sm:$0xff]  }
 0x4a9   : > { %23416 = vmatprep.subr.bf16.mxu0 %v26238_v0 }
 0x4af   : > { %v2402_v33 = vpop.xlane.xlu1 %2401 }
 0x4b0   : > { %25801 = vrcp.f32 %v2402_v33 }
 0x4b3   : > { %v2411_v63 = vpop.xlane.xlu0 %2410 }
 0x4b4   : > { %25803 = vrcp.f32 %v2411_v63 }
 0x4b7   : > { %v2417_v3 = vpop.xlane.xlu0 %2416 }
 0x4b8   : > { %25805 = vrcp.f32 %v2417_v3  ;;  %v2408_v5 = vpop.xlane.xlu1 %2407 }
 0x4b9   : > { %25807 = vrcp.f32 %v2408_v5 }
 0x4ba   : > { %v25802_v6 = vpop.eup %25801 }
 0x4bb   : > { %v2430_v9 = vmul.f32 %v25802_v6, %v26772_v27 }
 0x4bd   : > { %v2438_v11 = vpack.c.bf16 %v2430_v9, %v2430_v9 }
 0x4be   : > { %v25804_v43 = vpop.eup %25803 }
 0x4bf   : > { %23389 = vmatmul.mubr.msk.bf16.vlgmr.msra.gmra.mrb[72].mxu1 %vm2348_vm3, %v2438_v11  ;;  %v2414_v16 = vpop.xlane.xlu1 %2413  ;;  %v2433_v18 = vmul.f32 %v25804_v43, %v26776_v32 }
 0x4c0   : > { %23399 = vmatpush3.bf16.msra.mxu1 %v2596_v14  ;;  %25809 = vrcp.f32 %v2414_v16  ;;  %23400 = vmatprep.mubr.msk.bf16.mxu1 %vm26239_vm0, %v26238_v0  ;;  %v25340_v16 = vld [vmem:[#allocation4 + $0xf8] sm:$0xff]  }
 0x4c1   : > { %v2441_v49 = vpack.c.bf16 %v2433_v18, %v2433_v18  ;;  %23410 = vmatprep.subr.bf16.mxu1 %v26238_v0 }
 0x4c2   : > { %v25806_v21 = vpop.eup %25805 }
 0x4c3   : > { %v25808_v22 = vpop.eup %25807  ;;  %23407 = vmatmul.mubr.msk.bf16.vlgmr.msra.gmra.mrb[68].mxu0 %vm2348_vm3, %v2441_v49  ;;  %v2435_v26 = vmul.f32 %v25806_v21, %v26780_v35  ;;  %v2452_v35 = vpack.c.bf16 %v1958_v29, %v1958_v29 }
 0x4c4   : > { %23417 = vmatpush3.bf16.msra.mxu0 %v2734_v23  ;;  %v2432_v25 = vmul.f32 %v25808_v22, %v26782_v36  ;;  %23418 = vmatprep.mubr.msk.bf16.mxu0 %vm26239_vm0, %v26238_v0 }
 0x4c5   : > { %23428 = vmatprep.subr.bf16.mxu0 %v26238_v0  ;;  %v2443_v32 = vpack.c.bf16 %v2435_v26, %v2435_v26  ;;  %v2780_v36 = vsel %vm2456_vm2, %v2452_v35, 0 }
 0x4c6   : > { %v2440_v27 = vpack.c.bf16 %v2432_v25, %v2432_v25 }
 0x4c7   : > { %v2420_v52 = vpop.xlane.xlu1 %2419 }
 0x4c8   : > { %23401 = vmatmul.mubr.msk.bf16.vlgmr.msra.gmra.mrb[76].mxu1 %vm2348_vm3, %v2440_v27  ;;  %25811 = vrcp.f32 %v2420_v52 }
 0x4c9   : > { %23411 = vmatpush3.bf16.msra.mxu1 %v2688_v30  ;;  %23412 = vmatprep.mubr.msk.bf16.mxu1 %vm26239_vm0, %v26238_v0 }
 0x4ca   : > { %v25810_v31 = vpop.eup %25809  ;;  %23422 = vmatprep.subr.bf16.mxu1 %v26238_v0 }
 0x4cb   : > { %23419 = vmatmul.mubr.msk.bf16.vlgmr.msra.gmra.mrb[72].mxu0 %vm2348_vm3, %v2443_v32  ;;  %v2434_v34 = vmul.f32 %v25810_v31, %v26788_v42 }
 0x4cc   : > { %23430 = vmatprep.mubr.msk.bf16.mxu0 %vm26239_vm0, %v26238_v0  ;;  %23429 = vmatpush3.bf16.msra.mxu0 %v25333_v40 }
 0x4cd   : > { %v2442_v15 = vpack.c.bf16 %v2434_v34, %v2434_v34  ;;  %23440 = vmatprep.subr.bf16.mxu0 %v26238_v0 }
 0x4d0   : > { %23413 = vmatmul.mubr.msk.bf16.vlgmr.msra.gmra.mrb[80].mxu1 %vm2348_vm3, %v2442_v15 }
 0x4d1   : > { %23423 = vmatpush3.bf16.msra.mxu1 %v2780_v36  ;;  %23424 = vmatprep.mubr.msk.bf16.mxu1 %vm26239_vm0, %v26238_v0 }
 0x4d2   : > { %v25812_v37 = vpop.eup %25811  ;;  %23434 = vmatprep.subr.bf16.mxu1 %v26238_v0 }
 0x4d3   : > { %v2436_v38 = vmul.f32 %v25812_v37, %v26792_v12 }
 0x4d5   : > { %v2444_v39 = vpack.c.bf16 %v2436_v38, %v2436_v38 }
 0x4d8   : > { %23425 = vmatmul.mubr.msk.bf16.vlgmr.msra.gmra.mrb[84].mxu1 %vm2348_vm3, %v2444_v39 }
 0x4d9   : > { %23436 = vmatprep.mubr.msk.bf16.mxu1 %vm26239_vm0, %v26238_v0  ;;  %23435 = vmatpush3.bf16.msra.mxu1 %v25335_v41 }
 0x4da   : > { %23446 = vmatprep.subr.bf16.mxu1 %v26238_v0 }
 0x572   : > { %v2494_v42 = vpop.f32.mrb[60].mxu0 }
 0x573   : > { %v2822_v46 = vpack.c.bf16 %v2494_v42, %v2494_v42  ;;  %v23384_v47 = vpop.f32.mrb[61].mxu0 }
 0x574   : > { %v2497_v48 = vpop.f32.mrb[62].mxu0 }
 0x575   : > { %v23385_v12 = vpop.f32.mrb[63].mxu0  ;;  %23431 = vmatmul.mubr.msk.bf16.vlgmr.msra.gmra.mrb[76].mxu0 %vm1979_vm1, %v2822_v46 }
 0x576   : > { %23441 = vmatpush3.bf16.msra.mxu0 %v25334_v44  ;;  %23442 = vmatprep.mubr.msk.bf16.mxu0 %vm26239_vm0, %v26238_v0 }
 0x577   : > { %23452 = vmatprep.subr.bf16.mxu0 %v26238_v0 }
 0x57a   : > { %v2586_v50 = vpop.f32.mrb[64].mxu0 }
 0x57b   : > { %v2824_v54 = vpack.c.bf16 %v2586_v50, %v2586_v50  ;;  %v23396_v55 = vpop.f32.mrb[65].mxu0 }
 0x57c   : > { %v2589_v56 = vpop.f32.mrb[66].mxu0 }
 0x57d   : > { %v23397_v57 = vpop.f32.mrb[67].mxu0  ;;  %23443 = vmatmul.mubr.msk.bf16.vlgmr.msra.gmra.mrb[80].mxu0 %vm1979_vm1, %v2824_v54 }
 0x57e   : > { %23453 = vmatpush3.bf16.msra.mxu0 %v25337_v51  ;;  %23454 = vmatprep.mubr.msk.bf16.mxu0 %vm26239_vm0, %v26238_v0 }
 0x57f   : > { %23464 = vmatprep.subr.bf16.mxu0 %v26238_v0 }
 0x592   : > { %v2540_v45 = vpop.f32.mrb[72].mxu1 }
 0x593   : > { %v2823_v59 = vpack.c.bf16 %v2540_v45, %v2540_v45  ;;  %v23390_v17 = vpop.f32.mrb[73].mxu1 }
 0x594   : > { %v2543_v60 = vpop.f32.mrb[74].mxu1 }
 0x595   : > { %v23391_v28 = vpop.f32.mrb[75].mxu1  ;;  %23437 = vmatmul.mubr.msk.bf16.vlgmr.msra.gmra.mrb[88].mxu1 %vm1979_vm1, %v2823_v59 }
 0x596   : > { %v2678_v61 = vpop.f32.mrb[68].mxu0  ;;  %23447 = vmatpush3.bf16.msra.mxu1 %v25336_v58  ;;  %23448 = vmatprep.mubr.msk.bf16.mxu1 %vm26239_vm0, %v26238_v0 }
 0x597   : > { %v2826_v33 = vpack.c.bf16 %v2678_v61, %v2678_v61  ;;  %v23408_v63 = vpop.f32.mrb[69].mxu0  ;;  %23458 = vmatprep.subr.bf16.mxu1 %v26238_v0 }
 0x598   : > { %v2681_v1 = vpop.f32.mrb[70].mxu0 }
 0x599   : > { %v23409_v2 = vpop.f32.mrb[71].mxu0  ;;  %23455 = vmatmul.mubr.msk.bf16.vlgmr.msra.gmra.mrb[84].mxu0 %vm1979_vm1, %v2826_v33 }
 0x59a   : > { %23465 = vmatpush3.bf16.msra.mxu0 %v25339_v62  ;;  %23466 = vmatprep.mubr.msk.bf16.mxu0 %vm26239_vm0, %v26238_v0  ;;  %v713_v62 = vld [vmem:[%s29500_s8 + $0x1] ss:$0 sm:$0xff] }
 0x59b   : > { %v2632_v3 = vpop.f32.mrb[76].mxu1 }
 0x59c   : > { %v2825_v5 = vpack.c.bf16 %v2632_v3, %v2632_v3  ;;  %v23402_v6 = vpop.f32.mrb[77].mxu1 }
 0x59d   : > { %v2635_v7 = vpop.f32.mrb[78].mxu1  ;;  %v25343_v6 = vld [vmem:[%s29498_s6 + $0x4] ss:$8 sps:$4 sm:$0xff]  }
 0x59e   : > { %v23403_v8 = vpop.f32.mrb[79].mxu1  ;;  %23449 = vmatmul.mubr.msk.bf16.vlgmr.msra.gmra.mrb[92].mxu1 %vm1979_vm1, %v2825_v5  ;;  %v2770_v9 = vpop.f32.mrb[72].mxu0  ;;  %v25341_v5 = vld [vmem:[%s29498_s6] ss:$8 sps:$4 sm:$0xff]   ;;  %v25346_v7 = vld [vmem:[%s29498_s6 + $0x14] ss:$8 sps:$4 sm:$0xff]   ;;  %3357 = vmatprep.subr.bf16.mxu0 %v25343_v6 }
 0x59f   : > { %v2828_v10 = vpack.c.bf16 %v2770_v9, %v2770_v9  ;;  %23459 = vmatpush3.bf16.msra.mxu1 %v25338_v4  ;;  %v23420_v11 = vpop.f32.mrb[73].mxu0  ;;  %23460 = vmatprep.mubr.msk.bf16.mxu1 %vm26239_vm0, %v26238_v0  ;;  %v25344_v8 = vld [vmem:[%s29498_s6 + $0x10] ss:$8 sps:$4 sm:$0xff]   ;;  %v25347_v9 = vld [vmem:[%s29498_s6 + $0x20] ss:$8 sps:$4 sm:$0xff]  }
 0x5a0   : > { %v2773_v43 = vpop.f32.mrb[74].mxu0  ;;  %23470 = vmatprep.subr.bf16.mxu1 %v26238_v0 }
 0x5a1   : > { %v23421_v13 = vpop.f32.mrb[75].mxu0  ;;  %23467 = vmatmul.mubr.msk.bf16.vlgmr.msra.gmra.mrb[88].mxu0 %vm1979_vm1, %v2828_v10 }
 0x5a2   : > { %3358 = vmatpush1.bf16.msra.mxu0 %v25341_v5 }
 0x5a3   : > { %v2724_v14 = vpop.f32.mrb[80].mxu1  ;;  %3359 = vmatprep.subr.bf16.mxu0 %v25346_v7 }
 0x5a4   : > { %v2827_v18 = vpack.c.bf16 %v2724_v14, %v2724_v14  ;;  %v23414_v19 = vpop.f32.mrb[81].mxu1  ;;  %v25352_v14 = vld [vmem:[%s29498_s6 + $0x34] ss:$8 sps:$4 sm:$0xff]  }
 0x5a5   : > { %v2727_v49 = vpop.f32.mrb[82].mxu1  ;;  %v25353_v19 = vld [vmem:[%s29498_s6 + $0x40] ss:$8 sps:$4 sm:$0xff]  }
 0x5a6   : > { %v23415_v21 = vpop.f32.mrb[83].mxu1  ;;  %23461 = vmatmul.mubr.msk.bf16.vlgmr.msra.gmra.mrb[96].mxu1 %vm1979_vm1, %v2827_v18  ;;  %3360 = vmatpush1.bf16.msra.mxu0 %v25344_v8  ;;  %v25355_v18 = vld [vmem:[%s29498_s6 + $0x44] ss:$8 sps:$4 sm:$0xff]   ;;  %v25358_v49 = vld [vmem:[%s29498_s6 + $0x54] ss:$8 sps:$4 sm:$0xff]  }
 0x5a7   : > { %23471 = vmatpush3.bf16.msra.mxu1 %v25340_v16  ;;  %23472 = vmatprep.mubr.msk.bf16.mxu1 %vm26239_vm0, %v26238_v0  ;;  %v25350_v16 = vld [vmem:[%s29498_s6 + $0x30] ss:$8 sps:$4 sm:$0xff]   ;;  %v26240_v21 = vmov 0  }
 0x5a8   : > { %3389 = vmatprep.mubr.bf16.mxu0 %v26240_v21  ;;  %25300 = vset.pattern.permute.xlu0 %v26240_v21  ;;  %v3434_v8 = vld [vmem:[%s29500_s8 + $0x12] ss:$0 sm:$0xff] }
 0x5ab   : > { %v2816_v22 = vpop.f32.mrb[84].mxu1 }
 0x5ac   : > { %v2829_v23 = vpack.c.bf16 %v2816_v22, %v2816_v22  ;;  %v23426_v24 = vpop.f32.mrb[85].mxu1  ;;  %v25356_v22 = vld [vmem:[%s29498_s6 + $0x50] ss:$8 sps:$4 sm:$0xff]  }
 0x5ad   : > { %v2819_v25 = vpop.f32.mrb[86].mxu1  ;;  %v25359_v24 = vld [vmem:[%s29498_s6 + $0x60] ss:$8 sps:$4 sm:$0xff]  }
 0x5ae   : > { %v23427_v53 = vpop.f32.mrb[87].mxu1  ;;  %23473 = vmatmul.mubr.msk.bf16.vlgmr.msra.gmra.mrb[100].mxu1 %vm1979_vm1, %v2829_v23  ;;  %v25361_v23 = vld [vmem:[%s29498_s6 + $0x64] ss:$8 sps:$4 sm:$0xff]   ;;  %v25364_v25 = vld [vmem:[%s29498_s6 + $0x74] ss:$8 sps:$4 sm:$0xff]  }
 0x5af   : > { %v25362_v53 = vld [vmem:[%s29498_s6 + $0x70] ss:$8 sps:$4 sm:$0xff]  }
 0x648   : > { %v2873_v26 = vpop.f32.mrb[76].mxu0 }
 0x649   : > { %v23432_v27 = vpop.f32.mrb[77].mxu0 }
 0x64a   : > { %v2876_v52 = vpop.f32.mrb[78].mxu0  ;;  %v25366_v27 = vld [vmem:[#allocation6] sm:$0xff]  }
 0x64b   : > { %v23433_v29 = vpop.f32.mrb[79].mxu0  ;;  %v25367_v52 = vld [vmem:[#allocation6 + $0x48] sm:$0xff]  }
 0x64c   : > { %v25368_v29 = vld [vmem:[#allocation6 + $0x8] sm:$0xff]  }
 0x650   : > { %v2971_v30 = vpop.f32.mrb[80].mxu0 }
 0x651   : > { %v23444_v32 = vpop.f32.mrb[81].mxu0 }
 0x652   : > { %v2974_v31 = vpop.f32.mrb[82].mxu0  ;;  %v25370_v32 = vld [vmem:[#allocation6 + $0x10] sm:$0xff]  }
 0x653   : > { %v23445_v34 = vpop.f32.mrb[83].mxu0  ;;  %v25371_v31 = vld [vmem:[#allocation6 + $0x58] sm:$0xff]  }
 0x654   : > { %v25372_v34 = vld [vmem:[#allocation6 + $0x18] sm:$0xff]  }
 0x668   : > { %v2922_v35 = vpop.f32.mrb[88].mxu1 }
 0x669   : > { %v3222_v15 = vadd.f32 %v2922_v35, %v2873_v26  ;;  %v23438_v36 = vpop.f32.mrb[89].mxu1  ;;  %v25365_v26 = vld [vmem:[#allocation6 + $0x40] sm:$0xff]  }
 0x66a   : > { %v2925_v37 = vpop.f32.mrb[90].mxu1  ;;  %22451 = vmatprep.subr.bf16.mxu1 %v25365_v26  ;;  %v25373_v35 = vld [vmem:[#allocation6 + $0x60] sm:$0xff]   ;;  %v25375_v36 = vld [vmem:[#allocation6 + $0x68] sm:$0xff]  }
 0x66b   : > { %v23439_v38 = vpop.f32.mrb[91].mxu1  ;;  %v3223_v39 = vadd.f32 %v3222_v15, %v2971_v30  ;;  %22452 = vmatpush3.bf16.msra.mxu1 %v25366_v27  ;;  %v25369_v30 = vld [vmem:[#allocation6 + $0x50] sm:$0xff]   ;;  %v25374_v15 = vld [vmem:[#allocation6 + $0x20] sm:$0xff]   ;;  %v25376_v37 = vld [vmem:[#allocation6 + $0x28] sm:$0xff]  }
 0x66c   : > { %v3069_v40 = vpop.f32.mrb[84].mxu0  ;;  %22453 = vmatprep.subr.bf16.mxu1 %v25367_v52  ;;  %v3573_v27 = vld [vmem:[%s29500_s8 + $0xb] ss:$0 sm:$0xff] }
 0x66d   : > { %v23456_v41 = vpop.f32.mrb[85].mxu0 }
 0x66e   : > { %v3072_v42 = vpop.f32.mrb[86].mxu0 }
 0x66f   : > { %v23457_v44 = vpop.f32.mrb[87].mxu0  ;;  %22454 = vmatpush3.bf16.msra.mxu1 %v25368_v29  ;;  %v3231_v42 = vld [vmem:[%s29500_s8 + $0x9] ss:$0 sm:$0xff] }
 0x670   : > { %22455 = vmatprep.subr.bf16.mxu1 %v25369_v30  ;;  %v25383_v30 = vld [vmem:[#allocation4 + $0x110] sm:$0xff]  }
 0x671   : > { %v3020_v46 = vpop.f32.mrb[92].mxu1 }
 0x672   : > { %v3224_v47 = vadd.f32 %v3223_v39, %v3020_v46  ;;  %v23450_v48 = vpop.f32.mrb[93].mxu1  ;;  %v3232_v46 = vld [vmem:[%s29500_s8 + $0x11] ss:$0 sm:$0xff] }
 0x673   : > { %v3023_v12 = vpop.f32.mrb[94].mxu1  ;;  %22456 = vmatpush3.bf16.msra.mxu1 %v25370_v32  ;;  %v25384_v32 = vld [vmem:[#allocation4 + $0x118] sm:$0xff]  }
 0x674   : > { %v23451_v50 = vpop.f32.mrb[95].mxu1  ;;  %v3167_v51 = vpop.f32.mrb[88].mxu0  ;;  %v3225_v54 = vadd.f32 %v3224_v47, %v3069_v40  ;;  %22457 = vmatprep.subr.bf16.mxu1 %v25371_v31 }
 0x675   : > { %v23468_v55 = vpop.f32.mrb[89].mxu0  ;;  %v25377_v50 = vld [vmem:[#allocation6 + $0x70] sm:$0xff]  }
 0x676   : > { %v3170_v56 = vpop.f32.mrb[90].mxu0  ;;  %v25380_v55 = vld [vmem:[#allocation6 + $0x38] sm:$0xff]  }
 0x677   : > { %v23469_v57 = vpop.f32.mrb[91].mxu0  ;;  %22458 = vmatpush3.bf16.msra.mxu1 %v25372_v34  ;;  %v3267_v56 = vlaneseq  ;;  %v25385_v34 = vld [vmem:[#allocation4 + $0x120] sm:$0xff]  }
 0x678   : > { %22459 = vmatprep.subr.bf16.mxu1 %v25373_v35  ;;  %v25386_v35 = vld [vmem:[#allocation4 + $0x128] sm:$0xff]  }
 0x679   : > { %v3118_v45 = vpop.f32.mrb[96].mxu1  ;;  %v3268_v57 = vshrl.u32 %v3267_v56, 7  ;;  %v25404_v56 = vld [vmem:[#allocation4 + $0x1b8] sm:$0xff]  }
 0x67a   : > { %v3226_v58 = vadd.f32 %v3225_v54, %v3118_v45  ;;  %v23462_v59 = vpop.f32.mrb[97].mxu1  ;;  %v25379_v54 = vld [vmem:[#allocation6 + $0x78] sm:$0xff]  }
 0x67b   : > { %v3121_v17 = vpop.f32.mrb[98].mxu1  ;;  %22460 = vmatpush3.bf16.msra.mxu1 %v25374_v15  ;;  %v26953_v45 = vsub.s32 0, %v3268_v57  ;;  %v26958_v59 = vsub.s32 1, %v3268_v57  ;;  %v25387_v15 = vld [vmem:[#allocation4 + $0x130] sm:$0xff]  }
 0x67c   : > { %v23463_v60 = vpop.f32.mrb[99].mxu1  ;;  %v3227_v28 = vadd.f32 %v3226_v58, %v3167_v51  ;;  %22461 = vmatprep.subr.bf16.mxu1 %v25375_v36  ;;  %v25378_v51 = vld [vmem:[#allocation6 + $0x30] sm:$0xff]   ;;  %v21437_v58 = vld [vmem:[%s29500_s8 + $0x2] ss:$8 sm:$0x3]  ;;  %v25388_v36 = vld [vmem:[#allocation4 + $0x138] sm:$0xff]  }
 0x67d   : > { %v3270_v17 = vrot.slane %v21437_v58, %v26953_v45  ;;  %v3274_v60 = vrot.slane %v21437_v58, %v26958_v59 }
 0x67f   : > { %22462 = vmatpush3.bf16.msra.mxu1 %v25376_v37  ;;  %v25389_v37 = vld [vmem:[#allocation4 + $0x140] sm:$0xff]  }
 0x680   : > { %22463 = vmatprep.subr.bf16.mxu1 %v25377_v50  ;;  %v25400_v50 = vld [vmem:[#allocation4 + $0x198] sm:$0xff]  }
 0x681   : > { %v3216_v61 = vpop.f32.mrb[100].mxu1 }
 0x682   : > { %v3228_v33 = vadd.f32 %v3227_v28, %v3216_v61  ;;  %v23474_v63 = vpop.f32.mrb[101].mxu1 }
 0x683   : > { %v3219_v1 = vpop.f32.mrb[102].mxu1  ;;  %22464 = vmatpush3.bf16.msra.mxu1 %v25378_v51  ;;  %v25401_v51 = vld [vmem:[#allocation4 + $0x1a0] sm:$0xff]  }
 0x684   : > { %v23475_v2 = vpop.f32.mrb[103].mxu1  ;;  %v3229_v3 = vadd.f32 %v3228_v33, %v713_v62  ;;  %22465 = vmatprep.subr.bf16.mxu1 %v25379_v54  ;;  %v25402_v54 = vld [vmem:[#allocation4 + $0x1a8] sm:$0xff]  }
 0x686   : > { %v3230_v4 = vadd.f32 %v3229_v3, %v26531_v20  ;;  %v25349_v20 = vld [vmem:[%s29498_s6 + $0x24] ss:$8 sps:$4 sm:$0xff]  }
 0x687   : > { %3361 = vmatprep.subr.bf16.mxu0 %v25349_v20  ;;  %22466 = vmatpush3.bf16.msra.mxu1 %v25380_v55  ;;  %v25403_v55 = vld [vmem:[#allocation4 + $0x1b0] sm:$0xff]  }
 0x688   : > { %3233 = vadd.xlane.f32.xlu0 %v3230_v4  ;;  %3362 = vmatpush1.bf16.msra.mxu0 %v25347_v9 }
 0x689   : > { %3363 = vmatprep.subr.bf16.mxu0 %v25352_v14  ;;  %23482 = vmatprep.subr.bf16.mxu1 %v26238_v0 }
 0x68c   : > { %3364 = vmatpush1.bf16.msra.mxu0 %v25350_v16 }
 0x68d   : > { %3365 = vmatprep.subr.bf16.mxu0 %v25355_v18 }
 0x690   : > { %3366 = vmatpush1.bf16.msra.mxu0 %v25353_v19  ;;  %v25381_v19 = vld [vmem:[#allocation4 + $0x100] sm:$0xff]  }
 0x691   : > { %3367 = vmatprep.subr.bf16.mxu0 %v25358_v49  ;;  %v25382_v49 = vld [vmem:[#allocation4 + $0x108] sm:$0xff]  }
 0x694   : > { %3368 = vmatpush1.bf16.msra.mxu0 %v25356_v22 }
 0x695   : > { %3369 = vmatprep.subr.bf16.mxu0 %v25361_v23 }
 0x698   : > { %3370 = vmatpush1.bf16.msra.mxu0 %v25359_v24 }
 0x699   : > { %3371 = vmatprep.subr.bf16.mxu0 %v25364_v25 }
 0x69c   : > { %3372 = vmatpush1.bf16.msra.mxu0 %v25362_v53  ;;  %v3572_v53 = vld [vmem:[%s29500_s8 + $0x3] ss:$0 sm:$0xff] }
 0x69d   : > { %23476 = vmatprep.subr.bf16.mxu0 %v26238_v0 }
 0x715   : > { %v3234_v10 = vpop.xlane.xlu0 %3233 }
 0x716   : > { %v3236_v11 = vmul.f32 0.0078125, %v3234_v10 }
 0x718   : > { %v3237_v43 = vsub.f32 %v3230_v4, %v3236_v11 }
 0x71a   : > { %v3238_v13 = vmul.f32 %v3237_v43, %v3237_v43 }
 0x71c   : > { %3239 = vadd.xlane.f32.xlu1 %v3238_v13 }
 0x7a9   : > { %v3240_v38 = vpop.xlane.xlu1 %3239 }
 0x7aa   : > { %v3241_v39 = vmul.f32 0.0078125, %v3240_v38  ;;  %v25390_v38 = vld [vmem:[#allocation4 + $0x148] sm:$0xff]  }
 0x7ac   : > { %v3242_v40 = vadd.f32 1e-05, %v3241_v39  ;;  %v25391_v39 = vld [vmem:[#allocation4 + $0x150] sm:$0xff]  }
 0x7ae   : > { %25813 = vrsqrt.f32 %v3242_v40  ;;  %v25392_v40 = vld [vmem:[#allocation4 + $0x158] sm:$0xff]  }
 0x7b8   : > { %v25814_v41 = vpop.eup %25813 }
 0x7b9   : > { %v3244_v44 = vmul.f32 %v25814_v41, %v3237_v43  ;;  %v25393_v41 = vld [vmem:[#allocation4 + $0x160] sm:$0xff]  }
 0x7bb   : > { %v3245_v47 = vmul.f32 %v3244_v44, %v3231_v42  ;;  %v25394_v42 = vld [vmem:[#allocation4 + $0x168] sm:$0xff]   ;;  %v25395_v44 = vld [vmem:[#allocation4 + $0x170] sm:$0xff]  }
 0x7bd   : > { %v3246_v48 = vadd.f32 %v3245_v47, %v3232_v46  ;;  %v25396_v46 = vld [vmem:[#allocation4 + $0x178] sm:$0xff]   ;;  %v25397_v47 = vld [vmem:[#allocation4 + $0x180] sm:$0xff]  }
 0x7bf   : > { %v3263_v12 = vpack.c.bf16 %v3246_v48, %v3246_v48 }
 0x7c1   : > { %3390 = vmatmul.mubr.bf16.vlgmr.msra.gmra.mrb[92].mxu0 %v3263_v12  ;;  %v25399_v12 = vld [vmem:[#allocation4 + $0x190] sm:$0xff]  }
 0x7c2   : > { %23478 = vmatprep.mubr.msk.bf16.mxu0 %vm26239_vm0, %v26238_v0  ;;  %23477 = vmatpush3.bf16.xpose.msra.mxu0 %v25381_v19 }
 0x7c3   : > { %23488 = vmatprep.subr.bf16.mxu0 %v26238_v0 }
 0x894   : > { %v3391_v28 = vpop.f32.mrb[92].mxu0 }
 0x895   : > { %v3392_v61 = vadd.f32 %v3391_v28, %v3270_v17  ;;  %v3393_v62 = vpop.f32.mrb[93].mxu0 }
 0x896   : > { %v3394_v33 = vadd.f32 %v3393_v62, %v3274_v60  ;;  %v3395_v63 = vpop.f32.mrb[94].mxu0 }
 0x897   : > { %v3398_v1 = vmax.f32 %v3392_v61, 0.0  ;;  %v3396_v2 = vpop.f32.mrb[95].mxu0 }
 0x898   : > { %v3399_v3 = vmax.f32 %v3394_v33, 0.0 }
 0x899   : > { %v3432_v5 = vpack.c.bf16 %v3398_v1, %v3398_v1 }
 0x89a   : > { %v3433_v4 = vpack.c.bf16 %v3399_v3, %v3399_v3 }
 0x89c   : > { %3563 = vmatprep.mubr.bf16.mxu1 %v3433_v4 }
 0x89d   : > { %3564 = vmatmul.mubr.bf16.vlgmr.msra.gmra.mrb[104].mxu1 %v3432_v5 }
 0x89e   : > { %23484 = vmatprep.mubr.msk.bf16.mxu1 %vm26239_vm0, %v26238_v0  ;;  %23483 = vmatpush3.bf16.xpose.msra.mxu1 %v25382_v49 }
 0x89f   : > { %23494 = vmatprep.subr.bf16.mxu1 %v26238_v0 }
 0x970   : > { %v22467_v6 = vpop.f32.mrb[104].mxu1 }
 0x971   : > { %v22468_v7 = vpop.f32.mrb[105].mxu1 }
 0x972   : > { %v22469_v20 = vadd.f32 %v22468_v7, %v22467_v6  ;;  %v22470_v9 = vpop.f32.mrb[106].mxu1 }
 0x973   : > { %v22471_v10 = vpop.f32.mrb[107].mxu1 }
 0x974   : > { %v3566_v11 = vadd.f32 %v22469_v20, %v3434_v8 }
 0x976   : > { %v3571_v43 = vadd.f32 %v3566_v11, %v3246_v48  ;;  %v25398_v48 = vld [vmem:[#allocation4 + $0x188] sm:$0xff]  }
 0x978   : > { %3574 = vadd.xlane.f32.xlu0 %v3571_v43 }
 0xa05   : > { %v3575_v13 = vpop.xlane.xlu0 %3574 }
 0xa06   : > { %v3576_v14 = vmul.f32 0.0078125, %v3575_v13 }
 0xa08   : > { %v3577_v16 = vsub.f32 %v3571_v43, %v3576_v14 }
 0xa0a   : > { %v3578_v18 = vmul.f32 %v3577_v16, %v3577_v16 }
 0xa0c   : > { %3579 = vadd.xlane.f32.xlu1 %v3578_v18 }
 0xa99   : > { %v3580_v22 = vpop.xlane.xlu1 %3579 }
 0xa9a   : > { %v3581_v23 = vmul.f32 0.0078125, %v3580_v22 }
 0xa9c   : > { %v3582_v24 = vadd.f32 1e-05, %v3581_v23 }
 0xa9e   : > { %25815 = vrsqrt.f32 %v3582_v24 }
 0xaa8   : > { %v25816_v25 = vpop.eup %25815 }
 0xaa9   : > { %v3584_v26 = vmul.f32 %v25816_v25, %v3577_v16 }
 0xaab   : > { %v3585_v52 = vmul.f32 %v3584_v26, %v3572_v53  ;;  %v21510_v53 = vld [vmem:[%s29497_s5 + $0x20] ss:$0 sm:$0xff]  ;;  %v21511_v26 = vld [vmem:[%s29497_s5 + $0x21] ss:$0 sm:$0xff] }
 0xaad   : > { %v26975_v29 = vadd.f32 %v3585_v52, %v3573_v27 }
 0xaaf   : > { %v26979_v31 = vpack.c.bf16 %v26975_v29, %v26975_v29 }
 0xab1   : > { %23479 = vmatmul.mubr.bf16.vlgmr.msra.gmra.mrb[96].mxu0 %v26979_v31  ;;  %23485 = vmatmul.mubr.bf16.vlgmr.msra.gmra.mrb[108].mxu1 %v26979_v31 }
 0xab2   : > { %23489 = vmatpush3.bf16.xpose.msra.mxu0 %v25383_v30  ;;  %23495 = vmatpush3.bf16.xpose.msra.mxu1 %v25384_v32 }
 0xab3   : > { %23490 = vmatprep.mubr.msk.bf16.mxu0 %vm26239_vm0, %v26238_v0  ;;  %23496 = vmatprep.mubr.msk.bf16.mxu1 %vm26239_vm0, %v26238_v0 }
 0xab4   : > { %23500 = vmatprep.subr.bf16.mxu0 %v26238_v0  ;;  %23506 = vmatprep.subr.bf16.mxu1 %v26238_v0 }
 0xab9   : > { %23491 = vmatmul.mubr.bf16.vlgmr.msra.gmra.mrb[100].mxu0 %v26979_v31  ;;  %23497 = vmatmul.mubr.bf16.vlgmr.msra.gmra.mrb[112].mxu1 %v26979_v31 }
 0xaba   : > { %23501 = vmatpush3.bf16.xpose.msra.mxu0 %v25385_v34  ;;  %23507 = vmatpush3.bf16.xpose.msra.mxu1 %v25386_v35 }
 0xabb   : > { %23502 = vmatprep.mubr.msk.bf16.mxu0 %vm26239_vm0, %v26238_v0  ;;  %23508 = vmatprep.mubr.msk.bf16.mxu1 %vm26239_vm0, %v26238_v0 }
 0xabc   : > { %23512 = vmatprep.subr.bf16.mxu0 %v26238_v0  ;;  %23518 = vmatprep.subr.bf16.mxu1 %v26238_v0 }
 0xac1   : > { %23503 = vmatmul.mubr.bf16.vlgmr.msra.gmra.mrb[104].mxu0 %v26979_v31  ;;  %23509 = vmatmul.mubr.bf16.vlgmr.msra.gmra.mrb[116].mxu1 %v26979_v31 }
 0xac2   : > { %23513 = vmatpush3.bf16.xpose.msra.mxu0 %v25387_v15  ;;  %23519 = vmatpush3.bf16.xpose.msra.mxu1 %v25388_v36 }
 0xac3   : > { %23514 = vmatprep.mubr.msk.bf16.mxu0 %vm26239_vm0, %v26238_v0  ;;  %23520 = vmatprep.mubr.msk.bf16.mxu1 %vm26239_vm0, %v26238_v0 }
 0xac4   : > { %23524 = vmatprep.subr.bf16.mxu0 %v26238_v0  ;;  %23530 = vmatprep.subr.bf16.mxu1 %v26238_v0 }
 0xac9   : > { %23515 = vmatmul.mubr.bf16.vlgmr.msra.gmra.mrb[108].mxu0 %v26979_v31  ;;  %23521 = vmatmul.mubr.bf16.vlgmr.msra.gmra.mrb[120].mxu1 %v26979_v31 }
 0xaca   : > { %23525 = vmatpush3.bf16.xpose.msra.mxu0 %v25389_v37  ;;  %23531 = vmatpush3.bf16.xpose.msra.mxu1 %v25390_v38 }
 0xacb   : > { %23526 = vmatprep.mubr.msk.bf16.mxu0 %vm26239_vm0, %v26238_v0  ;;  %23532 = vmatprep.mubr.msk.bf16.mxu1 %vm26239_vm0, %v26238_v0 }
 0xacc   : > { %23536 = vmatprep.subr.bf16.mxu0 %v26238_v0  ;;  %23542 = vmatprep.subr.bf16.mxu1 %v26238_v0 }
 0xad1   : > { %23527 = vmatmul.mubr.bf16.vlgmr.msra.gmra.mrb[112].mxu0 %v26979_v31  ;;  %23533 = vmatmul.mubr.bf16.vlgmr.msra.gmra.mrb[124].mxu1 %v26979_v31 }
 0xad2   : > { %23537 = vmatpush3.bf16.xpose.msra.mxu0 %v25391_v39  ;;  %23543 = vmatpush3.bf16.xpose.msra.mxu1 %v25392_v40  ;;  %v21494_v40 = vld [vmem:[%s29497_s5 + $0x18] ss:$0 sm:$0xff] }
 0xad3   : > { %23538 = vmatprep.mubr.msk.bf16.mxu0 %vm26239_vm0, %v26238_v0  ;;  %23544 = vmatprep.mubr.msk.bf16.mxu1 %vm26239_vm0, %v26238_v0 }
 0xad4   : > { %23548 = vmatprep.subr.bf16.mxu0 %v26238_v0  ;;  %23554 = vmatprep.subr.bf16.mxu1 %v26238_v0 }
 0xad9   : > { %23539 = vmatmul.mubr.bf16.vlgmr.msra.gmra.mrb[116].mxu0 %v26979_v31  ;;  %23545 = vmatmul.mubr.bf16.vlgmr.msra.gmra.mrb[128].mxu1 %v26979_v31 }
 0xada   : > { %23549 = vmatpush3.bf16.xpose.msra.mxu0 %v25393_v41  ;;  %23555 = vmatpush3.bf16.xpose.msra.mxu1 %v25394_v42  ;;  %v21495_v41 = vld [vmem:[%s29497_s5 + $0x19] ss:$0 sm:$0xff] }
 0xadb   : > { %23550 = vmatprep.mubr.msk.bf16.mxu0 %vm26239_vm0, %v26238_v0  ;;  %23556 = vmatprep.mubr.msk.bf16.mxu1 %vm26239_vm0, %v26238_v0 }
 0xadc   : > { %23560 = vmatprep.subr.bf16.mxu0 %v26238_v0  ;;  %23566 = vmatprep.subr.bf16.mxu1 %v26238_v0 }
 0xae1   : > { %23551 = vmatmul.mubr.bf16.vlgmr.msra.gmra.mrb[120].mxu0 %v26979_v31  ;;  %23557 = vmatmul.mubr.bf16.vlgmr.msra.gmra.mrb[132].mxu1 %v26979_v31 }
 0xae2   : > { %23561 = vmatpush3.bf16.xpose.msra.mxu0 %v25395_v44  ;;  %23567 = vmatpush3.bf16.xpose.msra.mxu1 %v25396_v46  ;;  %v21512_v46 = vld [vmem:[%s29497_s5 + $0x22] ss:$0 sm:$0xff] }
 0xae3   : > { %23562 = vmatprep.mubr.msk.bf16.mxu0 %vm26239_vm0, %v26238_v0  ;;  %23568 = vmatprep.mubr.msk.bf16.mxu1 %vm26239_vm0, %v26238_v0 }
 0xae4   : > { %23572 = vmatprep.subr.bf16.mxu0 %v26238_v0  ;;  %23578 = vmatprep.subr.bf16.mxu1 %v26238_v0 }
 0xae9   : > { %23563 = vmatmul.mubr.bf16.vlgmr.msra.gmra.mrb[124].mxu0 %v26979_v31  ;;  %23569 = vmatmul.mubr.bf16.vlgmr.msra.gmra.mrb[136].mxu1 %v26979_v31 }
 0xaea   : > { %23573 = vmatpush3.bf16.xpose.msra.mxu0 %v25397_v47  ;;  %23579 = vmatpush3.bf16.xpose.msra.mxu1 %v25398_v48  ;;  %v21513_v47 = vld [vmem:[%s29497_s5 + $0x23] ss:$0 sm:$0xff] }
 0xaeb   : > { %23574 = vmatprep.mubr.msk.bf16.mxu0 %vm26239_vm0, %v26238_v0  ;;  %23580 = vmatprep.mubr.msk.bf16.mxu1 %vm26239_vm0, %v26238_v0 }
 0xaec   : > { %23584 = vmatprep.subr.bf16.mxu0 %v26238_v0  ;;  %23590 = vmatprep.subr.bf16.mxu1 %v26238_v0 }
 0xaf1   : > { %23575 = vmatmul.mubr.bf16.vlgmr.msra.gmra.mrb[128].mxu0 %v26979_v31  ;;  %23581 = vmatmul.mubr.bf16.vlgmr.msra.gmra.mrb[140].mxu1 %v26979_v31 }
 0xaf2   : > { %23585 = vmatpush3.bf16.xpose.msra.mxu0 %v25399_v12  ;;  %23591 = vmatpush3.bf16.xpose.msra.mxu1 %v25400_v50 }
 0xaf3   : > { %23586 = vmatprep.mubr.msk.bf16.mxu0 %vm26239_vm0, %v26238_v0  ;;  %23592 = vmatprep.mubr.msk.bf16.mxu1 %vm26239_vm0, %v26238_v0 }
 0xaf4   : > { %23596 = vmatprep.subr.bf16.mxu0 %v26238_v0  ;;  %23602 = vmatprep.subr.bf16.mxu1 %v26238_v0 }
 0xaf9   : > { %23587 = vmatmul.mubr.bf16.vlgmr.msra.gmra.mrb[132].mxu0 %v26979_v31  ;;  %23593 = vmatmul.mubr.bf16.vlgmr.msra.gmra.mrb[144].mxu1 %v26979_v31 }
 0xafa   : > { %23597 = vmatpush3.bf16.xpose.msra.mxu0 %v25401_v51  ;;  %23603 = vmatpush3.bf16.xpose.msra.mxu1 %v25402_v54 }
 0xafb   : > { %23598 = vmatprep.mubr.msk.bf16.mxu0 %vm26239_vm0, %v26238_v0  ;;  %23604 = vmatprep.mubr.msk.bf16.mxu1 %vm26239_vm0, %v26238_v0 }
 0xafc   : > { %23608 = vmatprep.subr.bf16.mxu0 %v26238_v0  ;;  %23614 = vmatprep.subr.bf16.mxu1 %v26238_v0 }
 0xb01   : > { %23599 = vmatmul.mubr.bf16.vlgmr.msra.gmra.mrb[136].mxu0 %v26979_v31  ;;  %23605 = vmatmul.mubr.bf16.vlgmr.msra.gmra.mrb[148].mxu1 %v26979_v31 }
 0xb02   : > { %23609 = vmatpush3.bf16.xpose.msra.mxu0 %v25403_v55  ;;  %23615 = vmatpush3.bf16.xpose.msra.mxu1 %v25404_v56 }
 0xb03   : > { %23610 = vmatprep.mubr.msk.bf16.mxu0 %vm26239_vm0, %v26238_v0  ;;  %23616 = vmatprep.mubr.msk.bf16.mxu1 %vm26239_vm0, %v26238_v0 }
 0xb04   : > { %23620 = vmatprep.subr.bf16.mxu0 %v26238_v0  ;;  %23626 = vmatprep.subr.bf16.mxu1 %v26238_v0 }
 0xb09   : > { %23611 = vmatmul.mubr.bf16.vlgmr.msra.gmra.mrb[140].mxu0 %v26979_v31  ;;  %23617 = vmatmul.mubr.bf16.vlgmr.msra.gmra.mrb[152].mxu1 %v26979_v31 }
 0xb0a   : > { %23622 = vmatprep.mubr.msk.bf16.mxu0 %vm26239_vm0, %v26238_v0  ;;  %23628 = vmatprep.mubr.msk.bf16.mxu1 %vm26239_vm0, %v26238_v0 }
 0xb84   : > { %v3772_v57 = vpop.f32.mrb[96].mxu0  ;;  %v3818_v58 = vpop.f32.mrb[108].mxu1 }
 0xb85   : > { %v23480_v17 = vpop.f32.mrb[97].mxu0  ;;  %v23486_v60 = vpop.f32.mrb[109].mxu1  ;;  %v3773_v48 = vadd.f32 %v21494_v40, %v3772_v57  ;;  %v3819_v12 = vadd.f32 %v21495_v41, %v3818_v58  ;;  %v21496_v57 = vld [vmem:[%s29497_s5 + $0x1a] ss:$0 sm:$0xff]  ;;  %v21497_v58 = vld [vmem:[%s29497_s5 + $0x1b] ss:$0 sm:$0xff] }
 0xb86   : > { %v3775_v28 = vpop.f32.mrb[98].mxu0  ;;  %v3821_v61 = vpop.f32.mrb[110].mxu1 }
 0xb87   : > { %v23481_v62 = vpop.f32.mrb[99].mxu0  ;;  %v23487_v33 = vpop.f32.mrb[111].mxu1  ;;  %v4932_v61 = vpack.c.bf16 %v3773_v48, %v3773_v48 }
 0xb88   : > { %v4933_v62 = vpack.c.bf16 %v3819_v12, %v3819_v12 }
 0xb8c   : > { %v27075_v63 = vpop.f32.mrb[100].mxu0  ;;  %v27077_v1 = vpop.f32.mrb[112].mxu1 }
 0xb8d   : > { %v23492_v2 = vpop.f32.mrb[101].mxu0  ;;  %v23498_v3 = vpop.f32.mrb[113].mxu1 }
 0xb8e   : > { %v3867_v4 = vpop.f32.mrb[102].mxu0  ;;  %v3913_v5 = vpop.f32.mrb[114].mxu1 }
 0xb8f   : > { %v23493_v6 = vpop.f32.mrb[103].mxu0  ;;  %v23499_v7 = vpop.f32.mrb[115].mxu1 }
 0xb90   : > { %v21514_v7 = vld [vmem:[%s29497_s5 + $0x24] ss:$0 sm:$0xff] }
 0xb94   : > { %v27079_v8 = vpop.f32.mrb[104].mxu0  ;;  %v27081_v20 = vpop.f32.mrb[116].mxu1 }
 0xb95   : > { %v23504_v9 = vpop.f32.mrb[105].mxu0  ;;  %v23510_v10 = vpop.f32.mrb[117].mxu1 }
 0xb96   : > { %v3959_v11 = vpop.f32.mrb[106].mxu0  ;;  %v4005_v43 = vpop.f32.mrb[118].mxu1  ;;  %v21515_v9 = vld [vmem:[%s29497_s5 + $0x25] ss:$0 sm:$0xff]  ;;  %v3865_v10 = vadd.f32 %v21496_v57, %v27075_v63 }
 0xb97   : > { %v23505_v13 = vpop.f32.mrb[107].mxu0  ;;  %v23511_v14 = vpop.f32.mrb[119].mxu1  ;;  %v3911_v11 = vadd.f32 %v21497_v58, %v27077_v1 }
 0xb99   : > { %v4935_v1 = vpack.c.bf16 %v3911_v11, %v3911_v11 }
 0xb9c   : > { %v27083_v16 = vpop.f32.mrb[108].mxu0  ;;  %v27085_v18 = vpop.f32.mrb[120].mxu1 }
 0xb9d   : > { %v23516_v19 = vpop.f32.mrb[109].mxu0  ;;  %v23522_v49 = vpop.f32.mrb[121].mxu1 }
 0xb9e   : > { %v4051_v22 = vpop.f32.mrb[110].mxu0  ;;  %v4097_v23 = vpop.f32.mrb[122].mxu1 }
 0xb9f   : > { %v23517_v24 = vpop.f32.mrb[111].mxu0  ;;  %v23523_v25 = vpop.f32.mrb[123].mxu1 }
 0xba0   : > { %v4934_v24 = vpack.c.bf16 %v3865_v10, %v3865_v10 }
 0xba4   : > { %v4188_v27 = vpop.f32.mrb[112].mxu0  ;;  %v4234_v52 = vpop.f32.mrb[124].mxu1 }
 0xba5   : > { %v4189_v30 = vadd.f32 %v21510_v53, %v4188_v27  ;;  %v4235_v32 = vadd.f32 %v21511_v26, %v4234_v52  ;;  %v23528_v31 = vpop.f32.mrb[113].mxu0  ;;  %v23534_v34 = vpop.f32.mrb[125].mxu1  ;;  %v21498_v52 = vld [vmem:[%s29497_s5 + $0x1c] ss:$0 sm:$0xff] }
 0xba6   : > { %v4191_v35 = vpop.f32.mrb[114].mxu0  ;;  %v4237_v15 = vpop.f32.mrb[126].mxu1  ;;  %v21516_v34 = vld [vmem:[%s29497_s5 + $0x26] ss:$0 sm:$0xff] }
 0xba7   : > { %v4940_v36 = vpack.c.bf16 %v4189_v30, %v4189_v30  ;;  %v4941_v37 = vpack.c.bf16 %v4235_v32, %v4235_v32  ;;  %v23529_v38 = vpop.f32.mrb[115].mxu0  ;;  %v23535_v39 = vpop.f32.mrb[127].mxu1  ;;  %v21499_v30 = vld [vmem:[%s29497_s5 + $0x1d] ss:$0 sm:$0xff]  ;;  %v21517_v35 = vld [vmem:[%s29497_s5 + $0x27] ss:$0 sm:$0xff]  ;;  %v3957_v15 = vadd.f32 %v21498_v52, %v27079_v8 }
 0xba9   : > { %v4952_v42 = vsel %vm1979_vm1, %v4940_v36, 0  ;;  %v4998_v44 = vsel %vm1979_vm1, %v4941_v37, 0  ;;  %v4003_v36 = vadd.f32 %v21499_v30, %v27081_v20 }
 0xbaa   : > { %23621 = vmatpush3.bf16.xpose.msra.mxu0 %v4952_v42  ;;  %23627 = vmatpush3.bf16.xpose.msra.mxu1 %v4998_v44 }
 0xbab   : > { %23632 = vmatprep.subr.bf16.mxu0 %v26238_v0  ;;  %23638 = vmatprep.subr.bf16.mxu1 %v26238_v0  ;;  %v4937_v20 = vpack.c.bf16 %v4003_v36, %v4003_v36 }
 0xbac   : > { %v4280_v50 = vpop.f32.mrb[116].mxu0  ;;  %v4326_v51 = vpop.f32.mrb[128].mxu1 }
 0xbad   : > { %v4281_v54 = vadd.f32 %v21512_v46, %v4280_v50  ;;  %v4327_v55 = vadd.f32 %v21513_v47, %v4326_v51  ;;  %v23540_v56 = vpop.f32.mrb[117].mxu0  ;;  %v23546_v17 = vpop.f32.mrb[129].mxu1  ;;  %v4936_v46 = vpack.c.bf16 %v3957_v15, %v3957_v15  ;;  %v21500_v51 = vld [vmem:[%s29497_s5 + $0x1e] ss:$0 sm:$0xff] }
 0xbae   : > { %v4283_v60 = vpop.f32.mrb[118].mxu0  ;;  %v4329_v28 = vpop.f32.mrb[130].mxu1  ;;  %v21526_v17 = vld [vmem:[%s29497_s5 + $0x28] ss:$0 sm:$0xff] }
 0xbaf   : > { %v4942_v33 = vpack.c.bf16 %v4281_v54, %v4281_v54  ;;  %v4943_v2 = vpack.c.bf16 %v4327_v55, %v4327_v55  ;;  %v23541_v3 = vpop.f32.mrb[119].mxu0  ;;  %v23547_v4 = vpop.f32.mrb[131].mxu1  ;;  %v21501_v54 = vld [vmem:[%s29497_s5 + $0x1f] ss:$0 sm:$0xff]  ;;  %v21527_v60 = vld [vmem:[%s29497_s5 + $0x29] ss:$0 sm:$0xff]  ;;  %v4049_v28 = vadd.f32 %v21500_v51, %v27083_v16 }
 0xbb1   : > { %23623 = vmatmul.mubr.msk.bf16.vlgmr.msra.gmra.mrb[144].mxu0 %vm1979_vm1, %v4932_v61  ;;  %23629 = vmatmul.mubr.msk.bf16.vlgmr.msra.gmra.mrb[156].mxu1 %vm1979_vm1, %v4933_v62  ;;  %v5044_v5 = vsel %vm1979_vm1, %v4942_v33, 0  ;;  %v5090_v6 = vsel %vm1979_vm1, %v4943_v2, 0  ;;  %v4095_v61 = vadd.f32 %v21501_v54, %v27085_v18 }
 0xbb2   : > { %23633 = vmatpush3.bf16.xpose.msra.mxu0 %v5044_v5  ;;  %23639 = vmatpush3.bf16.xpose.msra.mxu1 %v5090_v6  ;;  %v4938_v5 = vpack.c.bf16 %v4049_v28, %v4049_v28 }
 0xbb3   : > { %23634 = vmatprep.mubr.msk.bf16.mxu0 %vm26239_vm0, %v26238_v0  ;;  %23640 = vmatprep.mubr.msk.bf16.mxu1 %vm26239_vm0, %v26238_v0  ;;  %v4939_v18 = vpack.c.bf16 %v4095_v61, %v4095_v61 }
 0xbb4   : > { %v4372_v43 = vpop.f32.mrb[120].mxu0  ;;  %v4418_v13 = vpop.f32.mrb[132].mxu1  ;;  %23644 = vmatprep.subr.bf16.mxu0 %v26238_v0  ;;  %23650 = vmatprep.subr.bf16.mxu1 %v26238_v0 }
 0xbb5   : > { %v4373_v14 = vadd.f32 %v21514_v7, %v4372_v43  ;;  %v4419_v19 = vadd.f32 %v21515_v9, %v4418_v13  ;;  %v23552_v49 = vpop.f32.mrb[121].mxu0  ;;  %v23558_v22 = vpop.f32.mrb[133].mxu1 }
 0xbb6   : > { %v4375_v23 = vpop.f32.mrb[122].mxu0  ;;  %v4421_v63 = vpop.f32.mrb[134].mxu1 }
 0xbb7   : > { %v4944_v25 = vpack.c.bf16 %v4373_v14, %v4373_v14  ;;  %v4945_v53 = vpack.c.bf16 %v4419_v19, %v4419_v19  ;;  %v23553_v26 = vpop.f32.mrb[123].mxu0  ;;  %v23559_v27 = vpop.f32.mrb[135].mxu1 }
 0xbb9   : > { %23635 = vmatmul.mubr.msk.bf16.vlgmr.msra.gmra.mrb[148].mxu0 %vm1979_vm1, %v4934_v24  ;;  %23641 = vmatmul.mubr.msk.bf16.vlgmr.msra.gmra.mrb[160].mxu1 %vm1979_vm1, %v4935_v1  ;;  %v5136_v32 = vsel %vm1979_vm1, %v4944_v25, 0  ;;  %v5182_v31 = vsel %vm1979_vm1, %v4945_v53, 0 }
 0xbba   : > { %23645 = vmatpush3.bf16.xpose.msra.mxu0 %v5136_v32  ;;  %23651 = vmatpush3.bf16.xpose.msra.mxu1 %v5182_v31 }
 0xbbb   : > { %23646 = vmatprep.mubr.msk.bf16.mxu0 %vm26239_vm0, %v26238_v0  ;;  %23652 = vmatprep.mubr.msk.bf16.mxu1 %vm26239_vm0, %v26238_v0 }
 0xbbc   : > { %v4464_v37 = vpop.f32.mrb[124].mxu0  ;;  %v4510_v38 = vpop.f32.mrb[136].mxu1  ;;  %23656 = vmatprep.subr.bf16.mxu0 %v26238_v0  ;;  %23662 = vmatprep.subr.bf16.mxu1 %v26238_v0 }
 0xbbd   : > { %v4465_v39 = vadd.f32 %v21516_v34, %v4464_v37  ;;  %v4511_v40 = vadd.f32 %v21517_v35, %v4510_v38  ;;  %v23564_v41 = vpop.f32.mrb[125].mxu0  ;;  %v23570_v42 = vpop.f32.mrb[137].mxu1 }
 0xbbe   : > { %v4467_v44 = vpop.f32.mrb[126].mxu0  ;;  %v4513_v8 = vpop.f32.mrb[138].mxu1 }
 0xbbf   : > { %v4946_v47 = vpack.c.bf16 %v4465_v39, %v4465_v39  ;;  %v4947_v48 = vpack.c.bf16 %v4511_v40, %v4511_v40  ;;  %v23565_v12 = vpop.f32.mrb[127].mxu0  ;;  %v23571_v50 = vpop.f32.mrb[139].mxu1 }
 0xbc1   : > { %23647 = vmatmul.mubr.msk.bf16.vlgmr.msra.gmra.mrb[152].mxu0 %vm1979_vm1, %v4936_v46  ;;  %23653 = vmatmul.mubr.msk.bf16.vlgmr.msra.gmra.mrb[164].mxu1 %vm1979_vm1, %v4937_v20  ;;  %v5228_v55 = vsel %vm1979_vm1, %v4946_v47, 0  ;;  %v5274_v56 = vsel %vm1979_vm1, %v4947_v48, 0 }
 0xbc2   : > { %23657 = vmatpush3.bf16.xpose.msra.mxu0 %v5228_v55  ;;  %23663 = vmatpush3.bf16.xpose.msra.mxu1 %v5274_v56 }
 0xbc3   : > { %23658 = vmatprep.mubr.msk.bf16.mxu0 %vm26239_vm0, %v26238_v0  ;;  %23664 = vmatprep.mubr.msk.bf16.mxu1 %vm26239_vm0, %v26238_v0 }
 0xbc4   : > { %v4604_v62 = vpop.f32.mrb[128].mxu0  ;;  %v4650_v33 = vpop.f32.mrb[140].mxu1  ;;  %23668 = vmatprep.subr.bf16.mxu0 %v26238_v0  ;;  %23674 = vmatprep.subr.bf16.mxu1 %v26238_v0 }
 0xbc5   : > { %v4605_v2 = vadd.f32 %v21526_v17, %v4604_v62  ;;  %v4651_v3 = vadd.f32 %v21527_v60, %v4650_v33  ;;  %v23576_v4 = vpop.f32.mrb[129].mxu0  ;;  %v23582_v57 = vpop.f32.mrb[141].mxu1 }
 0xbc6   : > { %v4607_v58 = vpop.f32.mrb[130].mxu0  ;;  %v4653_v16 = vpop.f32.mrb[142].mxu1 }
 0xbc7   : > { %v5412_v6 = vpack.c.bf16 %v4605_v2, %v4605_v2  ;;  %v5413_v7 = vpack.c.bf16 %v4651_v3, %v4651_v3  ;;  %v23577_v9 = vpop.f32.mrb[131].mxu0  ;;  %v23583_v10 = vpop.f32.mrb[143].mxu1 }
 0xbc9   : > { %23659 = vmatmul.mubr.msk.bf16.vlgmr.msra.gmra.mrb[156].mxu0 %vm1979_vm1, %v4938_v5  ;;  %23665 = vmatmul.mubr.msk.bf16.vlgmr.msra.gmra.mrb[168].mxu1 %vm1979_vm1, %v4939_v18  ;;  %v5424_v11 = vsel %vm2456_vm2, %v5412_v6, 0  ;;  %v5470_v43 = vsel %vm2456_vm2, %v5413_v7, 0 }
 0xbca   : > { %23669 = vmatpush3.bf16.msra.mxu0 %v5424_v11  ;;  %23675 = vmatpush3.bf16.msra.mxu1 %v5470_v43 }
 0xbcb   : > { %23670 = vmatprep.mubr.msk.bf16.mxu0 %vm26239_vm0, %v26238_v0  ;;  %23676 = vmatprep.mubr.msk.bf16.mxu1 %vm26239_vm0, %v26238_v0 }
 0xbcc   : > { %v27189_v13 = vpop.f32.mrb[132].mxu0  ;;  %v27191_v14 = vpop.f32.mrb[144].mxu1  ;;  %23680 = vmatprep.subr.bf16.mxu0 %v26238_v0  ;;  %23686 = vmatprep.subr.bf16.mxu1 %v26238_v0 }
 0xbcd   : > { %v23588_v19 = vpop.f32.mrb[133].mxu0  ;;  %v23594_v49 = vpop.f32.mrb[145].mxu1 }
 0xbce   : > { %v4699_v22 = vpop.f32.mrb[134].mxu0  ;;  %v4745_v23 = vpop.f32.mrb[146].mxu1 }
 0xbcf   : > { %v23589_v63 = vpop.f32.mrb[135].mxu0  ;;  %v23595_v24 = vpop.f32.mrb[147].mxu1 }
 0xbd4   : > { %v27195_v1 = vpop.f32.mrb[136].mxu0  ;;  %v27197_v25 = vpop.f32.mrb[148].mxu1 }
 0xbd5   : > { %v23600_v53 = vpop.f32.mrb[137].mxu0  ;;  %v23606_v26 = vpop.f32.mrb[149].mxu1 }
 0xbd6   : > { %v4791_v27 = vpop.f32.mrb[138].mxu0  ;;  %v4837_v52 = vpop.f32.mrb[150].mxu1 }
 0xbd7   : > { %v23601_v30 = vpop.f32.mrb[139].mxu0  ;;  %v23607_v32 = vpop.f32.mrb[151].mxu1 }
 0xbdc   : > { %v27199_v31 = vpop.f32.mrb[140].mxu0  ;;  %v27201_v34 = vpop.f32.mrb[152].mxu1 }
 0xbdd   : > { %v23612_v35 = vpop.f32.mrb[141].mxu0  ;;  %v23618_v15 = vpop.f32.mrb[153].mxu1 }
 0xbde   : > { %v4883_v36 = vpop.f32.mrb[142].mxu0  ;;  %v4929_v37 = vpop.f32.mrb[154].mxu1 }
 0xbdf   : > { %v23613_v38 = vpop.f32.mrb[143].mxu0  ;;  %v23619_v39 = vpop.f32.mrb[155].mxu1 }
 0xc84   : > { %v4988_v40 = vpop.f32.mrb[144].mxu0  ;;  %v5034_v41 = vpop.f32.mrb[156].mxu1 }
 0xc85   : > { %v23624_v42 = vpop.f32.mrb[145].mxu0  ;;  %v23630_v44 = vpop.f32.mrb[157].mxu1  ;;  %v5319_v8 = vsel %vm2348_vm3, %v5034_v41, -inf  ;;  %v5316_v46 = vsel %vm2348_vm3, %v4988_v40, -inf }
 0xc86   : > { %5320 = vmax.xlane.f32.xlu1 %v5319_v8  ;;  %v5037_v20 = vpop.f32.mrb[158].mxu1  ;;  %5317 = vmax.xlane.f32.xlu0 %v5316_v46  ;;  %v4991_v47 = vpop.f32.mrb[146].mxu0 }
 0xc87   : > { %v23625_v48 = vpop.f32.mrb[147].mxu0  ;;  %v23631_v12 = vpop.f32.mrb[159].mxu1 }
 0xc8c   : > { %v5080_v50 = vpop.f32.mrb[148].mxu0  ;;  %v5126_v51 = vpop.f32.mrb[160].mxu1 }
 0xc8d   : > { %v23636_v54 = vpop.f32.mrb[149].mxu0  ;;  %v23642_v55 = vpop.f32.mrb[161].mxu1  ;;  %v5325_v56 = vsel %vm2348_vm3, %v5126_v51, -inf  ;;  %v5322_v17 = vsel %vm2348_vm3, %v5080_v50, -inf }
 0xc8e   : > { %5326 = vmax.xlane.f32.xlu1 %v5325_v56  ;;  %v5129_v60 = vpop.f32.mrb[162].mxu1  ;;  %5323 = vmax.xlane.f32.xlu0 %v5322_v17  ;;  %v5083_v28 = vpop.f32.mrb[150].mxu0 }
 0xc8f   : > { %v23637_v61 = vpop.f32.mrb[151].mxu0  ;;  %v23643_v62 = vpop.f32.mrb[163].mxu1 }
 0xc94   : > { %v5172_v33 = vpop.f32.mrb[152].mxu0  ;;  %v5218_v2 = vpop.f32.mrb[164].mxu1 }
 0xc95   : > { %v23648_v3 = vpop.f32.mrb[153].mxu0  ;;  %v23654_v4 = vpop.f32.mrb[165].mxu1  ;;  %v5331_v57 = vsel %vm2348_vm3, %v5218_v2, -inf  ;;  %v5328_v58 = vsel %vm2348_vm3, %v5172_v33, -inf }
 0xc96   : > { %5332 = vmax.xlane.f32.xlu1 %v5331_v57  ;;  %v5221_v16 = vpop.f32.mrb[166].mxu1  ;;  %5329 = vmax.xlane.f32.xlu0 %v5328_v58  ;;  %v5175_v5 = vpop.f32.mrb[154].mxu0 }
 0xc97   : > { %v23649_v18 = vpop.f32.mrb[155].mxu0  ;;  %v23655_v6 = vpop.f32.mrb[167].mxu1 }
 0xc98   : > { %v21529_v6 = vld [vmem:[%s29497_s5 + $0x2b] ss:$0 sm:$0xff] }
 0xc9c   : > { %v5264_v7 = vpop.f32.mrb[156].mxu0  ;;  %v5310_v9 = vpop.f32.mrb[168].mxu1 }
 0xc9d   : > { %v23660_v10 = vpop.f32.mrb[157].mxu0  ;;  %v23666_v11 = vpop.f32.mrb[169].mxu1  ;;  %v5337_v43 = vsel %vm2348_vm3, %v5310_v9, -inf  ;;  %v5334_v19 = vsel %vm2348_vm3, %v5264_v7, -inf }
 0xc9e   : > { %5338 = vmax.xlane.f32.xlu1 %v5337_v43  ;;  %v5313_v49 = vpop.f32.mrb[170].mxu1  ;;  %5335 = vmax.xlane.f32.xlu0 %v5334_v19  ;;  %v5267_v22 = vpop.f32.mrb[158].mxu0 }
 0xc9f   : > { %v23661_v23 = vpop.f32.mrb[159].mxu0  ;;  %v23667_v63 = vpop.f32.mrb[171].mxu1 }
 0xd13   : > { %v5321_v24 = vpop.xlane.xlu1 %5320  ;;  %v5318_v53 = vpop.xlane.xlu0 %5317 }
 0xd14   : > { %v5341_v26 = vsub.f32 %v5034_v41, %v5321_v24  ;;  %v5340_v27 = vsub.f32 %v4988_v40, %v5318_v53  ;;  %v21531_v24 = vld [vmem:[%s29497_s5 + $0x2d] ss:$0 sm:$0xff] }
 0xd16   : > { %v5350_v52 = vmul.f32 1.442695, %v5341_v26  ;;  %v5348_v30 = vmul.f32 1.442695, %v5340_v27 }
 0xd18   : > { %25817 = vpow2.f32 %v5350_v52 }
 0xd19   : > { %25819 = vpow2.f32 %v5348_v30 }
 0xd1b   : > { %v5327_v32 = vpop.xlane.xlu1 %5326  ;;  %v5324_v35 = vpop.xlane.xlu0 %5323 }
 0xd1c   : > { %v5343_v15 = vsub.f32 %v5126_v51, %v5327_v32  ;;  %v5342_v36 = vsub.f32 %v5080_v50, %v5324_v35 }
 0xd1e   : > { %v5354_v37 = vmul.f32 1.442695, %v5343_v15  ;;  %v5352_v38 = vmul.f32 1.442695, %v5342_v36 }
 0xd20   : > { %25821 = vpow2.f32 %v5354_v37 }
 0xd21   : > { %25823 = vpow2.f32 %v5352_v38 }
 0xd22   : > { %v25818_v39 = vpop.eup %25817 }
 0xd23   : > { %v25820_v42 = vpop.eup %25819  ;;  %v5333_v44 = vpop.xlane.xlu1 %5332  ;;  %v5367_v46 = vsel %vm2348_vm3, %v25818_v39, 0.0 }
 0xd24   : > { %v5330_v8 = vpop.xlane.xlu0 %5329  ;;  %v5345_v41 = vsub.f32 %v5218_v2, %v5333_v44  ;;  %5368 = vadd.xlane.f32.xlu1 %v5367_v46  ;;  %v5364_v20 = vsel %vm2348_vm3, %v25820_v42, 0.0  ;;  %v21532_v44 = vld [vmem:[%s29497_s5 + $0x2e] ss:$0 sm:$0xff] }
 0xd25   : > { %v5344_v40 = vsub.f32 %v5172_v33, %v5330_v8  ;;  %5365 = vadd.xlane.f32.xlu0 %v5364_v20 }
 0xd26   : > { %v5358_v47 = vmul.f32 1.442695, %v5345_v41 }
 0xd27   : > { %v5356_v48 = vmul.f32 1.442695, %v5344_v40 }
 0xd28   : > { %25825 = vpow2.f32 %v5358_v47  ;;  %v4881_v47 = vadd.f32 %v21532_v44, %v27199_v31 }
 0xd29   : > { %25827 = vpow2.f32 %v5356_v48 }
 0xd2a   : > { %v27213_v12 = vpop.eup %25821 }
 0xd2b   : > { %v27215_v50 = vpop.eup %25823  ;;  %v5339_v51 = vpop.xlane.xlu1 %5338  ;;  %v5373_v55 = vsel %vm2348_vm3, %v27213_v12, 0.0 }
 0xd2c   : > { %v5336_v54 = vpop.xlane.xlu0 %5335  ;;  %v5347_v56 = vsub.f32 %v5310_v9, %v5339_v51  ;;  %5374 = vadd.xlane.f32.xlu1 %v5373_v55  ;;  %v5370_v60 = vsel %vm2348_vm3, %v27215_v50, 0.0  ;;  %v4743_v9 = vadd.f32 %v21529_v6, %v27191_v14  ;;  %v21530_v14 = vld [vmem:[%s29497_s5 + $0x2c] ss:$0 sm:$0xff] }
 0xd2d   : > { %v5346_v17 = vsub.f32 %v5264_v7, %v5336_v54  ;;  %5371 = vadd.xlane.f32.xlu0 %v5370_v60  ;;  %v21528_v7 = vld [vmem:[%s29497_s5 + $0x2a] ss:$0 sm:$0xff]  ;;  %v4789_v32 = vadd.f32 %v21530_v14, %v27195_v1  ;;  %v5418_v54 = vpack.c.bf16 %v4881_v47, %v4881_v47 }
 0xd2e   : > { %v5362_v28 = vmul.f32 1.442695, %v5347_v56  ;;  %v4697_v11 = vadd.f32 %v21528_v7, %v27189_v13  ;;  %v5415_v22 = vpack.c.bf16 %v4743_v9, %v4743_v9  ;;  %v4835_v13 = vadd.f32 %v21531_v24, %v27197_v25  ;;  %v25407_v9 = vld [vmem:[#allocation4 + $0x1d0] sm:$0xff]  }
 0xd2f   : > { %v5360_v61 = vmul.f32 1.442695, %v5346_v17  ;;  %v5416_v38 = vpack.c.bf16 %v4789_v32, %v4789_v32 }
 0xd30   : > { %25829 = vpow2.f32 %v5362_v28  ;;  %v5414_v63 = vpack.c.bf16 %v4697_v11, %v4697_v11  ;;  %v5562_v52 = vsel %vm2456_vm2, %v5415_v22, 0  ;;  %v5417_v1 = vpack.c.bf16 %v4835_v13, %v4835_v13 }
 0xd31   : > { %25831 = vpow2.f32 %v5360_v61  ;;  %v5608_v48 = vsel %vm2456_vm2, %v5416_v38, 0  ;;  %v5700_v28 = vsel %vm2456_vm2, %v5418_v54, 0  ;;  %v25411_v38 = vld [vmem:[#allocation4 + $0x1f0] sm:$0xff]  }
 0xd32   : > { %v27221_v62 = vpop.eup %25825  ;;  %v5516_v35 = vsel %vm2456_vm2, %v5414_v63, 0  ;;  %v5654_v40 = vsel %vm2456_vm2, %v5417_v1, 0  ;;  %v25410_v63 = vld [vmem:[#allocation4 + $0x1e8] sm:$0xff]  }
 0xd33   : > { %v27223_v33 = vpop.eup %25827  ;;  %v5379_v2 = vsel %vm2348_vm3, %v27221_v62, 0.0 }
 0xd34   : > { %5380 = vadd.xlane.f32.xlu1 %v5379_v2  ;;  %v5376_v3 = vsel %vm2348_vm3, %v27223_v33, 0.0 }
 0xd35   : > { %5377 = vadd.xlane.f32.xlu0 %v5376_v3  ;;  %v25406_v3 = vld [vmem:[#allocation4 + $0x1c8] sm:$0xff]  }
 0xd3a   : > { %v27229_v4 = vpop.eup %25829 }
 0xd3b   : > { %v27231_v57 = vpop.eup %25831  ;;  %v5385_v58 = vsel %vm2348_vm3, %v27229_v4, 0.0 }
 0xd3c   : > { %5386 = vadd.xlane.f32.xlu1 %v5385_v58  ;;  %v5382_v16 = vsel %vm2348_vm3, %v27231_v57, 0.0 }
 0xd3d   : > { %5383 = vadd.xlane.f32.xlu0 %v5382_v16  ;;  %v25405_v16 = vld [vmem:[#allocation4 + $0x1c0] sm:$0xff]  }
 0xdb1   : > { %v5369_v5 = vpop.xlane.xlu1 %5368 }
 0xdb2   : > { %25833 = vrcp.f32 %v5369_v5  ;;  %v5366_v18 = vpop.xlane.xlu0 %5365 }
 0xdb3   : > { %25835 = vrcp.f32 %v5366_v18 }
 0xdb9   : > { %v5375_v10 = vpop.xlane.xlu1 %5374 }
 0xdba   : > { %25837 = vrcp.f32 %v5375_v10  ;;  %v5372_v43 = vpop.xlane.xlu0 %5371 }
 0xdbb   : > { %25839 = vrcp.f32 %v5372_v43 }
 0xdbc   : > { %v25834_v19 = vpop.eup %25833 }
 0xdbd   : > { %v25836_v49 = vpop.eup %25835  ;;  %v5397_v23 = vmul.f32 %v25834_v19, %v25818_v39  ;;  %v21533_v39 = vld [vmem:[%s29497_s5 + $0x2f] ss:$0 sm:$0xff] }
 0xdbe   : > { %v5396_v53 = vmul.f32 %v25836_v49, %v25820_v42  ;;  %v4927_v41 = vadd.f32 %v21533_v39, %v27201_v34 }
 0xdbf   : > { %v5405_v26 = vpack.c.bf16 %v5397_v23, %v5397_v23 }
 0xdc0   : > { %v5404_v27 = vpack.c.bf16 %v5396_v53, %v5396_v53  ;;  %v5419_v31 = vpack.c.bf16 %v4927_v41, %v4927_v41 }
 0xdc1   : > { %23677 = vmatmul.mubr.msk.bf16.vlgmr.msra.gmra.mrb[172].mxu1 %vm2348_vm3, %v5405_v26  ;;  %v5381_v30 = vpop.xlane.xlu1 %5380  ;;  %v25409_v26 = vld [vmem:[#allocation4 + $0x1e0] sm:$0xff]  }
 0xdc2   : > { %23687 = vmatpush3.bf16.msra.mxu1 %v5562_v52  ;;  %25841 = vrcp.f32 %v5381_v30  ;;  %23671 = vmatmul.mubr.msk.bf16.vlgmr.msra.gmra.mrb[160].mxu0 %vm2348_vm3, %v5404_v27  ;;  %v5378_v15 = vpop.xlane.xlu0 %5377  ;;  %v5746_v60 = vsel %vm2456_vm2, %v5419_v31, 0 }
 0xdc3   : > { %23681 = vmatpush3.bf16.msra.mxu0 %v5516_v35  ;;  %25843 = vrcp.f32 %v5378_v15  ;;  %23682 = vmatprep.mubr.msk.bf16.mxu0 %vm26239_vm0, %v26238_v0 }
 0xdc4   : > { %v25838_v25 = vpop.eup %25837  ;;  %23688 = vmatprep.mubr.msk.bf16.mxu1 %vm26239_vm0, %v26238_v0  ;;  %23692 = vmatprep.subr.bf16.mxu0 %v26238_v0 }
 0xdc5   : > { %v25840_v36 = vpop.eup %25839  ;;  %23698 = vmatprep.subr.bf16.mxu1 %v26238_v0  ;;  %v5399_v37 = vmul.f32 %v25838_v25, %v27213_v12  ;;  %v25412_v25 = vld [vmem:[#allocation4 + $0x1f8] sm:$0xff]  }
 0xdc6   : > { %v5398_v42 = vmul.f32 %v25840_v36, %v27215_v50 }
 0xdc7   : > { %v5407_v8 = vpack.c.bf16 %v5399_v37, %v5399_v37 }
 0xdc8   : > { %v5406_v46 = vpack.c.bf16 %v5398_v42, %v5398_v42 }
 0xdc9   : > { %23689 = vmatmul.mubr.msk.bf16.vlgmr.msra.gmra.mrb[176].mxu1 %vm2348_vm3, %v5407_v8  ;;  %v5387_v20 = vpop.xlane.xlu1 %5386 }
 0xdca   : > { %23699 = vmatpush3.bf16.msra.mxu1 %v5654_v40  ;;  %25845 = vrcp.f32 %v5387_v20  ;;  %23683 = vmatmul.mubr.msk.bf16.vlgmr.msra.gmra.mrb[164].mxu0 %vm2348_vm3, %v5406_v46  ;;  %v5384_v12 = vpop.xlane.xlu0 %5383 }
 0xdcb   : > { %23693 = vmatpush3.bf16.msra.mxu0 %v5608_v48  ;;  %25847 = vrcp.f32 %v5384_v12  ;;  %23694 = vmatprep.mubr.msk.bf16.mxu0 %vm26239_vm0, %v26238_v0 }
 0xdcc   : > { %v25842_v34 = vpop.eup %25841  ;;  %23700 = vmatprep.mubr.msk.bf16.mxu1 %vm26239_vm0, %v26238_v0  ;;  %23704 = vmatprep.subr.bf16.mxu0 %v26238_v0 }
 0xdcd   : > { %v25844_v50 = vpop.eup %25843  ;;  %23710 = vmatprep.subr.bf16.mxu1 %v26238_v0  ;;  %v5401_v51 = vmul.f32 %v25842_v34, %v27221_v62 }
 0xdce   : > { %v5400_v55 = vmul.f32 %v25844_v50, %v27223_v33 }
 0xdcf   : > { %v5409_v56 = vpack.c.bf16 %v5401_v51, %v5401_v51 }
 0xdd0   : > { %v5408_v17 = vpack.c.bf16 %v5400_v55, %v5400_v55 }
 0xdd1   : > { %23701 = vmatmul.mubr.msk.bf16.vlgmr.msra.gmra.mrb[180].mxu1 %vm2348_vm3, %v5409_v56 }
 0xdd2   : > { %23695 = vmatmul.mubr.msk.bf16.vlgmr.msra.gmra.mrb[168].mxu0 %vm2348_vm3, %v5408_v17  ;;  %23711 = vmatpush3.bf16.msra.mxu1 %v5746_v60 }
 0xdd3   : > { %23705 = vmatpush3.bf16.msra.mxu0 %v5700_v28  ;;  %23706 = vmatprep.mubr.msk.bf16.mxu0 %vm26239_vm0, %v26238_v0 }
 0xdd4   : > { %v25846_v61 = vpop.eup %25845  ;;  %23712 = vmatprep.mubr.msk.bf16.mxu1 %vm26239_vm0, %v26238_v0  ;;  %23716 = vmatprep.subr.bf16.mxu0 %v26238_v0 }
 0xdd5   : > { %v25848_v62 = vpop.eup %25847  ;;  %v5403_v33 = vmul.f32 %v25846_v61, %v27229_v4  ;;  %23722 = vmatprep.subr.bf16.mxu1 %v26238_v0 }
 0xdd6   : > { %v5402_v2 = vmul.f32 %v25848_v62, %v27231_v57  ;;  %v25408_v57 = vld [vmem:[#allocation4 + $0x1d8] sm:$0xff]  }
 0xdd7   : > { %v5411_v58 = vpack.c.bf16 %v5403_v33, %v5403_v33 }
 0xdd8   : > { %v5410_v5 = vpack.c.bf16 %v5402_v2, %v5402_v2 }
 0xdd9   : > { %23713 = vmatmul.mubr.msk.bf16.vlgmr.msra.gmra.mrb[184].mxu1 %vm2348_vm3, %v5411_v58 }
 0xdda   : > { %23707 = vmatmul.mubr.msk.bf16.vlgmr.msra.gmra.mrb[172].mxu0 %vm2348_vm3, %v5410_v5  ;;  %23723 = vmatpush3.bf16.msra.mxu1 %v25406_v3 }
 0xddb   : > { %23717 = vmatpush3.bf16.msra.mxu0 %v25405_v16  ;;  %23718 = vmatprep.mubr.msk.bf16.mxu0 %vm26239_vm0, %v26238_v0 }
 0xddc   : > { %23724 = vmatprep.mubr.msk.bf16.mxu1 %vm26239_vm0, %v26238_v0  ;;  %23728 = vmatprep.subr.bf16.mxu0 %v26238_v0 }
 0xddd   : > { %23734 = vmatprep.subr.bf16.mxu1 %v26238_v0 }
 0xe94   : > { %v5506_v4 = vpop.f32.mrb[172].mxu1 }
 0xe95   : > { %v5460_v18 = vpop.f32.mrb[160].mxu0  ;;  %v5789_v6 = vpack.c.bf16 %v5506_v4, %v5506_v4  ;;  %v23678_v7 = vpop.f32.mrb[173].mxu1 }
 0xe96   : > { %v5788_v10 = vpack.c.bf16 %v5460_v18, %v5460_v18  ;;  %v23672_v11 = vpop.f32.mrb[161].mxu0  ;;  %v5509_v43 = vpop.f32.mrb[174].mxu1 }
 0xe97   : > { %v5463_v19 = vpop.f32.mrb[162].mxu0  ;;  %v23679_v49 = vpop.f32.mrb[175].mxu1  ;;  %23725 = vmatmul.mubr.msk.bf16.vlgmr.msra.gmra.mrb[188].mxu1 %vm1979_vm1, %v5789_v6 }
 0xe98   : > { %v23673_v22 = vpop.f32.mrb[163].mxu0  ;;  %23719 = vmatmul.mubr.msk.bf16.vlgmr.msra.gmra.mrb[176].mxu0 %vm1979_vm1, %v5788_v10  ;;  %23735 = vmatpush3.bf16.msra.mxu1 %v25408_v57 }
 0xe99   : > { %23729 = vmatpush3.bf16.msra.mxu0 %v25407_v9  ;;  %23730 = vmatprep.mubr.msk.bf16.mxu0 %vm26239_vm0, %v26238_v0 }
 0xe9a   : > { %23736 = vmatprep.mubr.msk.bf16.mxu1 %vm26239_vm0, %v26238_v0  ;;  %23740 = vmatprep.subr.bf16.mxu0 %v26238_v0 }
 0xe9b   : > { %23746 = vmatprep.subr.bf16.mxu1 %v26238_v0 }
 0xe9c   : > { %v5598_v23 = vpop.f32.mrb[176].mxu1 }
 0xe9d   : > { %v5552_v24 = vpop.f32.mrb[164].mxu0  ;;  %v5791_v53 = vpack.c.bf16 %v5598_v23, %v5598_v23  ;;  %v23690_v14 = vpop.f32.mrb[177].mxu1 }
 0xe9e   : > { %v5790_v27 = vpack.c.bf16 %v5552_v24, %v5552_v24  ;;  %v23684_v13 = vpop.f32.mrb[165].mxu0  ;;  %v5601_v52 = vpop.f32.mrb[178].mxu1 }
 0xe9f   : > { %v5555_v30 = vpop.f32.mrb[166].mxu0  ;;  %v23691_v32 = vpop.f32.mrb[179].mxu1  ;;  %23737 = vmatmul.mubr.msk.bf16.vlgmr.msra.gmra.mrb[192].mxu1 %vm1979_vm1, %v5791_v53 }
 0xea0   : > { %v23685_v35 = vpop.f32.mrb[167].mxu0  ;;  %23731 = vmatmul.mubr.msk.bf16.vlgmr.msra.gmra.mrb[180].mxu0 %vm1979_vm1, %v5790_v27  ;;  %23747 = vmatpush3.bf16.msra.mxu1 %v25410_v63 }
 0xea1   : > { %23741 = vmatpush3.bf16.msra.mxu0 %v25409_v26  ;;  %23742 = vmatprep.mubr.msk.bf16.mxu0 %vm26239_vm0, %v26238_v0 }
 0xea2   : > { %23748 = vmatprep.mubr.msk.bf16.mxu1 %vm26239_vm0, %v26238_v0  ;;  %23752 = vmatprep.subr.bf16.mxu0 %v26238_v0 }
 0xea3   : > { %23758 = vmatprep.subr.bf16.mxu1 %v26238_v0 }
 0xea4   : > { %v5690_v15 = vpop.f32.mrb[180].mxu1 }
 0xea5   : > { %v5644_v36 = vpop.f32.mrb[168].mxu0  ;;  %v5793_v1 = vpack.c.bf16 %v5690_v15, %v5690_v15  ;;  %v23702_v37 = vpop.f32.mrb[181].mxu1  ;;  %v3682_v15 = vld [vmem:[%s29500_s8 + $0x4] ss:$0 sm:$0xff] }
 0xea6   : > { %v5792_v39 = vpack.c.bf16 %v5644_v36, %v5644_v36  ;;  %v23696_v42 = vpop.f32.mrb[169].mxu0  ;;  %v5693_v44 = vpop.f32.mrb[182].mxu1 }
 0xea7   : > { %v5647_v8 = vpop.f32.mrb[170].mxu0  ;;  %v23703_v46 = vpop.f32.mrb[183].mxu1  ;;  %23749 = vmatmul.mubr.msk.bf16.vlgmr.msra.gmra.mrb[196].mxu1 %vm1979_vm1, %v5793_v1  ;;  %v25418_v42 = vld [vmem:[%s29498_s6 + $0x94] ss:$8 sps:$4 sm:$0xff]   ;;  %v25416_v44 = vld [vmem:[%s29498_s6 + $0x90] ss:$8 sps:$4 sm:$0xff]  }
 0xea8   : > { %v23697_v41 = vpop.f32.mrb[171].mxu0  ;;  %23743 = vmatmul.mubr.msk.bf16.vlgmr.msra.gmra.mrb[184].mxu0 %vm1979_vm1, %v5792_v39  ;;  %23759 = vmatpush3.bf16.msra.mxu1 %v25412_v25  ;;  %v25415_v39 = vld [vmem:[%s29498_s6 + $0x84] ss:$8 sps:$4 sm:$0xff]   ;;  %v25419_v8 = vld [vmem:[%s29498_s6 + $0xa0] ss:$8 sps:$4 sm:$0xff]  }
 0xea9   : > { %23753 = vmatpush3.bf16.msra.mxu0 %v25411_v38  ;;  %23754 = vmatprep.mubr.msk.bf16.mxu0 %vm26239_vm0, %v26238_v0  ;;  %v25413_v38 = vld [vmem:[%s29498_s6 + $0x80] ss:$8 sps:$4 sm:$0xff]  }
 0xeaa   : > { %23760 = vmatprep.mubr.msk.bf16.mxu1 %vm26239_vm0, %v26238_v0  ;;  %6323 = vmatprep.subr.bf16.mxu0 %v25415_v39  ;;  %v6401_v39 = vld [vmem:[%s29500_s8 + $0x15] ss:$0 sm:$0xff] }
 0xeac   : > { %v5782_v40 = vpop.f32.mrb[184].mxu1 }
 0xead   : > { %v5736_v20 = vpop.f32.mrb[172].mxu0  ;;  %v5795_v47 = vpack.c.bf16 %v5782_v40, %v5782_v40  ;;  %v23714_v48 = vpop.f32.mrb[185].mxu1 }
 0xeae   : > { %v5794_v12 = vpack.c.bf16 %v5736_v20, %v5736_v20  ;;  %v23708_v34 = vpop.f32.mrb[173].mxu0  ;;  %v5785_v50 = vpop.f32.mrb[186].mxu1  ;;  %v25422_v48 = vld [vmem:[%s29498_s6 + $0xb0] ss:$8 sps:$4 sm:$0xff]  }
 0xeaf   : > { %v5739_v31 = vpop.f32.mrb[174].mxu0  ;;  %v23715_v51 = vpop.f32.mrb[187].mxu1  ;;  %23761 = vmatmul.mubr.msk.bf16.vlgmr.msra.gmra.mrb[200].mxu1 %vm1979_vm1, %v5795_v47  ;;  %v25424_v47 = vld [vmem:[%s29498_s6 + $0xb4] ss:$8 sps:$4 sm:$0xff]   ;;  %v25425_v34 = vld [vmem:[%s29498_s6 + $0xc0] ss:$8 sps:$4 sm:$0xff]  }
 0xeb0   : > { %v23709_v54 = vpop.f32.mrb[175].mxu0  ;;  %23755 = vmatmul.mubr.msk.bf16.vlgmr.msra.gmra.mrb[188].mxu0 %vm1979_vm1, %v5794_v12  ;;  %v25427_v12 = vld [vmem:[%s29498_s6 + $0xc4] ss:$8 sps:$4 sm:$0xff]   ;;  %v25430_v50 = vld [vmem:[%s29498_s6 + $0xd4] ss:$8 sps:$4 sm:$0xff]  }
 0xeb1   : > { %6355 = vmatprep.mubr.bf16.mxu0 %v26240_v21  ;;  %6324 = vmatpush1.bf16.msra.mxu0 %v25413_v38  ;;  %v25428_v31 = vld [vmem:[%s29498_s6 + $0xd0] ss:$8 sps:$4 sm:$0xff]   ;;  %v25433_v51 = vld [vmem:[%s29498_s6 + $0xe4] ss:$8 sps:$4 sm:$0xff]   ;;  %v25431_v54 = vld [vmem:[%s29498_s6 + $0xe0] ss:$8 sps:$4 sm:$0xff]  }
 0xeb2   : > { %6325 = vmatprep.subr.bf16.mxu0 %v25418_v42 }
 0xeb5   : > { %6326 = vmatpush1.bf16.msra.mxu0 %v25416_v44 }
 0xf6a   : > { %v5888_v55 = vpop.f32.mrb[188].mxu1 }
 0xf6b   : > { %v5839_v56 = vpop.f32.mrb[176].mxu0  ;;  %v23726_v17 = vpop.f32.mrb[189].mxu1 }
 0xf6c   : > { %v6188_v60 = vadd.f32 %v5888_v55, %v5839_v56  ;;  %v23720_v28 = vpop.f32.mrb[177].mxu0  ;;  %v5891_v61 = vpop.f32.mrb[190].mxu1  ;;  %v25436_v55 = vld [vmem:[%s29498_s6 + $0xf4] ss:$8 sps:$4 sm:$0xff]   ;;  %v25434_v56 = vld [vmem:[%s29498_s6 + $0xf0] ss:$8 sps:$4 sm:$0xff]  }
 0xf6d   : > { %v5842_v62 = vpop.f32.mrb[178].mxu0  ;;  %v23727_v33 = vpop.f32.mrb[191].mxu1  ;;  %v25437_v17 = vld [vmem:[#allocation6 + $0xc0] sm:$0xff]   ;;  %v25439_v28 = vld [vmem:[#allocation6 + $0xc8] sm:$0xff]  }
 0xf6e   : > { %v23721_v2 = vpop.f32.mrb[179].mxu0  ;;  %22569 = vmatprep.subr.bf16.mxu1 %v25437_v17  ;;  %v25440_v61 = vld [vmem:[#allocation6 + $0x88] sm:$0xff]   ;;  %v25441_v62 = vld [vmem:[#allocation6 + $0xd0] sm:$0xff]  }
 0xf6f   : > { %v25442_v33 = vld [vmem:[#allocation6 + $0x90] sm:$0xff]   ;;  %v25443_v2 = vld [vmem:[#allocation6 + $0xd8] sm:$0xff]  }
 0xf72   : > { %v5986_v3 = vpop.f32.mrb[192].mxu1 }
 0xf73   : > { %v5937_v58 = vpop.f32.mrb[180].mxu0  ;;  %v23738_v16 = vpop.f32.mrb[193].mxu1 }
 0xf74   : > { %v6189_v5 = vadd.f32 %v6188_v60, %v5937_v58  ;;  %v23732_v4 = vpop.f32.mrb[181].mxu0  ;;  %v5989_v57 = vpop.f32.mrb[194].mxu1  ;;  %v25438_v60 = vld [vmem:[#allocation6 + $0x80] sm:$0xff]  }
 0xf75   : > { %v5940_v18 = vpop.f32.mrb[182].mxu0  ;;  %v23739_v6 = vpop.f32.mrb[195].mxu1  ;;  %22570 = vmatpush3.bf16.msra.mxu1 %v25438_v60  ;;  %v25445_v58 = vld [vmem:[#allocation6 + $0xe0] sm:$0xff]   ;;  %v25448_v4 = vld [vmem:[#allocation6 + $0xa8] sm:$0xff]  }
 0xf76   : > { %v6190_v7 = vadd.f32 %v6189_v5, %v5986_v3  ;;  %v23733_v9 = vpop.f32.mrb[183].mxu0  ;;  %22571 = vmatprep.subr.bf16.mxu1 %v25439_v28  ;;  %v25444_v3 = vld [vmem:[#allocation6 + $0x98] sm:$0xff]   ;;  %v25446_v16 = vld [vmem:[#allocation6 + $0xa0] sm:$0xff]   ;;  %v25447_v5 = vld [vmem:[#allocation6 + $0xe8] sm:$0xff]  }
 0xf77   : > { %v6197_v9 = vld [vmem:[%s29500_s8 + $0xc] ss:$0 sm:$0xff]  ;;  %v25455_v28 = vld [vmem:[#allocation4 + $0x210] sm:$0xff]  }
 0xf79   : > { %22572 = vmatpush3.bf16.msra.mxu1 %v25440_v61  ;;  %v25456_v61 = vld [vmem:[#allocation4 + $0x218] sm:$0xff]  }
 0xf7a   : > { %v6084_v10 = vpop.f32.mrb[196].mxu1  ;;  %22573 = vmatprep.subr.bf16.mxu1 %v25441_v62 }
 0xf7b   : > { %v6035_v11 = vpop.f32.mrb[184].mxu0  ;;  %v23750_v43 = vpop.f32.mrb[197].mxu1 }
 0xf7c   : > { %v6191_v19 = vadd.f32 %v6190_v7, %v6035_v11  ;;  %v23744_v49 = vpop.f32.mrb[185].mxu0  ;;  %v6087_v22 = vpop.f32.mrb[198].mxu1  ;;  %v6198_v11 = vld [vmem:[%s29500_s8 + $0x14] ss:$0 sm:$0xff] }
 0xf7d   : > { %v6038_v23 = vpop.f32.mrb[186].mxu0  ;;  %v23751_v63 = vpop.f32.mrb[199].mxu1  ;;  %22574 = vmatpush3.bf16.msra.mxu1 %v25442_v33  ;;  %v25449_v22 = vld [vmem:[#allocation6 + $0xf0] sm:$0xff]   ;;  %v25457_v33 = vld [vmem:[#allocation4 + $0x220] sm:$0xff]  }
 0xf7e   : > { %v6192_v24 = vadd.f32 %v6191_v19, %v6084_v10  ;;  %v23745_v53 = vpop.f32.mrb[187].mxu0  ;;  %22575 = vmatprep.subr.bf16.mxu1 %v25443_v2  ;;  %v25450_v23 = vld [vmem:[#allocation6 + $0xb0] sm:$0xff]   ;;  %v25451_v63 = vld [vmem:[#allocation6 + $0xf8] sm:$0xff]   ;;  %v25458_v2 = vld [vmem:[#allocation4 + $0x228] sm:$0xff]  }
 0xf7f   : > { %v21590_v53 = vld [vmem:[%s29500_s8 + $0x5] ss:$8 sm:$0x3] }
 0xf81   : > { %22576 = vmatpush3.bf16.msra.mxu1 %v25444_v3  ;;  %v25459_v3 = vld [vmem:[#allocation4 + $0x230] sm:$0xff]  }
 0xf82   : > { %v6182_v14 = vpop.f32.mrb[200].mxu1  ;;  %22577 = vmatprep.subr.bf16.mxu1 %v25445_v58  ;;  %v25460_v58 = vld [vmem:[#allocation4 + $0x238] sm:$0xff]  }
 0xf83   : > { %v6133_v26 = vpop.f32.mrb[188].mxu0  ;;  %v23762_v27 = vpop.f32.mrb[201].mxu1 }
 0xf84   : > { %v6193_v13 = vadd.f32 %v6192_v24, %v6133_v26  ;;  %v23756_v52 = vpop.f32.mrb[189].mxu0  ;;  %v6185_v30 = vpop.f32.mrb[202].mxu1  ;;  %v25452_v24 = vld [vmem:[#allocation6 + $0xb8] sm:$0xff]   ;;  %v6240_v26 = vrot.slane %v21590_v53, %v26958_v59 }
 0xf85   : > { %v6136_v32 = vpop.f32.mrb[190].mxu0  ;;  %v23763_v35 = vpop.f32.mrb[203].mxu1  ;;  %22578 = vmatpush3.bf16.msra.mxu1 %v25446_v16  ;;  %v25461_v16 = vld [vmem:[#allocation4 + $0x240] sm:$0xff]  }
 0xf86   : > { %v6194_v25 = vadd.f32 %v6193_v13, %v6182_v14  ;;  %v23757_v36 = vpop.f32.mrb[191].mxu0  ;;  %22579 = vmatprep.subr.bf16.mxu1 %v25447_v5  ;;  %v6236_v14 = vrot.slane %v21590_v53, %v26953_v45  ;;  %v25462_v5 = vld [vmem:[#allocation4 + $0x248] sm:$0xff]  }
 0xf88   : > { %v6195_v1 = vadd.f32 %v6194_v25, %v3682_v15 }
 0xf89   : > { %22580 = vmatpush3.bf16.msra.mxu1 %v25448_v4  ;;  %v25463_v4 = vld [vmem:[#allocation4 + $0x250] sm:$0xff]  }
 0xf8a   : > { %v6196_v37 = vadd.f32 %v6195_v1, %v26975_v29  ;;  %v25421_v29 = vld [vmem:[%s29498_s6 + $0xa4] ss:$8 sps:$4 sm:$0xff]   ;;  %22581 = vmatprep.subr.bf16.mxu1 %v25449_v22 }
 0xf8b   : > { %6327 = vmatprep.subr.bf16.mxu0 %v25421_v29  ;;  %v25474_v22 = vld [vmem:[#allocation4 + $0x2a8] sm:$0xff]  }
 0xf8c   : > { %6199 = vadd.xlane.f32.xlu0 %v6196_v37  ;;  %6328 = vmatpush1.bf16.msra.mxu0 %v25419_v8 }
 0xf8d   : > { %6329 = vmatprep.subr.bf16.mxu0 %v25424_v47  ;;  %22582 = vmatpush3.bf16.msra.mxu1 %v25450_v23  ;;  %v25475_v23 = vld [vmem:[#allocation4 + $0x2b0] sm:$0xff]  }
 0xf8e   : > { %22583 = vmatprep.subr.bf16.mxu1 %v25451_v63  ;;  %v25476_v63 = vld [vmem:[#allocation4 + $0x2b8] sm:$0xff]  }
 0xf90   : > { %6330 = vmatpush1.bf16.msra.mxu0 %v25422_v48  ;;  %v25453_v48 = vld [vmem:[#allocation4 + $0x200] sm:$0xff]  }
 0xf91   : > { %6331 = vmatprep.subr.bf16.mxu0 %v25427_v12  ;;  %22584 = vmatpush3.bf16.msra.mxu1 %v25452_v24  ;;  %v25454_v12 = vld [vmem:[#allocation4 + $0x208] sm:$0xff]  }
 0xf92   : > { %23770 = vmatprep.subr.bf16.mxu1 %v26238_v0 }
 0xf94   : > { %6332 = vmatpush1.bf16.msra.mxu0 %v25425_v34 }
 0xf95   : > { %6333 = vmatprep.subr.bf16.mxu0 %v25430_v50 }
 0xf98   : > { %6334 = vmatpush1.bf16.msra.mxu0 %v25428_v31 }
 0xf99   : > { %6335 = vmatprep.subr.bf16.mxu0 %v25433_v51 }
 0xf9c   : > { %6336 = vmatpush1.bf16.msra.mxu0 %v25431_v54  ;;  %v6539_v54 = vld [vmem:[%s29500_s8 + $0x6] ss:$0 sm:$0xff] }
 0xf9d   : > { %6337 = vmatprep.subr.bf16.mxu0 %v25436_v55 }
 0xfa0   : > { %6338 = vmatpush1.bf16.msra.mxu0 %v25434_v56  ;;  %v6540_v56 = vld [vmem:[%s29500_s8 + $0xe] ss:$0 sm:$0xff] }
 0xfa1   : > { %23764 = vmatprep.subr.bf16.mxu0 %v26238_v0 }
0x1019   : > { %v6200_v46 = vpop.xlane.xlu0 %6199 }
0x101a   : > { %v6201_v41 = vmul.f32 0.0078125, %v6200_v46 }
0x101c   : > { %v6202_v40 = vsub.f32 %v6196_v37, %v6201_v41 }
0x101e   : > { %v6203_v20 = vmul.f32 %v6202_v40, %v6202_v40 }
0x1020   : > { %6204 = vadd.xlane.f32.xlu1 %v6203_v20 }
0x10ad   : > { %v6205_v57 = vpop.xlane.xlu1 %6204 }
0x10ae   : > { %v6206_v18 = vmul.f32 0.0078125, %v6205_v57  ;;  %v25464_v57 = vld [vmem:[#allocation4 + $0x258] sm:$0xff]  }
0x10b0   : > { %v6207_v6 = vadd.f32 1e-05, %v6206_v18  ;;  %v25465_v18 = vld [vmem:[#allocation4 + $0x260] sm:$0xff]  }
0x10b2   : > { %25849 = vrsqrt.f32 %v6207_v6  ;;  %v25466_v6 = vld [vmem:[#allocation4 + $0x268] sm:$0xff]  }
0x10bc   : > { %v25850_v7 = vpop.eup %25849 }
0x10bd   : > { %v6209_v10 = vmul.f32 %v25850_v7, %v6202_v40  ;;  %v25467_v7 = vld [vmem:[#allocation4 + $0x270] sm:$0xff]  }
0x10bf   : > { %v6210_v43 = vmul.f32 %v6209_v10, %v6197_v9  ;;  %v25468_v9 = vld [vmem:[#allocation4 + $0x278] sm:$0xff]   ;;  %v25469_v10 = vld [vmem:[#allocation4 + $0x280] sm:$0xff]  }
0x10c1   : > { %v6211_v19 = vadd.f32 %v6210_v43, %v6198_v11  ;;  %v25470_v11 = vld [vmem:[#allocation4 + $0x288] sm:$0xff]   ;;  %v25471_v43 = vld [vmem:[#allocation4 + $0x290] sm:$0xff]  }
0x10c3   : > { %v6229_v49 = vpack.c.bf16 %v6211_v19, %v6211_v19 }
0x10c5   : > { %6356 = vmatmul.mubr.bf16.vlgmr.msra.gmra.mrb[192].mxu0 %v6229_v49  ;;  %v25473_v49 = vld [vmem:[#allocation4 + $0x2a0] sm:$0xff]  }
0x10c6   : > { %23766 = vmatprep.mubr.msk.bf16.mxu0 %vm26239_vm0, %v26238_v0  ;;  %23765 = vmatpush3.bf16.xpose.msra.mxu0 %v25453_v48 }
0x10c7   : > { %23776 = vmatprep.subr.bf16.mxu0 %v26238_v0 }
0x1198   : > { %v6357_v27 = vpop.f32.mrb[192].mxu0 }
0x1199   : > { %v6358_v13 = vadd.f32 %v6357_v27, %v6236_v14  ;;  %v6359_v52 = vpop.f32.mrb[193].mxu0 }
0x119a   : > { %v6360_v30 = vadd.f32 %v6359_v52, %v6240_v26  ;;  %v6361_v32 = vpop.f32.mrb[194].mxu0 }
0x119b   : > { %v6364_v35 = vmax.f32 %v6358_v13, 0.0  ;;  %v6362_v15 = vpop.f32.mrb[195].mxu0 }
0x119c   : > { %v6365_v25 = vmax.f32 %v6360_v30, 0.0 }
0x119d   : > { %v6399_v1 = vpack.c.bf16 %v6364_v35, %v6364_v35 }
0x119e   : > { %v6400_v36 = vpack.c.bf16 %v6365_v25, %v6365_v25 }
0x11a0   : > { %6530 = vmatprep.mubr.bf16.mxu1 %v6400_v36 }
0x11a1   : > { %6531 = vmatmul.mubr.bf16.vlgmr.msra.gmra.mrb[204].mxu1 %v6399_v1 }
0x11a2   : > { %23772 = vmatprep.mubr.msk.bf16.mxu1 %vm26239_vm0, %v26238_v0  ;;  %23771 = vmatpush3.bf16.xpose.msra.mxu1 %v25454_v12 }
0x11a3   : > { %23782 = vmatprep.subr.bf16.mxu1 %v26238_v0 }
0x1274   : > { %v22585_v37 = vpop.f32.mrb[204].mxu1 }
0x1275   : > { %v22586_v38 = vpop.f32.mrb[205].mxu1 }
0x1276   : > { %v22587_v42 = vadd.f32 %v22586_v38, %v22585_v37  ;;  %v22588_v44 = vpop.f32.mrb[206].mxu1 }
0x1277   : > { %v22589_v29 = vpop.f32.mrb[207].mxu1 }
0x1278   : > { %v6533_v8 = vadd.f32 %v22587_v42, %v6401_v39 }
0x127a   : > { %v6538_v46 = vadd.f32 %v6533_v8, %v6211_v19  ;;  %v25472_v19 = vld [vmem:[#allocation4 + $0x298] sm:$0xff]  }
0x127c   : > { %6541 = vadd.xlane.f32.xlu0 %v6538_v46 }
0x1309   : > { %v6542_v41 = vpop.xlane.xlu0 %6541 }
0x130a   : > { %v6543_v40 = vmul.f32 0.0078125, %v6542_v41 }
0x130c   : > { %v6544_v20 = vsub.f32 %v6538_v46, %v6543_v40 }
0x130e   : > { %v6545_v47 = vmul.f32 %v6544_v20, %v6544_v20 }
0x1310   : > { %6546 = vadd.xlane.f32.xlu1 %v6545_v47 }
0x139d   : > { %v6547_v34 = vpop.xlane.xlu1 %6546 }
0x139e   : > { %v6548_v50 = vmul.f32 0.0078125, %v6547_v34 }
0x13a0   : > { %v6549_v31 = vadd.f32 1e-05, %v6548_v50 }
0x13a2   : > { %25851 = vrsqrt.f32 %v6549_v31 }
0x13ac   : > { %v25852_v51 = vpop.eup %25851 }
0x13ad   : > { %v6551_v55 = vmul.f32 %v25852_v51, %v6544_v20 }
0x13af   : > { %v6552_v17 = vmul.f32 %v6551_v55, %v6539_v54  ;;  %v21663_v54 = vld [vmem:[%s29497_s5 + $0x38] ss:$0 sm:$0xff]  ;;  %v21664_v55 = vld [vmem:[%s29497_s5 + $0x39] ss:$0 sm:$0xff] }
0x13b1   : > { %v27410_v60 = vadd.f32 %v6552_v17, %v6540_v56 }
0x13b3   : > { %v27414_v62 = vpack.c.bf16 %v27410_v60, %v27410_v60 }
0x13b5   : > { %23767 = vmatmul.mubr.bf16.vlgmr.msra.gmra.mrb[196].mxu0 %v27414_v62  ;;  %23773 = vmatmul.mubr.bf16.vlgmr.msra.gmra.mrb[208].mxu1 %v27414_v62 }
0x13b6   : > { %23777 = vmatpush3.bf16.xpose.msra.mxu0 %v25455_v28  ;;  %23783 = vmatpush3.bf16.xpose.msra.mxu1 %v25456_v61 }
0x13b7   : > { %23778 = vmatprep.mubr.msk.bf16.mxu0 %vm26239_vm0, %v26238_v0  ;;  %23784 = vmatprep.mubr.msk.bf16.mxu1 %vm26239_vm0, %v26238_v0 }
0x13b8   : > { %23788 = vmatprep.subr.bf16.mxu0 %v26238_v0  ;;  %23794 = vmatprep.subr.bf16.mxu1 %v26238_v0 }
0x13bd   : > { %23779 = vmatmul.mubr.bf16.vlgmr.msra.gmra.mrb[200].mxu0 %v27414_v62  ;;  %23785 = vmatmul.mubr.bf16.vlgmr.msra.gmra.mrb[212].mxu1 %v27414_v62 }
0x13be   : > { %23789 = vmatpush3.bf16.xpose.msra.mxu0 %v25457_v33  ;;  %23795 = vmatpush3.bf16.xpose.msra.mxu1 %v25458_v2 }
0x13bf   : > { %23790 = vmatprep.mubr.msk.bf16.mxu0 %vm26239_vm0, %v26238_v0  ;;  %23796 = vmatprep.mubr.msk.bf16.mxu1 %vm26239_vm0, %v26238_v0 }
0x13c0   : > { %23800 = vmatprep.subr.bf16.mxu0 %v26238_v0  ;;  %23806 = vmatprep.subr.bf16.mxu1 %v26238_v0 }
0x13c5   : > { %23791 = vmatmul.mubr.bf16.vlgmr.msra.gmra.mrb[204].mxu0 %v27414_v62  ;;  %23797 = vmatmul.mubr.bf16.vlgmr.msra.gmra.mrb[216].mxu1 %v27414_v62 }
0x13c6   : > { %23801 = vmatpush3.bf16.xpose.msra.mxu0 %v25459_v3  ;;  %23807 = vmatpush3.bf16.xpose.msra.mxu1 %v25460_v58 }
0x13c7   : > { %23802 = vmatprep.mubr.msk.bf16.mxu0 %vm26239_vm0, %v26238_v0  ;;  %23808 = vmatprep.mubr.msk.bf16.mxu1 %vm26239_vm0, %v26238_v0 }
0x13c8   : > { %23812 = vmatprep.subr.bf16.mxu0 %v26238_v0  ;;  %23818 = vmatprep.subr.bf16.mxu1 %v26238_v0 }
0x13cd   : > { %23803 = vmatmul.mubr.bf16.vlgmr.msra.gmra.mrb[208].mxu0 %v27414_v62  ;;  %23809 = vmatmul.mubr.bf16.vlgmr.msra.gmra.mrb[220].mxu1 %v27414_v62 }
0x13ce   : > { %23813 = vmatpush3.bf16.xpose.msra.mxu0 %v25461_v16  ;;  %23819 = vmatpush3.bf16.xpose.msra.mxu1 %v25462_v5 }
0x13cf   : > { %23814 = vmatprep.mubr.msk.bf16.mxu0 %vm26239_vm0, %v26238_v0  ;;  %23820 = vmatprep.mubr.msk.bf16.mxu1 %vm26239_vm0, %v26238_v0 }
0x13d0   : > { %23824 = vmatprep.subr.bf16.mxu0 %v26238_v0  ;;  %23830 = vmatprep.subr.bf16.mxu1 %v26238_v0 }
0x13d5   : > { %23815 = vmatmul.mubr.bf16.vlgmr.msra.gmra.mrb[212].mxu0 %v27414_v62  ;;  %23821 = vmatmul.mubr.bf16.vlgmr.msra.gmra.mrb[224].mxu1 %v27414_v62 }
0x13d6   : > { %23825 = vmatpush3.bf16.xpose.msra.mxu0 %v25463_v4  ;;  %23831 = vmatpush3.bf16.xpose.msra.mxu1 %v25464_v57  ;;  %v21647_v57 = vld [vmem:[%s29497_s5 + $0x30] ss:$0 sm:$0xff] }
0x13d7   : > { %23826 = vmatprep.mubr.msk.bf16.mxu0 %vm26239_vm0, %v26238_v0  ;;  %23832 = vmatprep.mubr.msk.bf16.mxu1 %vm26239_vm0, %v26238_v0 }
0x13d8   : > { %23836 = vmatprep.subr.bf16.mxu0 %v26238_v0  ;;  %23842 = vmatprep.subr.bf16.mxu1 %v26238_v0 }
0x13dd   : > { %23827 = vmatmul.mubr.bf16.vlgmr.msra.gmra.mrb[216].mxu0 %v27414_v62  ;;  %23833 = vmatmul.mubr.bf16.vlgmr.msra.gmra.mrb[228].mxu1 %v27414_v62 }
0x13de   : > { %23837 = vmatpush3.bf16.xpose.msra.mxu0 %v25465_v18  ;;  %23843 = vmatpush3.bf16.xpose.msra.mxu1 %v25466_v6  ;;  %v21648_v18 = vld [vmem:[%s29497_s5 + $0x31] ss:$0 sm:$0xff] }
0x13df   : > { %23838 = vmatprep.mubr.msk.bf16.mxu0 %vm26239_vm0, %v26238_v0  ;;  %23844 = vmatprep.mubr.msk.bf16.mxu1 %vm26239_vm0, %v26238_v0 }
0x13e0   : > { %23848 = vmatprep.subr.bf16.mxu0 %v26238_v0  ;;  %23854 = vmatprep.subr.bf16.mxu1 %v26238_v0 }
0x13e5   : > { %23839 = vmatmul.mubr.bf16.vlgmr.msra.gmra.mrb[220].mxu0 %v27414_v62  ;;  %23845 = vmatmul.mubr.bf16.vlgmr.msra.gmra.mrb[232].mxu1 %v27414_v62 }
0x13e6   : > { %23849 = vmatpush3.bf16.xpose.msra.mxu0 %v25467_v7  ;;  %23855 = vmatpush3.bf16.xpose.msra.mxu1 %v25468_v9  ;;  %v21665_v9 = vld [vmem:[%s29497_s5 + $0x3a] ss:$0 sm:$0xff] }
0x13e7   : > { %23850 = vmatprep.mubr.msk.bf16.mxu0 %vm26239_vm0, %v26238_v0  ;;  %23856 = vmatprep.mubr.msk.bf16.mxu1 %vm26239_vm0, %v26238_v0 }
0x13e8   : > { %23860 = vmatprep.subr.bf16.mxu0 %v26238_v0  ;;  %23866 = vmatprep.subr.bf16.mxu1 %v26238_v0 }
0x13ed   : > { %23851 = vmatmul.mubr.bf16.vlgmr.msra.gmra.mrb[224].mxu0 %v27414_v62  ;;  %23857 = vmatmul.mubr.bf16.vlgmr.msra.gmra.mrb[236].mxu1 %v27414_v62 }
0x13ee   : > { %23861 = vmatpush3.bf16.xpose.msra.mxu0 %v25469_v10  ;;  %23867 = vmatpush3.bf16.xpose.msra.mxu1 %v25470_v11  ;;  %v21666_v10 = vld [vmem:[%s29497_s5 + $0x3b] ss:$0 sm:$0xff] }
0x13ef   : > { %23862 = vmatprep.mubr.msk.bf16.mxu0 %vm26239_vm0, %v26238_v0  ;;  %23868 = vmatprep.mubr.msk.bf16.mxu1 %vm26239_vm0, %v26238_v0 }
0x13f0   : > { %23872 = vmatprep.subr.bf16.mxu0 %v26238_v0  ;;  %23878 = vmatprep.subr.bf16.mxu1 %v26238_v0 }
0x13f5   : > { %23863 = vmatmul.mubr.bf16.vlgmr.msra.gmra.mrb[228].mxu0 %v27414_v62  ;;  %23869 = vmatmul.mubr.bf16.vlgmr.msra.gmra.mrb[240].mxu1 %v27414_v62 }
0x13f6   : > { %23873 = vmatpush3.bf16.xpose.msra.mxu0 %v25471_v43  ;;  %23879 = vmatpush3.bf16.xpose.msra.mxu1 %v25472_v19 }
0x13f7   : > { %23874 = vmatprep.mubr.msk.bf16.mxu0 %vm26239_vm0, %v26238_v0  ;;  %23880 = vmatprep.mubr.msk.bf16.mxu1 %vm26239_vm0, %v26238_v0 }
0x13f8   : > { %23884 = vmatprep.subr.bf16.mxu0 %v26238_v0  ;;  %23890 = vmatprep.subr.bf16.mxu1 %v26238_v0 }
0x13fd   : > { %23875 = vmatmul.mubr.bf16.vlgmr.msra.gmra.mrb[232].mxu0 %v27414_v62  ;;  %23881 = vmatmul.mubr.bf16.vlgmr.msra.gmra.mrb[244].mxu1 %v27414_v62 }
0x13fe   : > { %23885 = vmatpush3.bf16.xpose.msra.mxu0 %v25473_v49  ;;  %23891 = vmatpush3.bf16.xpose.msra.mxu1 %v25474_v22 }
0x13ff   : > { %23886 = vmatprep.mubr.msk.bf16.mxu0 %vm26239_vm0, %v26238_v0  ;;  %23892 = vmatprep.mubr.msk.bf16.mxu1 %vm26239_vm0, %v26238_v0 }
0x1400   : > { %23896 = vmatprep.subr.bf16.mxu0 %v26238_v0  ;;  %23902 = vmatprep.subr.bf16.mxu1 %v26238_v0 }
0x1405   : > { %23887 = vmatmul.mubr.bf16.vlgmr.msra.gmra.mrb[236].mxu0 %v27414_v62  ;;  %23893 = vmatmul.mubr.bf16.vlgmr.msra.gmra.mrb[248].mxu1 %v27414_v62 }
0x1406   : > { %23897 = vmatpush3.bf16.xpose.msra.mxu0 %v25475_v23  ;;  %23903 = vmatpush3.bf16.xpose.msra.mxu1 %v25476_v63 }
0x1407   : > { %23898 = vmatprep.mubr.msk.bf16.mxu0 %vm26239_vm0, %v26238_v0  ;;  %23904 = vmatprep.mubr.msk.bf16.mxu1 %vm26239_vm0, %v26238_v0 }
0x1408   : > { %23908 = vmatprep.subr.bf16.mxu0 %v26238_v0  ;;  %23914 = vmatprep.subr.bf16.mxu1 %v26238_v0 }
0x140d   : > { %23899 = vmatmul.mubr.bf16.vlgmr.msra.gmra.mrb[240].mxu0 %v27414_v62  ;;  %23905 = vmatmul.mubr.bf16.vlgmr.msra.gmra.mrb[252].mxu1 %v27414_v62 }
0x140e   : > { %23910 = vmatprep.mubr.msk.bf16.mxu0 %vm26239_vm0, %v26238_v0  ;;  %23916 = vmatprep.mubr.msk.bf16.mxu1 %vm26239_vm0, %v26238_v0 }
0x1488   : > { %v6739_v24 = vpop.f32.mrb[196].mxu0  ;;  %v6785_v53 = vpop.f32.mrb[208].mxu1 }
0x1489   : > { %v23768_v14 = vpop.f32.mrb[197].mxu0  ;;  %v23774_v26 = vpop.f32.mrb[209].mxu1  ;;  %v6740_v11 = vadd.f32 %v21647_v57, %v6739_v24  ;;  %v6786_v43 = vadd.f32 %v21648_v18, %v6785_v53  ;;  %v21649_v24 = vld [vmem:[%s29497_s5 + $0x32] ss:$0 sm:$0xff]  ;;  %v21650_v53 = vld [vmem:[%s29497_s5 + $0x33] ss:$0 sm:$0xff] }
0x148a   : > { %v6742_v27 = vpop.f32.mrb[198].mxu0  ;;  %v6788_v13 = vpop.f32.mrb[210].mxu1 }
0x148b   : > { %v23769_v52 = vpop.f32.mrb[199].mxu0  ;;  %v23775_v30 = vpop.f32.mrb[211].mxu1  ;;  %v7899_v13 = vpack.c.bf16 %v6740_v11, %v6740_v11 }
0x148c   : > { %v7900_v52 = vpack.c.bf16 %v6786_v43, %v6786_v43 }
0x1490   : > { %v27510_v32 = vpop.f32.mrb[200].mxu0  ;;  %v27512_v35 = vpop.f32.mrb[212].mxu1 }
0x1491   : > { %v23780_v15 = vpop.f32.mrb[201].mxu0  ;;  %v23786_v25 = vpop.f32.mrb[213].mxu1 }
0x1492   : > { %v6834_v36 = vpop.f32.mrb[202].mxu0  ;;  %v6880_v1 = vpop.f32.mrb[214].mxu1 }
0x1493   : > { %v23781_v37 = vpop.f32.mrb[203].mxu0  ;;  %v23787_v38 = vpop.f32.mrb[215].mxu1 }
0x1494   : > { %v21667_v38 = vld [vmem:[%s29497_s5 + $0x3c] ss:$0 sm:$0xff] }
0x1498   : > { %v27514_v39 = vpop.f32.mrb[204].mxu0  ;;  %v27516_v42 = vpop.f32.mrb[216].mxu1 }
0x1499   : > { %v23792_v44 = vpop.f32.mrb[205].mxu0  ;;  %v23798_v29 = vpop.f32.mrb[217].mxu1 }
0x149a   : > { %v6926_v8 = vpop.f32.mrb[206].mxu0  ;;  %v6972_v46 = vpop.f32.mrb[218].mxu1  ;;  %v21668_v44 = vld [vmem:[%s29497_s5 + $0x3d] ss:$0 sm:$0xff]  ;;  %v6832_v29 = vadd.f32 %v21649_v24, %v27510_v32 }
0x149b   : > { %v23793_v41 = vpop.f32.mrb[207].mxu0  ;;  %v23799_v40 = vpop.f32.mrb[219].mxu1  ;;  %v6878_v8 = vadd.f32 %v21650_v53, %v27512_v35 }
0x149d   : > { %v7902_v35 = vpack.c.bf16 %v6878_v8, %v6878_v8 }
0x14a0   : > { %v27518_v20 = vpop.f32.mrb[208].mxu0  ;;  %v27520_v47 = vpop.f32.mrb[220].mxu1 }
0x14a1   : > { %v23804_v48 = vpop.f32.mrb[209].mxu0  ;;  %v23810_v12 = vpop.f32.mrb[221].mxu1 }
0x14a2   : > { %v7018_v34 = vpop.f32.mrb[210].mxu0  ;;  %v7064_v50 = vpop.f32.mrb[222].mxu1 }
0x14a3   : > { %v23805_v31 = vpop.f32.mrb[211].mxu0  ;;  %v23811_v51 = vpop.f32.mrb[223].mxu1 }
0x14a4   : > { %v7901_v31 = vpack.c.bf16 %v6832_v29, %v6832_v29 }
0x14a8   : > { %v7155_v56 = vpop.f32.mrb[212].mxu0  ;;  %v7201_v17 = vpop.f32.mrb[224].mxu1 }
0x14a9   : > { %v7156_v28 = vadd.f32 %v21663_v54, %v7155_v56  ;;  %v7202_v61 = vadd.f32 %v21664_v55, %v7201_v17  ;;  %v23816_v62 = vpop.f32.mrb[213].mxu0  ;;  %v23822_v33 = vpop.f32.mrb[225].mxu1  ;;  %v21651_v17 = vld [vmem:[%s29497_s5 + $0x34] ss:$0 sm:$0xff] }
0x14aa   : > { %v7158_v2 = vpop.f32.mrb[214].mxu0  ;;  %v7204_v3 = vpop.f32.mrb[226].mxu1  ;;  %v21669_v33 = vld [vmem:[%s29497_s5 + $0x3e] ss:$0 sm:$0xff] }
0x14ab   : > { %v7907_v58 = vpack.c.bf16 %v7156_v28, %v7156_v28  ;;  %v7908_v16 = vpack.c.bf16 %v7202_v61, %v7202_v61  ;;  %v23817_v5 = vpop.f32.mrb[215].mxu0  ;;  %v23823_v4 = vpop.f32.mrb[227].mxu1  ;;  %v21652_v28 = vld [vmem:[%s29497_s5 + $0x35] ss:$0 sm:$0xff]  ;;  %v21670_v2 = vld [vmem:[%s29497_s5 + $0x3f] ss:$0 sm:$0xff]  ;;  %v6924_v3 = vadd.f32 %v21651_v17, %v27514_v39 }
0x14ad   : > { %v7919_v6 = vsel %vm1979_vm1, %v7907_v58, 0  ;;  %v7965_v7 = vsel %vm1979_vm1, %v7908_v16, 0  ;;  %v6970_v58 = vadd.f32 %v21652_v28, %v27516_v42 }
0x14ae   : > { %23909 = vmatpush3.bf16.xpose.msra.mxu0 %v7919_v6  ;;  %23915 = vmatpush3.bf16.xpose.msra.mxu1 %v7965_v7 }
0x14af   : > { %23920 = vmatprep.subr.bf16.mxu0 %v26238_v0  ;;  %23926 = vmatprep.subr.bf16.mxu1 %v26238_v0  ;;  %v7904_v42 = vpack.c.bf16 %v6970_v58, %v6970_v58 }
0x14b0   : > { %v7247_v19 = vpop.f32.mrb[216].mxu0  ;;  %v7293_v49 = vpop.f32.mrb[228].mxu1 }
0x14b1   : > { %v7248_v22 = vadd.f32 %v21665_v9, %v7247_v19  ;;  %v7294_v23 = vadd.f32 %v21666_v10, %v7293_v49  ;;  %v23828_v63 = vpop.f32.mrb[217].mxu0  ;;  %v23834_v14 = vpop.f32.mrb[229].mxu1  ;;  %v7903_v9 = vpack.c.bf16 %v6924_v3, %v6924_v3  ;;  %v21653_v49 = vld [vmem:[%s29497_s5 + $0x36] ss:$0 sm:$0xff] }
0x14b2   : > { %v7250_v26 = vpop.f32.mrb[218].mxu0  ;;  %v7296_v27 = vpop.f32.mrb[230].mxu1  ;;  %v21679_v14 = vld [vmem:[%s29497_s5 + $0x40] ss:$0 sm:$0xff] }
0x14b3   : > { %v7909_v30 = vpack.c.bf16 %v7248_v22, %v7248_v22  ;;  %v7910_v15 = vpack.c.bf16 %v7294_v23, %v7294_v23  ;;  %v23829_v25 = vpop.f32.mrb[219].mxu0  ;;  %v23835_v36 = vpop.f32.mrb[231].mxu1  ;;  %v21654_v22 = vld [vmem:[%s29497_s5 + $0x37] ss:$0 sm:$0xff]  ;;  %v21680_v26 = vld [vmem:[%s29497_s5 + $0x41] ss:$0 sm:$0xff]  ;;  %v7016_v27 = vadd.f32 %v21653_v49, %v27518_v20 }
0x14b5   : > { %23911 = vmatmul.mubr.msk.bf16.vlgmr.msra.gmra.mrb[244].mxu0 %vm1979_vm1, %v7899_v13  ;;  %23917 = vmatmul.mubr.msk.bf16.vlgmr.msra.gmra.mrb[0].mxu1 %vm1979_vm1, %v7900_v52  ;;  %v8011_v1 = vsel %vm1979_vm1, %v7909_v30, 0  ;;  %v8057_v37 = vsel %vm1979_vm1, %v7910_v15, 0  ;;  %v7062_v13 = vadd.f32 %v21654_v22, %v27520_v47 }
0x14b6   : > { %23921 = vmatpush3.bf16.xpose.msra.mxu0 %v8011_v1  ;;  %23927 = vmatpush3.bf16.xpose.msra.mxu1 %v8057_v37  ;;  %v7905_v1 = vpack.c.bf16 %v7016_v27, %v7016_v27 }
0x14b7   : > { %23922 = vmatprep.mubr.msk.bf16.mxu0 %vm26239_vm0, %v26238_v0  ;;  %23928 = vmatprep.mubr.msk.bf16.mxu1 %vm26239_vm0, %v26238_v0  ;;  %v7906_v47 = vpack.c.bf16 %v7062_v13, %v7062_v13 }
0x14b8   : > { %v7339_v46 = vpop.f32.mrb[220].mxu0  ;;  %v7385_v41 = vpop.f32.mrb[232].mxu1  ;;  %23932 = vmatprep.subr.bf16.mxu0 %v26238_v0  ;;  %23938 = vmatprep.subr.bf16.mxu1 %v26238_v0 }
0x14b9   : > { %v7340_v40 = vadd.f32 %v21667_v38, %v7339_v46  ;;  %v7386_v48 = vadd.f32 %v21668_v44, %v7385_v41  ;;  %v23840_v12 = vpop.f32.mrb[221].mxu0  ;;  %v23846_v34 = vpop.f32.mrb[233].mxu1 }
0x14ba   : > { %v7342_v50 = vpop.f32.mrb[222].mxu0  ;;  %v7388_v32 = vpop.f32.mrb[234].mxu1 }
0x14bb   : > { %v7911_v51 = vpack.c.bf16 %v7340_v40, %v7340_v40  ;;  %v7912_v54 = vpack.c.bf16 %v7386_v48, %v7386_v48  ;;  %v23841_v55 = vpop.f32.mrb[223].mxu0  ;;  %v23847_v56 = vpop.f32.mrb[235].mxu1 }
0x14bd   : > { %23923 = vmatmul.mubr.msk.bf16.vlgmr.msra.gmra.mrb[248].mxu0 %vm1979_vm1, %v7901_v31  ;;  %23929 = vmatmul.mubr.msk.bf16.vlgmr.msra.gmra.mrb[4].mxu1 %vm1979_vm1, %v7902_v35  ;;  %v8103_v61 = vsel %vm1979_vm1, %v7911_v51, 0  ;;  %v8149_v62 = vsel %vm1979_vm1, %v7912_v54, 0 }
0x14be   : > { %23933 = vmatpush3.bf16.xpose.msra.mxu0 %v8103_v61  ;;  %23939 = vmatpush3.bf16.xpose.msra.mxu1 %v8149_v62 }
0x14bf   : > { %23934 = vmatprep.mubr.msk.bf16.mxu0 %vm26239_vm0, %v26238_v0  ;;  %23940 = vmatprep.mubr.msk.bf16.mxu1 %vm26239_vm0, %v26238_v0 }
0x14c0   : > { %v7431_v16 = vpop.f32.mrb[224].mxu0  ;;  %v7477_v5 = vpop.f32.mrb[236].mxu1  ;;  %23944 = vmatprep.subr.bf16.mxu0 %v26238_v0  ;;  %23950 = vmatprep.subr.bf16.mxu1 %v26238_v0 }
0x14c1   : > { %v7432_v4 = vadd.f32 %v21669_v33, %v7431_v16  ;;  %v7478_v57 = vadd.f32 %v21670_v2, %v7477_v5  ;;  %v23852_v18 = vpop.f32.mrb[225].mxu0  ;;  %v23858_v6 = vpop.f32.mrb[237].mxu1 }
0x14c2   : > { %v7434_v7 = vpop.f32.mrb[226].mxu0  ;;  %v7480_v39 = vpop.f32.mrb[238].mxu1 }
0x14c3   : > { %v7913_v10 = vpack.c.bf16 %v7432_v4, %v7432_v4  ;;  %v7914_v11 = vpack.c.bf16 %v7478_v57, %v7478_v57  ;;  %v23853_v43 = vpop.f32.mrb[227].mxu0  ;;  %v23859_v19 = vpop.f32.mrb[239].mxu1 }
0x14c5   : > { %23935 = vmatmul.mubr.msk.bf16.vlgmr.msra.gmra.mrb[252].mxu0 %vm1979_vm1, %v7903_v9  ;;  %23941 = vmatmul.mubr.msk.bf16.vlgmr.msra.gmra.mrb[8].mxu1 %vm1979_vm1, %v7904_v42  ;;  %v8195_v23 = vsel %vm1979_vm1, %v7913_v10, 0  ;;  %v8241_v63 = vsel %vm1979_vm1, %v7914_v11, 0 }
0x14c6   : > { %23945 = vmatpush3.bf16.xpose.msra.mxu0 %v8195_v23  ;;  %23951 = vmatpush3.bf16.xpose.msra.mxu1 %v8241_v63 }
0x14c7   : > { %23946 = vmatprep.mubr.msk.bf16.mxu0 %vm26239_vm0, %v26238_v0  ;;  %23952 = vmatprep.mubr.msk.bf16.mxu1 %vm26239_vm0, %v26238_v0 }
0x14c8   : > { %v7571_v52 = vpop.f32.mrb[228].mxu0  ;;  %v7617_v30 = vpop.f32.mrb[240].mxu1  ;;  %23956 = vmatprep.subr.bf16.mxu0 %v26238_v0  ;;  %23962 = vmatprep.subr.bf16.mxu1 %v26238_v0 }
0x14c9   : > { %v7572_v15 = vadd.f32 %v21679_v14, %v7571_v52  ;;  %v7618_v25 = vadd.f32 %v21680_v26, %v7617_v30  ;;  %v23864_v36 = vpop.f32.mrb[229].mxu0  ;;  %v23870_v24 = vpop.f32.mrb[241].mxu1 }
0x14ca   : > { %v7574_v53 = vpop.f32.mrb[230].mxu0  ;;  %v7620_v20 = vpop.f32.mrb[242].mxu1 }
0x14cb   : > { %v8379_v37 = vpack.c.bf16 %v7572_v15, %v7572_v15  ;;  %v8380_v38 = vpack.c.bf16 %v7618_v25, %v7618_v25  ;;  %v23865_v44 = vpop.f32.mrb[231].mxu0  ;;  %v23871_v29 = vpop.f32.mrb[243].mxu1 }
0x14cd   : > { %23947 = vmatmul.mubr.msk.bf16.vlgmr.msra.gmra.mrb[0].mxu0 %vm1979_vm1, %v7905_v1  ;;  %23953 = vmatmul.mubr.msk.bf16.vlgmr.msra.gmra.mrb[12].mxu1 %vm1979_vm1, %v7906_v47  ;;  %v8391_v8 = vsel %vm2456_vm2, %v8379_v37, 0  ;;  %v8437_v46 = vsel %vm2456_vm2, %v8380_v38, 0 }
0x14ce   : > { %23957 = vmatpush3.bf16.msra.mxu0 %v8391_v8  ;;  %23963 = vmatpush3.bf16.msra.mxu1 %v8437_v46 }
0x14cf   : > { %23958 = vmatprep.mubr.msk.bf16.mxu0 %vm26239_vm0, %v26238_v0  ;;  %23964 = vmatprep.mubr.msk.bf16.mxu1 %vm26239_vm0, %v26238_v0 }
0x14d0   : > { %v27624_v41 = vpop.f32.mrb[232].mxu0  ;;  %v27626_v40 = vpop.f32.mrb[244].mxu1  ;;  %23968 = vmatprep.subr.bf16.mxu0 %v26238_v0  ;;  %23974 = vmatprep.subr.bf16.mxu1 %v26238_v0 }
0x14d1   : > { %v23876_v48 = vpop.f32.mrb[233].mxu0  ;;  %v23882_v12 = vpop.f32.mrb[245].mxu1 }
0x14d2   : > { %v7666_v34 = vpop.f32.mrb[234].mxu0  ;;  %v7712_v50 = vpop.f32.mrb[246].mxu1 }
0x14d3   : > { %v23877_v32 = vpop.f32.mrb[235].mxu0  ;;  %v23883_v31 = vpop.f32.mrb[247].mxu1 }
0x14d8   : > { %v27630_v35 = vpop.f32.mrb[236].mxu0  ;;  %v27632_v51 = vpop.f32.mrb[248].mxu1 }
0x14d9   : > { %v23888_v54 = vpop.f32.mrb[237].mxu0  ;;  %v23894_v55 = vpop.f32.mrb[249].mxu1 }
0x14da   : > { %v7758_v56 = vpop.f32.mrb[238].mxu0  ;;  %v7804_v17 = vpop.f32.mrb[250].mxu1 }
0x14db   : > { %v23889_v28 = vpop.f32.mrb[239].mxu0  ;;  %v23895_v61 = vpop.f32.mrb[251].mxu1 }
0x14e0   : > { %v27634_v62 = vpop.f32.mrb[240].mxu0  ;;  %v27636_v33 = vpop.f32.mrb[252].mxu1 }
0x14e1   : > { %v23900_v2 = vpop.f32.mrb[241].mxu0  ;;  %v23906_v3 = vpop.f32.mrb[253].mxu1 }
0x14e2   : > { %v7850_v58 = vpop.f32.mrb[242].mxu0  ;;  %v7896_v16 = vpop.f32.mrb[254].mxu1 }
0x14e3   : > { %v23901_v5 = vpop.f32.mrb[243].mxu0  ;;  %v23907_v4 = vpop.f32.mrb[255].mxu1 }
0x1588   : > { %v7955_v57 = vpop.f32.mrb[244].mxu0  ;;  %v8001_v18 = vpop.f32.mrb[0].mxu1 }
0x1589   : > { %v23912_v6 = vpop.f32.mrb[245].mxu0  ;;  %v23918_v7 = vpop.f32.mrb[1].mxu1  ;;  %v8286_v39 = vsel %vm2348_vm3, %v8001_v18, -inf  ;;  %v8283_v9 = vsel %vm2348_vm3, %v7955_v57, -inf }
0x158a   : > { %8287 = vmax.xlane.f32.xlu1 %v8286_v39  ;;  %v8004_v42 = vpop.f32.mrb[2].mxu1  ;;  %8284 = vmax.xlane.f32.xlu0 %v8283_v9  ;;  %v7958_v10 = vpop.f32.mrb[246].mxu0 }
0x158b   : > { %v23913_v11 = vpop.f32.mrb[247].mxu0  ;;  %v23919_v43 = vpop.f32.mrb[3].mxu1 }
0x1590   : > { %v8047_v19 = vpop.f32.mrb[248].mxu0  ;;  %v8093_v49 = vpop.f32.mrb[4].mxu1 }
0x1591   : > { %v23924_v22 = vpop.f32.mrb[249].mxu0  ;;  %v23930_v23 = vpop.f32.mrb[5].mxu1  ;;  %v8292_v63 = vsel %vm2348_vm3, %v8093_v49, -inf  ;;  %v8289_v14 = vsel %vm2348_vm3, %v8047_v19, -inf }
0x1592   : > { %8293 = vmax.xlane.f32.xlu1 %v8292_v63  ;;  %v8096_v26 = vpop.f32.mrb[6].mxu1  ;;  %8290 = vmax.xlane.f32.xlu0 %v8289_v14  ;;  %v8050_v27 = vpop.f32.mrb[250].mxu0 }
0x1593   : > { %v23925_v13 = vpop.f32.mrb[251].mxu0  ;;  %v23931_v52 = vpop.f32.mrb[7].mxu1 }
0x1598   : > { %v8139_v30 = vpop.f32.mrb[252].mxu0  ;;  %v8185_v15 = vpop.f32.mrb[8].mxu1 }
0x1599   : > { %v23936_v25 = vpop.f32.mrb[253].mxu0  ;;  %v23942_v36 = vpop.f32.mrb[9].mxu1  ;;  %v8298_v24 = vsel %vm2348_vm3, %v8185_v15, -inf  ;;  %v8295_v53 = vsel %vm2348_vm3, %v8139_v30, -inf }
0x159a   : > { %8299 = vmax.xlane.f32.xlu1 %v8298_v24  ;;  %v8188_v20 = vpop.f32.mrb[10].mxu1  ;;  %8296 = vmax.xlane.f32.xlu0 %v8295_v53  ;;  %v8142_v1 = vpop.f32.mrb[254].mxu0 }
0x159b   : > { %v23937_v47 = vpop.f32.mrb[255].mxu0  ;;  %v23943_v37 = vpop.f32.mrb[11].mxu1 }
0x159c   : > { %v21682_v37 = vld [vmem:[%s29497_s5 + $0x43] ss:$0 sm:$0xff] }
0x15a0   : > { %v8231_v38 = vpop.f32.mrb[0].mxu0  ;;  %v8277_v44 = vpop.f32.mrb[12].mxu1 }
0x15a1   : > { %v23948_v29 = vpop.f32.mrb[1].mxu0  ;;  %v23954_v8 = vpop.f32.mrb[13].mxu1  ;;  %v8304_v46 = vsel %vm2348_vm3, %v8277_v44, -inf  ;;  %v8301_v48 = vsel %vm2348_vm3, %v8231_v38, -inf }
0x15a2   : > { %8305 = vmax.xlane.f32.xlu1 %v8304_v46  ;;  %v8280_v12 = vpop.f32.mrb[14].mxu1  ;;  %8302 = vmax.xlane.f32.xlu0 %v8301_v48  ;;  %v8234_v34 = vpop.f32.mrb[2].mxu0 }
0x15a3   : > { %v23949_v50 = vpop.f32.mrb[3].mxu0  ;;  %v23955_v32 = vpop.f32.mrb[15].mxu1 }
0x1617   : > { %v8288_v31 = vpop.xlane.xlu1 %8287  ;;  %v8285_v54 = vpop.xlane.xlu0 %8284 }
0x1618   : > { %v8308_v55 = vsub.f32 %v8001_v18, %v8288_v31  ;;  %v8307_v56 = vsub.f32 %v7955_v57, %v8285_v54  ;;  %v21684_v31 = vld [vmem:[%s29497_s5 + $0x45] ss:$0 sm:$0xff] }
0x161a   : > { %v8317_v17 = vmul.f32 1.442695, %v8308_v55  ;;  %v8315_v28 = vmul.f32 1.442695, %v8307_v56 }
0x161c   : > { %25853 = vpow2.f32 %v8317_v17 }
0x161d   : > { %25855 = vpow2.f32 %v8315_v28 }
0x161f   : > { %v8294_v61 = vpop.xlane.xlu1 %8293  ;;  %v8291_v2 = vpop.xlane.xlu0 %8290 }
0x1620   : > { %v8310_v3 = vsub.f32 %v8093_v49, %v8294_v61  ;;  %v8309_v58 = vsub.f32 %v8047_v19, %v8291_v2 }
0x1622   : > { %v8321_v16 = vmul.f32 1.442695, %v8310_v3  ;;  %v8319_v5 = vmul.f32 1.442695, %v8309_v58 }
0x1624   : > { %25857 = vpow2.f32 %v8321_v16 }
0x1625   : > { %25859 = vpow2.f32 %v8319_v5 }
0x1626   : > { %v25854_v4 = vpop.eup %25853 }
0x1627   : > { %v25856_v6 = vpop.eup %25855  ;;  %v8300_v7 = vpop.xlane.xlu1 %8299  ;;  %v8334_v9 = vsel %vm2348_vm3, %v25854_v4, 0.0 }
0x1628   : > { %v8297_v39 = vpop.xlane.xlu0 %8296  ;;  %v8312_v18 = vsub.f32 %v8185_v15, %v8300_v7  ;;  %8335 = vadd.xlane.f32.xlu1 %v8334_v9  ;;  %v8331_v42 = vsel %vm2348_vm3, %v25856_v6, 0.0  ;;  %v21685_v7 = vld [vmem:[%s29497_s5 + $0x46] ss:$0 sm:$0xff] }
0x1629   : > { %v8311_v57 = vsub.f32 %v8139_v30, %v8297_v39  ;;  %8332 = vadd.xlane.f32.xlu0 %v8331_v42 }
0x162a   : > { %v8325_v10 = vmul.f32 1.442695, %v8312_v18 }
0x162b   : > { %v8323_v11 = vmul.f32 1.442695, %v8311_v57 }
0x162c   : > { %25861 = vpow2.f32 %v8325_v10  ;;  %v7848_v10 = vadd.f32 %v21685_v7, %v27634_v62 }
0x162d   : > { %25863 = vpow2.f32 %v8323_v11 }
0x162e   : > { %v27648_v43 = vpop.eup %25857 }
0x162f   : > { %v27650_v19 = vpop.eup %25859  ;;  %v8306_v49 = vpop.xlane.xlu1 %8305  ;;  %v8340_v23 = vsel %vm2348_vm3, %v27648_v43, 0.0 }
0x1630   : > { %v8303_v22 = vpop.xlane.xlu0 %8302  ;;  %v8314_v63 = vsub.f32 %v8277_v44, %v8306_v49  ;;  %8341 = vadd.xlane.f32.xlu1 %v8340_v23  ;;  %v8337_v26 = vsel %vm2348_vm3, %v27650_v19, 0.0  ;;  %v7710_v44 = vadd.f32 %v21682_v37, %v27626_v40  ;;  %v21683_v40 = vld [vmem:[%s29497_s5 + $0x44] ss:$0 sm:$0xff] }
0x1631   : > { %v8313_v14 = vsub.f32 %v8231_v38, %v8303_v22  ;;  %8338 = vadd.xlane.f32.xlu0 %v8337_v26  ;;  %v21681_v38 = vld [vmem:[%s29497_s5 + $0x42] ss:$0 sm:$0xff]  ;;  %v7756_v61 = vadd.f32 %v21683_v40, %v27630_v35  ;;  %v8385_v22 = vpack.c.bf16 %v7848_v10, %v7848_v10 }
0x1632   : > { %v8329_v27 = vmul.f32 1.442695, %v8314_v63  ;;  %v7664_v8 = vadd.f32 %v21681_v38, %v27624_v41  ;;  %v8382_v34 = vpack.c.bf16 %v7710_v44, %v7710_v44  ;;  %v7802_v41 = vadd.f32 %v21684_v31, %v27632_v51  ;;  %v25479_v44 = vld [vmem:[#allocation4 + $0x2d0] sm:$0xff]  }
0x1633   : > { %v8327_v13 = vmul.f32 1.442695, %v8313_v14  ;;  %v8383_v5 = vpack.c.bf16 %v7756_v61, %v7756_v61 }
0x1634   : > { %25865 = vpow2.f32 %v8329_v27  ;;  %v8381_v32 = vpack.c.bf16 %v7664_v8, %v7664_v8  ;;  %v8529_v17 = vsel %vm2456_vm2, %v8382_v34, 0  ;;  %v8384_v35 = vpack.c.bf16 %v7802_v41, %v7802_v41 }
0x1635   : > { %25867 = vpow2.f32 %v8327_v13  ;;  %v8575_v11 = vsel %vm2456_vm2, %v8383_v5, 0  ;;  %v8667_v27 = vsel %vm2456_vm2, %v8385_v22, 0  ;;  %v25483_v5 = vld [vmem:[#allocation4 + $0x2f0] sm:$0xff]  }
0x1636   : > { %v27656_v52 = vpop.eup %25861  ;;  %v8483_v2 = vsel %vm2456_vm2, %v8381_v32, 0  ;;  %v8621_v57 = vsel %vm2456_vm2, %v8384_v35, 0  ;;  %v25482_v32 = vld [vmem:[#allocation4 + $0x2e8] sm:$0xff]  }
0x1637   : > { %v27658_v30 = vpop.eup %25863  ;;  %v8346_v15 = vsel %vm2348_vm3, %v27656_v52, 0.0 }
0x1638   : > { %8347 = vadd.xlane.f32.xlu1 %v8346_v15  ;;  %v8343_v25 = vsel %vm2348_vm3, %v27658_v30, 0.0 }
0x1639   : > { %8344 = vadd.xlane.f32.xlu0 %v8343_v25  ;;  %v25478_v25 = vld [vmem:[#allocation4 + $0x2c8] sm:$0xff]  }
0x163e   : > { %v27664_v36 = vpop.eup %25865 }
0x163f   : > { %v27666_v24 = vpop.eup %25867  ;;  %v8352_v53 = vsel %vm2348_vm3, %v27664_v36, 0.0 }
0x1640   : > { %8353 = vadd.xlane.f32.xlu1 %v8352_v53  ;;  %v8349_v20 = vsel %vm2348_vm3, %v27666_v24, 0.0 }
0x1641   : > { %8350 = vadd.xlane.f32.xlu0 %v8349_v20  ;;  %v25477_v20 = vld [vmem:[#allocation4 + $0x2c0] sm:$0xff]  }
0x16b5   : > { %v8336_v1 = vpop.xlane.xlu1 %8335 }
0x16b6   : > { %25869 = vrcp.f32 %v8336_v1  ;;  %v8333_v47 = vpop.xlane.xlu0 %8332 }
0x16b7   : > { %25871 = vrcp.f32 %v8333_v47 }
0x16bd   : > { %v8342_v29 = vpop.xlane.xlu1 %8341 }
0x16be   : > { %25873 = vrcp.f32 %v8342_v29  ;;  %v8339_v46 = vpop.xlane.xlu0 %8338 }
0x16bf   : > { %25875 = vrcp.f32 %v8339_v46 }
0x16c0   : > { %v25870_v48 = vpop.eup %25869 }
0x16c1   : > { %v25872_v12 = vpop.eup %25871  ;;  %v8364_v50 = vmul.f32 %v25870_v48, %v25854_v4  ;;  %v21686_v4 = vld [vmem:[%s29497_s5 + $0x47] ss:$0 sm:$0xff] }
0x16c2   : > { %v8363_v54 = vmul.f32 %v25872_v12, %v25856_v6  ;;  %v7894_v18 = vadd.f32 %v21686_v4, %v27636_v33 }
0x16c3   : > { %v8372_v55 = vpack.c.bf16 %v8364_v50, %v8364_v50 }
0x16c4   : > { %v8371_v56 = vpack.c.bf16 %v8363_v54, %v8363_v54  ;;  %v8386_v62 = vpack.c.bf16 %v7894_v18, %v7894_v18 }
0x16c5   : > { %23965 = vmatmul.mubr.msk.bf16.vlgmr.msra.gmra.mrb[16].mxu1 %vm2348_vm3, %v8372_v55  ;;  %v8348_v28 = vpop.xlane.xlu1 %8347  ;;  %v25481_v55 = vld [vmem:[#allocation4 + $0x2e0] sm:$0xff]  }
0x16c6   : > { %23975 = vmatpush3.bf16.msra.mxu1 %v8529_v17  ;;  %25877 = vrcp.f32 %v8348_v28  ;;  %23959 = vmatmul.mubr.msk.bf16.vlgmr.msra.gmra.mrb[4].mxu0 %vm2348_vm3, %v8371_v56  ;;  %v8345_v3 = vpop.xlane.xlu0 %8344  ;;  %v8713_v26 = vsel %vm2456_vm2, %v8386_v62, 0 }
0x16c7   : > { %23969 = vmatpush3.bf16.msra.mxu0 %v8483_v2  ;;  %25879 = vrcp.f32 %v8345_v3  ;;  %23970 = vmatprep.mubr.msk.bf16.mxu0 %vm26239_vm0, %v26238_v0 }
0x16c8   : > { %v25874_v51 = vpop.eup %25873  ;;  %23976 = vmatprep.mubr.msk.bf16.mxu1 %vm26239_vm0, %v26238_v0  ;;  %23980 = vmatprep.subr.bf16.mxu0 %v26238_v0 }
0x16c9   : > { %v25876_v58 = vpop.eup %25875  ;;  %v8366_v16 = vmul.f32 %v25874_v51, %v27648_v43  ;;  %23986 = vmatprep.subr.bf16.mxu1 %v26238_v0  ;;  %v25484_v51 = vld [vmem:[#allocation4 + $0x2f8] sm:$0xff]  }
0x16ca   : > { %v8365_v6 = vmul.f32 %v25876_v58, %v27650_v19 }
0x16cb   : > { %v8374_v39 = vpack.c.bf16 %v8366_v16, %v8366_v16 }
0x16cc   : > { %v8373_v9 = vpack.c.bf16 %v8365_v6, %v8365_v6 }
0x16cd   : > { %23977 = vmatmul.mubr.msk.bf16.vlgmr.msra.gmra.mrb[20].mxu1 %vm2348_vm3, %v8374_v39  ;;  %v8354_v42 = vpop.xlane.xlu1 %8353 }
0x16ce   : > { %23987 = vmatpush3.bf16.msra.mxu1 %v8621_v57  ;;  %25881 = vrcp.f32 %v8354_v42  ;;  %23971 = vmatmul.mubr.msk.bf16.vlgmr.msra.gmra.mrb[8].mxu0 %vm2348_vm3, %v8373_v9  ;;  %v8351_v43 = vpop.xlane.xlu0 %8350 }
0x16cf   : > { %23981 = vmatpush3.bf16.msra.mxu0 %v8575_v11  ;;  %25883 = vrcp.f32 %v8351_v43  ;;  %23982 = vmatprep.mubr.msk.bf16.mxu0 %vm26239_vm0, %v26238_v0 }
0x16d0   : > { %v25878_v33 = vpop.eup %25877  ;;  %23988 = vmatprep.mubr.msk.bf16.mxu1 %vm26239_vm0, %v26238_v0  ;;  %23992 = vmatprep.subr.bf16.mxu0 %v26238_v0 }
0x16d1   : > { %v25880_v19 = vpop.eup %25879  ;;  %v8368_v49 = vmul.f32 %v25878_v33, %v27656_v52  ;;  %23998 = vmatprep.subr.bf16.mxu1 %v26238_v0 }
0x16d2   : > { %v8367_v23 = vmul.f32 %v25880_v19, %v27658_v30 }
0x16d3   : > { %v8376_v63 = vpack.c.bf16 %v8368_v49, %v8368_v49 }
0x16d4   : > { %v8375_v14 = vpack.c.bf16 %v8367_v23, %v8367_v23 }
0x16d5   : > { %23989 = vmatmul.mubr.msk.bf16.vlgmr.msra.gmra.mrb[24].mxu1 %vm2348_vm3, %v8376_v63 }
0x16d6   : > { %23983 = vmatmul.mubr.msk.bf16.vlgmr.msra.gmra.mrb[12].mxu0 %vm2348_vm3, %v8375_v14  ;;  %23999 = vmatpush3.bf16.msra.mxu1 %v8713_v26 }
0x16d7   : > { %23993 = vmatpush3.bf16.msra.mxu0 %v8667_v27  ;;  %23994 = vmatprep.mubr.msk.bf16.mxu0 %vm26239_vm0, %v26238_v0 }
0x16d8   : > { %v25882_v13 = vpop.eup %25881  ;;  %24000 = vmatprep.mubr.msk.bf16.mxu1 %vm26239_vm0, %v26238_v0  ;;  %24004 = vmatprep.subr.bf16.mxu0 %v26238_v0 }
0x16d9   : > { %v25884_v52 = vpop.eup %25883  ;;  %v8370_v30 = vmul.f32 %v25882_v13, %v27664_v36  ;;  %24010 = vmatprep.subr.bf16.mxu1 %v26238_v0 }
0x16da   : > { %v8369_v15 = vmul.f32 %v25884_v52, %v27666_v24  ;;  %v25480_v24 = vld [vmem:[#allocation4 + $0x2d8] sm:$0xff]  }
0x16db   : > { %v8378_v53 = vpack.c.bf16 %v8370_v30, %v8370_v30 }
0x16dc   : > { %v8377_v1 = vpack.c.bf16 %v8369_v15, %v8369_v15 }
0x16dd   : > { %24001 = vmatmul.mubr.msk.bf16.vlgmr.msra.gmra.mrb[28].mxu1 %vm2348_vm3, %v8378_v53 }
0x16de   : > { %23995 = vmatmul.mubr.msk.bf16.vlgmr.msra.gmra.mrb[16].mxu0 %vm2348_vm3, %v8377_v1  ;;  %24011 = vmatpush3.bf16.msra.mxu1 %v25478_v25 }
0x16df   : > { %24005 = vmatpush3.bf16.msra.mxu0 %v25477_v20  ;;  %24006 = vmatprep.mubr.msk.bf16.mxu0 %vm26239_vm0, %v26238_v0 }
0x16e0   : > { %24012 = vmatprep.mubr.msk.bf16.mxu1 %vm26239_vm0, %v26238_v0  ;;  %24016 = vmatprep.subr.bf16.mxu0 %v26238_v0 }
0x16e1   : > { %24022 = vmatprep.subr.bf16.mxu1 %v26238_v0 }
0x1798   : > { %v8473_v36 = vpop.f32.mrb[16].mxu1 }
0x1799   : > { %v8427_v47 = vpop.f32.mrb[4].mxu0  ;;  %v8756_v37 = vpack.c.bf16 %v8473_v36, %v8473_v36  ;;  %v23966_v38 = vpop.f32.mrb[17].mxu1 }
0x179a   : > { %v8755_v29 = vpack.c.bf16 %v8427_v47, %v8427_v47  ;;  %v23960_v8 = vpop.f32.mrb[5].mxu0  ;;  %v8476_v46 = vpop.f32.mrb[18].mxu1 }
0x179b   : > { %v8430_v48 = vpop.f32.mrb[6].mxu0  ;;  %v23967_v12 = vpop.f32.mrb[19].mxu1  ;;  %24013 = vmatmul.mubr.msk.bf16.vlgmr.msra.gmra.mrb[32].mxu1 %vm1979_vm1, %v8756_v37 }
0x179c   : > { %v23961_v34 = vpop.f32.mrb[7].mxu0  ;;  %24007 = vmatmul.mubr.msk.bf16.vlgmr.msra.gmra.mrb[20].mxu0 %vm1979_vm1, %v8755_v29  ;;  %24023 = vmatpush3.bf16.msra.mxu1 %v25480_v24 }
0x179d   : > { %24017 = vmatpush3.bf16.msra.mxu0 %v25479_v44  ;;  %24018 = vmatprep.mubr.msk.bf16.mxu0 %vm26239_vm0, %v26238_v0 }
0x179e   : > { %24024 = vmatprep.mubr.msk.bf16.mxu1 %vm26239_vm0, %v26238_v0  ;;  %24028 = vmatprep.subr.bf16.mxu0 %v26238_v0 }
0x179f   : > { %24034 = vmatprep.subr.bf16.mxu1 %v26238_v0 }
0x17a0   : > { %v8565_v50 = vpop.f32.mrb[20].mxu1 }
0x17a1   : > { %v8519_v31 = vpop.f32.mrb[8].mxu0  ;;  %v8758_v54 = vpack.c.bf16 %v8565_v50, %v8565_v50  ;;  %v23978_v40 = vpop.f32.mrb[21].mxu1 }
0x17a2   : > { %v8757_v56 = vpack.c.bf16 %v8519_v31, %v8519_v31  ;;  %v23972_v41 = vpop.f32.mrb[9].mxu0  ;;  %v8568_v17 = vpop.f32.mrb[22].mxu1 }
0x17a3   : > { %v8522_v28 = vpop.f32.mrb[10].mxu0  ;;  %v23979_v61 = vpop.f32.mrb[23].mxu1  ;;  %24025 = vmatmul.mubr.msk.bf16.vlgmr.msra.gmra.mrb[36].mxu1 %vm1979_vm1, %v8758_v54 }
0x17a4   : > { %v23973_v2 = vpop.f32.mrb[11].mxu0  ;;  %24019 = vmatmul.mubr.msk.bf16.vlgmr.msra.gmra.mrb[24].mxu0 %vm1979_vm1, %v8757_v56  ;;  %24035 = vmatpush3.bf16.msra.mxu1 %v25482_v32 }
0x17a5   : > { %24029 = vmatpush3.bf16.msra.mxu0 %v25481_v55  ;;  %24030 = vmatprep.mubr.msk.bf16.mxu0 %vm26239_vm0, %v26238_v0 }
0x17a6   : > { %24036 = vmatprep.mubr.msk.bf16.mxu1 %vm26239_vm0, %v26238_v0  ;;  %24040 = vmatprep.subr.bf16.mxu0 %v26238_v0 }
0x17a7   : > { %24046 = vmatprep.subr.bf16.mxu1 %v26238_v0 }
0x17a8   : > { %v8657_v3 = vpop.f32.mrb[24].mxu1 }
0x17a9   : > { %v8611_v58 = vpop.f32.mrb[12].mxu0  ;;  %v8760_v35 = vpack.c.bf16 %v8657_v3, %v8657_v3  ;;  %v23990_v16 = vpop.f32.mrb[25].mxu1  ;;  %v6649_v3 = vld [vmem:[%s29500_s8 + $0x7] ss:$0 sm:$0xff] }
0x17aa   : > { %v8759_v4 = vpack.c.bf16 %v8611_v58, %v8611_v58  ;;  %v23984_v6 = vpop.f32.mrb[13].mxu0  ;;  %v8660_v7 = vpop.f32.mrb[26].mxu1 }
0x17ab   : > { %v8614_v39 = vpop.f32.mrb[14].mxu0  ;;  %v23991_v9 = vpop.f32.mrb[27].mxu1  ;;  %24037 = vmatmul.mubr.msk.bf16.vlgmr.msra.gmra.mrb[40].mxu1 %vm1979_vm1, %v8760_v35  ;;  %v25490_v6 = vld [vmem:[%s29498_s6 + $0x114] ss:$8 sps:$4 sm:$0xff]   ;;  %v25488_v7 = vld [vmem:[%s29498_s6 + $0x110] ss:$8 sps:$4 sm:$0xff]  }
0x17ac   : > { %v23985_v18 = vpop.f32.mrb[15].mxu0  ;;  %24031 = vmatmul.mubr.msk.bf16.vlgmr.msra.gmra.mrb[28].mxu0 %vm1979_vm1, %v8759_v4  ;;  %24047 = vmatpush3.bf16.msra.mxu1 %v25484_v51  ;;  %v25487_v4 = vld [vmem:[%s29498_s6 + $0x104] ss:$8 sps:$4 sm:$0xff]   ;;  %v25491_v39 = vld [vmem:[%s29498_s6 + $0x120] ss:$8 sps:$4 sm:$0xff]  }
0x17ad   : > { %24041 = vmatpush3.bf16.msra.mxu0 %v25483_v5  ;;  %24042 = vmatprep.mubr.msk.bf16.mxu0 %vm26239_vm0, %v26238_v0  ;;  %v25485_v5 = vld [vmem:[%s29498_s6 + $0x100] ss:$8 sps:$4 sm:$0xff]  }
0x17ae   : > { %24048 = vmatprep.mubr.msk.bf16.mxu1 %vm26239_vm0, %v26238_v0  ;;  %9290 = vmatprep.subr.bf16.mxu0 %v25487_v4 }
0x17b0   : > { %v8749_v57 = vpop.f32.mrb[28].mxu1 }
0x17b1   : > { %v8703_v42 = vpop.f32.mrb[16].mxu0  ;;  %v8762_v10 = vpack.c.bf16 %v8749_v57, %v8749_v57  ;;  %v24002_v11 = vpop.f32.mrb[29].mxu1 }
0x17b2   : > { %v8761_v43 = vpack.c.bf16 %v8703_v42, %v8703_v42  ;;  %v23996_v33 = vpop.f32.mrb[17].mxu0  ;;  %v8752_v19 = vpop.f32.mrb[30].mxu1  ;;  %v25494_v11 = vld [vmem:[%s29498_s6 + $0x130] ss:$8 sps:$4 sm:$0xff]  }
0x17b3   : > { %v8706_v62 = vpop.f32.mrb[18].mxu0  ;;  %v24003_v49 = vpop.f32.mrb[31].mxu1  ;;  %24049 = vmatmul.mubr.msk.bf16.vlgmr.msra.gmra.mrb[44].mxu1 %vm1979_vm1, %v8762_v10  ;;  %v25496_v10 = vld [vmem:[%s29498_s6 + $0x134] ss:$8 sps:$4 sm:$0xff]   ;;  %v25497_v33 = vld [vmem:[%s29498_s6 + $0x140] ss:$8 sps:$4 sm:$0xff]  }
0x17b4   : > { %v23997_v22 = vpop.f32.mrb[19].mxu0  ;;  %24043 = vmatmul.mubr.msk.bf16.vlgmr.msra.gmra.mrb[32].mxu0 %vm1979_vm1, %v8761_v43  ;;  %v25499_v43 = vld [vmem:[%s29498_s6 + $0x144] ss:$8 sps:$4 sm:$0xff]   ;;  %v25502_v19 = vld [vmem:[%s29498_s6 + $0x154] ss:$8 sps:$4 sm:$0xff]  }
0x17b5   : > { %9322 = vmatprep.mubr.bf16.mxu0 %v26240_v21  ;;  %9291 = vmatpush1.bf16.msra.mxu0 %v25485_v5  ;;  %v25500_v62 = vld [vmem:[%s29498_s6 + $0x150] ss:$8 sps:$4 sm:$0xff]   ;;  %v25505_v49 = vld [vmem:[%s29498_s6 + $0x164] ss:$8 sps:$4 sm:$0xff]   ;;  %v25503_v22 = vld [vmem:[%s29498_s6 + $0x160] ss:$8 sps:$4 sm:$0xff]  }
0x17b6   : > { %9292 = vmatprep.subr.bf16.mxu0 %v25490_v6 }
0x17b9   : > { %9293 = vmatpush1.bf16.msra.mxu0 %v25488_v7 }
0x186e   : > { %v8855_v23 = vpop.f32.mrb[32].mxu1 }
0x186f   : > { %v8806_v63 = vpop.f32.mrb[20].mxu0  ;;  %v24014_v14 = vpop.f32.mrb[33].mxu1 }
0x1870   : > { %v9155_v26 = vadd.f32 %v8855_v23, %v8806_v63  ;;  %v24008_v27 = vpop.f32.mrb[21].mxu0  ;;  %v8858_v13 = vpop.f32.mrb[34].mxu1  ;;  %v25508_v23 = vld [vmem:[%s29498_s6 + $0x174] ss:$8 sps:$4 sm:$0xff]   ;;  %v25506_v63 = vld [vmem:[%s29498_s6 + $0x170] ss:$8 sps:$4 sm:$0xff]  }
0x1871   : > { %v8809_v52 = vpop.f32.mrb[22].mxu0  ;;  %v24015_v30 = vpop.f32.mrb[35].mxu1  ;;  %v25517_v14 = vld [vmem:[#allocation6 + $0x140] sm:$0xff]   ;;  %v25519_v27 = vld [vmem:[#allocation6 + $0x148] sm:$0xff]  }
0x1872   : > { %v24009_v15 = vpop.f32.mrb[23].mxu0  ;;  %22687 = vmatprep.subr.bf16.mxu1 %v25517_v14  ;;  %v25520_v13 = vld [vmem:[#allocation6 + $0x108] sm:$0xff]   ;;  %v25521_v52 = vld [vmem:[#allocation6 + $0x150] sm:$0xff]  }
0x1873   : > { %v25522_v30 = vld [vmem:[#allocation6 + $0x110] sm:$0xff]   ;;  %v25523_v15 = vld [vmem:[#allocation6 + $0x158] sm:$0xff]  }
0x1874   : > { %v25536_v14 = vld [vmem:[#allocation4 + $0x330] sm:$0xff]  }
0x1876   : > { %v8953_v25 = vpop.f32.mrb[36].mxu1 }
0x1877   : > { %v8904_v53 = vpop.f32.mrb[24].mxu0  ;;  %v24026_v20 = vpop.f32.mrb[37].mxu1 }
0x1878   : > { %v9156_v1 = vadd.f32 %v9155_v26, %v8904_v53  ;;  %v24020_v36 = vpop.f32.mrb[25].mxu0  ;;  %v8956_v24 = vpop.f32.mrb[38].mxu1  ;;  %v25518_v26 = vld [vmem:[#allocation6 + $0x100] sm:$0xff]  }
0x1879   : > { %v8907_v47 = vpop.f32.mrb[26].mxu0  ;;  %v24027_v37 = vpop.f32.mrb[39].mxu1  ;;  %22688 = vmatpush3.bf16.msra.mxu1 %v25518_v26  ;;  %v25525_v53 = vld [vmem:[#allocation6 + $0x160] sm:$0xff]   ;;  %v25528_v36 = vld [vmem:[#allocation6 + $0x128] sm:$0xff]  }
0x187a   : > { %v9157_v38 = vadd.f32 %v9156_v1, %v8953_v25  ;;  %v24021_v44 = vpop.f32.mrb[27].mxu0  ;;  %22689 = vmatprep.subr.bf16.mxu1 %v25519_v27  ;;  %v25524_v25 = vld [vmem:[#allocation6 + $0x118] sm:$0xff]   ;;  %v25526_v20 = vld [vmem:[#allocation6 + $0x120] sm:$0xff]   ;;  %v25527_v1 = vld [vmem:[#allocation6 + $0x168] sm:$0xff]  }
0x187b   : > { %v9164_v44 = vld [vmem:[%s29500_s8 + $0xf] ss:$0 sm:$0xff]  ;;  %v25537_v27 = vld [vmem:[#allocation4 + $0x310] sm:$0xff]  }
0x187d   : > { %22690 = vmatpush3.bf16.msra.mxu1 %v25520_v13  ;;  %v25538_v13 = vld [vmem:[#allocation4 + $0x340] sm:$0xff]  }
0x187e   : > { %v9051_v29 = vpop.f32.mrb[40].mxu1  ;;  %22691 = vmatprep.subr.bf16.mxu1 %v25521_v52  ;;  %v25539_v52 = vld [vmem:[#allocation4 + $0x318] sm:$0xff]  }
0x187f   : > { %v9002_v8 = vpop.f32.mrb[28].mxu0  ;;  %v24038_v46 = vpop.f32.mrb[41].mxu1 }
0x1880   : > { %v9158_v48 = vadd.f32 %v9157_v38, %v9002_v8  ;;  %v24032_v12 = vpop.f32.mrb[29].mxu0  ;;  %v9054_v34 = vpop.f32.mrb[42].mxu1  ;;  %v9165_v8 = vld [vmem:[%s29500_s8 + $0x17] ss:$0 sm:$0xff] }
0x1881   : > { %v9005_v50 = vpop.f32.mrb[30].mxu0  ;;  %v24039_v32 = vpop.f32.mrb[43].mxu1  ;;  %22692 = vmatpush3.bf16.msra.mxu1 %v25522_v30  ;;  %v25509_v12 = vld [vmem:[#allocation2 + $0x40] sm:$0xff]   ;;  %v25540_v30 = vld [vmem:[#allocation4 + $0x350] sm:$0xff]  }
0x1882   : > { %v9159_v31 = vadd.f32 %v9158_v48, %v9051_v29  ;;  %v24033_v54 = vpop.f32.mrb[31].mxu0  ;;  %22693 = vmatprep.subr.bf16.mxu1 %v25523_v15  ;;  %v25510_v50 = vld [vmem:[#allocation2 + $0x48] sm:$0xff]   ;;  %v25511_v32 = vld [vmem:[#allocation2 + $0x50] sm:$0xff]  }
0x1883   : > { %v25513_v54 = vld [vmem:[#allocation2 + $0x60] sm:$0xff]   ;;  %v25541_v15 = vld [vmem:[#allocation4 + $0x328] sm:$0xff]  }
0x1885   : > { %22694 = vmatpush3.bf16.msra.mxu1 %v25524_v25  ;;  %v25542_v25 = vld [vmem:[#allocation4 + $0x360] sm:$0xff]  }
0x1886   : > { %v9149_v40 = vpop.f32.mrb[44].mxu1  ;;  %22695 = vmatprep.subr.bf16.mxu1 %v25525_v53  ;;  %v25543_v53 = vld [vmem:[#allocation4 + $0x338] sm:$0xff]  }
0x1887   : > { %v9100_v55 = vpop.f32.mrb[32].mxu0  ;;  %v24050_v56 = vpop.f32.mrb[45].mxu1 }
0x1888   : > { %v9160_v41 = vadd.f32 %v9159_v31, %v9100_v55  ;;  %v24044_v17 = vpop.f32.mrb[33].mxu0  ;;  %v9152_v28 = vpop.f32.mrb[46].mxu1  ;;  %v25512_v31 = vld [vmem:[#allocation2 + $0x58] sm:$0xff]   ;;  %v25515_v55 = vld [vmem:[#allocation2 + $0x70] sm:$0xff]   ;;  %v9521_v56 = vld [vmem:[%s506_s19] sm:$0xff] }
0x1889   : > { %v9103_v61 = vpop.f32.mrb[34].mxu0  ;;  %v24051_v2 = vpop.f32.mrb[47].mxu1  ;;  %22696 = vmatpush3.bf16.msra.mxu1 %v25526_v20  ;;  %v9539_v17 = vpack.c.bf16 %v9521_v56, %v9521_v56  ;;  %v25529_v28 = vld [vmem:[#allocation6 + $0x170] sm:$0xff]  }
0x188a   : > { %v9161_v51 = vadd.f32 %v9160_v41, %v9149_v40  ;;  %v24045_v58 = vpop.f32.mrb[35].mxu0  ;;  %22697 = vmatprep.subr.bf16.mxu1 %v25527_v1  ;;  %v25514_v40 = vld [vmem:[#allocation2 + $0x68] sm:$0xff]   ;;  %v25516_v41 = vld [vmem:[#allocation2 + $0x78] sm:$0xff]   ;;  %v25530_v61 = vld [vmem:[#allocation6 + $0x130] sm:$0xff]  }
0x188b   : > { %v25531_v2 = vld [vmem:[#allocation6 + $0x178] sm:$0xff]   ;;  %v25544_v20 = vld [vmem:[#allocation4 + $0x370] sm:$0xff]   ;;  %v25545_v1 = vld [vmem:[#allocation4 + $0x348] sm:$0xff]  }
0x188c   : > { %v9162_v35 = vadd.f32 %v9161_v51, %v6649_v3  ;;  %v25532_v3 = vld [vmem:[#allocation6 + $0x138] sm:$0xff]   ;;  %v25534_v51 = vld [vmem:[#allocation4 + $0x320] sm:$0xff]  }
0x188d   : > { %22698 = vmatpush3.bf16.msra.mxu1 %v25528_v36  ;;  %v21743_v58 = vld [vmem:[%s29500_s8 + $0x18] ss:$8 sm:$0x3] }
0x188e   : > { %v9163_v16 = vadd.f32 %v9162_v35, %v27410_v60  ;;  %v25493_v60 = vld [vmem:[%s29498_s6 + $0x124] ss:$8 sps:$4 sm:$0xff]   ;;  %22699 = vmatprep.subr.bf16.mxu1 %v25529_v28  ;;  %v9203_v35 = vrot.slane %v21743_v58, %v26953_v45 }
0x188f   : > { %9294 = vmatprep.subr.bf16.mxu0 %v25493_v60  ;;  %v25546_v36 = vld [vmem:[#allocation4 + $0x380] sm:$0xff]  }
0x1890   : > { %9166 = vadd.xlane.f32.xlu0 %v9163_v16  ;;  %9295 = vmatpush1.bf16.msra.mxu0 %v25491_v39 }
0x1891   : > { %9296 = vmatprep.subr.bf16.mxu0 %v25496_v10  ;;  %22700 = vmatpush3.bf16.msra.mxu1 %v25530_v61 }
0x1892   : > { %22701 = vmatprep.subr.bf16.mxu1 %v25531_v2 }
0x1894   : > { %9297 = vmatpush1.bf16.msra.mxu0 %v25494_v11  ;;  %v21776_v11 = vld [vmem:[%s29500_s8 + $0x30] ss:$0 sm:$0xff] }
0x1895   : > { %9298 = vmatprep.subr.bf16.mxu0 %v25499_v43  ;;  %22702 = vmatpush3.bf16.msra.mxu1 %v25532_v3 }
0x1896   : > { %24072 = vmatprep.subr.bf16.mxu1 %v26238_v0 }
0x1898   : > { %9299 = vmatpush1.bf16.msra.mxu0 %v25497_v33 }
0x1899   : > { %9300 = vmatprep.subr.bf16.mxu0 %v25502_v19 }
0x189c   : > { %9301 = vmatpush1.bf16.msra.mxu0 %v25500_v62 }
0x189d   : > { %9302 = vmatprep.subr.bf16.mxu0 %v25505_v49  ;;  %v26035_v49 = vld [vmem:[%s29494_s2] sm:$0xff] }
0x18a0   : > { %9303 = vmatpush1.bf16.msra.mxu0 %v25503_v22 }
0x18a1   : > { %9304 = vmatprep.subr.bf16.mxu0 %v25508_v23 }
0x18a4   : > { %9305 = vmatpush1.bf16.msra.mxu0 %v25506_v63  ;;  %v25535_v63 = vld [vmem:[#allocation4 + $0x308] sm:$0xff]  }
0x18a5   : > { %24052 = vmatprep.subr.bf16.mxu0 %v26238_v0 }
0x191d   : > { %v9167_v9 = vpop.xlane.xlu0 %9166 }
0x191e   : > { %v9168_v18 = vmul.f32 0.0078125, %v9167_v9 }
0x1920   : > { %v9169_v57 = vsub.f32 %v9163_v16, %v9168_v18  ;;  %v9207_v16 = vrot.slane %v21743_v58, %v26958_v59 }
0x1922   : > { %v9170_v42 = vmul.f32 %v9169_v57, %v9169_v57 }
0x1924   : > { %9171 = vadd.xlane.f32.xlu1 %v9170_v42  ;;  %v25533_v42 = vld [vmem:[#allocation4 + $0x300] sm:$0xff]  }
0x19b1   : > { %v9172_v24 = vpop.xlane.xlu1 %9171 }
0x19b2   : > { %v9173_v47 = vmul.f32 0.0078125, %v9172_v24  ;;  %v25547_v24 = vld [vmem:[#allocation4 + $0x358] sm:$0xff]  }
0x19b4   : > { %v9174_v37 = vadd.f32 1e-05, %v9173_v47  ;;  %v25548_v47 = vld [vmem:[#allocation4 + $0x390] sm:$0xff]  }
0x19b6   : > { %25885 = vrsqrt.f32 %v9174_v37  ;;  %v25549_v37 = vld [vmem:[#allocation4 + $0x368] sm:$0xff]  }
0x19c0   : > { %v25886_v38 = vpop.eup %25885 }
0x19c1   : > { %v9176_v29 = vmul.f32 %v25886_v38, %v9169_v57  ;;  %v25550_v38 = vld [vmem:[#allocation4 + $0x3a0] sm:$0xff]  }
0x19c3   : > { %v9177_v46 = vmul.f32 %v9176_v29, %v9164_v44  ;;  %v25551_v44 = vld [vmem:[#allocation4 + $0x378] sm:$0xff]   ;;  %v25552_v29 = vld [vmem:[#allocation4 + $0x3b0] sm:$0xff]  }
0x19c5   : > { %v27824_v48 = vadd.f32 %v9177_v46, %v9165_v8  ;;  %v25553_v8 = vld [vmem:[#allocation4 + $0x388] sm:$0xff]   ;;  %v25554_v46 = vld [vmem:[#allocation4 + $0x398] sm:$0xff]  }
0x19c7   : > { %v9196_v34 = vpack.c.bf16 %v27824_v48, %v27824_v48 }
0x19c9   : > { %9323 = vmatmul.mubr.bf16.vlgmr.msra.gmra.mrb[36].mxu0 %v9196_v34  ;;  %v25556_v34 = vld [vmem:[#allocation4 + $0x3b8] sm:$0xff]  }
0x19ca   : > { %24053 = vmatpush3.bf16.msra.mxu0 %v25509_v12  ;;  %24068 = vmatprep.mubr.msk.bf16.mxu0 %vm26239_vm0, %v26238_v0  ;;  %v25555_v12 = vld [vmem:[#allocation4 + $0x3a8] sm:$0xff]  }
0x19cb   : > { %24054 = vmatprep.subr.bf16.mxu0 %v26238_v0 }
0x19ce   : > { %24055 = vmatpush3.bf16.msra.mxu0 %v25510_v50 }
0x19cf   : > { %24056 = vmatprep.subr.bf16.mxu0 %v26238_v0 }
0x19d2   : > { %24057 = vmatpush3.bf16.msra.mxu0 %v25511_v32 }
0x19d3   : > { %24058 = vmatprep.subr.bf16.mxu0 %v26238_v0 }
0x19d6   : > { %24059 = vmatpush3.bf16.msra.mxu0 %v25512_v31 }
0x19d7   : > { %24060 = vmatprep.subr.bf16.mxu0 %v26238_v0 }
0x19da   : > { %24061 = vmatpush3.bf16.msra.mxu0 %v25513_v54 }
0x19db   : > { %24062 = vmatprep.subr.bf16.mxu0 %v26238_v0 }
0x19de   : > { %24063 = vmatpush3.bf16.msra.mxu0 %v25514_v40 }
0x19df   : > { %24064 = vmatprep.subr.bf16.mxu0 %v26238_v0 }
0x19e2   : > { %24065 = vmatpush3.bf16.msra.mxu0 %v25515_v55 }
0x19e3   : > { %24066 = vmatprep.subr.bf16.mxu0 %v26238_v0 }
0x19e6   : > { %24067 = vmatpush3.bf16.msra.mxu0 %v25516_v41 }
0x19e7   : > { %24096 = vmatprep.subr.bf16.mxu0 %v26238_v0 }
0x19e9   : > { %24069 = vmatmul.mubr.bf16.vlgmr.msra.gmra.mrb[40].mxu0 %v9539_v17 }
0x19ea   : > { %24098 = vmatprep.mubr.msk.bf16.mxu0 %vm26239_vm0, %v26238_v0 }
0x19ef   : > { %24097 = vmatpush3.bf16.xpose.msra.mxu0 %v25534_v51 }
0x19f0   : > { %24108 = vmatprep.subr.bf16.mxu0 %v26238_v0 }
0x1a9c   : > { %v9324_v5 = vpop.f32.mrb[36].mxu0 }
0x1a9d   : > { %v9325_v4 = vadd.f32 %v9324_v5, %v9203_v35  ;;  %v9326_v6 = vpop.f32.mrb[37].mxu0 }
0x1a9e   : > { %v9327_v7 = vadd.f32 %v9326_v6, %v9207_v16  ;;  %v9328_v60 = vpop.f32.mrb[38].mxu0 }
0x1a9f   : > { %v9331_v39 = vmax.f32 %v9325_v4, 0.0  ;;  %v9329_v9 = vpop.f32.mrb[39].mxu0  ;;  %v21826_v60 = vld [vmem:[%s29497_s5 + $0x50] ss:$0 sm:$0xff] }
0x1aa0   : > { %v9332_v18 = vmax.f32 %v9327_v7, 0.0 }
0x1aa1   : > { %v9366_v10 = vpack.c.bf16 %v9331_v39, %v9331_v39 }
0x1aa2   : > { %v9367_v57 = vpack.c.bf16 %v9332_v18, %v9332_v18 }
0x1aa4   : > { %9497 = vmatprep.mubr.bf16.mxu1 %v9367_v57 }
0x1aa5   : > { %9498 = vmatmul.mubr.bf16.vlgmr.msra.gmra.mrb[48].mxu1 %v9366_v10 }
0x1aa6   : > { %24073 = vmatpush3.bf16.xpose.msra.mxu1 %v25533_v42  ;;  %24074 = vmatprep.mubr.msk.bf16.mxu1 %vm26239_vm0, %v26238_v0 }
0x1aa7   : > { %24078 = vmatprep.subr.bf16.mxu1 %v26238_v0 }
0x1abc   : > { %v9624_v43 = vpop.f32.mrb[40].mxu0 }
0x1abd   : > { %v9625_v33 = vadd.f32 %v21776_v11, %v9624_v43  ;;  %v24070_v19 = vpop.f32.mrb[41].mxu0 }
0x1abe   : > { %v9627_v62 = vpop.f32.mrb[42].mxu0 }
0x1abf   : > { %v27861_v22 = vadd.f32 %v26035_v49, %v9625_v33  ;;  %v24071_v23 = vpop.f32.mrb[43].mxu0  ;;  %v21810_v62 = vld [vmem:[%s29497_s5 + $0x48] ss:$0 sm:$0xff] }
0x1ac0   : > { %v21828_v23 = vld [vmem:[%s29497_s5 + $0x52] ss:$0 sm:$0xff] }
0x1ac1   : > { %v27865_v26 = vpack.c.bf16 %v27861_v22, %v27861_v22 }
0x1ac3   : > { %24075 = vmatmul.mubr.bf16.vlgmr.msra.gmra.mrb[52].mxu1 %v27865_v26  ;;  %24099 = vmatmul.mubr.bf16.vlgmr.msra.gmra.mrb[44].mxu0 %v27865_v26 }
0x1ac4   : > { %24079 = vmatpush3.bf16.xpose.msra.mxu1 %v25535_v63  ;;  %24109 = vmatpush3.bf16.xpose.msra.mxu0 %v25536_v14 }
0x1ac5   : > { %24080 = vmatprep.mubr.msk.bf16.mxu1 %vm26239_vm0, %v26238_v0  ;;  %24110 = vmatprep.mubr.msk.bf16.mxu0 %vm26239_vm0, %v26238_v0 }
0x1ac6   : > { %24084 = vmatprep.subr.bf16.mxu1 %v26238_v0  ;;  %24120 = vmatprep.subr.bf16.mxu0 %v26238_v0 }
0x1acb   : > { %24081 = vmatmul.mubr.bf16.vlgmr.msra.gmra.mrb[56].mxu1 %v27865_v26  ;;  %24111 = vmatmul.mubr.bf16.vlgmr.msra.gmra.mrb[48].mxu0 %v27865_v26 }
0x1acc   : > { %24085 = vmatpush3.bf16.xpose.msra.mxu1 %v25537_v27  ;;  %24121 = vmatpush3.bf16.xpose.msra.mxu0 %v25538_v13 }
0x1acd   : > { %24086 = vmatprep.mubr.msk.bf16.mxu1 %vm26239_vm0, %v26238_v0  ;;  %24122 = vmatprep.mubr.msk.bf16.mxu0 %vm26239_vm0, %v26238_v0 }
0x1ace   : > { %24090 = vmatprep.subr.bf16.mxu1 %v26238_v0  ;;  %24132 = vmatprep.subr.bf16.mxu0 %v26238_v0 }
0x1ad3   : > { %24087 = vmatmul.mubr.bf16.vlgmr.msra.gmra.mrb[60].mxu1 %v27865_v26  ;;  %24123 = vmatmul.mubr.bf16.vlgmr.msra.gmra.mrb[52].mxu0 %v27865_v26 }
0x1ad4   : > { %24091 = vmatpush3.bf16.xpose.msra.mxu1 %v25539_v52  ;;  %24133 = vmatpush3.bf16.xpose.msra.mxu0 %v25540_v30 }
0x1ad5   : > { %24092 = vmatprep.mubr.msk.bf16.mxu1 %vm26239_vm0, %v26238_v0  ;;  %24134 = vmatprep.mubr.msk.bf16.mxu0 %vm26239_vm0, %v26238_v0 }
0x1ad6   : > { %24102 = vmatprep.subr.bf16.mxu1 %v26238_v0  ;;  %24144 = vmatprep.subr.bf16.mxu0 %v26238_v0 }
0x1adb   : > { %24093 = vmatmul.mubr.bf16.vlgmr.msra.gmra.mrb[64].mxu1 %v27865_v26  ;;  %24135 = vmatmul.mubr.bf16.vlgmr.msra.gmra.mrb[56].mxu0 %v27865_v26 }
0x1adc   : > { %24103 = vmatpush3.bf16.xpose.msra.mxu1 %v25541_v15  ;;  %24145 = vmatpush3.bf16.xpose.msra.mxu0 %v25542_v25 }
0x1add   : > { %24104 = vmatprep.mubr.msk.bf16.mxu1 %vm26239_vm0, %v26238_v0  ;;  %24146 = vmatprep.mubr.msk.bf16.mxu0 %vm26239_vm0, %v26238_v0 }
0x1ade   : > { %24114 = vmatprep.subr.bf16.mxu1 %v26238_v0  ;;  %24156 = vmatprep.subr.bf16.mxu0 %v26238_v0 }
0x1ae3   : > { %24105 = vmatmul.mubr.bf16.vlgmr.msra.gmra.mrb[68].mxu1 %v27865_v26  ;;  %24147 = vmatmul.mubr.bf16.vlgmr.msra.gmra.mrb[60].mxu0 %v27865_v26 }
0x1ae4   : > { %24115 = vmatpush3.bf16.xpose.msra.mxu1 %v25543_v53  ;;  %24157 = vmatpush3.bf16.xpose.msra.mxu0 %v25544_v20 }
0x1ae5   : > { %24116 = vmatprep.mubr.msk.bf16.mxu1 %vm26239_vm0, %v26238_v0  ;;  %24158 = vmatprep.mubr.msk.bf16.mxu0 %vm26239_vm0, %v26238_v0 }
0x1ae6   : > { %24126 = vmatprep.subr.bf16.mxu1 %v26238_v0  ;;  %24168 = vmatprep.subr.bf16.mxu0 %v26238_v0 }
0x1aeb   : > { %24117 = vmatmul.mubr.bf16.vlgmr.msra.gmra.mrb[72].mxu1 %v27865_v26  ;;  %24159 = vmatmul.mubr.bf16.vlgmr.msra.gmra.mrb[64].mxu0 %v27865_v26 }
0x1aec   : > { %24127 = vmatpush3.bf16.xpose.msra.mxu1 %v25545_v1  ;;  %24169 = vmatpush3.bf16.xpose.msra.mxu0 %v25546_v36  ;;  %v21812_v36 = vld [vmem:[%s29497_s5 + $0x4a] ss:$0 sm:$0xff] }
0x1aed   : > { %24128 = vmatprep.mubr.msk.bf16.mxu1 %vm26239_vm0, %v26238_v0  ;;  %24170 = vmatprep.mubr.msk.bf16.mxu0 %vm26239_vm0, %v26238_v0 }
0x1aee   : > { %24138 = vmatprep.subr.bf16.mxu1 %v26238_v0  ;;  %24180 = vmatprep.subr.bf16.mxu0 %v26238_v0 }
0x1af3   : > { %24129 = vmatmul.mubr.bf16.vlgmr.msra.gmra.mrb[76].mxu1 %v27865_v26  ;;  %24171 = vmatmul.mubr.bf16.vlgmr.msra.gmra.mrb[68].mxu0 %v27865_v26 }
0x1af4   : > { %24139 = vmatpush3.bf16.xpose.msra.mxu1 %v25547_v24  ;;  %24181 = vmatpush3.bf16.xpose.msra.mxu0 %v25548_v47  ;;  %v21830_v47 = vld [vmem:[%s29497_s5 + $0x54] ss:$0 sm:$0xff] }
0x1af5   : > { %24140 = vmatprep.mubr.msk.bf16.mxu1 %vm26239_vm0, %v26238_v0  ;;  %24182 = vmatprep.mubr.msk.bf16.mxu0 %vm26239_vm0, %v26238_v0 }
0x1af6   : > { %24150 = vmatprep.subr.bf16.mxu1 %v26238_v0  ;;  %24192 = vmatprep.subr.bf16.mxu0 %v26238_v0 }
0x1afb   : > { %24141 = vmatmul.mubr.bf16.vlgmr.msra.gmra.mrb[80].mxu1 %v27865_v26  ;;  %24183 = vmatmul.mubr.bf16.vlgmr.msra.gmra.mrb[72].mxu0 %v27865_v26 }
0x1afc   : > { %24151 = vmatpush3.bf16.xpose.msra.mxu1 %v25549_v37  ;;  %24193 = vmatpush3.bf16.xpose.msra.mxu0 %v25550_v38 }
0x1afd   : > { %24152 = vmatprep.mubr.msk.bf16.mxu1 %vm26239_vm0, %v26238_v0  ;;  %24194 = vmatprep.mubr.msk.bf16.mxu0 %vm26239_vm0, %v26238_v0 }
0x1afe   : > { %24162 = vmatprep.subr.bf16.mxu1 %v26238_v0  ;;  %24204 = vmatprep.subr.bf16.mxu0 %v26238_v0 }
0x1b03   : > { %24153 = vmatmul.mubr.bf16.vlgmr.msra.gmra.mrb[84].mxu1 %v27865_v26  ;;  %24195 = vmatmul.mubr.bf16.vlgmr.msra.gmra.mrb[76].mxu0 %v27865_v26 }
0x1b04   : > { %24163 = vmatpush3.bf16.xpose.msra.mxu1 %v25551_v44  ;;  %24205 = vmatpush3.bf16.xpose.msra.mxu0 %v25552_v29 }
0x1b05   : > { %24164 = vmatprep.mubr.msk.bf16.mxu1 %vm26239_vm0, %v26238_v0  ;;  %24206 = vmatprep.mubr.msk.bf16.mxu0 %vm26239_vm0, %v26238_v0 }
0x1b06   : > { %24174 = vmatprep.subr.bf16.mxu1 %v26238_v0  ;;  %24216 = vmatprep.subr.bf16.mxu0 %v26238_v0 }
0x1b0b   : > { %24165 = vmatmul.mubr.bf16.vlgmr.msra.gmra.mrb[88].mxu1 %v27865_v26  ;;  %24207 = vmatmul.mubr.bf16.vlgmr.msra.gmra.mrb[80].mxu0 %v27865_v26 }
0x1b0c   : > { %24175 = vmatpush3.bf16.xpose.msra.mxu1 %v25553_v8  ;;  %24176 = vmatprep.mubr.msk.bf16.mxu1 %vm26239_vm0, %v26238_v0 }
0x1b0d   : > { %24186 = vmatprep.subr.bf16.mxu1 %v26238_v0  ;;  %24218 = vmatprep.mubr.msk.bf16.mxu0 %vm26239_vm0, %v26238_v0 }
0x1b13   : > { %24177 = vmatmul.mubr.bf16.vlgmr.msra.gmra.mrb[92].mxu1 %v27865_v26 }
0x1b14   : > { %24187 = vmatpush3.bf16.xpose.msra.mxu1 %v25554_v46  ;;  %24188 = vmatprep.mubr.msk.bf16.mxu1 %vm26239_vm0, %v26238_v0 }
0x1b15   : > { %24198 = vmatprep.subr.bf16.mxu1 %v26238_v0 }
0x1b1b   : > { %24189 = vmatmul.mubr.bf16.vlgmr.msra.gmra.mrb[96].mxu1 %v27865_v26 }
0x1b1c   : > { %24199 = vmatpush3.bf16.xpose.msra.mxu1 %v25555_v12  ;;  %24200 = vmatprep.mubr.msk.bf16.mxu1 %vm26239_vm0, %v26238_v0 }
0x1b1d   : > { %24210 = vmatprep.subr.bf16.mxu1 %v26238_v0 }
0x1b23   : > { %24201 = vmatmul.mubr.bf16.vlgmr.msra.gmra.mrb[100].mxu1 %v27865_v26 }
0x1b24   : > { %24211 = vmatpush3.bf16.xpose.msra.mxu1 %v25556_v34  ;;  %24212 = vmatprep.mubr.msk.bf16.mxu1 %vm26239_vm0, %v26238_v0 }
0x1b25   : > { %24222 = vmatprep.subr.bf16.mxu1 %v26238_v0 }
0x1b2b   : > { %24213 = vmatmul.mubr.bf16.vlgmr.msra.gmra.mrb[104].mxu1 %v27865_v26 }
0x1b2c   : > { %24224 = vmatprep.mubr.msk.bf16.mxu1 %vm26239_vm0, %v26238_v0 }
0x1b78   : > { %v22703_v50 = vpop.f32.mrb[48].mxu1 }
0x1b79   : > { %v22704_v32 = vpop.f32.mrb[49].mxu1 }
0x1b7a   : > { %v27961_v31 = vadd.f32 %v22704_v32, %v22703_v50  ;;  %v22706_v54 = vpop.f32.mrb[50].mxu1 }
0x1b7b   : > { %v22707_v40 = vpop.f32.mrb[51].mxu1 }
0x1b96   : > { %v9816_v55 = vpop.f32.mrb[52].mxu1  ;;  %v27963_v56 = vpop.f32.mrb[44].mxu0 }
0x1b97   : > { %v24076_v41 = vpop.f32.mrb[53].mxu1  ;;  %v24100_v17 = vpop.f32.mrb[45].mxu0  ;;  %v9817_v63 = vadd.f32 %v21810_v62, %v9816_v55  ;;  %v21814_v55 = vld [vmem:[%s29497_s5 + $0x4c] ss:$0 sm:$0xff] }
0x1b98   : > { %v9819_v28 = vpop.f32.mrb[54].mxu1  ;;  %v10003_v61 = vpop.f32.mrb[46].mxu0  ;;  %v21832_v17 = vld [vmem:[%s29497_s5 + $0x56] ss:$0 sm:$0xff] }
0x1b99   : > { %v24077_v2 = vpop.f32.mrb[55].mxu1  ;;  %v24101_v3 = vpop.f32.mrb[47].mxu0  ;;  %v10976_v25 = vpack.c.bf16 %v9817_v63, %v9817_v63  ;;  %v10001_v28 = vadd.f32 %v21814_v55, %v27963_v56 }
0x1b9e   : > { %v27965_v51 = vpop.f32.mrb[56].mxu1  ;;  %v27967_v58 = vpop.f32.mrb[48].mxu0 }
0x1b9f   : > { %v24082_v35 = vpop.f32.mrb[57].mxu1  ;;  %v24112_v16 = vpop.f32.mrb[49].mxu0 }
0x1ba0   : > { %v9865_v5 = vpop.f32.mrb[58].mxu1  ;;  %v10095_v4 = vpop.f32.mrb[50].mxu0 }
0x1ba1   : > { %v24083_v6 = vpop.f32.mrb[59].mxu1  ;;  %v24113_v7 = vpop.f32.mrb[51].mxu0 }
0x1ba2   : > { %v10980_v6 = vpack.c.bf16 %v10001_v28, %v10001_v28 }
0x1ba6   : > { %v9908_v39 = vpop.f32.mrb[60].mxu1  ;;  %v10232_v9 = vpop.f32.mrb[52].mxu0 }
0x1ba7   : > { %v10233_v18 = vadd.f32 %v21826_v60, %v10232_v9  ;;  %v24088_v57 = vpop.f32.mrb[61].mxu1  ;;  %v24124_v42 = vpop.f32.mrb[53].mxu0  ;;  %v9909_v37 = vadd.f32 %v21812_v36, %v9908_v39  ;;  %v21816_v9 = vld [vmem:[%s29497_s5 + $0x4e] ss:$0 sm:$0xff] }
0x1ba8   : > { %v9911_v10 = vpop.f32.mrb[62].mxu1  ;;  %v10235_v11 = vpop.f32.mrb[54].mxu0  ;;  %v21842_v57 = vld [vmem:[%s29497_s5 + $0x58] ss:$0 sm:$0xff]  ;;  %v10093_v42 = vadd.f32 %v21816_v9, %v27967_v58 }
0x1ba9   : > { %v10984_v43 = vpack.c.bf16 %v10233_v18, %v10233_v18  ;;  %v24089_v33 = vpop.f32.mrb[63].mxu1  ;;  %v24125_v19 = vpop.f32.mrb[55].mxu0  ;;  %v10978_v50 = vpack.c.bf16 %v9909_v37, %v9909_v37  ;;  %v21827_v18 = vld [vmem:[%s29497_s5 + $0x51] ss:$0 sm:$0xff] }
0x1baa   : > { %v10982_v63 = vpack.c.bf16 %v10093_v42, %v10093_v42 }
0x1bab   : > { %v10996_v49 = vsel %vm1979_vm1, %v10984_v43, 0 }
0x1bac   : > { %24217 = vmatpush3.bf16.xpose.msra.mxu0 %v10996_v49 }
0x1bad   : > { %24228 = vmatprep.subr.bf16.mxu0 %v26238_v0 }
0x1bae   : > { %v27980_v14 = vpop.f32.mrb[64].mxu1  ;;  %v10324_v26 = vpop.f32.mrb[56].mxu0 }
0x1baf   : > { %v10325_v27 = vadd.f32 %v21828_v23, %v10324_v26  ;;  %v24094_v13 = vpop.f32.mrb[65].mxu1  ;;  %v24136_v52 = vpop.f32.mrb[57].mxu0 }
0x1bb0   : > { %v9957_v30 = vpop.f32.mrb[66].mxu1  ;;  %v10327_v15 = vpop.f32.mrb[58].mxu0 }
0x1bb1   : > { %v10986_v53 = vpack.c.bf16 %v10325_v27, %v10325_v27  ;;  %v24095_v20 = vpop.f32.mrb[67].mxu1  ;;  %v24137_v1 = vpop.f32.mrb[59].mxu0  ;;  %v21811_v30 = vld [vmem:[%s29497_s5 + $0x49] ss:$0 sm:$0xff] }
0x1bb3   : > { %24219 = vmatmul.mubr.msk.bf16.vlgmr.msra.gmra.mrb[84].mxu0 %vm1979_vm1, %v10976_v25  ;;  %v11088_v24 = vsel %vm1979_vm1, %v10986_v53, 0  ;;  %v21829_v25 = vld [vmem:[%s29497_s5 + $0x53] ss:$0 sm:$0xff]  ;;  %v9863_v53 = vadd.f32 %v21811_v30, %v27965_v51  ;;  %v21813_v51 = vld [vmem:[%s29497_s5 + $0x4b] ss:$0 sm:$0xff] }
0x1bb4   : > { %24229 = vmatpush3.bf16.xpose.msra.mxu0 %v11088_v24  ;;  %24230 = vmatprep.mubr.msk.bf16.mxu0 %vm26239_vm0, %v26238_v0 }
0x1bb5   : > { %24240 = vmatprep.subr.bf16.mxu0 %v26238_v0 }
0x1bb6   : > { %v27993_v38 = vpop.f32.mrb[68].mxu1  ;;  %v10416_v44 = vpop.f32.mrb[60].mxu0 }
0x1bb7   : > { %v10417_v29 = vadd.f32 %v21830_v47, %v10416_v44  ;;  %v24106_v8 = vpop.f32.mrb[69].mxu1  ;;  %v24148_v46 = vpop.f32.mrb[61].mxu0 }
0x1bb8   : > { %v10049_v12 = vpop.f32.mrb[70].mxu1  ;;  %v10419_v34 = vpop.f32.mrb[62].mxu0 }
0x1bb9   : > { %v10988_v32 = vpack.c.bf16 %v10417_v29, %v10417_v29  ;;  %v24107_v54 = vpop.f32.mrb[71].mxu1  ;;  %v24149_v40 = vpop.f32.mrb[63].mxu0  ;;  %v10977_v29 = vpack.c.bf16 %v9863_v53, %v9863_v53 }
0x1bbb   : > { %24231 = vmatmul.mubr.msk.bf16.vlgmr.msra.gmra.mrb[88].mxu0 %vm1979_vm1, %v10978_v50  ;;  %v11180_v41 = vsel %vm1979_vm1, %v10988_v32, 0  ;;  %v21831_v50 = vld [vmem:[%s29497_s5 + $0x55] ss:$0 sm:$0xff]  ;;  %v9955_v32 = vadd.f32 %v21813_v51, %v27980_v14 }
0x1bbc   : > { %24241 = vmatpush3.bf16.xpose.msra.mxu0 %v11180_v41  ;;  %24242 = vmatprep.mubr.msk.bf16.mxu0 %vm26239_vm0, %v26238_v0 }
0x1bbd   : > { %24252 = vmatprep.subr.bf16.mxu0 %v26238_v0 }
0x1bbe   : > { %v28007_v61 = vpop.f32.mrb[72].mxu1  ;;  %v10508_v2 = vpop.f32.mrb[64].mxu0 }
0x1bbf   : > { %v10509_v3 = vadd.f32 %v21832_v17, %v10508_v2  ;;  %v24118_v35 = vpop.f32.mrb[73].mxu1  ;;  %v24160_v16 = vpop.f32.mrb[65].mxu0 }
0x1bc0   : > { %v10141_v5 = vpop.f32.mrb[74].mxu1  ;;  %v10511_v4 = vpop.f32.mrb[66].mxu0 }
0x1bc1   : > { %v10990_v7 = vpack.c.bf16 %v10509_v3, %v10509_v3  ;;  %v24119_v60 = vpop.f32.mrb[75].mxu1  ;;  %v24161_v39 = vpop.f32.mrb[67].mxu0  ;;  %v10979_v3 = vpack.c.bf16 %v9955_v32, %v9955_v32  ;;  %v21815_v4 = vld [vmem:[%s29497_s5 + $0x4d] ss:$0 sm:$0xff] }
0x1bc3   : > { %24243 = vmatmul.mubr.msk.bf16.vlgmr.msra.gmra.mrb[92].mxu0 %vm1979_vm1, %v10980_v6  ;;  %v11272_v56 = vsel %vm1979_vm1, %v10990_v7, 0  ;;  %v21833_v6 = vld [vmem:[%s29497_s5 + $0x57] ss:$0 sm:$0xff]  ;;  %v10047_v7 = vadd.f32 %v21815_v4, %v27993_v38 }
0x1bc4   : > { %24253 = vmatpush3.bf16.xpose.msra.mxu0 %v11272_v56  ;;  %24254 = vmatprep.mubr.msk.bf16.mxu0 %vm26239_vm0, %v26238_v0 }
0x1bc5   : > { %24264 = vmatprep.subr.bf16.mxu0 %v26238_v0 }
0x1bc6   : > { %v10278_v10 = vpop.f32.mrb[76].mxu1  ;;  %v10648_v11 = vpop.f32.mrb[68].mxu0 }
0x1bc7   : > { %v10279_v43 = vadd.f32 %v21827_v18, %v10278_v10  ;;  %v10649_v33 = vadd.f32 %v21842_v57, %v10648_v11  ;;  %v24130_v19 = vpop.f32.mrb[77].mxu1  ;;  %v24172_v62 = vpop.f32.mrb[69].mxu0  ;;  %v10981_v10 = vpack.c.bf16 %v10047_v7, %v10047_v7 }
0x1bc8   : > { %v10281_v49 = vpop.f32.mrb[78].mxu1  ;;  %v10651_v23 = vpop.f32.mrb[70].mxu0  ;;  %v21817_v19 = vld [vmem:[%s29497_s5 + $0x4f] ss:$0 sm:$0xff]  ;;  %v21843_v62 = vld [vmem:[%s29497_s5 + $0x59] ss:$0 sm:$0xff] }
0x1bc9   : > { %v10985_v26 = vpack.c.bf16 %v10279_v43, %v10279_v43  ;;  %v11456_v27 = vpack.c.bf16 %v10649_v33, %v10649_v33  ;;  %v24131_v13 = vpop.f32.mrb[79].mxu1  ;;  %v24173_v52 = vpop.f32.mrb[71].mxu0  ;;  %v10139_v49 = vadd.f32 %v21817_v19, %v28007_v61 }
0x1bcb   : > { %24255 = vmatmul.mubr.msk.bf16.vlgmr.msra.gmra.mrb[96].mxu0 %vm1979_vm1, %v10982_v63  ;;  %v11042_v58 = vsel %vm1979_vm1, %v10985_v26, 0  ;;  %v11468_v15 = vsel %vm2456_vm2, %v11456_v27, 0  ;;  %v10983_v13 = vpack.c.bf16 %v10139_v49, %v10139_v49 }
0x1bcc   : > { %24223 = vmatpush3.bf16.xpose.msra.mxu1 %v11042_v58  ;;  %24265 = vmatpush3.bf16.msra.mxu0 %v11468_v15 }
0x1bcd   : > { %24234 = vmatprep.subr.bf16.mxu1 %v26238_v0  ;;  %24266 = vmatprep.mubr.msk.bf16.mxu0 %vm26239_vm0, %v26238_v0 }
0x1bce   : > { %v10370_v20 = vpop.f32.mrb[80].mxu1  ;;  %v28037_v1 = vpop.f32.mrb[72].mxu0  ;;  %24276 = vmatprep.subr.bf16.mxu0 %v26238_v0 }
0x1bcf   : > { %v10371_v36 = vadd.f32 %v21829_v25, %v10370_v20  ;;  %v24142_v24 = vpop.f32.mrb[81].mxu1  ;;  %v24184_v47 = vpop.f32.mrb[73].mxu0 }
0x1bd0   : > { %v10373_v37 = vpop.f32.mrb[82].mxu1  ;;  %v10743_v44 = vpop.f32.mrb[74].mxu0 }
0x1bd1   : > { %v10987_v8 = vpack.c.bf16 %v10371_v36, %v10371_v36  ;;  %v24143_v46 = vpop.f32.mrb[83].mxu1  ;;  %v24185_v12 = vpop.f32.mrb[75].mxu0 }
0x1bd3   : > { %24225 = vmatmul.mubr.msk.bf16.vlgmr.msra.gmra.mrb[108].mxu1 %vm1979_vm1, %v10977_v29  ;;  %v11134_v34 = vsel %vm1979_vm1, %v10987_v8, 0 }
0x1bd4   : > { %24235 = vmatpush3.bf16.xpose.msra.mxu1 %v11134_v34  ;;  %24236 = vmatprep.mubr.msk.bf16.mxu1 %vm26239_vm0, %v26238_v0 }
0x1bd5   : > { %24246 = vmatprep.subr.bf16.mxu1 %v26238_v0 }
0x1bd6   : > { %v10462_v54 = vpop.f32.mrb[84].mxu1  ;;  %v28052_v40 = vpop.f32.mrb[76].mxu0 }
0x1bd7   : > { %v10463_v55 = vadd.f32 %v21831_v50, %v10462_v54  ;;  %v24154_v41 = vpop.f32.mrb[85].mxu1  ;;  %v24196_v17 = vpop.f32.mrb[77].mxu0 }
0x1bd8   : > { %v10465_v28 = vpop.f32.mrb[86].mxu1  ;;  %v10835_v2 = vpop.f32.mrb[78].mxu0 }
0x1bd9   : > { %v10989_v35 = vpack.c.bf16 %v10463_v55, %v10463_v55  ;;  %v24155_v16 = vpop.f32.mrb[87].mxu1  ;;  %v24197_v5 = vpop.f32.mrb[79].mxu0 }
0x1bdb   : > { %24237 = vmatmul.mubr.msk.bf16.vlgmr.msra.gmra.mrb[112].mxu1 %vm1979_vm1, %v10979_v3  ;;  %v11226_v14 = vsel %vm1979_vm1, %v10989_v35, 0 }
0x1bdc   : > { %24247 = vmatpush3.bf16.xpose.msra.mxu1 %v11226_v14  ;;  %24248 = vmatprep.mubr.msk.bf16.mxu1 %vm26239_vm0, %v26238_v0 }
0x1bdd   : > { %24258 = vmatprep.subr.bf16.mxu1 %v26238_v0 }
0x1bde   : > { %v10554_v60 = vpop.f32.mrb[88].mxu1  ;;  %v28066_v39 = vpop.f32.mrb[80].mxu0 }
0x1bdf   : > { %v10555_v9 = vadd.f32 %v21833_v6, %v10554_v60  ;;  %v24166_v56 = vpop.f32.mrb[89].mxu1  ;;  %v24208_v18 = vpop.f32.mrb[81].mxu0 }
0x1be0   : > { %v10557_v57 = vpop.f32.mrb[90].mxu1  ;;  %v10927_v42 = vpop.f32.mrb[82].mxu0 }
0x1be1   : > { %v10991_v11 = vpack.c.bf16 %v10555_v9, %v10555_v9  ;;  %v24167_v43 = vpop.f32.mrb[91].mxu1  ;;  %v24209_v33 = vpop.f32.mrb[83].mxu0 }
0x1be3   : > { %24249 = vmatmul.mubr.msk.bf16.vlgmr.msra.gmra.mrb[116].mxu1 %vm1979_vm1, %v10981_v10  ;;  %v11318_v38 = vsel %vm1979_vm1, %v10991_v11, 0 }
0x1be4   : > { %24259 = vmatpush3.bf16.xpose.msra.mxu1 %v11318_v38  ;;  %24260 = vmatprep.mubr.msk.bf16.mxu1 %vm26239_vm0, %v26238_v0 }
0x1be5   : > { %24270 = vmatprep.subr.bf16.mxu1 %v26238_v0 }
0x1be6   : > { %v10694_v23 = vpop.f32.mrb[92].mxu1 }
0x1be7   : > { %v10695_v63 = vadd.f32 %v21843_v62, %v10694_v23  ;;  %v24178_v26 = vpop.f32.mrb[93].mxu1 }
0x1be8   : > { %v10697_v27 = vpop.f32.mrb[94].mxu1 }
0x1be9   : > { %v11457_v52 = vpack.c.bf16 %v10695_v63, %v10695_v63  ;;  %v24179_v30 = vpop.f32.mrb[95].mxu1 }
0x1beb   : > { %24261 = vmatmul.mubr.msk.bf16.vlgmr.msra.gmra.mrb[120].mxu1 %vm1979_vm1, %v10983_v13  ;;  %v11514_v58 = vsel %vm2456_vm2, %v11457_v52, 0 }
0x1bec   : > { %24271 = vmatpush3.bf16.msra.mxu1 %v11514_v58  ;;  %24272 = vmatprep.mubr.msk.bf16.mxu1 %vm26239_vm0, %v26238_v0 }
0x1bed   : > { %24282 = vmatprep.subr.bf16.mxu1 %v26238_v0 }
0x1bee   : > { %v28085_v61 = vpop.f32.mrb[96].mxu1 }
0x1bef   : > { %v24190_v15 = vpop.f32.mrb[97].mxu1 }
0x1bf0   : > { %v10789_v25 = vpop.f32.mrb[98].mxu1 }
0x1bf1   : > { %v24191_v53 = vpop.f32.mrb[99].mxu1 }
0x1bf6   : > { %v28087_v20 = vpop.f32.mrb[100].mxu1 }
0x1bf7   : > { %v24202_v36 = vpop.f32.mrb[101].mxu1 }
0x1bf8   : > { %v10881_v24 = vpop.f32.mrb[102].mxu1 }
0x1bf9   : > { %v24203_v47 = vpop.f32.mrb[103].mxu1 }
0x1bfe   : > { %v28089_v37 = vpop.f32.mrb[104].mxu1 }
0x1bff   : > { %v24214_v44 = vpop.f32.mrb[105].mxu1 }
0x1c00   : > { %v10973_v29 = vpop.f32.mrb[106].mxu1 }
0x1c01   : > { %v24215_v8 = vpop.f32.mrb[107].mxu1 }
0x1c86   : > { %v11032_v46 = vpop.f32.mrb[84].mxu0 }
0x1c87   : > { %v24220_v12 = vpop.f32.mrb[85].mxu0  ;;  %v11360_v51 = vsel %vm2348_vm3, %v11032_v46, -inf }
0x1c88   : > { %11361 = vmax.xlane.f32.xlu0 %v11360_v51  ;;  %v11035_v34 = vpop.f32.mrb[86].mxu0 }
0x1c89   : > { %v24221_v50 = vpop.f32.mrb[87].mxu0 }
0x1c8e   : > { %v11124_v32 = vpop.f32.mrb[88].mxu0 }
0x1c8f   : > { %v24232_v54 = vpop.f32.mrb[89].mxu0  ;;  %v11366_v55 = vsel %vm2348_vm3, %v11124_v32, -inf }
0x1c90   : > { %11367 = vmax.xlane.f32.xlu0 %v11366_v55  ;;  %v11127_v41 = vpop.f32.mrb[90].mxu0 }
0x1c91   : > { %v24233_v17 = vpop.f32.mrb[91].mxu0 }
0x1c96   : > { %v11216_v28 = vpop.f32.mrb[92].mxu0 }
0x1c97   : > { %v24244_v2 = vpop.f32.mrb[93].mxu0  ;;  %v11372_v3 = vsel %vm2348_vm3, %v11216_v28, -inf }
0x1c98   : > { %11373 = vmax.xlane.f32.xlu0 %v11372_v3  ;;  %v11219_v35 = vpop.f32.mrb[94].mxu0 }
0x1c99   : > { %v24245_v16 = vpop.f32.mrb[95].mxu0 }
0x1c9e   : > { %v11308_v5 = vpop.f32.mrb[96].mxu0 }
0x1c9f   : > { %v24256_v4 = vpop.f32.mrb[97].mxu0  ;;  %v11378_v14 = vsel %vm2348_vm3, %v11308_v5, -inf }
0x1ca0   : > { %11379 = vmax.xlane.f32.xlu0 %v11378_v14  ;;  %v11311_v6 = vpop.f32.mrb[98].mxu0 }
0x1ca1   : > { %v24257_v7 = vpop.f32.mrb[99].mxu0 }
0x1ca6   : > { %v11078_v60 = vpop.f32.mrb[108].mxu1 }
0x1ca7   : > { %v24226_v9 = vpop.f32.mrb[109].mxu1  ;;  %v11363_v56 = vsel %vm2348_vm3, %v11078_v60, -inf }
0x1ca8   : > { %11364 = vmax.xlane.f32.xlu1 %v11363_v56  ;;  %v11081_v18 = vpop.f32.mrb[110].mxu1 }
0x1ca9   : > { %v24227_v57 = vpop.f32.mrb[111].mxu1 }
0x1cae   : > { %v11170_v42 = vpop.f32.mrb[112].mxu1 }
0x1caf   : > { %v24238_v10 = vpop.f32.mrb[113].mxu1  ;;  %v11369_v11 = vsel %vm2348_vm3, %v11170_v42, -inf }
0x1cb0   : > { %11370 = vmax.xlane.f32.xlu1 %v11369_v11  ;;  %v11173_v43 = vpop.f32.mrb[114].mxu1 }
0x1cb1   : > { %v24239_v33 = vpop.f32.mrb[115].mxu1 }
0x1cb6   : > { %v11262_v19 = vpop.f32.mrb[116].mxu1 }
0x1cb7   : > { %v24250_v38 = vpop.f32.mrb[117].mxu1  ;;  %v11375_v62 = vsel %vm2348_vm3, %v11262_v19, -inf }
0x1cb8   : > { %11376 = vmax.xlane.f32.xlu1 %v11375_v62  ;;  %v11265_v49 = vpop.f32.mrb[118].mxu1 }
0x1cb9   : > { %v24251_v23 = vpop.f32.mrb[119].mxu1 }
0x1cbe   : > { %v11354_v63 = vpop.f32.mrb[120].mxu1 }
0x1cbf   : > { %v24262_v26 = vpop.f32.mrb[121].mxu1  ;;  %v11381_v27 = vsel %vm2348_vm3, %v11354_v63, -inf }
0x1cc0   : > { %11382 = vmax.xlane.f32.xlu1 %v11381_v27  ;;  %v11357_v13 = vpop.f32.mrb[122].mxu1  ;;  %v21846_v26 = vld [vmem:[%s29497_s5 + $0x5c] ss:$0 sm:$0xff] }
0x1cc1   : > { %v24263_v52 = vpop.f32.mrb[123].mxu1  ;;  %v10833_v13 = vadd.f32 %v21846_v26, %v28052_v40 }
0x1d15   : > { %v11362_v30 = vpop.xlane.xlu0 %11361 }
0x1d16   : > { %v11384_v58 = vsub.f32 %v11032_v46, %v11362_v30 }
0x1d18   : > { %v11392_v15 = vmul.f32 1.442695, %v11384_v58  ;;  %v11460_v58 = vpack.c.bf16 %v10833_v13, %v10833_v13 }
0x1d1a   : > { %25887 = vpow2.f32 %v11392_v15 }
0x1d1d   : > { %v11368_v25 = vpop.xlane.xlu0 %11367 }
0x1d1e   : > { %v11386_v53 = vsub.f32 %v11124_v32, %v11368_v25  ;;  %v21848_v25 = vld [vmem:[%s29497_s5 + $0x5e] ss:$0 sm:$0xff] }
0x1d20   : > { %v11396_v36 = vmul.f32 1.442695, %v11386_v53  ;;  %v10925_v53 = vadd.f32 %v21848_v25, %v28066_v39 }
0x1d22   : > { %25889 = vpow2.f32 %v11396_v36  ;;  %v11652_v36 = vsel %vm2456_vm2, %v11460_v58, 0 }
0x1d24   : > { %v25888_v24 = vpop.eup %25887 }
0x1d25   : > { %v11374_v47 = vpop.xlane.xlu0 %11373  ;;  %v11408_v44 = vsel %vm2348_vm3, %v25888_v24, 0.0 }
0x1d26   : > { %v11388_v29 = vsub.f32 %v11216_v28, %v11374_v47  ;;  %11409 = vadd.xlane.f32.xlu0 %v11408_v44  ;;  %v11462_v44 = vpack.c.bf16 %v10925_v53, %v10925_v53 }
0x1d28   : > { %v11400_v8 = vmul.f32 1.442695, %v11388_v29  ;;  %v11744_v39 = vsel %vm2456_vm2, %v11462_v44, 0 }
0x1d2a   : > { %25891 = vpow2.f32 %v11400_v8 }
0x1d2c   : > { %v25890_v12 = vpop.eup %25889 }
0x1d2d   : > { %v11380_v51 = vpop.xlane.xlu0 %11379  ;;  %v11414_v34 = vsel %vm2348_vm3, %v25890_v12, 0.0 }
0x1d2e   : > { %v11390_v50 = vsub.f32 %v11308_v5, %v11380_v51  ;;  %11415 = vadd.xlane.f32.xlu0 %v11414_v34 }
0x1d30   : > { %v11404_v46 = vmul.f32 1.442695, %v11390_v50  ;;  %v21845_v50 = vld [vmem:[%s29497_s5 + $0x5b] ss:$0 sm:$0xff] }
0x1d32   : > { %25893 = vpow2.f32 %v11404_v46 }
0x1d34   : > { %v28101_v54 = vpop.eup %25891 }
0x1d35   : > { %v11365_v32 = vpop.xlane.xlu1 %11364  ;;  %v11420_v55 = vsel %vm2348_vm3, %v28101_v54, 0.0 }
0x1d36   : > { %v11385_v41 = vsub.f32 %v11078_v60, %v11365_v32  ;;  %11421 = vadd.xlane.f32.xlu0 %v11420_v55 }
0x1d38   : > { %v11394_v17 = vmul.f32 1.442695, %v11385_v41 }
0x1d3a   : > { %25895 = vpow2.f32 %v11394_v17 }
0x1d3c   : > { %v28105_v28 = vpop.eup %25893 }
0x1d3d   : > { %v11371_v2 = vpop.xlane.xlu1 %11370  ;;  %v11426_v3 = vsel %vm2348_vm3, %v28105_v28, 0.0 }
0x1d3e   : > { %v11387_v35 = vsub.f32 %v11170_v42, %v11371_v2  ;;  %11427 = vadd.xlane.f32.xlu0 %v11426_v3 }
0x1d40   : > { %v11398_v16 = vmul.f32 1.442695, %v11387_v35 }
0x1d42   : > { %25897 = vpow2.f32 %v11398_v16 }
0x1d44   : > { %v28109_v5 = vpop.eup %25895 }
0x1d45   : > { %v11377_v4 = vpop.xlane.xlu1 %11376  ;;  %v11411_v14 = vsel %vm2348_vm3, %v28109_v5, 0.0 }
0x1d46   : > { %v11389_v6 = vsub.f32 %v11262_v19, %v11377_v4  ;;  %11412 = vadd.xlane.f32.xlu1 %v11411_v14  ;;  %v21844_v19 = vld [vmem:[%s29497_s5 + $0x5a] ss:$0 sm:$0xff] }
0x1d47   : > { %v10741_v38 = vadd.f32 %v21844_v19, %v28037_v1  ;;  %v25561_v19 = vld [vmem:[#allocation4 + $0x3c8] sm:$0xff]  }
0x1d48   : > { %v11402_v7 = vmul.f32 1.442695, %v11389_v6 }
0x1d49   : > { %v11458_v23 = vpack.c.bf16 %v10741_v38, %v10741_v38 }
0x1d4a   : > { %25899 = vpow2.f32 %v11402_v7 }
0x1d4b   : > { %v11560_v52 = vsel %vm2456_vm2, %v11458_v23, 0 }
0x1d4c   : > { %v28113_v60 = vpop.eup %25897 }
0x1d4d   : > { %v11383_v9 = vpop.xlane.xlu1 %11382  ;;  %v11417_v56 = vsel %vm2348_vm3, %v28113_v60, 0.0 }
0x1d4e   : > { %v11391_v18 = vsub.f32 %v11354_v63, %v11383_v9  ;;  %11418 = vadd.xlane.f32.xlu1 %v11417_v56 }
0x1d50   : > { %v11406_v57 = vmul.f32 1.442695, %v11391_v18 }
0x1d52   : > { %25901 = vpow2.f32 %v11406_v57 }
0x1d54   : > { %v28117_v42 = vpop.eup %25899 }
0x1d55   : > { %v11423_v10 = vsel %vm2348_vm3, %v28117_v42, 0.0 }
0x1d56   : > { %11424 = vadd.xlane.f32.xlu1 %v11423_v10 }
0x1d5c   : > { %v28121_v11 = vpop.eup %25901 }
0x1d5d   : > { %v11429_v43 = vsel %vm2348_vm3, %v28121_v11, 0.0 }
0x1d5e   : > { %11430 = vadd.xlane.f32.xlu1 %v11429_v43 }
0x1db3   : > { %v11410_v33 = vpop.xlane.xlu0 %11409 }
0x1db4   : > { %25903 = vrcp.f32 %v11410_v33 }
0x1dbb   : > { %v11416_v62 = vpop.xlane.xlu0 %11415 }
0x1dbc   : > { %25905 = vrcp.f32 %v11416_v62  ;;  %v25558_v62 = vld [vmem:[#allocation4 + $0x3d0] sm:$0xff]  }
0x1dbe   : > { %v25904_v49 = vpop.eup %25903 }
0x1dbf   : > { %v11440_v63 = vmul.f32 %v25904_v49, %v25888_v24 }
0x1dc1   : > { %v11448_v27 = vpack.c.bf16 %v11440_v63, %v11440_v63 }
0x1dc3   : > { %24267 = vmatmul.mubr.msk.bf16.vlgmr.msra.gmra.mrb[100].mxu0 %vm2348_vm3, %v11448_v27  ;;  %v11422_v30 = vpop.xlane.xlu0 %11421  ;;  %v25559_v27 = vld [vmem:[#allocation4 + $0x3e0] sm:$0xff]  }
0x1dc4   : > { %24277 = vmatpush3.bf16.msra.mxu0 %v11560_v52  ;;  %25907 = vrcp.f32 %v11422_v30  ;;  %24278 = vmatprep.mubr.msk.bf16.mxu0 %vm26239_vm0, %v26238_v0 }
0x1dc5   : > { %24288 = vmatprep.subr.bf16.mxu0 %v26238_v0 }
0x1dc6   : > { %v25906_v1 = vpop.eup %25905 }
0x1dc7   : > { %v11442_v15 = vmul.f32 %v25906_v1, %v25890_v12 }
0x1dc9   : > { %v11450_v40 = vpack.c.bf16 %v11442_v15, %v11442_v15  ;;  %v25560_v15 = vld [vmem:[#allocation4 + $0x3f0] sm:$0xff]  }
0x1dcb   : > { %24279 = vmatmul.mubr.msk.bf16.vlgmr.msra.gmra.mrb[104].mxu0 %vm2348_vm3, %v11450_v40  ;;  %v11428_v24 = vpop.xlane.xlu0 %11427 }
0x1dcc   : > { %24289 = vmatpush3.bf16.msra.mxu0 %v11652_v36  ;;  %25909 = vrcp.f32 %v11428_v24  ;;  %24290 = vmatprep.mubr.msk.bf16.mxu0 %vm26239_vm0, %v26238_v0 }
0x1dcd   : > { %24300 = vmatprep.subr.bf16.mxu0 %v26238_v0 }
0x1dce   : > { %v25908_v47 = vpop.eup %25907 }
0x1dcf   : > { %v11444_v29 = vmul.f32 %v25908_v47, %v28101_v54  ;;  %v10787_v54 = vadd.f32 %v21845_v50, %v28085_v61 }
0x1dd1   : > { %v11452_v8 = vpack.c.bf16 %v11444_v29, %v11444_v29  ;;  %v11459_v41 = vpack.c.bf16 %v10787_v54, %v10787_v54 }
0x1dd3   : > { %24291 = vmatmul.mubr.msk.bf16.vlgmr.msra.gmra.mrb[108].mxu0 %vm2348_vm3, %v11452_v8  ;;  %v11413_v12 = vpop.xlane.xlu1 %11412  ;;  %v11606_v61 = vsel %vm2456_vm2, %v11459_v41, 0 }
0x1dd4   : > { %24301 = vmatpush3.bf16.msra.mxu0 %v11744_v39  ;;  %25911 = vrcp.f32 %v11413_v12  ;;  %24302 = vmatprep.mubr.msk.bf16.mxu0 %vm26239_vm0, %v26238_v0  ;;  %v25562_v12 = vld [vmem:[#allocation4 + $0x3d8] sm:$0xff]  }
0x1dd5   : > { %24312 = vmatprep.subr.bf16.mxu0 %v26238_v0 }
0x1dd6   : > { %v25910_v51 = vpop.eup %25909 }
0x1dd7   : > { %v11446_v34 = vmul.f32 %v25910_v51, %v28105_v28  ;;  %v21847_v28 = vld [vmem:[%s29497_s5 + $0x5d] ss:$0 sm:$0xff] }
0x1dd8   : > { %v10879_v3 = vadd.f32 %v21847_v28, %v28087_v20  ;;  %v21849_v20 = vld [vmem:[%s29497_s5 + $0x5f] ss:$0 sm:$0xff] }
0x1dd9   : > { %v11454_v46 = vpack.c.bf16 %v11446_v34, %v11446_v34  ;;  %v10971_v6 = vadd.f32 %v21849_v20, %v28089_v37 }
0x1ddb   : > { %24303 = vmatmul.mubr.msk.bf16.vlgmr.msra.gmra.mrb[112].mxu0 %vm2348_vm3, %v11454_v46  ;;  %v11419_v32 = vpop.xlane.xlu1 %11418  ;;  %v11463_v56 = vpack.c.bf16 %v10971_v6, %v10971_v6 }
0x1ddc   : > { %25913 = vrcp.f32 %v11419_v32  ;;  %24314 = vmatprep.mubr.msk.bf16.mxu0 %vm26239_vm0, %v26238_v0  ;;  %v25563_v32 = vld [vmem:[#allocation4 + $0x3e8] sm:$0xff]  }
0x1ddd   : > { %v11790_v37 = vsel %vm2456_vm2, %v11463_v56, 0 }
0x1dde   : > { %v25912_v55 = vpop.eup %25911 }
0x1ddf   : > { %v11441_v17 = vmul.f32 %v25912_v55, %v28109_v5  ;;  %v11461_v5 = vpack.c.bf16 %v10879_v3, %v10879_v3  ;;  %v25564_v3 = vld [vmem:[#allocation4 + $0x3f8] sm:$0xff]  }
0x1de1   : > { %v11449_v2 = vpack.c.bf16 %v11441_v17, %v11441_v17  ;;  %v11698_v7 = vsel %vm2456_vm2, %v11461_v5, 0 }
0x1de3   : > { %24273 = vmatmul.mubr.msk.bf16.vlgmr.msra.gmra.mrb[124].mxu1 %vm2348_vm3, %v11449_v2  ;;  %v11425_v35 = vpop.xlane.xlu1 %11424 }
0x1de4   : > { %24283 = vmatpush3.bf16.msra.mxu1 %v11606_v61  ;;  %25915 = vrcp.f32 %v11425_v35  ;;  %24284 = vmatprep.mubr.msk.bf16.mxu1 %vm26239_vm0, %v26238_v0 }
0x1de5   : > { %24294 = vmatprep.subr.bf16.mxu1 %v26238_v0 }
0x1de6   : > { %v25914_v16 = vpop.eup %25913 }
0x1de7   : > { %v11443_v4 = vmul.f32 %v25914_v16, %v28113_v60 }
0x1de9   : > { %v11451_v14 = vpack.c.bf16 %v11443_v4, %v11443_v4 }
0x1deb   : > { %24285 = vmatmul.mubr.msk.bf16.vlgmr.msra.gmra.mrb[128].mxu1 %vm2348_vm3, %v11451_v14  ;;  %v11431_v9 = vpop.xlane.xlu1 %11430 }
0x1dec   : > { %24295 = vmatpush3.bf16.msra.mxu1 %v11698_v7  ;;  %25917 = vrcp.f32 %v11431_v9  ;;  %24296 = vmatprep.mubr.msk.bf16.mxu1 %vm26239_vm0, %v26238_v0 }
0x1ded   : > { %24306 = vmatprep.subr.bf16.mxu1 %v26238_v0 }
0x1dee   : > { %v25916_v60 = vpop.eup %25915 }
0x1def   : > { %v11445_v18 = vmul.f32 %v25916_v60, %v28117_v42  ;;  %v25557_v42 = vld [vmem:[#allocation4 + $0x3c0] sm:$0xff]  }
0x1df0   : > { %24313 = vmatpush3.bf16.msra.mxu0 %v25557_v42 }
0x1df1   : > { %v11453_v57 = vpack.c.bf16 %v11445_v18, %v11445_v18  ;;  %24324 = vmatprep.subr.bf16.mxu0 %v26238_v0 }
0x1df3   : > { %24297 = vmatmul.mubr.msk.bf16.vlgmr.msra.gmra.mrb[132].mxu1 %vm2348_vm3, %v11453_v57 }
0x1df4   : > { %24307 = vmatpush3.bf16.msra.mxu1 %v11790_v37  ;;  %24308 = vmatprep.mubr.msk.bf16.mxu1 %vm26239_vm0, %v26238_v0 }
0x1df5   : > { %24318 = vmatprep.subr.bf16.mxu1 %v26238_v0 }
0x1df6   : > { %v25918_v10 = vpop.eup %25917 }
0x1df7   : > { %v11447_v43 = vmul.f32 %v25918_v10, %v28121_v11 }
0x1df9   : > { %v11455_v33 = vpack.c.bf16 %v11447_v43, %v11447_v43 }
0x1dfb   : > { %24309 = vmatmul.mubr.msk.bf16.vlgmr.msra.gmra.mrb[136].mxu1 %vm2348_vm3, %v11455_v33 }
0x1dfc   : > { %24320 = vmatprep.mubr.msk.bf16.mxu1 %vm26239_vm0, %v26238_v0  ;;  %24319 = vmatpush3.bf16.msra.mxu1 %v25561_v19 }
0x1dfd   : > { %24330 = vmatprep.subr.bf16.mxu1 %v26238_v0 }
0x1e96   : > { %v11504_v38 = vpop.f32.mrb[100].mxu0 }
0x1e97   : > { %v11832_v49 = vpack.c.bf16 %v11504_v38, %v11504_v38  ;;  %v24268_v23 = vpop.f32.mrb[101].mxu0 }
0x1e98   : > { %v11507_v63 = vpop.f32.mrb[102].mxu0 }
0x1e99   : > { %v24269_v11 = vpop.f32.mrb[103].mxu0  ;;  %24315 = vmatmul.mubr.msk.bf16.vlgmr.msra.gmra.mrb[116].mxu0 %vm1979_vm1, %v11832_v49 }
0x1e9a   : > { %24325 = vmatpush3.bf16.msra.mxu0 %v25558_v62  ;;  %24326 = vmatprep.mubr.msk.bf16.mxu0 %vm26239_vm0, %v26238_v0 }
0x1e9b   : > { %24336 = vmatprep.subr.bf16.mxu0 %v26238_v0 }
0x1e9e   : > { %v11596_v26 = vpop.f32.mrb[104].mxu0 }
0x1e9f   : > { %v11834_v13 = vpack.c.bf16 %v11596_v26, %v11596_v26  ;;  %v24280_v52 = vpop.f32.mrb[105].mxu0 }
0x1ea0   : > { %v11599_v30 = vpop.f32.mrb[106].mxu0 }
0x1ea1   : > { %v24281_v1 = vpop.f32.mrb[107].mxu0  ;;  %24327 = vmatmul.mubr.msk.bf16.vlgmr.msra.gmra.mrb[120].mxu0 %vm1979_vm1, %v11834_v13 }
0x1ea2   : > { %24337 = vmatpush3.bf16.msra.mxu0 %v25559_v27  ;;  %24338 = vmatprep.mubr.msk.bf16.mxu0 %vm26239_vm0, %v26238_v0 }
0x1ea3   : > { %24348 = vmatprep.subr.bf16.mxu0 %v26238_v0 }
0x1ea6   : > { %v11688_v58 = vpop.f32.mrb[108].mxu0 }
0x1ea7   : > { %v11836_v25 = vpack.c.bf16 %v11688_v58, %v11688_v58  ;;  %v24292_v40 = vpop.f32.mrb[109].mxu0 }
0x1ea8   : > { %v11691_v53 = vpop.f32.mrb[110].mxu0 }
0x1ea9   : > { %v24293_v36 = vpop.f32.mrb[111].mxu0  ;;  %24339 = vmatmul.mubr.msk.bf16.vlgmr.msra.gmra.mrb[124].mxu0 %vm1979_vm1, %v11836_v25 }
0x1eaa   : > { %24349 = vmatpush3.bf16.msra.mxu0 %v25560_v15  ;;  %24350 = vmatprep.mubr.msk.bf16.mxu0 %vm26239_vm0, %v26238_v0 }
0x1eae   : > { %v11780_v24 = vpop.f32.mrb[112].mxu0 }
0x1eaf   : > { %v11838_v47 = vpack.c.bf16 %v11780_v24, %v11780_v24  ;;  %v24304_v44 = vpop.f32.mrb[113].mxu0 }
0x1eb0   : > { %v11783_v29 = vpop.f32.mrb[114].mxu0 }
0x1eb1   : > { %v24305_v8 = vpop.f32.mrb[115].mxu0  ;;  %24351 = vmatmul.mubr.msk.bf16.vlgmr.msra.gmra.mrb[128].mxu0 %vm1979_vm1, %v11838_v47 }
0x1eb2   : > { %12399 = vmatprep.mubr.bf16.mxu0 %v26240_v21 }
0x1eb6   : > { %v11550_v39 = vpop.f32.mrb[124].mxu1 }
0x1eb7   : > { %v11833_v51 = vpack.c.bf16 %v11550_v39, %v11550_v39  ;;  %v24274_v34 = vpop.f32.mrb[125].mxu1 }
0x1eb8   : > { %v11553_v50 = vpop.f32.mrb[126].mxu1 }
0x1eb9   : > { %v24275_v46 = vpop.f32.mrb[127].mxu1  ;;  %24321 = vmatmul.mubr.msk.bf16.vlgmr.msra.gmra.mrb[140].mxu1 %vm1979_vm1, %v11833_v51 }
0x1eba   : > { %24331 = vmatpush3.bf16.msra.mxu1 %v25562_v12  ;;  %24332 = vmatprep.mubr.msk.bf16.mxu1 %vm26239_vm0, %v26238_v0  ;;  %v21809_v12 = vld [vmem:[%s29500_s8 + $0x31] ss:$0 sm:$0xff] }
0x1ebb   : > { %24342 = vmatprep.subr.bf16.mxu1 %v26238_v0 }
0x1ebe   : > { %v11642_v54 = vpop.f32.mrb[128].mxu1 }
0x1ebf   : > { %v11835_v55 = vpack.c.bf16 %v11642_v54, %v11642_v54  ;;  %v24286_v41 = vpop.f32.mrb[129].mxu1 }
0x1ec0   : > { %v11645_v17 = vpop.f32.mrb[130].mxu1  ;;  %v25567_v41 = vld [vmem:[%s29498_s6 + $0x184] ss:$8 sps:$4 sm:$0xff]  }
0x1ec1   : > { %v24287_v28 = vpop.f32.mrb[131].mxu1  ;;  %24333 = vmatmul.mubr.msk.bf16.vlgmr.msra.gmra.mrb[144].mxu1 %vm1979_vm1, %v11835_v55  ;;  %v25565_v55 = vld [vmem:[%s29498_s6 + $0x180] ss:$8 sps:$4 sm:$0xff]   ;;  %v25570_v17 = vld [vmem:[%s29498_s6 + $0x194] ss:$8 sps:$4 sm:$0xff]   ;;  %12367 = vmatprep.subr.bf16.mxu0 %v25567_v41 }
0x1ec2   : > { %24343 = vmatpush3.bf16.msra.mxu1 %v25563_v32  ;;  %24344 = vmatprep.mubr.msk.bf16.mxu1 %vm26239_vm0, %v26238_v0  ;;  %v25568_v28 = vld [vmem:[%s29498_s6 + $0x190] ss:$8 sps:$4 sm:$0xff]  }
0x1ec3   : > { %24354 = vmatprep.subr.bf16.mxu1 %v26238_v0  ;;  %12368 = vmatpush1.bf16.msra.mxu0 %v25565_v55 }
0x1ec4   : > { %12369 = vmatprep.subr.bf16.mxu0 %v25570_v17 }
0x1ec6   : > { %v11734_v2 = vpop.f32.mrb[132].mxu1 }
0x1ec7   : > { %v11837_v61 = vpack.c.bf16 %v11734_v2, %v11734_v2  ;;  %v24298_v35 = vpop.f32.mrb[133].mxu1  ;;  %12370 = vmatpush1.bf16.msra.mxu0 %v25568_v28  ;;  %v25571_v2 = vld [vmem:[%s29498_s6 + $0x1a0] ss:$8 sps:$4 sm:$0xff]  }
0x1ec8   : > { %v11737_v16 = vpop.f32.mrb[134].mxu1  ;;  %v21925_v28 = vld [vmem:[%s29500_s8 + $0x42] ss:$0 sm:$0xff] }
0x1ec9   : > { %v24299_v5 = vpop.f32.mrb[135].mxu1  ;;  %24345 = vmatmul.mubr.msk.bf16.vlgmr.msra.gmra.mrb[148].mxu1 %vm1979_vm1, %v11837_v61 }
0x1eca   : > { %24355 = vmatpush3.bf16.msra.mxu1 %v25564_v3  ;;  %24356 = vmatprep.mubr.msk.bf16.mxu1 %vm26239_vm0, %v26238_v0  ;;  %v25576_v5 = vld [vmem:[%s29498_s6 + $0x1b4] ss:$8 sps:$4 sm:$0xff]  }
0x1ece   : > { %v11826_v4 = vpop.f32.mrb[136].mxu1 }
0x1ecf   : > { %v11839_v20 = vpack.c.bf16 %v11826_v4, %v11826_v4  ;;  %v24310_v14 = vpop.f32.mrb[137].mxu1  ;;  %v25574_v4 = vld [vmem:[%s29498_s6 + $0x1b0] ss:$8 sps:$4 sm:$0xff]  }
0x1ed0   : > { %v11829_v6 = vpop.f32.mrb[138].mxu1  ;;  %v25577_v14 = vld [vmem:[%s29498_s6 + $0x1c0] ss:$8 sps:$4 sm:$0xff]  }
0x1ed1   : > { %v24311_v7 = vpop.f32.mrb[139].mxu1  ;;  %24357 = vmatmul.mubr.msk.bf16.vlgmr.msra.gmra.mrb[152].mxu1 %vm1979_vm1, %v11839_v20  ;;  %v25579_v20 = vld [vmem:[%s29498_s6 + $0x1c4] ss:$8 sps:$4 sm:$0xff]   ;;  %v25582_v6 = vld [vmem:[%s29498_s6 + $0x1d4] ss:$8 sps:$4 sm:$0xff]  }
0x1ed2   : > { %v25580_v7 = vld [vmem:[%s29498_s6 + $0x1d0] ss:$8 sps:$4 sm:$0xff]  }
0x1f6c   : > { %v11883_v9 = vpop.f32.mrb[116].mxu0 }
0x1f6d   : > { %v24316_v60 = vpop.f32.mrb[117].mxu0 }
0x1f6e   : > { %v11886_v56 = vpop.f32.mrb[118].mxu0  ;;  %v25583_v60 = vld [vmem:[%s29498_s6 + $0x1e0] ss:$8 sps:$4 sm:$0xff]  }
0x1f6f   : > { %v24317_v18 = vpop.f32.mrb[119].mxu0  ;;  %v25588_v56 = vld [vmem:[%s29498_s6 + $0x1f4] ss:$8 sps:$4 sm:$0xff]  }
0x1f70   : > { %v25586_v18 = vld [vmem:[%s29498_s6 + $0x1f0] ss:$8 sps:$4 sm:$0xff]  }
0x1f74   : > { %v11981_v57 = vpop.f32.mrb[120].mxu0 }
0x1f75   : > { %v24328_v37 = vpop.f32.mrb[121].mxu0 }
0x1f76   : > { %v11984_v10 = vpop.f32.mrb[122].mxu0  ;;  %v25590_v37 = vld [vmem:[#allocation6 + $0x180] sm:$0xff]  }
0x1f77   : > { %v24329_v43 = vpop.f32.mrb[123].mxu0  ;;  %v25591_v10 = vld [vmem:[#allocation6 + $0x1c8] sm:$0xff]  }
0x1f78   : > { %v25592_v43 = vld [vmem:[#allocation6 + $0x188] sm:$0xff]  }
0x1f7c   : > { %v12079_v33 = vpop.f32.mrb[124].mxu0 }
0x1f7d   : > { %v24340_v42 = vpop.f32.mrb[125].mxu0 }
0x1f7e   : > { %v12082_v19 = vpop.f32.mrb[126].mxu0  ;;  %v25594_v42 = vld [vmem:[#allocation6 + $0x190] sm:$0xff]  }
0x1f7f   : > { %v24341_v38 = vpop.f32.mrb[127].mxu0  ;;  %v25595_v19 = vld [vmem:[#allocation6 + $0x1d8] sm:$0xff]  }
0x1f80   : > { %v25596_v38 = vld [vmem:[#allocation6 + $0x198] sm:$0xff]  }
0x1f84   : > { %v12177_v62 = vpop.f32.mrb[128].mxu0 }
0x1f85   : > { %v24352_v49 = vpop.f32.mrb[129].mxu0 }
0x1f86   : > { %v12180_v23 = vpop.f32.mrb[130].mxu0  ;;  %v25598_v49 = vld [vmem:[#allocation6 + $0x1a0] sm:$0xff]  }
0x1f87   : > { %v24353_v63 = vpop.f32.mrb[131].mxu0  ;;  %v25599_v23 = vld [vmem:[#allocation6 + $0x1e8] sm:$0xff]  }
0x1f88   : > { %v25600_v63 = vld [vmem:[#allocation6 + $0x1a8] sm:$0xff]  }
0x1f8c   : > { %v11932_v11 = vpop.f32.mrb[140].mxu1 }
0x1f8d   : > { %v12232_v26 = vadd.f32 %v11932_v11, %v11883_v9  ;;  %v24322_v27 = vpop.f32.mrb[141].mxu1  ;;  %v25585_v9 = vld [vmem:[%s29498_s6 + $0x1e4] ss:$8 sps:$4 sm:$0xff]  }
0x1f8e   : > { %v11935_v13 = vpop.f32.mrb[142].mxu1 }
0x1f8f   : > { %v24323_v52 = vpop.f32.mrb[143].mxu1  ;;  %v12233_v30 = vadd.f32 %v12232_v26, %v11981_v57  ;;  %v25589_v57 = vld [vmem:[#allocation6 + $0x1c0] sm:$0xff]  }
0x1f90   : > { %22814 = vmatprep.subr.bf16.mxu1 %v25589_v57  ;;  %v21890_v52 = vld [vmem:[%s29500_s8 + $0x39] ss:$0 sm:$0xff] }
0x1f91   : > { %22815 = vmatpush3.bf16.msra.mxu1 %v25590_v37  ;;  %v21943_v37 = vld [vmem:[%s29500_s8 + $0x3b] ss:$0 sm:$0xff] }
0x1f92   : > { %22816 = vmatprep.subr.bf16.mxu1 %v25591_v10 }
0x1f94   : > { %v12030_v1 = vpop.f32.mrb[144].mxu1 }
0x1f95   : > { %v12234_v58 = vadd.f32 %v12233_v30, %v12030_v1  ;;  %v24334_v15 = vpop.f32.mrb[145].mxu1  ;;  %22817 = vmatpush3.bf16.msra.mxu1 %v25592_v43  ;;  %v21891_v1 = vld [vmem:[%s29500_s8 + $0x41] ss:$0 sm:$0xff] }
0x1f96   : > { %v12033_v25 = vpop.f32.mrb[146].mxu1 }
0x1f97   : > { %v24335_v40 = vpop.f32.mrb[147].mxu1  ;;  %v12235_v53 = vadd.f32 %v12234_v58, %v12079_v33  ;;  %v25593_v33 = vld [vmem:[#allocation6 + $0x1d0] sm:$0xff]  }
0x1f98   : > { %22818 = vmatprep.subr.bf16.mxu1 %v25593_v33  ;;  %v25601_v40 = vld [vmem:[#allocation6 + $0x1f0] sm:$0xff]  }
0x1f99   : > { %22819 = vmatpush3.bf16.msra.mxu1 %v25594_v42  ;;  %v25607_v33 = vld [vmem:[#allocation4 + $0x410] sm:$0xff]   ;;  %v25608_v42 = vld [vmem:[#allocation4 + $0x418] sm:$0xff]  }
0x1f9a   : > { %22820 = vmatprep.subr.bf16.mxu1 %v25595_v19 }
0x1f9c   : > { %v12128_v36 = vpop.f32.mrb[148].mxu1 }
0x1f9d   : > { %v12236_v24 = vadd.f32 %v12235_v53, %v12128_v36  ;;  %v24346_v47 = vpop.f32.mrb[149].mxu1  ;;  %22821 = vmatpush3.bf16.msra.mxu1 %v25596_v38  ;;  %v25602_v53 = vld [vmem:[#allocation6 + $0x1b0] sm:$0xff]   ;;  %v25603_v36 = vld [vmem:[#allocation6 + $0x1f8] sm:$0xff]   ;;  %v25609_v38 = vld [vmem:[#allocation4 + $0x420] sm:$0xff]  }
0x1f9e   : > { %v12131_v44 = vpop.f32.mrb[150].mxu1  ;;  %v21908_v47 = vld [vmem:[%s29500_s8 + $0x32] ss:$8 sm:$0x3] }
0x1f9f   : > { %v24347_v29 = vpop.f32.mrb[151].mxu1  ;;  %v12237_v8 = vadd.f32 %v12236_v24, %v12177_v62  ;;  %v25597_v62 = vld [vmem:[#allocation6 + $0x1e0] sm:$0xff]   ;;  %v25604_v24 = vld [vmem:[#allocation6 + $0x1b8] sm:$0xff]   ;;  %v12280_v44 = vrot.slane %v21908_v47, %v26953_v45 }
0x1fa0   : > { %22822 = vmatprep.subr.bf16.mxu1 %v25597_v62  ;;  %v12284_v29 = vrot.slane %v21908_v47, %v26958_v59  ;;  %v25610_v62 = vld [vmem:[#allocation4 + $0x428] sm:$0xff]   ;;  %v25628_v47 = vld [vmem:[#allocation4 + $0x4b8] sm:$0xff]  }
0x1fa1   : > { %22823 = vmatpush3.bf16.msra.mxu1 %v25598_v49  ;;  %v25611_v49 = vld [vmem:[#allocation4 + $0x430] sm:$0xff]  }
0x1fa2   : > { %22824 = vmatprep.subr.bf16.mxu1 %v25599_v23  ;;  %v25612_v23 = vld [vmem:[#allocation4 + $0x438] sm:$0xff]  }
0x1fa4   : > { %v12226_v39 = vpop.f32.mrb[152].mxu1 }
0x1fa5   : > { %v12238_v51 = vadd.f32 %v12237_v8, %v12226_v39  ;;  %v24358_v34 = vpop.f32.mrb[153].mxu1  ;;  %22825 = vmatpush3.bf16.msra.mxu1 %v25600_v63  ;;  %v25613_v63 = vld [vmem:[#allocation4 + $0x440] sm:$0xff]  }
0x1fa6   : > { %v12229_v50 = vpop.f32.mrb[154].mxu1  ;;  %22826 = vmatprep.subr.bf16.mxu1 %v25601_v40  ;;  %v25624_v40 = vld [vmem:[#allocation4 + $0x498] sm:$0xff]  }
0x1fa7   : > { %v24359_v46 = vpop.f32.mrb[155].mxu1  ;;  %v12239_v54 = vadd.f32 %v21809_v12, %v12238_v51 }
0x1fa9   : > { %v12240_v32 = vadd.f32 %v12239_v54, %v27861_v22  ;;  %v25573_v22 = vld [vmem:[%s29498_s6 + $0x1a4] ss:$8 sps:$4 sm:$0xff]   ;;  %22827 = vmatpush3.bf16.msra.mxu1 %v25602_v53 }
0x1faa   : > { %12371 = vmatprep.subr.bf16.mxu0 %v25573_v22  ;;  %22828 = vmatprep.subr.bf16.mxu1 %v25603_v36  ;;  %v25625_v53 = vld [vmem:[#allocation4 + $0x4a0] sm:$0xff]   ;;  %v25626_v36 = vld [vmem:[#allocation4 + $0x4a8] sm:$0xff]  }
0x1fab   : > { %12243 = vadd.xlane.f32.xlu0 %v12240_v32  ;;  %12372 = vmatpush1.bf16.msra.mxu0 %v25571_v2 }
0x1fac   : > { %12373 = vmatprep.subr.bf16.mxu0 %v25576_v5 }
0x1fad   : > { %22829 = vmatpush3.bf16.msra.mxu1 %v25604_v24  ;;  %v25627_v24 = vld [vmem:[#allocation4 + $0x4b0] sm:$0xff]  }
0x1fae   : > { %24366 = vmatprep.subr.bf16.mxu1 %v26238_v0 }
0x1faf   : > { %12374 = vmatpush1.bf16.msra.mxu0 %v25574_v4 }
0x1fb0   : > { %12375 = vmatprep.subr.bf16.mxu0 %v25579_v20 }
0x1fb3   : > { %12376 = vmatpush1.bf16.msra.mxu0 %v25577_v14  ;;  %v25605_v14 = vld [vmem:[#allocation4 + $0x400] sm:$0xff]  }
0x1fb4   : > { %12377 = vmatprep.subr.bf16.mxu0 %v25582_v6  ;;  %v25606_v6 = vld [vmem:[#allocation4 + $0x408] sm:$0xff]  }
0x1fb7   : > { %12378 = vmatpush1.bf16.msra.mxu0 %v25580_v7 }
0x1fb8   : > { %12379 = vmatprep.subr.bf16.mxu0 %v25585_v9 }
0x1fbb   : > { %12380 = vmatpush1.bf16.msra.mxu0 %v25583_v60 }
0x1fbc   : > { %12381 = vmatprep.subr.bf16.mxu0 %v25588_v56 }
0x1fbf   : > { %12382 = vmatpush1.bf16.msra.mxu0 %v25586_v18  ;;  %v21942_v18 = vld [vmem:[%s29500_s8 + $0x33] ss:$0 sm:$0xff] }
0x1fc0   : > { %24360 = vmatprep.subr.bf16.mxu0 %v26238_v0 }
0x2038   : > { %v12244_v3 = vpop.xlane.xlu0 %12243 }
0x2039   : > { %v12245_v61 = vmul.f32 0.0078125, %v12244_v3 }
0x203b   : > { %v12246_v35 = vsub.f32 %v12240_v32, %v12245_v61 }
0x203d   : > { %v12247_v16 = vmul.f32 %v12246_v35, %v12246_v35 }
0x203f   : > { %12248 = vadd.xlane.f32.xlu1 %v12247_v16 }
0x20cc   : > { %v12249_v11 = vpop.xlane.xlu1 %12248 }
0x20cd   : > { %v12250_v26 = vmul.f32 0.0078125, %v12249_v11  ;;  %v25614_v11 = vld [vmem:[#allocation4 + $0x448] sm:$0xff]  }
0x20cf   : > { %v12251_v27 = vadd.f32 1e-05, %v12250_v26  ;;  %v25615_v26 = vld [vmem:[#allocation4 + $0x450] sm:$0xff]  }
0x20d1   : > { %25919 = vrsqrt.f32 %v12251_v27  ;;  %v25616_v27 = vld [vmem:[#allocation4 + $0x458] sm:$0xff]  }
0x20db   : > { %v25920_v13 = vpop.eup %25919 }
0x20dc   : > { %v12253_v30 = vmul.f32 %v25920_v13, %v12246_v35  ;;  %v25617_v13 = vld [vmem:[#allocation4 + $0x460] sm:$0xff]  }
0x20de   : > { %v12254_v58 = vmul.f32 %v21890_v52, %v12253_v30  ;;  %v25618_v52 = vld [vmem:[#allocation4 + $0x468] sm:$0xff]   ;;  %v25619_v30 = vld [vmem:[#allocation4 + $0x470] sm:$0xff]  }
0x20e0   : > { %v12255_v15 = vadd.f32 %v21891_v1, %v12254_v58  ;;  %v25620_v1 = vld [vmem:[#allocation4 + $0x478] sm:$0xff]   ;;  %v25621_v58 = vld [vmem:[#allocation4 + $0x480] sm:$0xff]  }
0x20e2   : > { %v12273_v25 = vpack.c.bf16 %v12255_v15, %v12255_v15 }
0x20e4   : > { %12400 = vmatmul.mubr.bf16.vlgmr.msra.gmra.mrb[132].mxu0 %v12273_v25  ;;  %v25623_v25 = vld [vmem:[#allocation4 + $0x490] sm:$0xff]  }
0x20e5   : > { %24362 = vmatprep.mubr.msk.bf16.mxu0 %vm26239_vm0, %v26238_v0  ;;  %24361 = vmatpush3.bf16.xpose.msra.mxu0 %v25605_v14 }
0x20e6   : > { %24372 = vmatprep.subr.bf16.mxu0 %v26238_v0 }
0x21b7   : > { %v12401_v8 = vpop.f32.mrb[132].mxu0 }
0x21b8   : > { %v12402_v39 = vadd.f32 %v12401_v8, %v12280_v44  ;;  %v12403_v12 = vpop.f32.mrb[133].mxu0 }
0x21b9   : > { %v12404_v51 = vadd.f32 %v12403_v12, %v12284_v29  ;;  %v12405_v34 = vpop.f32.mrb[134].mxu0 }
0x21ba   : > { %v12408_v50 = vmax.f32 %v12402_v39, 0.0  ;;  %v12406_v46 = vpop.f32.mrb[135].mxu0 }
0x21bb   : > { %v12409_v54 = vmax.f32 %v12404_v51, 0.0 }
0x21bc   : > { %v12443_v55 = vpack.c.bf16 %v12408_v50, %v12408_v50 }
0x21bd   : > { %v12444_v32 = vpack.c.bf16 %v12409_v54, %v12409_v54 }
0x21bf   : > { %12574 = vmatprep.mubr.bf16.mxu1 %v12444_v32 }
0x21c0   : > { %12575 = vmatmul.mubr.bf16.vlgmr.msra.gmra.mrb[156].mxu1 %v12443_v55 }
0x21c1   : > { %24368 = vmatprep.mubr.msk.bf16.mxu1 %vm26239_vm0, %v26238_v0  ;;  %24367 = vmatpush3.bf16.xpose.msra.mxu1 %v25606_v6 }
0x21c2   : > { %24378 = vmatprep.subr.bf16.mxu1 %v26238_v0 }
0x2293   : > { %v22830_v41 = vpop.f32.mrb[156].mxu1 }
0x2294   : > { %v22831_v17 = vpop.f32.mrb[157].mxu1 }
0x2295   : > { %v22832_v22 = vadd.f32 %v22831_v17, %v22830_v41  ;;  %v22833_v2 = vpop.f32.mrb[158].mxu1 }
0x2296   : > { %v22834_v3 = vpop.f32.mrb[159].mxu1 }
0x2297   : > { %v12577_v61 = vadd.f32 %v22832_v22, %v21925_v28 }
0x2299   : > { %v12582_v35 = vadd.f32 %v12577_v61, %v12255_v15  ;;  %v25622_v15 = vld [vmem:[#allocation4 + $0x488] sm:$0xff]  }
0x229b   : > { %12585 = vadd.xlane.f32.xlu0 %v12582_v35 }
0x2328   : > { %v12586_v16 = vpop.xlane.xlu0 %12585 }
0x2329   : > { %v12587_v5 = vmul.f32 0.0078125, %v12586_v16 }
0x232b   : > { %v12588_v4 = vsub.f32 %v12582_v35, %v12587_v5 }
0x232d   : > { %v12589_v20 = vmul.f32 %v12588_v4, %v12588_v4 }
0x232f   : > { %12590 = vadd.xlane.f32.xlu1 %v12589_v20 }
0x23bc   : > { %v12591_v7 = vpop.xlane.xlu1 %12590 }
0x23bd   : > { %v12592_v9 = vmul.f32 0.0078125, %v12591_v7 }
0x23bf   : > { %v12593_v60 = vadd.f32 1e-05, %v12592_v9 }
0x23c1   : > { %25921 = vrsqrt.f32 %v12593_v60 }
0x23cb   : > { %v25922_v56 = vpop.eup %25921 }
0x23cc   : > { %v12595_v57 = vmul.f32 %v25922_v56, %v12588_v4 }
0x23ce   : > { %v12596_v10 = vmul.f32 %v21942_v18, %v12595_v57 }
0x23d0   : > { %v28298_v43 = vadd.f32 %v21943_v37, %v12596_v10  ;;  %v21985_v37 = vld [vmem:[%s29497_s5 + $0x68] ss:$0 sm:$0xff]  ;;  %v21986_v10 = vld [vmem:[%s29497_s5 + $0x69] ss:$0 sm:$0xff] }
0x23d2   : > { %v28302_v19 = vpack.c.bf16 %v28298_v43, %v28298_v43 }
0x23d4   : > { %24363 = vmatmul.mubr.bf16.vlgmr.msra.gmra.mrb[136].mxu0 %v28302_v19  ;;  %24369 = vmatmul.mubr.bf16.vlgmr.msra.gmra.mrb[160].mxu1 %v28302_v19 }
0x23d5   : > { %24373 = vmatpush3.bf16.xpose.msra.mxu0 %v25607_v33  ;;  %24379 = vmatpush3.bf16.xpose.msra.mxu1 %v25608_v42 }
0x23d6   : > { %24374 = vmatprep.mubr.msk.bf16.mxu0 %vm26239_vm0, %v26238_v0  ;;  %24380 = vmatprep.mubr.msk.bf16.mxu1 %vm26239_vm0, %v26238_v0 }
0x23d7   : > { %24384 = vmatprep.subr.bf16.mxu0 %v26238_v0  ;;  %24390 = vmatprep.subr.bf16.mxu1 %v26238_v0 }
0x23dc   : > { %24375 = vmatmul.mubr.bf16.vlgmr.msra.gmra.mrb[140].mxu0 %v28302_v19  ;;  %24381 = vmatmul.mubr.bf16.vlgmr.msra.gmra.mrb[164].mxu1 %v28302_v19 }
0x23dd   : > { %24385 = vmatpush3.bf16.xpose.msra.mxu0 %v25609_v38  ;;  %24391 = vmatpush3.bf16.xpose.msra.mxu1 %v25610_v62 }
0x23de   : > { %24386 = vmatprep.mubr.msk.bf16.mxu0 %vm26239_vm0, %v26238_v0  ;;  %24392 = vmatprep.mubr.msk.bf16.mxu1 %vm26239_vm0, %v26238_v0 }
0x23df   : > { %24396 = vmatprep.subr.bf16.mxu0 %v26238_v0  ;;  %24402 = vmatprep.subr.bf16.mxu1 %v26238_v0 }
0x23e4   : > { %24387 = vmatmul.mubr.bf16.vlgmr.msra.gmra.mrb[144].mxu0 %v28302_v19  ;;  %24393 = vmatmul.mubr.bf16.vlgmr.msra.gmra.mrb[168].mxu1 %v28302_v19 }
0x23e5   : > { %24397 = vmatpush3.bf16.xpose.msra.mxu0 %v25611_v49  ;;  %24403 = vmatpush3.bf16.xpose.msra.mxu1 %v25612_v23 }
0x23e6   : > { %24398 = vmatprep.mubr.msk.bf16.mxu0 %vm26239_vm0, %v26238_v0  ;;  %24404 = vmatprep.mubr.msk.bf16.mxu1 %vm26239_vm0, %v26238_v0 }
0x23e7   : > { %24408 = vmatprep.subr.bf16.mxu0 %v26238_v0  ;;  %24414 = vmatprep.subr.bf16.mxu1 %v26238_v0 }
0x23ec   : > { %24399 = vmatmul.mubr.bf16.vlgmr.msra.gmra.mrb[148].mxu0 %v28302_v19  ;;  %24405 = vmatmul.mubr.bf16.vlgmr.msra.gmra.mrb[172].mxu1 %v28302_v19 }
0x23ed   : > { %24409 = vmatpush3.bf16.xpose.msra.mxu0 %v25613_v63  ;;  %24415 = vmatpush3.bf16.xpose.msra.mxu1 %v25614_v11 }
0x23ee   : > { %24410 = vmatprep.mubr.msk.bf16.mxu0 %vm26239_vm0, %v26238_v0  ;;  %24416 = vmatprep.mubr.msk.bf16.mxu1 %vm26239_vm0, %v26238_v0 }
0x23ef   : > { %24420 = vmatprep.subr.bf16.mxu0 %v26238_v0  ;;  %24426 = vmatprep.subr.bf16.mxu1 %v26238_v0 }
0x23f4   : > { %24411 = vmatmul.mubr.bf16.vlgmr.msra.gmra.mrb[152].mxu0 %v28302_v19  ;;  %24417 = vmatmul.mubr.bf16.vlgmr.msra.gmra.mrb[176].mxu1 %v28302_v19 }
0x23f5   : > { %24421 = vmatpush3.bf16.xpose.msra.mxu0 %v25615_v26  ;;  %24427 = vmatpush3.bf16.xpose.msra.mxu1 %v25616_v27 }
0x23f6   : > { %24422 = vmatprep.mubr.msk.bf16.mxu0 %vm26239_vm0, %v26238_v0  ;;  %24428 = vmatprep.mubr.msk.bf16.mxu1 %vm26239_vm0, %v26238_v0 }
0x23f7   : > { %24432 = vmatprep.subr.bf16.mxu0 %v26238_v0  ;;  %24438 = vmatprep.subr.bf16.mxu1 %v26238_v0 }
0x23fc   : > { %24423 = vmatmul.mubr.bf16.vlgmr.msra.gmra.mrb[156].mxu0 %v28302_v19  ;;  %24429 = vmatmul.mubr.bf16.vlgmr.msra.gmra.mrb[180].mxu1 %v28302_v19 }
0x23fd   : > { %24433 = vmatpush3.bf16.xpose.msra.mxu0 %v25617_v13  ;;  %24439 = vmatpush3.bf16.xpose.msra.mxu1 %v25618_v52  ;;  %v21969_v52 = vld [vmem:[%s29497_s5 + $0x60] ss:$0 sm:$0xff] }
0x23fe   : > { %24434 = vmatprep.mubr.msk.bf16.mxu0 %vm26239_vm0, %v26238_v0  ;;  %24440 = vmatprep.mubr.msk.bf16.mxu1 %vm26239_vm0, %v26238_v0 }
0x23ff   : > { %24444 = vmatprep.subr.bf16.mxu0 %v26238_v0  ;;  %24450 = vmatprep.subr.bf16.mxu1 %v26238_v0 }
0x2404   : > { %24435 = vmatmul.mubr.bf16.vlgmr.msra.gmra.mrb[160].mxu0 %v28302_v19  ;;  %24441 = vmatmul.mubr.bf16.vlgmr.msra.gmra.mrb[184].mxu1 %v28302_v19 }
0x2405   : > { %24445 = vmatpush3.bf16.xpose.msra.mxu0 %v25619_v30  ;;  %24451 = vmatpush3.bf16.xpose.msra.mxu1 %v25620_v1  ;;  %v21970_v30 = vld [vmem:[%s29497_s5 + $0x61] ss:$0 sm:$0xff] }
0x2406   : > { %24446 = vmatprep.mubr.msk.bf16.mxu0 %vm26239_vm0, %v26238_v0  ;;  %24452 = vmatprep.mubr.msk.bf16.mxu1 %vm26239_vm0, %v26238_v0 }
0x2407   : > { %24456 = vmatprep.subr.bf16.mxu0 %v26238_v0  ;;  %24462 = vmatprep.subr.bf16.mxu1 %v26238_v0 }
0x240c   : > { %24447 = vmatmul.mubr.bf16.vlgmr.msra.gmra.mrb[164].mxu0 %v28302_v19  ;;  %24453 = vmatmul.mubr.bf16.vlgmr.msra.gmra.mrb[188].mxu1 %v28302_v19 }
0x240d   : > { %24457 = vmatpush3.bf16.xpose.msra.mxu0 %v25621_v58  ;;  %24463 = vmatpush3.bf16.xpose.msra.mxu1 %v25622_v15  ;;  %v21987_v15 = vld [vmem:[%s29497_s5 + $0x6a] ss:$0 sm:$0xff] }
0x240e   : > { %24458 = vmatprep.mubr.msk.bf16.mxu0 %vm26239_vm0, %v26238_v0  ;;  %24464 = vmatprep.mubr.msk.bf16.mxu1 %vm26239_vm0, %v26238_v0 }
0x240f   : > { %24468 = vmatprep.subr.bf16.mxu0 %v26238_v0  ;;  %24474 = vmatprep.subr.bf16.mxu1 %v26238_v0 }
0x2414   : > { %24459 = vmatmul.mubr.bf16.vlgmr.msra.gmra.mrb[168].mxu0 %v28302_v19  ;;  %24465 = vmatmul.mubr.bf16.vlgmr.msra.gmra.mrb[192].mxu1 %v28302_v19 }
0x2415   : > { %24469 = vmatpush3.bf16.xpose.msra.mxu0 %v25623_v25  ;;  %24475 = vmatpush3.bf16.xpose.msra.mxu1 %v25624_v40  ;;  %v21988_v25 = vld [vmem:[%s29497_s5 + $0x6b] ss:$0 sm:$0xff] }
0x2416   : > { %24470 = vmatprep.mubr.msk.bf16.mxu0 %vm26239_vm0, %v26238_v0  ;;  %24476 = vmatprep.mubr.msk.bf16.mxu1 %vm26239_vm0, %v26238_v0 }
0x2417   : > { %24480 = vmatprep.subr.bf16.mxu0 %v26238_v0  ;;  %24486 = vmatprep.subr.bf16.mxu1 %v26238_v0 }
0x241c   : > { %24471 = vmatmul.mubr.bf16.vlgmr.msra.gmra.mrb[172].mxu0 %v28302_v19  ;;  %24477 = vmatmul.mubr.bf16.vlgmr.msra.gmra.mrb[196].mxu1 %v28302_v19 }
0x241d   : > { %24481 = vmatpush3.bf16.xpose.msra.mxu0 %v25625_v53  ;;  %24487 = vmatpush3.bf16.xpose.msra.mxu1 %v25626_v36 }
0x241e   : > { %24482 = vmatprep.mubr.msk.bf16.mxu0 %vm26239_vm0, %v26238_v0  ;;  %24488 = vmatprep.mubr.msk.bf16.mxu1 %vm26239_vm0, %v26238_v0 }
0x241f   : > { %24492 = vmatprep.subr.bf16.mxu0 %v26238_v0  ;;  %24498 = vmatprep.subr.bf16.mxu1 %v26238_v0 }
0x2424   : > { %24483 = vmatmul.mubr.bf16.vlgmr.msra.gmra.mrb[176].mxu0 %v28302_v19  ;;  %24489 = vmatmul.mubr.bf16.vlgmr.msra.gmra.mrb[200].mxu1 %v28302_v19 }
0x2425   : > { %24493 = vmatpush3.bf16.xpose.msra.mxu0 %v25627_v24  ;;  %24499 = vmatpush3.bf16.xpose.msra.mxu1 %v25628_v47 }
0x2426   : > { %24494 = vmatprep.mubr.msk.bf16.mxu0 %vm26239_vm0, %v26238_v0  ;;  %24500 = vmatprep.mubr.msk.bf16.mxu1 %vm26239_vm0, %v26238_v0 }
0x2427   : > { %24504 = vmatprep.subr.bf16.mxu0 %v26238_v0  ;;  %24510 = vmatprep.subr.bf16.mxu1 %v26238_v0 }
0x242c   : > { %24495 = vmatmul.mubr.bf16.vlgmr.msra.gmra.mrb[180].mxu0 %v28302_v19  ;;  %24501 = vmatmul.mubr.bf16.vlgmr.msra.gmra.mrb[204].mxu1 %v28302_v19 }
0x242d   : > { %24506 = vmatprep.mubr.msk.bf16.mxu0 %vm26239_vm0, %v26238_v0  ;;  %24512 = vmatprep.mubr.msk.bf16.mxu1 %vm26239_vm0, %v26238_v0 }
0x24a7   : > { %v12783_v44 = vpop.f32.mrb[136].mxu0  ;;  %v12829_v29 = vpop.f32.mrb[160].mxu1 }
0x24a8   : > { %v24364_v8 = vpop.f32.mrb[137].mxu0  ;;  %v24370_v39 = vpop.f32.mrb[161].mxu1  ;;  %v12784_v40 = vadd.f32 %v21969_v52, %v12783_v44  ;;  %v12830_v53 = vadd.f32 %v21970_v30, %v12829_v29  ;;  %v21971_v44 = vld [vmem:[%s29497_s5 + $0x62] ss:$0 sm:$0xff]  ;;  %v21972_v29 = vld [vmem:[%s29497_s5 + $0x63] ss:$0 sm:$0xff] }
0x24a9   : > { %v12786_v12 = vpop.f32.mrb[138].mxu0  ;;  %v12832_v51 = vpop.f32.mrb[162].mxu1 }
0x24aa   : > { %v24365_v34 = vpop.f32.mrb[139].mxu0  ;;  %v24371_v50 = vpop.f32.mrb[163].mxu1 }
0x24ab   : > { %v13943_v50 = vpack.c.bf16 %v12784_v40, %v12784_v40 }
0x24af   : > { %v28398_v46 = vpop.f32.mrb[140].mxu0  ;;  %v28400_v54 = vpop.f32.mrb[164].mxu1 }
0x24b0   : > { %v24376_v32 = vpop.f32.mrb[141].mxu0  ;;  %v24382_v55 = vpop.f32.mrb[165].mxu1 }
0x24b1   : > { %v12878_v41 = vpop.f32.mrb[142].mxu0  ;;  %v12924_v17 = vpop.f32.mrb[166].mxu1  ;;  %v13944_v32 = vpack.c.bf16 %v12830_v53, %v12830_v53 }
0x24b2   : > { %v24377_v28 = vpop.f32.mrb[143].mxu0  ;;  %v24383_v22 = vpop.f32.mrb[167].mxu1 }
0x24b7   : > { %v28402_v2 = vpop.f32.mrb[144].mxu0  ;;  %v28404_v3 = vpop.f32.mrb[168].mxu1 }
0x24b8   : > { %v24388_v61 = vpop.f32.mrb[145].mxu0  ;;  %v24394_v35 = vpop.f32.mrb[169].mxu1 }
0x24b9   : > { %v12970_v16 = vpop.f32.mrb[146].mxu0  ;;  %v13016_v5 = vpop.f32.mrb[170].mxu1  ;;  %v21989_v35 = vld [vmem:[%s29497_s5 + $0x6c] ss:$0 sm:$0xff] }
0x24ba   : > { %v24389_v4 = vpop.f32.mrb[147].mxu0  ;;  %v24395_v20 = vpop.f32.mrb[171].mxu1  ;;  %v21990_v16 = vld [vmem:[%s29497_s5 + $0x6d] ss:$0 sm:$0xff]  ;;  %v12876_v5 = vadd.f32 %v21971_v44, %v28398_v46 }
0x24bb   : > { %v12922_v4 = vadd.f32 %v21972_v29, %v28400_v54 }
0x24bd   : > { %v13946_v54 = vpack.c.bf16 %v12922_v4, %v12922_v4 }
0x24bf   : > { %v28406_v14 = vpop.f32.mrb[148].mxu0  ;;  %v28408_v6 = vpop.f32.mrb[172].mxu1 }
0x24c0   : > { %v24400_v7 = vpop.f32.mrb[149].mxu0  ;;  %v24406_v9 = vpop.f32.mrb[173].mxu1 }
0x24c1   : > { %v13062_v60 = vpop.f32.mrb[150].mxu0  ;;  %v13108_v56 = vpop.f32.mrb[174].mxu1 }
0x24c2   : > { %v24401_v18 = vpop.f32.mrb[151].mxu0  ;;  %v24407_v57 = vpop.f32.mrb[175].mxu1 }
0x24c7   : > { %v13199_v33 = vpop.f32.mrb[152].mxu0  ;;  %v13245_v42 = vpop.f32.mrb[176].mxu1 }
0x24c8   : > { %v13200_v19 = vadd.f32 %v21985_v37, %v13199_v33  ;;  %v13246_v38 = vadd.f32 %v21986_v10, %v13245_v42  ;;  %v24412_v62 = vpop.f32.mrb[153].mxu0  ;;  %v24418_v49 = vpop.f32.mrb[177].mxu1  ;;  %v13945_v37 = vpack.c.bf16 %v12876_v5, %v12876_v5 }
0x24c9   : > { %v13202_v23 = vpop.f32.mrb[154].mxu0  ;;  %v13248_v63 = vpop.f32.mrb[178].mxu1  ;;  %v21974_v62 = vld [vmem:[%s29497_s5 + $0x65] ss:$0 sm:$0xff] }
0x24ca   : > { %v13951_v11 = vpack.c.bf16 %v13200_v19, %v13200_v19  ;;  %v13952_v26 = vpack.c.bf16 %v13246_v38, %v13246_v38  ;;  %v24413_v27 = vpop.f32.mrb[155].mxu0  ;;  %v24419_v13 = vpop.f32.mrb[179].mxu1  ;;  %v21973_v38 = vld [vmem:[%s29497_s5 + $0x64] ss:$0 sm:$0xff]  ;;  %v21991_v63 = vld [vmem:[%s29497_s5 + $0x6e] ss:$0 sm:$0xff] }
0x24cb   : > { %v13014_v27 = vadd.f32 %v21974_v62, %v28404_v3 }
0x24cc   : > { %v13963_v1 = vsel %vm1979_vm1, %v13951_v11, 0  ;;  %v14009_v58 = vsel %vm1979_vm1, %v13952_v26, 0  ;;  %v21992_v11 = vld [vmem:[%s29497_s5 + $0x6f] ss:$0 sm:$0xff]  ;;  %v12968_v26 = vadd.f32 %v21973_v38, %v28402_v2 }
0x24cd   : > { %24505 = vmatpush3.bf16.xpose.msra.mxu0 %v13963_v1  ;;  %24511 = vmatpush3.bf16.xpose.msra.mxu1 %v14009_v58  ;;  %v13948_v3 = vpack.c.bf16 %v13014_v27, %v13014_v27 }
0x24ce   : > { %24516 = vmatprep.subr.bf16.mxu0 %v26238_v0  ;;  %24522 = vmatprep.subr.bf16.mxu1 %v26238_v0  ;;  %v13947_v40 = vpack.c.bf16 %v12968_v26, %v12968_v26 }
0x24cf   : > { %v13291_v36 = vpop.f32.mrb[156].mxu0  ;;  %v13337_v24 = vpop.f32.mrb[180].mxu1 }
0x24d0   : > { %v13292_v47 = vadd.f32 %v21987_v15, %v13291_v36  ;;  %v13338_v8 = vadd.f32 %v21988_v25, %v13337_v24  ;;  %v24424_v39 = vpop.f32.mrb[157].mxu0  ;;  %v24430_v12 = vpop.f32.mrb[181].mxu1 }
0x24d1   : > { %v13294_v51 = vpop.f32.mrb[158].mxu0  ;;  %v13340_v34 = vpop.f32.mrb[182].mxu1  ;;  %v21976_v39 = vld [vmem:[%s29497_s5 + $0x67] ss:$0 sm:$0xff] }
0x24d2   : > { %v13953_v55 = vpack.c.bf16 %v13292_v47, %v13292_v47  ;;  %v13954_v41 = vpack.c.bf16 %v13338_v8, %v13338_v8  ;;  %v24425_v17 = vpop.f32.mrb[159].mxu0  ;;  %v24431_v28 = vpop.f32.mrb[183].mxu1  ;;  %v21975_v8 = vld [vmem:[%s29497_s5 + $0x66] ss:$0 sm:$0xff]  ;;  %v22001_v34 = vld [vmem:[%s29497_s5 + $0x70] ss:$0 sm:$0xff] }
0x24d4   : > { %24507 = vmatmul.mubr.msk.bf16.vlgmr.msra.gmra.mrb[184].mxu0 %vm1979_vm1, %v13943_v50  ;;  %24513 = vmatmul.mubr.msk.bf16.vlgmr.msra.gmra.mrb[208].mxu1 %vm1979_vm1, %v13944_v32  ;;  %v14055_v22 = vsel %vm1979_vm1, %v13953_v55, 0  ;;  %v14101_v61 = vsel %vm1979_vm1, %v13954_v41, 0  ;;  %v22002_v50 = vld [vmem:[%s29497_s5 + $0x71] ss:$0 sm:$0xff]  ;;  %v13060_v32 = vadd.f32 %v21975_v8, %v28406_v14  ;;  %v13106_v55 = vadd.f32 %v21976_v39, %v28408_v6 }
0x24d5   : > { %24517 = vmatpush3.bf16.xpose.msra.mxu0 %v14055_v22  ;;  %24523 = vmatpush3.bf16.xpose.msra.mxu1 %v14101_v61 }
0x24d6   : > { %24518 = vmatprep.mubr.msk.bf16.mxu0 %vm26239_vm0, %v26238_v0  ;;  %24524 = vmatprep.mubr.msk.bf16.mxu1 %vm26239_vm0, %v26238_v0  ;;  %v13950_v6 = vpack.c.bf16 %v13106_v55, %v13106_v55 }
0x24d7   : > { %v13383_v20 = vpop.f32.mrb[160].mxu0  ;;  %v13429_v7 = vpop.f32.mrb[184].mxu1  ;;  %24528 = vmatprep.subr.bf16.mxu0 %v26238_v0  ;;  %24534 = vmatprep.subr.bf16.mxu1 %v26238_v0 }
0x24d8   : > { %v13384_v9 = vadd.f32 %v21989_v35, %v13383_v20  ;;  %v13430_v60 = vadd.f32 %v21990_v16, %v13429_v7  ;;  %v24436_v56 = vpop.f32.mrb[161].mxu0  ;;  %v24442_v18 = vpop.f32.mrb[185].mxu1  ;;  %v13949_v35 = vpack.c.bf16 %v13060_v32, %v13060_v32 }
0x24d9   : > { %v13386_v57 = vpop.f32.mrb[162].mxu0  ;;  %v13432_v46 = vpop.f32.mrb[186].mxu1 }
0x24da   : > { %v13955_v10 = vpack.c.bf16 %v13384_v9, %v13384_v9  ;;  %v13956_v33 = vpack.c.bf16 %v13430_v60, %v13430_v60  ;;  %v24437_v42 = vpop.f32.mrb[163].mxu0  ;;  %v24443_v19 = vpop.f32.mrb[187].mxu1 }
0x24dc   : > { %24519 = vmatmul.mubr.msk.bf16.vlgmr.msra.gmra.mrb[188].mxu0 %vm1979_vm1, %v13945_v37  ;;  %24525 = vmatmul.mubr.msk.bf16.vlgmr.msra.gmra.mrb[212].mxu1 %vm1979_vm1, %v13946_v54  ;;  %v14147_v49 = vsel %vm1979_vm1, %v13955_v10, 0  ;;  %v14193_v23 = vsel %vm1979_vm1, %v13956_v33, 0 }
0x24dd   : > { %24529 = vmatpush3.bf16.xpose.msra.mxu0 %v14147_v49  ;;  %24535 = vmatpush3.bf16.xpose.msra.mxu1 %v14193_v23 }
0x24de   : > { %24530 = vmatprep.mubr.msk.bf16.mxu0 %vm26239_vm0, %v26238_v0  ;;  %24536 = vmatprep.mubr.msk.bf16.mxu1 %vm26239_vm0, %v26238_v0 }
0x24df   : > { %v13475_v13 = vpop.f32.mrb[164].mxu0  ;;  %v13521_v52 = vpop.f32.mrb[188].mxu1  ;;  %24540 = vmatprep.subr.bf16.mxu0 %v26238_v0  ;;  %24546 = vmatprep.subr.bf16.mxu1 %v26238_v0 }
0x24e0   : > { %v13476_v30 = vadd.f32 %v21991_v63, %v13475_v13  ;;  %v13522_v1 = vadd.f32 %v21992_v11, %v13521_v52  ;;  %v24448_v58 = vpop.f32.mrb[165].mxu0  ;;  %v24454_v15 = vpop.f32.mrb[189].mxu1 }
0x24e1   : > { %v13478_v25 = vpop.f32.mrb[166].mxu0  ;;  %v13524_v2 = vpop.f32.mrb[190].mxu1 }
0x24e2   : > { %v13957_v53 = vpack.c.bf16 %v13476_v30, %v13476_v30  ;;  %v13958_v36 = vpack.c.bf16 %v13522_v1, %v13522_v1  ;;  %v24449_v24 = vpop.f32.mrb[167].mxu0  ;;  %v24455_v47 = vpop.f32.mrb[191].mxu1 }
0x24e4   : > { %24531 = vmatmul.mubr.msk.bf16.vlgmr.msra.gmra.mrb[192].mxu0 %vm1979_vm1, %v13947_v40  ;;  %24537 = vmatmul.mubr.msk.bf16.vlgmr.msra.gmra.mrb[216].mxu1 %vm1979_vm1, %v13948_v3  ;;  %v14239_v12 = vsel %vm1979_vm1, %v13957_v53, 0  ;;  %v14285_v51 = vsel %vm1979_vm1, %v13958_v36, 0 }
0x24e5   : > { %24541 = vmatpush3.bf16.xpose.msra.mxu0 %v14239_v12  ;;  %24547 = vmatpush3.bf16.xpose.msra.mxu1 %v14285_v51 }
0x24e6   : > { %24542 = vmatprep.mubr.msk.bf16.mxu0 %vm26239_vm0, %v26238_v0  ;;  %24548 = vmatprep.mubr.msk.bf16.mxu1 %vm26239_vm0, %v26238_v0 }
0x24e7   : > { %v13615_v41 = vpop.f32.mrb[168].mxu0  ;;  %v13661_v17 = vpop.f32.mrb[192].mxu1  ;;  %24552 = vmatprep.subr.bf16.mxu0 %v26238_v0  ;;  %24558 = vmatprep.subr.bf16.mxu1 %v26238_v0 }
0x24e8   : > { %v13616_v28 = vadd.f32 %v22001_v34, %v13615_v41  ;;  %v13662_v44 = vadd.f32 %v22002_v50, %v13661_v17  ;;  %v24460_v29 = vpop.f32.mrb[169].mxu0  ;;  %v24466_v22 = vpop.f32.mrb[193].mxu1 }
0x24e9   : > { %v13618_v61 = vpop.f32.mrb[170].mxu0  ;;  %v13664_v14 = vpop.f32.mrb[194].mxu1 }
0x24ea   : > { %v14423_v16 = vpack.c.bf16 %v13616_v28, %v13616_v28  ;;  %v14424_v5 = vpack.c.bf16 %v13662_v44, %v13662_v44  ;;  %v24461_v4 = vpop.f32.mrb[171].mxu0  ;;  %v24467_v20 = vpop.f32.mrb[195].mxu1 }
0x24ec   : > { %24543 = vmatmul.mubr.msk.bf16.vlgmr.msra.gmra.mrb[196].mxu0 %vm1979_vm1, %v13949_v35  ;;  %24549 = vmatmul.mubr.msk.bf16.vlgmr.msra.gmra.mrb[220].mxu1 %vm1979_vm1, %v13950_v6  ;;  %v14435_v7 = vsel %vm2456_vm2, %v14423_v16, 0  ;;  %v14481_v9 = vsel %vm2456_vm2, %v14424_v5, 0 }
0x24ed   : > { %24553 = vmatpush3.bf16.msra.mxu0 %v14435_v7  ;;  %24559 = vmatpush3.bf16.msra.mxu1 %v14481_v9 }
0x24ee   : > { %24554 = vmatprep.mubr.msk.bf16.mxu0 %vm26239_vm0, %v26238_v0  ;;  %24560 = vmatprep.mubr.msk.bf16.mxu1 %vm26239_vm0, %v26238_v0 }
0x24ef   : > { %v28512_v60 = vpop.f32.mrb[172].mxu0  ;;  %v28514_v56 = vpop.f32.mrb[196].mxu1  ;;  %24564 = vmatprep.subr.bf16.mxu0 %v26238_v0  ;;  %24570 = vmatprep.subr.bf16.mxu1 %v26238_v0 }
0x24f0   : > { %v24472_v18 = vpop.f32.mrb[173].mxu0  ;;  %v24478_v57 = vpop.f32.mrb[197].mxu1 }
0x24f1   : > { %v13710_v46 = vpop.f32.mrb[174].mxu0  ;;  %v13756_v37 = vpop.f32.mrb[198].mxu1 }
0x24f2   : > { %v24473_v54 = vpop.f32.mrb[175].mxu0  ;;  %v24479_v10 = vpop.f32.mrb[199].mxu1 }
0x24f7   : > { %v28518_v33 = vpop.f32.mrb[176].mxu0  ;;  %v28520_v42 = vpop.f32.mrb[200].mxu1 }
0x24f8   : > { %v24484_v19 = vpop.f32.mrb[177].mxu0  ;;  %v24490_v38 = vpop.f32.mrb[201].mxu1 }
0x24f9   : > { %v13802_v62 = vpop.f32.mrb[178].mxu0  ;;  %v13848_v49 = vpop.f32.mrb[202].mxu1 }
0x24fa   : > { %v24485_v23 = vpop.f32.mrb[179].mxu0  ;;  %v24491_v63 = vpop.f32.mrb[203].mxu1 }
0x24ff   : > { %v28522_v11 = vpop.f32.mrb[180].mxu0  ;;  %v28524_v26 = vpop.f32.mrb[204].mxu1 }
0x2500   : > { %v24496_v27 = vpop.f32.mrb[181].mxu0  ;;  %v24502_v13 = vpop.f32.mrb[205].mxu1 }
0x2501   : > { %v13894_v52 = vpop.f32.mrb[182].mxu0  ;;  %v13940_v30 = vpop.f32.mrb[206].mxu1 }
0x2502   : > { %v24497_v1 = vpop.f32.mrb[183].mxu0  ;;  %v24503_v58 = vpop.f32.mrb[207].mxu1 }
0x25a7   : > { %v13999_v15 = vpop.f32.mrb[184].mxu0  ;;  %v14045_v25 = vpop.f32.mrb[208].mxu1 }
0x25a8   : > { %v24508_v2 = vpop.f32.mrb[185].mxu0  ;;  %v24514_v40 = vpop.f32.mrb[209].mxu1  ;;  %v14330_v3 = vsel %vm2348_vm3, %v14045_v25, -inf  ;;  %v14327_v53 = vsel %vm2348_vm3, %v13999_v15, -inf }
0x25a9   : > { %14331 = vmax.xlane.f32.xlu1 %v14330_v3  ;;  %v14048_v36 = vpop.f32.mrb[210].mxu1  ;;  %14328 = vmax.xlane.f32.xlu0 %v14327_v53  ;;  %v14002_v24 = vpop.f32.mrb[186].mxu0 }
0x25aa   : > { %v24509_v47 = vpop.f32.mrb[187].mxu0  ;;  %v24515_v8 = vpop.f32.mrb[211].mxu1 }
0x25af   : > { %v14091_v39 = vpop.f32.mrb[188].mxu0  ;;  %v14137_v12 = vpop.f32.mrb[212].mxu1 }
0x25b0   : > { %v24520_v51 = vpop.f32.mrb[189].mxu0  ;;  %v24526_v34 = vpop.f32.mrb[213].mxu1  ;;  %v14336_v50 = vsel %vm2348_vm3, %v14137_v12, -inf  ;;  %v14333_v32 = vsel %vm2348_vm3, %v14091_v39, -inf }
0x25b1   : > { %14337 = vmax.xlane.f32.xlu1 %v14336_v50  ;;  %v14140_v55 = vpop.f32.mrb[214].mxu1  ;;  %14334 = vmax.xlane.f32.xlu0 %v14333_v32  ;;  %v14094_v41 = vpop.f32.mrb[190].mxu0 }
0x25b2   : > { %v24521_v17 = vpop.f32.mrb[191].mxu0  ;;  %v24527_v28 = vpop.f32.mrb[215].mxu1 }
0x25b7   : > { %v14183_v44 = vpop.f32.mrb[192].mxu0  ;;  %v14229_v29 = vpop.f32.mrb[216].mxu1 }
0x25b8   : > { %v24532_v22 = vpop.f32.mrb[193].mxu0  ;;  %v24538_v61 = vpop.f32.mrb[217].mxu1  ;;  %v14342_v14 = vsel %vm2348_vm3, %v14229_v29, -inf  ;;  %v14339_v35 = vsel %vm2348_vm3, %v14183_v44, -inf }
0x25b9   : > { %14343 = vmax.xlane.f32.xlu1 %v14342_v14  ;;  %v14232_v6 = vpop.f32.mrb[218].mxu1  ;;  %14340 = vmax.xlane.f32.xlu0 %v14339_v35  ;;  %v14186_v16 = vpop.f32.mrb[194].mxu0 }
0x25ba   : > { %v24533_v5 = vpop.f32.mrb[195].mxu0  ;;  %v24539_v4 = vpop.f32.mrb[219].mxu1 }
0x25bf   : > { %v14275_v20 = vpop.f32.mrb[196].mxu0  ;;  %v14321_v7 = vpop.f32.mrb[220].mxu1 }
0x25c0   : > { %v24544_v9 = vpop.f32.mrb[197].mxu0  ;;  %v24550_v18 = vpop.f32.mrb[221].mxu1  ;;  %v14348_v57 = vsel %vm2348_vm3, %v14321_v7, -inf  ;;  %v14345_v46 = vsel %vm2348_vm3, %v14275_v20, -inf }
0x25c1   : > { %14349 = vmax.xlane.f32.xlu1 %v14348_v57  ;;  %v14324_v37 = vpop.f32.mrb[222].mxu1  ;;  %14346 = vmax.xlane.f32.xlu0 %v14345_v46  ;;  %v14278_v54 = vpop.f32.mrb[198].mxu0  ;;  %v22003_v9 = vld [vmem:[%s29497_s5 + $0x72] ss:$0 sm:$0xff] }
0x25c2   : > { %v24545_v10 = vpop.f32.mrb[199].mxu0  ;;  %v24551_v19 = vpop.f32.mrb[223].mxu1  ;;  %v13708_v46 = vadd.f32 %v22003_v9, %v28512_v60 }
0x2636   : > { %v14332_v38 = vpop.xlane.xlu1 %14331  ;;  %v14329_v62 = vpop.xlane.xlu0 %14328 }
0x2637   : > { %v14352_v49 = vsub.f32 %v14045_v25, %v14332_v38  ;;  %v14351_v23 = vsub.f32 %v13999_v15, %v14329_v62  ;;  %v14425_v62 = vpack.c.bf16 %v13708_v46, %v13708_v46  ;;  %v25631_v46 = vld [vmem:[#allocation4 + $0x4d0] sm:$0xff]  }
0x2639   : > { %v14361_v63 = vmul.f32 1.442695, %v14352_v49  ;;  %v14359_v27 = vmul.f32 1.442695, %v14351_v23  ;;  %v22006_v49 = vld [vmem:[%s29497_s5 + $0x75] ss:$0 sm:$0xff] }
0x263a   : > { %v13846_v60 = vadd.f32 %v22006_v49, %v28520_v42 }
0x263b   : > { %25923 = vpow2.f32 %v14361_v63 }
0x263c   : > { %25925 = vpow2.f32 %v14359_v27 }
0x263e   : > { %v14338_v13 = vpop.xlane.xlu1 %14337  ;;  %v14335_v52 = vpop.xlane.xlu0 %14334 }
0x263f   : > { %v14354_v30 = vsub.f32 %v14137_v12, %v14338_v13  ;;  %v14353_v1 = vsub.f32 %v14091_v39, %v14335_v52 }
0x2641   : > { %v14365_v58 = vmul.f32 1.442695, %v14354_v30  ;;  %v14363_v2 = vmul.f32 1.442695, %v14353_v1  ;;  %v14527_v1 = vsel %vm2456_vm2, %v14425_v62, 0 }
0x2643   : > { %25927 = vpow2.f32 %v14365_v58 }
0x2644   : > { %25929 = vpow2.f32 %v14363_v2 }
0x2645   : > { %v25924_v40 = vpop.eup %25923 }
0x2646   : > { %v25926_v3 = vpop.eup %25925  ;;  %v14344_v53 = vpop.xlane.xlu1 %14343  ;;  %v14378_v24 = vsel %vm2348_vm3, %v25924_v40, 0.0 }
0x2647   : > { %v14341_v36 = vpop.xlane.xlu0 %14340  ;;  %v14356_v25 = vsub.f32 %v14229_v29, %v14344_v53  ;;  %14379 = vadd.xlane.f32.xlu1 %v14378_v24  ;;  %v14375_v47 = vsel %vm2348_vm3, %v25926_v3, 0.0  ;;  %v22008_v53 = vld [vmem:[%s29497_s5 + $0x77] ss:$0 sm:$0xff]  ;;  %v22007_v24 = vld [vmem:[%s29497_s5 + $0x76] ss:$0 sm:$0xff] }
0x2648   : > { %v14355_v15 = vsub.f32 %v14183_v44, %v14341_v36  ;;  %14376 = vadd.xlane.f32.xlu0 %v14375_v47 }
0x2649   : > { %v14369_v8 = vmul.f32 1.442695, %v14356_v25 }
0x264a   : > { %v14367_v51 = vmul.f32 1.442695, %v14355_v15 }
0x264b   : > { %25931 = vpow2.f32 %v14369_v8  ;;  %v13938_v8 = vadd.f32 %v22008_v53, %v28524_v26 }
0x264c   : > { %25933 = vpow2.f32 %v14367_v51 }
0x264d   : > { %v28536_v39 = vpop.eup %25927 }
0x264e   : > { %v28538_v12 = vpop.eup %25929  ;;  %v14350_v34 = vpop.xlane.xlu1 %14349  ;;  %v14384_v32 = vsel %vm2348_vm3, %v28536_v39, 0.0 }
0x264f   : > { %v14347_v50 = vpop.xlane.xlu0 %14346  ;;  %v14358_v55 = vsub.f32 %v14321_v7, %v14350_v34  ;;  %14385 = vadd.xlane.f32.xlu1 %v14384_v32  ;;  %v14381_v17 = vsel %vm2348_vm3, %v28538_v12, 0.0  ;;  %v22004_v7 = vld [vmem:[%s29497_s5 + $0x73] ss:$0 sm:$0xff]  ;;  %v13892_v34 = vadd.f32 %v22007_v24, %v28522_v11  ;;  %v14430_v32 = vpack.c.bf16 %v13938_v8, %v13938_v8 }
0x2650   : > { %v14357_v41 = vsub.f32 %v14275_v20, %v14347_v50  ;;  %14382 = vadd.xlane.f32.xlu0 %v14381_v17  ;;  %v13754_v18 = vadd.f32 %v22004_v7, %v28514_v56  ;;  %v22005_v56 = vld [vmem:[%s29497_s5 + $0x74] ss:$0 sm:$0xff] }
0x2651   : > { %v14373_v28 = vmul.f32 1.442695, %v14358_v55  ;;  %v13800_v30 = vadd.f32 %v22005_v56, %v28518_v33  ;;  %v14428_v33 = vpack.c.bf16 %v13846_v60, %v13846_v60  ;;  %v14429_v55 = vpack.c.bf16 %v13892_v34, %v13892_v34  ;;  %v25633_v60 = vld [vmem:[#allocation4 + $0x4e0] sm:$0xff]  }
0x2652   : > { %v14371_v44 = vmul.f32 1.442695, %v14357_v41  ;;  %v14426_v19 = vpack.c.bf16 %v13754_v18, %v13754_v18 }
0x2653   : > { %25935 = vpow2.f32 %v14373_v28  ;;  %v14665_v47 = vsel %vm2456_vm2, %v14428_v33, 0  ;;  %v25636_v33 = vld [vmem:[#allocation4 + $0x4f8] sm:$0xff]  }
0x2654   : > { %25937 = vpow2.f32 %v14371_v44  ;;  %v14573_v13 = vsel %vm2456_vm2, %v14426_v19, 0  ;;  %v14757_v44 = vsel %vm2456_vm2, %v14430_v32, 0 }
0x2655   : > { %v28544_v29 = vpop.eup %25931 }
0x2656   : > { %v28546_v22 = vpop.eup %25933  ;;  %v14390_v61 = vsel %vm2348_vm3, %v28544_v29, 0.0 }
0x2657   : > { %14391 = vadd.xlane.f32.xlu1 %v14390_v61  ;;  %v14387_v14 = vsel %vm2348_vm3, %v28546_v22, 0.0  ;;  %v14711_v61 = vsel %vm2456_vm2, %v14429_v55, 0 }
0x2658   : > { %14388 = vadd.xlane.f32.xlu0 %v14387_v14 }
0x265d   : > { %v28552_v35 = vpop.eup %25935 }
0x265e   : > { %v28554_v6 = vpop.eup %25937  ;;  %v14396_v16 = vsel %vm2348_vm3, %v28552_v35, 0.0 }
0x265f   : > { %14397 = vadd.xlane.f32.xlu1 %v14396_v16  ;;  %v14393_v5 = vsel %vm2348_vm3, %v28554_v6, 0.0 }
0x2660   : > { %14394 = vadd.xlane.f32.xlu0 %v14393_v5  ;;  %v25630_v5 = vld [vmem:[#allocation4 + $0x4c8] sm:$0xff]  }
0x26d4   : > { %v14380_v4 = vpop.xlane.xlu1 %14379 }
0x26d5   : > { %25939 = vrcp.f32 %v14380_v4  ;;  %v14377_v20 = vpop.xlane.xlu0 %14376 }
0x26d6   : > { %25941 = vrcp.f32 %v14377_v20  ;;  %v25629_v20 = vld [vmem:[#allocation4 + $0x4c0] sm:$0xff]  }
0x26dc   : > { %v14386_v57 = vpop.xlane.xlu1 %14385 }
0x26dd   : > { %25943 = vrcp.f32 %v14386_v57  ;;  %v14383_v37 = vpop.xlane.xlu0 %14382 }
0x26de   : > { %25945 = vrcp.f32 %v14383_v37 }
0x26df   : > { %v25940_v54 = vpop.eup %25939 }
0x26e0   : > { %v25942_v10 = vpop.eup %25941  ;;  %v14408_v38 = vmul.f32 %v25940_v54, %v25924_v40 }
0x26e1   : > { %v14407_v23 = vmul.f32 %v25942_v10, %v25926_v3  ;;  %v14427_v3 = vpack.c.bf16 %v13800_v30, %v13800_v30 }
0x26e2   : > { %v14416_v63 = vpack.c.bf16 %v14408_v38, %v14408_v38 }
0x26e3   : > { %v14415_v27 = vpack.c.bf16 %v14407_v23, %v14407_v23  ;;  %v25634_v23 = vld [vmem:[#allocation4 + $0x4e8] sm:$0xff]  }
0x26e4   : > { %24561 = vmatmul.mubr.msk.bf16.vlgmr.msra.gmra.mrb[224].mxu1 %vm2348_vm3, %v14416_v63  ;;  %v14392_v52 = vpop.xlane.xlu1 %14391 }
0x26e5   : > { %24571 = vmatpush3.bf16.msra.mxu1 %v14573_v13  ;;  %25947 = vrcp.f32 %v14392_v52  ;;  %24555 = vmatmul.mubr.msk.bf16.vlgmr.msra.gmra.mrb[200].mxu0 %vm2348_vm3, %v14415_v27  ;;  %v14389_v58 = vpop.xlane.xlu0 %14388 }
0x26e6   : > { %24565 = vmatpush3.bf16.msra.mxu0 %v14527_v1  ;;  %25949 = vrcp.f32 %v14389_v58  ;;  %24566 = vmatprep.mubr.msk.bf16.mxu0 %vm26239_vm0, %v26238_v0 }
0x26e7   : > { %v25944_v42 = vpop.eup %25943  ;;  %24572 = vmatprep.mubr.msk.bf16.mxu1 %vm26239_vm0, %v26238_v0  ;;  %24576 = vmatprep.subr.bf16.mxu0 %v26238_v0 }
0x26e8   : > { %v25946_v2 = vpop.eup %25945  ;;  %v14410_v40 = vmul.f32 %v25944_v42, %v28536_v39  ;;  %24582 = vmatprep.subr.bf16.mxu1 %v26238_v0  ;;  %v14619_v39 = vsel %vm2456_vm2, %v14427_v3, 0 }
0x26e9   : > { %v14409_v36 = vmul.f32 %v25946_v2, %v28538_v12 }
0x26ea   : > { %v14418_v25 = vpack.c.bf16 %v14410_v40, %v14410_v40 }
0x26eb   : > { %v14417_v15 = vpack.c.bf16 %v14409_v36, %v14409_v36  ;;  %v25635_v36 = vld [vmem:[#allocation4 + $0x4f0] sm:$0xff]  }
0x26ec   : > { %24573 = vmatmul.mubr.msk.bf16.vlgmr.msra.gmra.mrb[228].mxu1 %vm2348_vm3, %v14418_v25  ;;  %v14398_v51 = vpop.xlane.xlu1 %14397 }
0x26ed   : > { %24583 = vmatpush3.bf16.msra.mxu1 %v14665_v47  ;;  %25951 = vrcp.f32 %v14398_v51  ;;  %24567 = vmatmul.mubr.msk.bf16.vlgmr.msra.gmra.mrb[204].mxu0 %vm2348_vm3, %v14417_v15  ;;  %v14395_v12 = vpop.xlane.xlu0 %14394 }
0x26ee   : > { %24577 = vmatpush3.bf16.msra.mxu0 %v14619_v39  ;;  %25953 = vrcp.f32 %v14395_v12  ;;  %24578 = vmatprep.mubr.msk.bf16.mxu0 %vm26239_vm0, %v26238_v0 }
0x26ef   : > { %v25948_v50 = vpop.eup %25947  ;;  %24584 = vmatprep.mubr.msk.bf16.mxu1 %vm26239_vm0, %v26238_v0  ;;  %24588 = vmatprep.subr.bf16.mxu0 %v26238_v0 }
0x26f0   : > { %v25950_v26 = vpop.eup %25949  ;;  %v14412_v11 = vmul.f32 %v25948_v50, %v28544_v29  ;;  %24594 = vmatprep.subr.bf16.mxu1 %v26238_v0 }
0x26f1   : > { %v14411_v41 = vmul.f32 %v25950_v26, %v28546_v22 }
0x26f2   : > { %v14420_v17 = vpack.c.bf16 %v14412_v11, %v14412_v11 }
0x26f3   : > { %v14419_v28 = vpack.c.bf16 %v14411_v41, %v14411_v41 }
0x26f4   : > { %24585 = vmatmul.mubr.msk.bf16.vlgmr.msra.gmra.mrb[232].mxu1 %vm2348_vm3, %v14420_v17 }
0x26f5   : > { %24579 = vmatmul.mubr.msk.bf16.vlgmr.msra.gmra.mrb[208].mxu0 %vm2348_vm3, %v14419_v28  ;;  %24595 = vmatpush3.bf16.msra.mxu1 %v14757_v44 }
0x26f6   : > { %24589 = vmatpush3.bf16.msra.mxu0 %v14711_v61  ;;  %24590 = vmatprep.mubr.msk.bf16.mxu0 %vm26239_vm0, %v26238_v0 }
0x26f7   : > { %v25952_v29 = vpop.eup %25951  ;;  %24596 = vmatprep.mubr.msk.bf16.mxu1 %vm26239_vm0, %v26238_v0  ;;  %24600 = vmatprep.subr.bf16.mxu0 %v26238_v0 }
0x26f8   : > { %v25954_v22 = vpop.eup %25953  ;;  %v14414_v14 = vmul.f32 %v25952_v29, %v28552_v35  ;;  %24606 = vmatprep.subr.bf16.mxu1 %v26238_v0 }
0x26f9   : > { %v14413_v16 = vmul.f32 %v25954_v22, %v28554_v6  ;;  %v25632_v6 = vld [vmem:[#allocation4 + $0x4d8] sm:$0xff]  }
0x26fa   : > { %v14422_v4 = vpack.c.bf16 %v14414_v14, %v14414_v14 }
0x26fb   : > { %v14421_v7 = vpack.c.bf16 %v14413_v16, %v14413_v16 }
0x26fc   : > { %24597 = vmatmul.mubr.msk.bf16.vlgmr.msra.gmra.mrb[236].mxu1 %vm2348_vm3, %v14422_v4 }
0x26fd   : > { %24591 = vmatmul.mubr.msk.bf16.vlgmr.msra.gmra.mrb[212].mxu0 %vm2348_vm3, %v14421_v7  ;;  %24607 = vmatpush3.bf16.msra.mxu1 %v25630_v5 }
0x26fe   : > { %24601 = vmatpush3.bf16.msra.mxu0 %v25629_v20  ;;  %24602 = vmatprep.mubr.msk.bf16.mxu0 %vm26239_vm0, %v26238_v0 }
0x26ff   : > { %24608 = vmatprep.mubr.msk.bf16.mxu1 %vm26239_vm0, %v26238_v0  ;;  %24612 = vmatprep.subr.bf16.mxu0 %v26238_v0 }
0x2700   : > { %24618 = vmatprep.subr.bf16.mxu1 %v26238_v0 }
0x27b7   : > { %v14517_v35 = vpop.f32.mrb[224].mxu1 }
0x27b8   : > { %v14471_v9 = vpop.f32.mrb[200].mxu0  ;;  %v14800_v18 = vpack.c.bf16 %v14517_v35, %v14517_v35  ;;  %v24562_v57 = vpop.f32.mrb[225].mxu1 }
0x27b9   : > { %v14799_v37 = vpack.c.bf16 %v14471_v9, %v14471_v9  ;;  %v24556_v54 = vpop.f32.mrb[201].mxu0  ;;  %v14520_v10 = vpop.f32.mrb[226].mxu1 }
0x27ba   : > { %v14474_v19 = vpop.f32.mrb[202].mxu0  ;;  %v24563_v38 = vpop.f32.mrb[227].mxu1  ;;  %24609 = vmatmul.mubr.msk.bf16.vlgmr.msra.gmra.mrb[240].mxu1 %vm1979_vm1, %v14800_v18 }
0x27bb   : > { %v24557_v62 = vpop.f32.mrb[203].mxu0  ;;  %24603 = vmatmul.mubr.msk.bf16.vlgmr.msra.gmra.mrb[216].mxu0 %vm1979_vm1, %v14799_v37  ;;  %24619 = vmatpush3.bf16.msra.mxu1 %v25632_v6 }
0x27bc   : > { %24613 = vmatpush3.bf16.msra.mxu0 %v25631_v46  ;;  %24614 = vmatprep.mubr.msk.bf16.mxu0 %vm26239_vm0, %v26238_v0 }
0x27bd   : > { %24620 = vmatprep.mubr.msk.bf16.mxu1 %vm26239_vm0, %v26238_v0  ;;  %24624 = vmatprep.subr.bf16.mxu0 %v26238_v0 }
0x27be   : > { %24630 = vmatprep.subr.bf16.mxu1 %v26238_v0 }
0x27bf   : > { %v14609_v49 = vpop.f32.mrb[228].mxu1 }
0x27c0   : > { %v14563_v56 = vpop.f32.mrb[204].mxu0  ;;  %v14802_v63 = vpack.c.bf16 %v14609_v49, %v14609_v49  ;;  %v24574_v27 = vpop.f32.mrb[229].mxu1 }
0x27c1   : > { %v14801_v13 = vpack.c.bf16 %v14563_v56, %v14563_v56  ;;  %v24568_v52 = vpop.f32.mrb[205].mxu0  ;;  %v14612_v30 = vpop.f32.mrb[230].mxu1 }
0x27c2   : > { %v14566_v1 = vpop.f32.mrb[206].mxu0  ;;  %v24575_v58 = vpop.f32.mrb[231].mxu1  ;;  %24621 = vmatmul.mubr.msk.bf16.vlgmr.msra.gmra.mrb[244].mxu1 %vm1979_vm1, %v14802_v63 }
0x27c3   : > { %v24569_v42 = vpop.f32.mrb[207].mxu0  ;;  %24615 = vmatmul.mubr.msk.bf16.vlgmr.msra.gmra.mrb[220].mxu0 %vm1979_vm1, %v14801_v13  ;;  %24631 = vmatpush3.bf16.msra.mxu1 %v25634_v23 }
0x27c4   : > { %24625 = vmatpush3.bf16.msra.mxu0 %v25633_v60  ;;  %24626 = vmatprep.mubr.msk.bf16.mxu0 %vm26239_vm0, %v26238_v0 }
0x27c5   : > { %24632 = vmatprep.mubr.msk.bf16.mxu1 %vm26239_vm0, %v26238_v0  ;;  %24636 = vmatprep.subr.bf16.mxu0 %v26238_v0 }
0x27c6   : > { %24642 = vmatprep.subr.bf16.mxu1 %v26238_v0 }
0x27c7   : > { %v14701_v2 = vpop.f32.mrb[232].mxu1 }
0x27c8   : > { %v14655_v40 = vpop.f32.mrb[208].mxu0  ;;  %v14804_v3 = vpack.c.bf16 %v14701_v2, %v14701_v2  ;;  %v24586_v53 = vpop.f32.mrb[233].mxu1  ;;  %v21968_v2 = vld [vmem:[%s29500_s8 + $0x34] ss:$0 sm:$0xff] }
0x27c9   : > { %v14803_v24 = vpack.c.bf16 %v14655_v40, %v14655_v40  ;;  %v24580_v25 = vpop.f32.mrb[209].mxu0  ;;  %v14704_v15 = vpop.f32.mrb[234].mxu1 }
0x27ca   : > { %v14658_v47 = vpop.f32.mrb[210].mxu0  ;;  %v24587_v8 = vpop.f32.mrb[235].mxu1  ;;  %24633 = vmatmul.mubr.msk.bf16.vlgmr.msra.gmra.mrb[248].mxu1 %vm1979_vm1, %v14804_v3  ;;  %v25637_v25 = vld [vmem:[%s29498_s6 + $0x200] ss:$8 sps:$4 sm:$0xff]   ;;  %v25639_v15 = vld [vmem:[%s29498_s6 + $0x204] ss:$8 sps:$4 sm:$0xff]  }
0x27cb   : > { %v24581_v51 = vpop.f32.mrb[211].mxu0  ;;  %24627 = vmatmul.mubr.msk.bf16.vlgmr.msra.gmra.mrb[224].mxu0 %vm1979_vm1, %v14803_v24  ;;  %24643 = vmatpush3.bf16.msra.mxu1 %v25636_v33  ;;  %v25642_v47 = vld [vmem:[%s29498_s6 + $0x214] ss:$8 sps:$4 sm:$0xff]   ;;  %v25640_v8 = vld [vmem:[%s29498_s6 + $0x210] ss:$8 sps:$4 sm:$0xff]  }
0x27cc   : > { %24637 = vmatpush3.bf16.msra.mxu0 %v25635_v36  ;;  %24638 = vmatprep.mubr.msk.bf16.mxu0 %vm26239_vm0, %v26238_v0  ;;  %v25643_v51 = vld [vmem:[%s29498_s6 + $0x220] ss:$8 sps:$4 sm:$0xff]  }
0x27cd   : > { %24644 = vmatprep.mubr.msk.bf16.mxu1 %vm26239_vm0, %v26238_v0  ;;  %15334 = vmatprep.subr.bf16.mxu0 %v25639_v15 }
0x27cf   : > { %v14793_v39 = vpop.f32.mrb[236].mxu1 }
0x27d0   : > { %v14747_v34 = vpop.f32.mrb[212].mxu0  ;;  %v14806_v12 = vpack.c.bf16 %v14793_v39, %v14793_v39  ;;  %v24598_v50 = vpop.f32.mrb[237].mxu1 }
0x27d1   : > { %v14805_v26 = vpack.c.bf16 %v14747_v34, %v14747_v34  ;;  %v24592_v32 = vpop.f32.mrb[213].mxu0  ;;  %v14796_v11 = vpop.f32.mrb[238].mxu1 }
0x27d2   : > { %v14750_v55 = vpop.f32.mrb[214].mxu0  ;;  %v24599_v41 = vpop.f32.mrb[239].mxu1  ;;  %24645 = vmatmul.mubr.msk.bf16.vlgmr.msra.gmra.mrb[252].mxu1 %vm1979_vm1, %v14806_v12  ;;  %v25646_v32 = vld [vmem:[%s29498_s6 + $0x230] ss:$8 sps:$4 sm:$0xff]   ;;  %v25651_v11 = vld [vmem:[%s29498_s6 + $0x244] ss:$8 sps:$4 sm:$0xff]  }
0x27d3   : > { %v24593_v17 = vpop.f32.mrb[215].mxu0  ;;  %24639 = vmatmul.mubr.msk.bf16.vlgmr.msra.gmra.mrb[228].mxu0 %vm1979_vm1, %v14805_v26  ;;  %v25648_v26 = vld [vmem:[%s29498_s6 + $0x234] ss:$8 sps:$4 sm:$0xff]   ;;  %v25649_v55 = vld [vmem:[%s29498_s6 + $0x240] ss:$8 sps:$4 sm:$0xff]  }
0x27d4   : > { %15366 = vmatprep.mubr.bf16.mxu0 %v26240_v21  ;;  %15335 = vmatpush1.bf16.msra.mxu0 %v25637_v25  ;;  %v25654_v41 = vld [vmem:[%s29498_s6 + $0x254] ss:$8 sps:$4 sm:$0xff]   ;;  %v25652_v17 = vld [vmem:[%s29498_s6 + $0x250] ss:$8 sps:$4 sm:$0xff]  }
0x27d5   : > { %15336 = vmatprep.subr.bf16.mxu0 %v25642_v47  ;;  %v22084_v47 = vld [vmem:[%s29500_s8 + $0x45] ss:$0 sm:$0xff] }
0x27d8   : > { %15337 = vmatpush1.bf16.msra.mxu0 %v25640_v8 }
0x288d   : > { %v14899_v28 = vpop.f32.mrb[240].mxu1 }
0x288e   : > { %v14850_v44 = vpop.f32.mrb[216].mxu0  ;;  %v24610_v61 = vpop.f32.mrb[241].mxu1 }
0x288f   : > { %v15199_v29 = vadd.f32 %v14899_v28, %v14850_v44  ;;  %v24604_v22 = vpop.f32.mrb[217].mxu0  ;;  %v14902_v14 = vpop.f32.mrb[242].mxu1  ;;  %v25657_v28 = vld [vmem:[%s29498_s6 + $0x264] ss:$8 sps:$4 sm:$0xff]   ;;  %v25655_v44 = vld [vmem:[%s29498_s6 + $0x260] ss:$8 sps:$4 sm:$0xff]  }
0x2890   : > { %v14853_v16 = vpop.f32.mrb[218].mxu0  ;;  %v24611_v5 = vpop.f32.mrb[243].mxu1  ;;  %v25660_v61 = vld [vmem:[%s29498_s6 + $0x274] ss:$8 sps:$4 sm:$0xff]   ;;  %v25661_v22 = vld [vmem:[#allocation6 + $0x240] sm:$0xff]  }
0x2891   : > { %v24605_v4 = vpop.f32.mrb[219].mxu0  ;;  %v25662_v14 = vld [vmem:[#allocation6 + $0x200] sm:$0xff]   ;;  %v25663_v16 = vld [vmem:[#allocation6 + $0x248] sm:$0xff]   ;;  %22932 = vmatprep.subr.bf16.mxu1 %v25661_v22 }
0x2892   : > { %22933 = vmatpush3.bf16.msra.mxu1 %v25662_v14  ;;  %v25664_v5 = vld [vmem:[#allocation6 + $0x208] sm:$0xff]   ;;  %v25665_v4 = vld [vmem:[#allocation6 + $0x250] sm:$0xff]   ;;  %v22102_v14 = vld [vmem:[%s29500_s8 + $0x3e] ss:$0 sm:$0xff] }
0x2893   : > { %22934 = vmatprep.subr.bf16.mxu1 %v25663_v16 }
0x2895   : > { %v14997_v20 = vpop.f32.mrb[244].mxu1 }
0x2896   : > { %v14948_v7 = vpop.f32.mrb[220].mxu0  ;;  %v24622_v35 = vpop.f32.mrb[245].mxu1  ;;  %22935 = vmatpush3.bf16.msra.mxu1 %v25664_v5 }
0x2897   : > { %v15200_v6 = vadd.f32 %v15199_v29, %v14948_v7  ;;  %v24616_v9 = vpop.f32.mrb[221].mxu0  ;;  %v15000_v18 = vpop.f32.mrb[246].mxu1  ;;  %v25658_v29 = vld [vmem:[%s29498_s6 + $0x270] ss:$8 sps:$4 sm:$0xff]   ;;  %22936 = vmatprep.subr.bf16.mxu1 %v25665_v4 }
0x2898   : > { %v14951_v57 = vpop.f32.mrb[222].mxu0  ;;  %v24623_v46 = vpop.f32.mrb[247].mxu1  ;;  %v25667_v7 = vld [vmem:[#allocation6 + $0x258] sm:$0xff]   ;;  %v25670_v9 = vld [vmem:[#allocation6 + $0x220] sm:$0xff]   ;;  %v25671_v18 = vld [vmem:[#allocation6 + $0x268] sm:$0xff]  }
0x2899   : > { %v15201_v37 = vadd.f32 %v15200_v6, %v14997_v20  ;;  %v24617_v54 = vpop.f32.mrb[223].mxu0  ;;  %v25666_v20 = vld [vmem:[#allocation6 + $0x210] sm:$0xff]   ;;  %v25668_v35 = vld [vmem:[#allocation6 + $0x218] sm:$0xff]   ;;  %v25669_v6 = vld [vmem:[#allocation6 + $0x260] sm:$0xff]  }
0x289a   : > { %22937 = vmatpush3.bf16.msra.mxu1 %v25666_v20  ;;  %v25672_v57 = vld [vmem:[#allocation6 + $0x228] sm:$0xff]   ;;  %v25679_v4 = vld [vmem:[#allocation4 + $0x510] sm:$0xff]   ;;  %v25680_v20 = vld [vmem:[#allocation4 + $0x518] sm:$0xff]  }
0x289b   : > { %22938 = vmatprep.subr.bf16.mxu1 %v25667_v7 }
0x289d   : > { %v15095_v10 = vpop.f32.mrb[248].mxu1 }
0x289e   : > { %v15046_v19 = vpop.f32.mrb[224].mxu0  ;;  %v24634_v38 = vpop.f32.mrb[249].mxu1  ;;  %22939 = vmatpush3.bf16.msra.mxu1 %v25668_v35  ;;  %v25681_v35 = vld [vmem:[#allocation4 + $0x520] sm:$0xff]  }
0x289f   : > { %v15202_v62 = vadd.f32 %v15201_v37, %v15046_v19  ;;  %v24628_v49 = vpop.f32.mrb[225].mxu0  ;;  %v15098_v23 = vpop.f32.mrb[250].mxu1  ;;  %22940 = vmatprep.subr.bf16.mxu1 %v25669_v6  ;;  %v22049_v19 = vld [vmem:[%s29500_s8 + $0x3c] ss:$0 sm:$0xff]  ;;  %v25682_v6 = vld [vmem:[#allocation4 + $0x528] sm:$0xff]  }
0x28a0   : > { %v15049_v56 = vpop.f32.mrb[226].mxu0  ;;  %v24635_v63 = vpop.f32.mrb[251].mxu1 }
0x28a1   : > { %v15203_v27 = vadd.f32 %v15202_v62, %v15095_v10  ;;  %v24629_v60 = vpop.f32.mrb[227].mxu0  ;;  %v22050_v62 = vld [vmem:[%s29500_s8 + $0x44] ss:$0 sm:$0xff]  ;;  %v25673_v63 = vld [vmem:[#allocation6 + $0x270] sm:$0xff]  }
0x28a2   : > { %22941 = vmatpush3.bf16.msra.mxu1 %v25670_v9  ;;  %v25675_v60 = vld [vmem:[#allocation6 + $0x278] sm:$0xff]   ;;  %v25683_v9 = vld [vmem:[#allocation4 + $0x530] sm:$0xff]  }
0x28a3   : > { %22942 = vmatprep.subr.bf16.mxu1 %v25671_v18  ;;  %v25684_v18 = vld [vmem:[#allocation4 + $0x538] sm:$0xff]  }
0x28a5   : > { %v15193_v13 = vpop.f32.mrb[252].mxu1 }
0x28a6   : > { %v15144_v52 = vpop.f32.mrb[228].mxu0  ;;  %v24646_v30 = vpop.f32.mrb[253].mxu1  ;;  %22943 = vmatpush3.bf16.msra.mxu1 %v25672_v57  ;;  %v25685_v57 = vld [vmem:[#allocation4 + $0x540] sm:$0xff]  }
0x28a7   : > { %v15204_v1 = vadd.f32 %v15203_v27, %v15144_v52  ;;  %v24640_v58 = vpop.f32.mrb[229].mxu0  ;;  %v15196_v42 = vpop.f32.mrb[254].mxu1  ;;  %v25674_v27 = vld [vmem:[#allocation6 + $0x230] sm:$0xff]   ;;  %22944 = vmatprep.subr.bf16.mxu1 %v25673_v63  ;;  %v25696_v63 = vld [vmem:[#allocation4 + $0x598] sm:$0xff]  }
0x28a8   : > { %v15147_v33 = vpop.f32.mrb[230].mxu0  ;;  %v24647_v40 = vpop.f32.mrb[255].mxu1  ;;  %v22067_v52 = vld [vmem:[%s29500_s8 + $0x35] ss:$8 sm:$0x3] }
0x28a9   : > { %v15205_v3 = vadd.f32 %v15204_v1, %v15193_v13  ;;  %v24641_v53 = vpop.f32.mrb[231].mxu0  ;;  %v25676_v13 = vld [vmem:[#allocation6 + $0x238] sm:$0xff]   ;;  %v15247_v30 = vrot.slane %v22067_v52, %v26953_v45  ;;  %v15251_v1 = vrot.slane %v22067_v52, %v26958_v59 }
0x28aa   : > { %22945 = vmatpush3.bf16.msra.mxu1 %v25674_v27  ;;  %v25697_v27 = vld [vmem:[#allocation4 + $0x5a0] sm:$0xff]   ;;  %v25700_v52 = vld [vmem:[#allocation4 + $0x5b8] sm:$0xff]  }
0x28ab   : > { %v15206_v36 = vadd.f32 %v21968_v2, %v15205_v3  ;;  %22946 = vmatprep.subr.bf16.mxu1 %v25675_v60  ;;  %v25698_v60 = vld [vmem:[#allocation4 + $0x5a8] sm:$0xff]  }
0x28ad   : > { %v15207_v24 = vadd.f32 %v15206_v36, %v28298_v43  ;;  %v25645_v43 = vld [vmem:[%s29498_s6 + $0x224] ss:$8 sps:$4 sm:$0xff]  }
0x28ae   : > { %15338 = vmatprep.subr.bf16.mxu0 %v25645_v43  ;;  %22947 = vmatpush3.bf16.msra.mxu1 %v25676_v13  ;;  %v25699_v13 = vld [vmem:[#allocation4 + $0x5b0] sm:$0xff]  }
0x28af   : > { %15210 = vadd.xlane.f32.xlu0 %v15207_v24  ;;  %15339 = vmatpush1.bf16.msra.mxu0 %v25643_v51 }
0x28b0   : > { %15340 = vmatprep.subr.bf16.mxu0 %v25648_v26  ;;  %24654 = vmatprep.subr.bf16.mxu1 %v26238_v0 }
0x28b3   : > { %15341 = vmatpush1.bf16.msra.mxu0 %v25646_v32 }
0x28b4   : > { %15342 = vmatprep.subr.bf16.mxu0 %v25651_v11 }
0x28b7   : > { %15343 = vmatpush1.bf16.msra.mxu0 %v25649_v55  ;;  %v25677_v55 = vld [vmem:[#allocation4 + $0x500] sm:$0xff]  }
0x28b8   : > { %15344 = vmatprep.subr.bf16.mxu0 %v25654_v41  ;;  %v25678_v41 = vld [vmem:[#allocation4 + $0x508] sm:$0xff]  }
0x28bb   : > { %15345 = vmatpush1.bf16.msra.mxu0 %v25652_v17 }
0x28bc   : > { %15346 = vmatprep.subr.bf16.mxu0 %v25657_v28 }
0x28bf   : > { %15347 = vmatpush1.bf16.msra.mxu0 %v25655_v44 }
0x28c0   : > { %15348 = vmatprep.subr.bf16.mxu0 %v25660_v61 }
0x28c3   : > { %15349 = vmatpush1.bf16.msra.mxu0 %v25658_v29  ;;  %v22101_v29 = vld [vmem:[%s29500_s8 + $0x36] ss:$0 sm:$0xff] }
0x28c4   : > { %24648 = vmatprep.subr.bf16.mxu0 %v26238_v0 }
0x293c   : > { %v15211_v39 = vpop.xlane.xlu0 %15210 }
0x293d   : > { %v15212_v34 = vmul.f32 0.0078125, %v15211_v39 }
0x293f   : > { %v15213_v12 = vsub.f32 %v15207_v24, %v15212_v34 }
0x2941   : > { %v15214_v50 = vmul.f32 %v15213_v12, %v15213_v12 }
0x2943   : > { %15215 = vadd.xlane.f32.xlu1 %v15214_v50 }
0x29d0   : > { %v15216_v46 = vpop.xlane.xlu1 %15215 }
0x29d1   : > { %v15217_v37 = vmul.f32 0.0078125, %v15216_v46  ;;  %v25686_v46 = vld [vmem:[#allocation4 + $0x548] sm:$0xff]  }
0x29d3   : > { %v15218_v54 = vadd.f32 1e-05, %v15217_v37  ;;  %v25687_v37 = vld [vmem:[#allocation4 + $0x550] sm:$0xff]  }
0x29d5   : > { %25955 = vrsqrt.f32 %v15218_v54  ;;  %v25688_v54 = vld [vmem:[#allocation4 + $0x558] sm:$0xff]  }
0x29df   : > { %v25956_v10 = vpop.eup %25955 }
0x29e0   : > { %v15220_v38 = vmul.f32 %v25956_v10, %v15213_v12  ;;  %v25689_v10 = vld [vmem:[#allocation4 + $0x560] sm:$0xff]  }
0x29e2   : > { %v15221_v49 = vmul.f32 %v22049_v19, %v15220_v38  ;;  %v25690_v19 = vld [vmem:[#allocation4 + $0x568] sm:$0xff]   ;;  %v25691_v38 = vld [vmem:[#allocation4 + $0x570] sm:$0xff]  }
0x29e4   : > { %v15222_v23 = vadd.f32 %v22050_v62, %v15221_v49  ;;  %v25692_v62 = vld [vmem:[#allocation4 + $0x578] sm:$0xff]   ;;  %v25693_v49 = vld [vmem:[#allocation4 + $0x580] sm:$0xff]  }
0x29e6   : > { %v15240_v56 = vpack.c.bf16 %v15222_v23, %v15222_v23 }
0x29e8   : > { %15367 = vmatmul.mubr.bf16.vlgmr.msra.gmra.mrb[232].mxu0 %v15240_v56  ;;  %v25695_v56 = vld [vmem:[#allocation4 + $0x590] sm:$0xff]  }
0x29e9   : > { %24650 = vmatprep.mubr.msk.bf16.mxu0 %vm26239_vm0, %v26238_v0  ;;  %24649 = vmatpush3.bf16.xpose.msra.mxu0 %v25677_v55 }
0x29ea   : > { %24660 = vmatprep.subr.bf16.mxu0 %v26238_v0 }
0x2abb   : > { %v15368_v58 = vpop.f32.mrb[232].mxu0 }
0x2abc   : > { %v15369_v42 = vadd.f32 %v15368_v58, %v15247_v30  ;;  %v15370_v2 = vpop.f32.mrb[233].mxu0 }
0x2abd   : > { %v15371_v33 = vadd.f32 %v15370_v2, %v15251_v1  ;;  %v15372_v40 = vpop.f32.mrb[234].mxu0 }
0x2abe   : > { %v15375_v3 = vmax.f32 %v15369_v42, 0.0  ;;  %v15373_v53 = vpop.f32.mrb[235].mxu0 }
0x2abf   : > { %v15376_v36 = vmax.f32 %v15371_v33, 0.0 }
0x2ac0   : > { %v15410_v25 = vpack.c.bf16 %v15375_v3, %v15375_v3 }
0x2ac1   : > { %v15411_v24 = vpack.c.bf16 %v15376_v36, %v15376_v36 }
0x2ac3   : > { %15541 = vmatprep.mubr.bf16.mxu1 %v15411_v24 }
0x2ac4   : > { %15542 = vmatmul.mubr.bf16.vlgmr.msra.gmra.mrb[0].mxu1 %v15410_v25 }
0x2ac5   : > { %24656 = vmatprep.mubr.msk.bf16.mxu1 %vm26239_vm0, %v26238_v0  ;;  %24655 = vmatpush3.bf16.xpose.msra.mxu1 %v25678_v41 }
0x2ac6   : > { %24666 = vmatprep.subr.bf16.mxu1 %v26238_v0 }
0x2b97   : > { %v22948_v15 = vpop.f32.mrb[0].mxu1 }
0x2b98   : > { %v22949_v8 = vpop.f32.mrb[1].mxu1 }
0x2b99   : > { %v22950_v43 = vadd.f32 %v22949_v8, %v22948_v15  ;;  %v22951_v51 = vpop.f32.mrb[2].mxu1 }
0x2b9a   : > { %v22952_v39 = vpop.f32.mrb[3].mxu1 }
0x2b9b   : > { %v15544_v34 = vadd.f32 %v22950_v43, %v22084_v47 }
0x2b9d   : > { %v15549_v12 = vadd.f32 %v15544_v34, %v15222_v23  ;;  %v25694_v23 = vld [vmem:[#allocation4 + $0x588] sm:$0xff]  }
0x2b9f   : > { %15552 = vadd.xlane.f32.xlu0 %v15549_v12 }
0x2c2c   : > { %v15553_v50 = vpop.xlane.xlu0 %15552 }
0x2c2d   : > { %v15554_v26 = vmul.f32 0.0078125, %v15553_v50 }
0x2c2f   : > { %v15555_v32 = vsub.f32 %v15549_v12, %v15554_v26 }
0x2c31   : > { %v15556_v11 = vmul.f32 %v15555_v32, %v15555_v32 }
0x2c33   : > { %15557 = vadd.xlane.f32.xlu1 %v15556_v11 }
0x2cc0   : > { %v15558_v17 = vpop.xlane.xlu1 %15557 }
0x2cc1   : > { %v15559_v28 = vmul.f32 0.0078125, %v15558_v17 }
0x2cc3   : > { %v15560_v44 = vadd.f32 1e-05, %v15559_v28 }
0x2cc5   : > { %25957 = vrsqrt.f32 %v15560_v44 }
0x2ccf   : > { %v25958_v61 = vpop.eup %25957 }
0x2cd0   : > { %v15562_v22 = vmul.f32 %v25958_v61, %v15555_v32 }
0x2cd2   : > { %v15563_v16 = vmul.f32 %v22101_v29, %v15562_v22 }
0x2cd4   : > { %v28733_v5 = vadd.f32 %v22102_v14, %v15563_v16  ;;  %v22144_v14 = vld [vmem:[%s29497_s5 + $0x80] ss:$0 sm:$0xff]  ;;  %v22145_v16 = vld [vmem:[%s29497_s5 + $0x81] ss:$0 sm:$0xff] }
0x2cd6   : > { %v28737_v7 = vpack.c.bf16 %v28733_v5, %v28733_v5 }
0x2cd8   : > { %24651 = vmatmul.mubr.bf16.vlgmr.msra.gmra.mrb[236].mxu0 %v28737_v7  ;;  %24657 = vmatmul.mubr.bf16.vlgmr.msra.gmra.mrb[4].mxu1 %v28737_v7 }
0x2cd9   : > { %24661 = vmatpush3.bf16.xpose.msra.mxu0 %v25679_v4  ;;  %24667 = vmatpush3.bf16.xpose.msra.mxu1 %v25680_v20 }
0x2cda   : > { %24662 = vmatprep.mubr.msk.bf16.mxu0 %vm26239_vm0, %v26238_v0  ;;  %24668 = vmatprep.mubr.msk.bf16.mxu1 %vm26239_vm0, %v26238_v0 }
0x2cdb   : > { %24672 = vmatprep.subr.bf16.mxu0 %v26238_v0  ;;  %24678 = vmatprep.subr.bf16.mxu1 %v26238_v0 }
0x2ce0   : > { %24663 = vmatmul.mubr.bf16.vlgmr.msra.gmra.mrb[240].mxu0 %v28737_v7  ;;  %24669 = vmatmul.mubr.bf16.vlgmr.msra.gmra.mrb[8].mxu1 %v28737_v7 }
0x2ce1   : > { %24673 = vmatpush3.bf16.xpose.msra.mxu0 %v25681_v35  ;;  %24679 = vmatpush3.bf16.xpose.msra.mxu1 %v25682_v6 }
0x2ce2   : > { %24674 = vmatprep.mubr.msk.bf16.mxu0 %vm26239_vm0, %v26238_v0  ;;  %24680 = vmatprep.mubr.msk.bf16.mxu1 %vm26239_vm0, %v26238_v0 }
0x2ce3   : > { %24684 = vmatprep.subr.bf16.mxu0 %v26238_v0  ;;  %24690 = vmatprep.subr.bf16.mxu1 %v26238_v0 }
0x2ce8   : > { %24675 = vmatmul.mubr.bf16.vlgmr.msra.gmra.mrb[244].mxu0 %v28737_v7  ;;  %24681 = vmatmul.mubr.bf16.vlgmr.msra.gmra.mrb[12].mxu1 %v28737_v7 }
0x2ce9   : > { %24685 = vmatpush3.bf16.xpose.msra.mxu0 %v25683_v9  ;;  %24691 = vmatpush3.bf16.xpose.msra.mxu1 %v25684_v18 }
0x2cea   : > { %24686 = vmatprep.mubr.msk.bf16.mxu0 %vm26239_vm0, %v26238_v0  ;;  %24692 = vmatprep.mubr.msk.bf16.mxu1 %vm26239_vm0, %v26238_v0 }
0x2ceb   : > { %24696 = vmatprep.subr.bf16.mxu0 %v26238_v0  ;;  %24702 = vmatprep.subr.bf16.mxu1 %v26238_v0 }
0x2cf0   : > { %24687 = vmatmul.mubr.bf16.vlgmr.msra.gmra.mrb[248].mxu0 %v28737_v7  ;;  %24693 = vmatmul.mubr.bf16.vlgmr.msra.gmra.mrb[16].mxu1 %v28737_v7 }
0x2cf1   : > { %24697 = vmatpush3.bf16.xpose.msra.mxu0 %v25685_v57  ;;  %24703 = vmatpush3.bf16.xpose.msra.mxu1 %v25686_v46 }
0x2cf2   : > { %24698 = vmatprep.mubr.msk.bf16.mxu0 %vm26239_vm0, %v26238_v0  ;;  %24704 = vmatprep.mubr.msk.bf16.mxu1 %vm26239_vm0, %v26238_v0 }
0x2cf3   : > { %24708 = vmatprep.subr.bf16.mxu0 %v26238_v0  ;;  %24714 = vmatprep.subr.bf16.mxu1 %v26238_v0 }
0x2cf8   : > { %24699 = vmatmul.mubr.bf16.vlgmr.msra.gmra.mrb[252].mxu0 %v28737_v7  ;;  %24705 = vmatmul.mubr.bf16.vlgmr.msra.gmra.mrb[20].mxu1 %v28737_v7 }
0x2cf9   : > { %24709 = vmatpush3.bf16.xpose.msra.mxu0 %v25687_v37  ;;  %24715 = vmatpush3.bf16.xpose.msra.mxu1 %v25688_v54 }
0x2cfa   : > { %24710 = vmatprep.mubr.msk.bf16.mxu0 %vm26239_vm0, %v26238_v0  ;;  %24716 = vmatprep.mubr.msk.bf16.mxu1 %vm26239_vm0, %v26238_v0 }
0x2cfb   : > { %24720 = vmatprep.subr.bf16.mxu0 %v26238_v0  ;;  %24726 = vmatprep.subr.bf16.mxu1 %v26238_v0 }
0x2d00   : > { %24711 = vmatmul.mubr.bf16.vlgmr.msra.gmra.mrb[0].mxu0 %v28737_v7  ;;  %24717 = vmatmul.mubr.bf16.vlgmr.msra.gmra.mrb[24].mxu1 %v28737_v7 }
0x2d01   : > { %24721 = vmatpush3.bf16.xpose.msra.mxu0 %v25689_v10  ;;  %24727 = vmatpush3.bf16.xpose.msra.mxu1 %v25690_v19  ;;  %v22128_v19 = vld [vmem:[%s29497_s5 + $0x78] ss:$0 sm:$0xff] }
0x2d02   : > { %24722 = vmatprep.mubr.msk.bf16.mxu0 %vm26239_vm0, %v26238_v0  ;;  %24728 = vmatprep.mubr.msk.bf16.mxu1 %vm26239_vm0, %v26238_v0 }
0x2d03   : > { %24732 = vmatprep.subr.bf16.mxu0 %v26238_v0  ;;  %24738 = vmatprep.subr.bf16.mxu1 %v26238_v0 }
0x2d08   : > { %24723 = vmatmul.mubr.bf16.vlgmr.msra.gmra.mrb[4].mxu0 %v28737_v7  ;;  %24729 = vmatmul.mubr.bf16.vlgmr.msra.gmra.mrb[28].mxu1 %v28737_v7 }
0x2d09   : > { %24733 = vmatpush3.bf16.xpose.msra.mxu0 %v25691_v38  ;;  %24739 = vmatpush3.bf16.xpose.msra.mxu1 %v25692_v62  ;;  %v22129_v38 = vld [vmem:[%s29497_s5 + $0x79] ss:$0 sm:$0xff] }
0x2d0a   : > { %24734 = vmatprep.mubr.msk.bf16.mxu0 %vm26239_vm0, %v26238_v0  ;;  %24740 = vmatprep.mubr.msk.bf16.mxu1 %vm26239_vm0, %v26238_v0 }
0x2d0b   : > { %24744 = vmatprep.subr.bf16.mxu0 %v26238_v0  ;;  %24750 = vmatprep.subr.bf16.mxu1 %v26238_v0 }
0x2d10   : > { %24735 = vmatmul.mubr.bf16.vlgmr.msra.gmra.mrb[8].mxu0 %v28737_v7  ;;  %24741 = vmatmul.mubr.bf16.vlgmr.msra.gmra.mrb[32].mxu1 %v28737_v7 }
0x2d11   : > { %24745 = vmatpush3.bf16.xpose.msra.mxu0 %v25693_v49  ;;  %24751 = vmatpush3.bf16.xpose.msra.mxu1 %v25694_v23  ;;  %v22146_v23 = vld [vmem:[%s29497_s5 + $0x82] ss:$0 sm:$0xff] }
0x2d12   : > { %24746 = vmatprep.mubr.msk.bf16.mxu0 %vm26239_vm0, %v26238_v0  ;;  %24752 = vmatprep.mubr.msk.bf16.mxu1 %vm26239_vm0, %v26238_v0 }
0x2d13   : > { %24756 = vmatprep.subr.bf16.mxu0 %v26238_v0  ;;  %24762 = vmatprep.subr.bf16.mxu1 %v26238_v0 }
0x2d18   : > { %24747 = vmatmul.mubr.bf16.vlgmr.msra.gmra.mrb[12].mxu0 %v28737_v7  ;;  %24753 = vmatmul.mubr.bf16.vlgmr.msra.gmra.mrb[36].mxu1 %v28737_v7 }
0x2d19   : > { %24757 = vmatpush3.bf16.xpose.msra.mxu0 %v25695_v56  ;;  %24763 = vmatpush3.bf16.xpose.msra.mxu1 %v25696_v63  ;;  %v22147_v56 = vld [vmem:[%s29497_s5 + $0x83] ss:$0 sm:$0xff] }
0x2d1a   : > { %24758 = vmatprep.mubr.msk.bf16.mxu0 %vm26239_vm0, %v26238_v0  ;;  %24764 = vmatprep.mubr.msk.bf16.mxu1 %vm26239_vm0, %v26238_v0 }
0x2d1b   : > { %24768 = vmatprep.subr.bf16.mxu0 %v26238_v0  ;;  %24774 = vmatprep.subr.bf16.mxu1 %v26238_v0 }
0x2d20   : > { %24759 = vmatmul.mubr.bf16.vlgmr.msra.gmra.mrb[16].mxu0 %v28737_v7  ;;  %24765 = vmatmul.mubr.bf16.vlgmr.msra.gmra.mrb[40].mxu1 %v28737_v7 }
0x2d21   : > { %24769 = vmatpush3.bf16.xpose.msra.mxu0 %v25697_v27  ;;  %24775 = vmatpush3.bf16.xpose.msra.mxu1 %v25698_v60 }
0x2d22   : > { %24770 = vmatprep.mubr.msk.bf16.mxu0 %vm26239_vm0, %v26238_v0  ;;  %24776 = vmatprep.mubr.msk.bf16.mxu1 %vm26239_vm0, %v26238_v0 }
0x2d23   : > { %24780 = vmatprep.subr.bf16.mxu0 %v26238_v0  ;;  %24786 = vmatprep.subr.bf16.mxu1 %v26238_v0 }
0x2d28   : > { %24771 = vmatmul.mubr.bf16.vlgmr.msra.gmra.mrb[20].mxu0 %v28737_v7  ;;  %24777 = vmatmul.mubr.bf16.vlgmr.msra.gmra.mrb[44].mxu1 %v28737_v7 }
0x2d29   : > { %24781 = vmatpush3.bf16.xpose.msra.mxu0 %v25699_v13  ;;  %24787 = vmatpush3.bf16.xpose.msra.mxu1 %v25700_v52 }
0x2d2a   : > { %24782 = vmatprep.mubr.msk.bf16.mxu0 %vm26239_vm0, %v26238_v0  ;;  %24788 = vmatprep.mubr.msk.bf16.mxu1 %vm26239_vm0, %v26238_v0 }
0x2d2b   : > { %24792 = vmatprep.subr.bf16.mxu0 %v26238_v0  ;;  %24798 = vmatprep.subr.bf16.mxu1 %v26238_v0 }
0x2d30   : > { %24783 = vmatmul.mubr.bf16.vlgmr.msra.gmra.mrb[24].mxu0 %v28737_v7  ;;  %24789 = vmatmul.mubr.bf16.vlgmr.msra.gmra.mrb[48].mxu1 %v28737_v7 }
0x2d31   : > { %24794 = vmatprep.mubr.msk.bf16.mxu0 %vm26239_vm0, %v26238_v0  ;;  %24800 = vmatprep.mubr.msk.bf16.mxu1 %vm26239_vm0, %v26238_v0 }
0x2dab   : > { %v15750_v30 = vpop.f32.mrb[236].mxu0  ;;  %v15796_v1 = vpop.f32.mrb[4].mxu1 }
0x2dac   : > { %v24652_v58 = vpop.f32.mrb[237].mxu0  ;;  %v24658_v42 = vpop.f32.mrb[5].mxu1  ;;  %v15751_v63 = vadd.f32 %v22128_v19, %v15750_v30  ;;  %v15797_v27 = vadd.f32 %v22129_v38, %v15796_v1  ;;  %v22130_v30 = vld [vmem:[%s29497_s5 + $0x7a] ss:$0 sm:$0xff]  ;;  %v22131_v1 = vld [vmem:[%s29497_s5 + $0x7b] ss:$0 sm:$0xff] }
0x2dad   : > { %v15753_v2 = vpop.f32.mrb[238].mxu0  ;;  %v15799_v33 = vpop.f32.mrb[6].mxu1 }
0x2dae   : > { %v24653_v40 = vpop.f32.mrb[239].mxu0  ;;  %v24659_v3 = vpop.f32.mrb[7].mxu1 }
0x2daf   : > { %v16910_v3 = vpack.c.bf16 %v15751_v63, %v15751_v63 }
0x2db3   : > { %v28833_v53 = vpop.f32.mrb[240].mxu0  ;;  %v28835_v36 = vpop.f32.mrb[8].mxu1 }
0x2db4   : > { %v24664_v24 = vpop.f32.mrb[241].mxu0  ;;  %v24670_v25 = vpop.f32.mrb[9].mxu1 }
0x2db5   : > { %v15845_v15 = vpop.f32.mrb[242].mxu0  ;;  %v15891_v47 = vpop.f32.mrb[10].mxu1  ;;  %v16911_v24 = vpack.c.bf16 %v15797_v27, %v15797_v27 }
0x2db6   : > { %v24665_v8 = vpop.f32.mrb[243].mxu0  ;;  %v24671_v43 = vpop.f32.mrb[11].mxu1 }
0x2dbb   : > { %v28837_v51 = vpop.f32.mrb[244].mxu0  ;;  %v28839_v39 = vpop.f32.mrb[12].mxu1 }
0x2dbc   : > { %v24676_v34 = vpop.f32.mrb[245].mxu0  ;;  %v24682_v12 = vpop.f32.mrb[13].mxu1 }
0x2dbd   : > { %v15937_v50 = vpop.f32.mrb[246].mxu0  ;;  %v15983_v26 = vpop.f32.mrb[14].mxu1  ;;  %v22148_v12 = vld [vmem:[%s29497_s5 + $0x84] ss:$0 sm:$0xff] }
0x2dbe   : > { %v24677_v32 = vpop.f32.mrb[247].mxu0  ;;  %v24683_v11 = vpop.f32.mrb[15].mxu1  ;;  %v22149_v50 = vld [vmem:[%s29497_s5 + $0x85] ss:$0 sm:$0xff]  ;;  %v15843_v26 = vadd.f32 %v22130_v30, %v28833_v53 }
0x2dbf   : > { %v15889_v32 = vadd.f32 %v22131_v1, %v28835_v36 }
0x2dc1   : > { %v16913_v36 = vpack.c.bf16 %v15889_v32, %v15889_v32 }
0x2dc3   : > { %v28841_v55 = vpop.f32.mrb[248].mxu0  ;;  %v28843_v41 = vpop.f32.mrb[16].mxu1 }
0x2dc4   : > { %v24688_v17 = vpop.f32.mrb[249].mxu0  ;;  %v24694_v28 = vpop.f32.mrb[17].mxu1 }
0x2dc5   : > { %v16029_v44 = vpop.f32.mrb[250].mxu0  ;;  %v16075_v61 = vpop.f32.mrb[18].mxu1 }
0x2dc6   : > { %v24689_v29 = vpop.f32.mrb[251].mxu0  ;;  %v24695_v22 = vpop.f32.mrb[19].mxu1 }
0x2dcb   : > { %v16166_v4 = vpop.f32.mrb[252].mxu0  ;;  %v16212_v20 = vpop.f32.mrb[20].mxu1 }
0x2dcc   : > { %v16167_v7 = vadd.f32 %v22144_v14, %v16166_v4  ;;  %v16213_v35 = vadd.f32 %v22145_v16, %v16212_v20  ;;  %v24700_v6 = vpop.f32.mrb[253].mxu0  ;;  %v24706_v9 = vpop.f32.mrb[21].mxu1  ;;  %v16912_v14 = vpack.c.bf16 %v15843_v26, %v15843_v26 }
0x2dcd   : > { %v16169_v18 = vpop.f32.mrb[254].mxu0  ;;  %v16215_v57 = vpop.f32.mrb[22].mxu1  ;;  %v22133_v6 = vld [vmem:[%s29497_s5 + $0x7d] ss:$0 sm:$0xff] }
0x2dce   : > { %v16918_v46 = vpack.c.bf16 %v16167_v7, %v16167_v7  ;;  %v16919_v37 = vpack.c.bf16 %v16213_v35, %v16213_v35  ;;  %v24701_v54 = vpop.f32.mrb[255].mxu0  ;;  %v24707_v10 = vpop.f32.mrb[23].mxu1  ;;  %v22132_v35 = vld [vmem:[%s29497_s5 + $0x7c] ss:$0 sm:$0xff]  ;;  %v22150_v57 = vld [vmem:[%s29497_s5 + $0x86] ss:$0 sm:$0xff] }
0x2dcf   : > { %v15981_v54 = vadd.f32 %v22133_v6, %v28839_v39 }
0x2dd0   : > { %v16930_v62 = vsel %vm1979_vm1, %v16918_v46, 0  ;;  %v16976_v49 = vsel %vm1979_vm1, %v16919_v37, 0  ;;  %v22151_v46 = vld [vmem:[%s29497_s5 + $0x87] ss:$0 sm:$0xff]  ;;  %v15935_v37 = vadd.f32 %v22132_v35, %v28837_v51 }
0x2dd1   : > { %24793 = vmatpush3.bf16.xpose.msra.mxu0 %v16930_v62  ;;  %24799 = vmatpush3.bf16.xpose.msra.mxu1 %v16976_v49  ;;  %v16915_v39 = vpack.c.bf16 %v15981_v54, %v15981_v54 }
0x2dd2   : > { %24804 = vmatprep.subr.bf16.mxu0 %v26238_v0  ;;  %24810 = vmatprep.subr.bf16.mxu1 %v26238_v0  ;;  %v16914_v63 = vpack.c.bf16 %v15935_v37, %v15935_v37 }
0x2dd3   : > { %v16258_v60 = vpop.f32.mrb[0].mxu0  ;;  %v16304_v13 = vpop.f32.mrb[24].mxu1 }
0x2dd4   : > { %v16259_v52 = vadd.f32 %v22146_v23, %v16258_v60  ;;  %v16305_v58 = vadd.f32 %v22147_v56, %v16304_v13  ;;  %v24712_v42 = vpop.f32.mrb[1].mxu0  ;;  %v24718_v2 = vpop.f32.mrb[25].mxu1 }
0x2dd5   : > { %v16261_v33 = vpop.f32.mrb[2].mxu0  ;;  %v16307_v40 = vpop.f32.mrb[26].mxu1  ;;  %v22135_v42 = vld [vmem:[%s29497_s5 + $0x7f] ss:$0 sm:$0xff] }
0x2dd6   : > { %v16920_v25 = vpack.c.bf16 %v16259_v52, %v16259_v52  ;;  %v16921_v15 = vpack.c.bf16 %v16305_v58, %v16305_v58  ;;  %v24713_v47 = vpop.f32.mrb[3].mxu0  ;;  %v24719_v8 = vpop.f32.mrb[27].mxu1  ;;  %v22134_v58 = vld [vmem:[%s29497_s5 + $0x7e] ss:$0 sm:$0xff]  ;;  %v22160_v40 = vld [vmem:[%s29497_s5 + $0x88] ss:$0 sm:$0xff] }
0x2dd8   : > { %v17022_v43 = vsel %vm1979_vm1, %v16920_v25, 0  ;;  %v17068_v34 = vsel %vm1979_vm1, %v16921_v15, 0  ;;  %24795 = vmatmul.mubr.msk.bf16.vlgmr.msra.gmra.mrb[28].mxu0 %vm1979_vm1, %v16910_v3  ;;  %24801 = vmatmul.mubr.msk.bf16.vlgmr.msra.gmra.mrb[52].mxu1 %vm1979_vm1, %v16911_v24  ;;  %v22161_v3 = vld [vmem:[%s29497_s5 + $0x89] ss:$0 sm:$0xff]  ;;  %v16027_v24 = vadd.f32 %v22134_v58, %v28841_v55  ;;  %v16073_v25 = vadd.f32 %v22135_v42, %v28843_v41 }
0x2dd9   : > { %24805 = vmatpush3.bf16.xpose.msra.mxu0 %v17022_v43  ;;  %24811 = vmatpush3.bf16.xpose.msra.mxu1 %v17068_v34 }
0x2dda   : > { %24806 = vmatprep.mubr.msk.bf16.mxu0 %vm26239_vm0, %v26238_v0  ;;  %24812 = vmatprep.mubr.msk.bf16.mxu1 %vm26239_vm0, %v26238_v0  ;;  %v16917_v41 = vpack.c.bf16 %v16073_v25, %v16073_v25 }
0x2ddb   : > { %v16350_v11 = vpop.f32.mrb[4].mxu0  ;;  %v16396_v17 = vpop.f32.mrb[28].mxu1  ;;  %24816 = vmatprep.subr.bf16.mxu0 %v26238_v0  ;;  %24822 = vmatprep.subr.bf16.mxu1 %v26238_v0 }
0x2ddc   : > { %v16351_v28 = vadd.f32 %v22148_v12, %v16350_v11  ;;  %v16397_v44 = vadd.f32 %v22149_v50, %v16396_v17  ;;  %v24724_v61 = vpop.f32.mrb[5].mxu0  ;;  %v24730_v29 = vpop.f32.mrb[29].mxu1  ;;  %v16916_v12 = vpack.c.bf16 %v16027_v24, %v16027_v24 }
0x2ddd   : > { %v16353_v22 = vpop.f32.mrb[6].mxu0  ;;  %v16399_v53 = vpop.f32.mrb[30].mxu1 }
0x2dde   : > { %v16922_v16 = vpack.c.bf16 %v16351_v28, %v16351_v28  ;;  %v16923_v4 = vpack.c.bf16 %v16397_v44, %v16397_v44  ;;  %v24725_v20 = vpop.f32.mrb[7].mxu0  ;;  %v24731_v7 = vpop.f32.mrb[31].mxu1 }
0x2de0   : > { %v17114_v9 = vsel %vm1979_vm1, %v16922_v16, 0  ;;  %v17160_v18 = vsel %vm1979_vm1, %v16923_v4, 0  ;;  %24807 = vmatmul.mubr.msk.bf16.vlgmr.msra.gmra.mrb[32].mxu0 %vm1979_vm1, %v16912_v14  ;;  %24813 = vmatmul.mubr.msk.bf16.vlgmr.msra.gmra.mrb[56].mxu1 %vm1979_vm1, %v16913_v36 }
0x2de1   : > { %24817 = vmatpush3.bf16.xpose.msra.mxu0 %v17114_v9  ;;  %24823 = vmatpush3.bf16.xpose.msra.mxu1 %v17160_v18 }
0x2de2   : > { %24818 = vmatprep.mubr.msk.bf16.mxu0 %vm26239_vm0, %v26238_v0  ;;  %24824 = vmatprep.mubr.msk.bf16.mxu1 %vm26239_vm0, %v26238_v0 }
0x2de3   : > { %v16442_v10 = vpop.f32.mrb[8].mxu0  ;;  %v16488_v19 = vpop.f32.mrb[32].mxu1  ;;  %24828 = vmatprep.subr.bf16.mxu0 %v26238_v0  ;;  %24834 = vmatprep.subr.bf16.mxu1 %v26238_v0 }
0x2de4   : > { %v16443_v38 = vadd.f32 %v22150_v57, %v16442_v10  ;;  %v16489_v62 = vadd.f32 %v22151_v46, %v16488_v19  ;;  %v24736_v49 = vpop.f32.mrb[9].mxu0  ;;  %v24742_v23 = vpop.f32.mrb[33].mxu1 }
0x2de5   : > { %v16445_v56 = vpop.f32.mrb[10].mxu0  ;;  %v16491_v51 = vpop.f32.mrb[34].mxu1 }
0x2de6   : > { %v16924_v27 = vpack.c.bf16 %v16443_v38, %v16443_v38  ;;  %v16925_v60 = vpack.c.bf16 %v16489_v62, %v16489_v62  ;;  %v24737_v13 = vpop.f32.mrb[11].mxu0  ;;  %v24743_v52 = vpop.f32.mrb[35].mxu1 }
0x2de8   : > { %v17206_v2 = vsel %vm1979_vm1, %v16924_v27, 0  ;;  %v17252_v33 = vsel %vm1979_vm1, %v16925_v60, 0  ;;  %24819 = vmatmul.mubr.msk.bf16.vlgmr.msra.gmra.mrb[36].mxu0 %vm1979_vm1, %v16914_v63  ;;  %24825 = vmatmul.mubr.msk.bf16.vlgmr.msra.gmra.mrb[60].mxu1 %vm1979_vm1, %v16915_v39 }
0x2de9   : > { %24829 = vmatpush3.bf16.xpose.msra.mxu0 %v17206_v2  ;;  %24835 = vmatpush3.bf16.xpose.msra.mxu1 %v17252_v33 }
0x2dea   : > { %24830 = vmatprep.mubr.msk.bf16.mxu0 %vm26239_vm0, %v26238_v0  ;;  %24836 = vmatprep.mubr.msk.bf16.mxu1 %vm26239_vm0, %v26238_v0 }
0x2deb   : > { %v16582_v15 = vpop.f32.mrb[12].mxu0  ;;  %v16628_v47 = vpop.f32.mrb[36].mxu1  ;;  %24840 = vmatprep.subr.bf16.mxu0 %v26238_v0  ;;  %24846 = vmatprep.subr.bf16.mxu1 %v26238_v0 }
0x2dec   : > { %v16583_v8 = vadd.f32 %v22160_v40, %v16582_v15  ;;  %v16629_v30 = vadd.f32 %v22161_v3, %v16628_v47  ;;  %v24748_v1 = vpop.f32.mrb[13].mxu0  ;;  %v24754_v43 = vpop.f32.mrb[37].mxu1 }
0x2ded   : > { %v16585_v34 = vpop.f32.mrb[14].mxu0  ;;  %v16631_v55 = vpop.f32.mrb[38].mxu1 }
0x2dee   : > { %v17390_v50 = vpack.c.bf16 %v16583_v8, %v16583_v8  ;;  %v17391_v26 = vpack.c.bf16 %v16629_v30, %v16629_v30  ;;  %v24749_v32 = vpop.f32.mrb[15].mxu0  ;;  %v24755_v11 = vpop.f32.mrb[39].mxu1 }
0x2df0   : > { %v17402_v17 = vsel %vm2456_vm2, %v17390_v50, 0  ;;  %v17448_v28 = vsel %vm2456_vm2, %v17391_v26, 0  ;;  %24831 = vmatmul.mubr.msk.bf16.vlgmr.msra.gmra.mrb[40].mxu0 %vm1979_vm1, %v16916_v12  ;;  %24837 = vmatmul.mubr.msk.bf16.vlgmr.msra.gmra.mrb[64].mxu1 %vm1979_vm1, %v16917_v41 }
0x2df1   : > { %24841 = vmatpush3.bf16.msra.mxu0 %v17402_v17  ;;  %24847 = vmatpush3.bf16.msra.mxu1 %v17448_v28 }
0x2df2   : > { %24842 = vmatprep.mubr.msk.bf16.mxu0 %vm26239_vm0, %v26238_v0  ;;  %24848 = vmatprep.mubr.msk.bf16.mxu1 %vm26239_vm0, %v26238_v0 }
0x2df3   : > { %v28947_v44 = vpop.f32.mrb[16].mxu0  ;;  %v28949_v61 = vpop.f32.mrb[40].mxu1  ;;  %24852 = vmatprep.subr.bf16.mxu0 %v26238_v0  ;;  %24858 = vmatprep.subr.bf16.mxu1 %v26238_v0 }
0x2df4   : > { %v24760_v29 = vpop.f32.mrb[17].mxu0  ;;  %v24766_v22 = vpop.f32.mrb[41].mxu1 }
0x2df5   : > { %v16677_v53 = vpop.f32.mrb[18].mxu0  ;;  %v16723_v14 = vpop.f32.mrb[42].mxu1 }
0x2df6   : > { %v24761_v36 = vpop.f32.mrb[19].mxu0  ;;  %v24767_v16 = vpop.f32.mrb[43].mxu1 }
0x2dfb   : > { %v28953_v4 = vpop.f32.mrb[20].mxu0  ;;  %v28955_v20 = vpop.f32.mrb[44].mxu1 }
0x2dfc   : > { %v24772_v7 = vpop.f32.mrb[21].mxu0  ;;  %v24778_v35 = vpop.f32.mrb[45].mxu1 }
0x2dfd   : > { %v16769_v6 = vpop.f32.mrb[22].mxu0  ;;  %v16815_v9 = vpop.f32.mrb[46].mxu1 }
0x2dfe   : > { %v24773_v18 = vpop.f32.mrb[23].mxu0  ;;  %v24779_v57 = vpop.f32.mrb[47].mxu1 }
0x2e03   : > { %v28957_v46 = vpop.f32.mrb[24].mxu0  ;;  %v28959_v37 = vpop.f32.mrb[48].mxu1 }
0x2e04   : > { %v24784_v54 = vpop.f32.mrb[25].mxu0  ;;  %v24790_v10 = vpop.f32.mrb[49].mxu1 }
0x2e05   : > { %v16861_v19 = vpop.f32.mrb[26].mxu0  ;;  %v16907_v38 = vpop.f32.mrb[50].mxu1 }
0x2e06   : > { %v24785_v62 = vpop.f32.mrb[27].mxu0  ;;  %v24791_v49 = vpop.f32.mrb[51].mxu1 }
0x2eab   : > { %v16966_v23 = vpop.f32.mrb[28].mxu0  ;;  %v17012_v56 = vpop.f32.mrb[52].mxu1 }
0x2eac   : > { %v24796_v51 = vpop.f32.mrb[29].mxu0  ;;  %v24802_v63 = vpop.f32.mrb[53].mxu1  ;;  %v17297_v39 = vsel %vm2348_vm3, %v17012_v56, -inf  ;;  %v17294_v27 = vsel %vm2348_vm3, %v16966_v23, -inf }
0x2ead   : > { %17298 = vmax.xlane.f32.xlu1 %v17297_v39  ;;  %v17015_v60 = vpop.f32.mrb[54].mxu1  ;;  %17295 = vmax.xlane.f32.xlu0 %v17294_v27  ;;  %v16969_v13 = vpop.f32.mrb[30].mxu0 }
0x2eae   : > { %v24797_v52 = vpop.f32.mrb[31].mxu0  ;;  %v24803_v58 = vpop.f32.mrb[55].mxu1 }
0x2eb3   : > { %v17058_v42 = vpop.f32.mrb[32].mxu0  ;;  %v17104_v2 = vpop.f32.mrb[56].mxu1 }
0x2eb4   : > { %v24808_v33 = vpop.f32.mrb[33].mxu0  ;;  %v24814_v40 = vpop.f32.mrb[57].mxu1  ;;  %v17303_v3 = vsel %vm2348_vm3, %v17104_v2, -inf  ;;  %v17300_v24 = vsel %vm2348_vm3, %v17058_v42, -inf }
0x2eb5   : > { %17304 = vmax.xlane.f32.xlu1 %v17303_v3  ;;  %v17107_v25 = vpop.f32.mrb[58].mxu1  ;;  %17301 = vmax.xlane.f32.xlu0 %v17300_v24  ;;  %v17061_v15 = vpop.f32.mrb[34].mxu0 }
0x2eb6   : > { %v24809_v47 = vpop.f32.mrb[35].mxu0  ;;  %v24815_v8 = vpop.f32.mrb[59].mxu1 }
0x2ebb   : > { %v17150_v30 = vpop.f32.mrb[36].mxu0  ;;  %v17196_v1 = vpop.f32.mrb[60].mxu1 }
0x2ebc   : > { %v24820_v43 = vpop.f32.mrb[37].mxu0  ;;  %v24826_v34 = vpop.f32.mrb[61].mxu1  ;;  %v17309_v55 = vsel %vm2348_vm3, %v17196_v1, -inf  ;;  %v17306_v12 = vsel %vm2348_vm3, %v17150_v30, -inf }
0x2ebd   : > { %17310 = vmax.xlane.f32.xlu1 %v17309_v55  ;;  %v17199_v41 = vpop.f32.mrb[62].mxu1  ;;  %17307 = vmax.xlane.f32.xlu0 %v17306_v12  ;;  %v17153_v50 = vpop.f32.mrb[38].mxu0 }
0x2ebe   : > { %v24821_v26 = vpop.f32.mrb[39].mxu0  ;;  %v24827_v32 = vpop.f32.mrb[63].mxu1 }
0x2ec3   : > { %v17242_v11 = vpop.f32.mrb[40].mxu0  ;;  %v17288_v17 = vpop.f32.mrb[64].mxu1 }
0x2ec4   : > { %v24832_v28 = vpop.f32.mrb[41].mxu0  ;;  %v24838_v29 = vpop.f32.mrb[65].mxu1  ;;  %v17315_v22 = vsel %vm2348_vm3, %v17288_v17, -inf  ;;  %v17312_v53 = vsel %vm2348_vm3, %v17242_v11, -inf }
0x2ec5   : > { %17316 = vmax.xlane.f32.xlu1 %v17315_v22  ;;  %v17291_v14 = vpop.f32.mrb[66].mxu1  ;;  %17313 = vmax.xlane.f32.xlu0 %v17312_v53  ;;  %v17245_v36 = vpop.f32.mrb[42].mxu0  ;;  %v22162_v28 = vld [vmem:[%s29497_s5 + $0x8a] ss:$0 sm:$0xff] }
0x2ec6   : > { %v24833_v16 = vpop.f32.mrb[43].mxu0  ;;  %v24839_v7 = vpop.f32.mrb[67].mxu1  ;;  %v16675_v53 = vadd.f32 %v22162_v28, %v28947_v44 }
0x2f3a   : > { %v17299_v35 = vpop.xlane.xlu1 %17298  ;;  %v17296_v6 = vpop.xlane.xlu0 %17295 }
0x2f3b   : > { %v17319_v9 = vsub.f32 %v17012_v56, %v17299_v35  ;;  %v17318_v18 = vsub.f32 %v16966_v23, %v17296_v6  ;;  %v17392_v6 = vpack.c.bf16 %v16675_v53, %v16675_v53  ;;  %v25703_v53 = vld [vmem:[#allocation4 + $0x5d0] sm:$0xff]  }
0x2f3d   : > { %v17328_v57 = vmul.f32 1.442695, %v17319_v9  ;;  %v17326_v54 = vmul.f32 1.442695, %v17318_v18  ;;  %v22165_v9 = vld [vmem:[%s29497_s5 + $0x8d] ss:$0 sm:$0xff] }
0x2f3f   : > { %25959 = vpow2.f32 %v17328_v57 }
0x2f40   : > { %25961 = vpow2.f32 %v17326_v54 }
0x2f42   : > { %v17305_v10 = vpop.xlane.xlu1 %17304  ;;  %v17302_v19 = vpop.xlane.xlu0 %17301 }
0x2f43   : > { %v17321_v38 = vsub.f32 %v17104_v2, %v17305_v10  ;;  %v17320_v62 = vsub.f32 %v17058_v42, %v17302_v19  ;;  %v16813_v10 = vadd.f32 %v22165_v9, %v28955_v20 }
0x2f45   : > { %v17332_v49 = vmul.f32 1.442695, %v17321_v38  ;;  %v17330_v51 = vmul.f32 1.442695, %v17320_v62  ;;  %v17494_v38 = vsel %vm2456_vm2, %v17392_v6, 0 }
0x2f47   : > { %25963 = vpow2.f32 %v17332_v49 }
0x2f48   : > { %25965 = vpow2.f32 %v17330_v51 }
0x2f49   : > { %v25960_v63 = vpop.eup %25959 }
0x2f4a   : > { %v25962_v39 = vpop.eup %25961  ;;  %v17311_v27 = vpop.xlane.xlu1 %17310  ;;  %v17345_v13 = vsel %vm2348_vm3, %v25960_v63, 0.0 }
0x2f4b   : > { %v17308_v60 = vpop.xlane.xlu0 %17307  ;;  %v17323_v56 = vsub.f32 %v17196_v1, %v17311_v27  ;;  %17346 = vadd.xlane.f32.xlu1 %v17345_v13  ;;  %v17342_v52 = vsel %vm2348_vm3, %v25962_v39, 0.0  ;;  %v22167_v27 = vld [vmem:[%s29497_s5 + $0x8f] ss:$0 sm:$0xff]  ;;  %v22166_v13 = vld [vmem:[%s29497_s5 + $0x8e] ss:$0 sm:$0xff] }
0x2f4c   : > { %v17322_v23 = vsub.f32 %v17150_v30, %v17308_v60  ;;  %17343 = vadd.xlane.f32.xlu0 %v17342_v52 }
0x2f4d   : > { %v17336_v58 = vmul.f32 1.442695, %v17323_v56 }
0x2f4e   : > { %v17334_v33 = vmul.f32 1.442695, %v17322_v23 }
0x2f4f   : > { %25967 = vpow2.f32 %v17336_v58  ;;  %v16905_v58 = vadd.f32 %v22167_v27, %v28959_v37 }
0x2f50   : > { %25969 = vpow2.f32 %v17334_v33 }
0x2f51   : > { %v28971_v42 = vpop.eup %25963 }
0x2f52   : > { %v28973_v2 = vpop.eup %25965  ;;  %v17317_v40 = vpop.xlane.xlu1 %17316  ;;  %v17351_v24 = vsel %vm2348_vm3, %v28971_v42, 0.0 }
0x2f53   : > { %v17314_v3 = vpop.xlane.xlu0 %17313  ;;  %v17325_v25 = vsub.f32 %v17288_v17, %v17317_v40  ;;  %17352 = vadd.xlane.f32.xlu1 %v17351_v24  ;;  %v17348_v47 = vsel %vm2348_vm3, %v28973_v2, 0.0  ;;  %v22163_v17 = vld [vmem:[%s29497_s5 + $0x8b] ss:$0 sm:$0xff]  ;;  %v16859_v40 = vadd.f32 %v22166_v13, %v28957_v46  ;;  %v17397_v24 = vpack.c.bf16 %v16905_v58, %v16905_v58 }
0x2f54   : > { %v17324_v15 = vsub.f32 %v17242_v11, %v17314_v3  ;;  %17349 = vadd.xlane.f32.xlu0 %v17348_v47  ;;  %v16721_v29 = vadd.f32 %v22163_v17, %v28949_v61  ;;  %v22164_v61 = vld [vmem:[%s29497_s5 + $0x8c] ss:$0 sm:$0xff] }
0x2f55   : > { %v17340_v8 = vmul.f32 1.442695, %v17325_v25  ;;  %v16767_v62 = vadd.f32 %v22164_v61, %v28953_v4  ;;  %v17396_v25 = vpack.c.bf16 %v16859_v40, %v16859_v40 }
0x2f56   : > { %v17338_v30 = vmul.f32 1.442695, %v17324_v15  ;;  %v17393_v7 = vpack.c.bf16 %v16721_v29, %v16721_v29 }
0x2f57   : > { %25971 = vpow2.f32 %v17340_v8 }
0x2f58   : > { %25973 = vpow2.f32 %v17338_v30  ;;  %v17540_v44 = vsel %vm2456_vm2, %v17393_v7, 0  ;;  %v17724_v30 = vsel %vm2456_vm2, %v17397_v24, 0 }
0x2f59   : > { %v28979_v1 = vpop.eup %25967 }
0x2f5a   : > { %v28981_v43 = vpop.eup %25969  ;;  %v17357_v34 = vsel %vm2348_vm3, %v28979_v1, 0.0 }
0x2f5b   : > { %17358 = vadd.xlane.f32.xlu1 %v17357_v34  ;;  %v17354_v55 = vsel %vm2348_vm3, %v28981_v43, 0.0  ;;  %v17678_v34 = vsel %vm2456_vm2, %v17396_v25, 0 }
0x2f5c   : > { %17355 = vadd.xlane.f32.xlu0 %v17354_v55 }
0x2f61   : > { %v28987_v12 = vpop.eup %25971 }
0x2f62   : > { %v28989_v41 = vpop.eup %25973  ;;  %v17363_v50 = vsel %vm2348_vm3, %v28987_v12, 0.0 }
0x2f63   : > { %17364 = vadd.xlane.f32.xlu1 %v17363_v50  ;;  %v17360_v26 = vsel %vm2348_vm3, %v28989_v41, 0.0 }
0x2f64   : > { %17361 = vadd.xlane.f32.xlu0 %v17360_v26  ;;  %v25702_v26 = vld [vmem:[#allocation4 + $0x5c8] sm:$0xff]  }
0x2fd8   : > { %v17347_v32 = vpop.xlane.xlu1 %17346 }
0x2fd9   : > { %25975 = vrcp.f32 %v17347_v32  ;;  %v17344_v11 = vpop.xlane.xlu0 %17343 }
0x2fda   : > { %25977 = vrcp.f32 %v17344_v11  ;;  %v25701_v11 = vld [vmem:[#allocation4 + $0x5c0] sm:$0xff]  }
0x2fe0   : > { %v17353_v22 = vpop.xlane.xlu1 %17352 }
0x2fe1   : > { %25979 = vrcp.f32 %v17353_v22  ;;  %v17350_v14 = vpop.xlane.xlu0 %17349 }
0x2fe2   : > { %25981 = vrcp.f32 %v17350_v14 }
0x2fe3   : > { %v25976_v36 = vpop.eup %25975 }
0x2fe4   : > { %v25978_v16 = vpop.eup %25977  ;;  %v17375_v35 = vmul.f32 %v25976_v36, %v25960_v63  ;;  %v17395_v63 = vpack.c.bf16 %v16813_v10, %v16813_v10 }
0x2fe5   : > { %v17374_v18 = vmul.f32 %v25978_v16, %v25962_v39  ;;  %v17394_v39 = vpack.c.bf16 %v16767_v62, %v16767_v62 }
0x2fe6   : > { %v17383_v57 = vpack.c.bf16 %v17375_v35, %v17375_v35  ;;  %v17632_v52 = vsel %vm2456_vm2, %v17395_v63, 0  ;;  %v25708_v63 = vld [vmem:[#allocation4 + $0x5f8] sm:$0xff]  }
0x2fe7   : > { %v17382_v54 = vpack.c.bf16 %v17374_v18, %v17374_v18  ;;  %v25706_v18 = vld [vmem:[#allocation4 + $0x5e8] sm:$0xff]  }
0x2fe8   : > { %24849 = vmatmul.mubr.msk.bf16.vlgmr.msra.gmra.mrb[68].mxu1 %vm2348_vm3, %v17383_v57  ;;  %v17359_v19 = vpop.xlane.xlu1 %17358 }
0x2fe9   : > { %24859 = vmatpush3.bf16.msra.mxu1 %v17540_v44  ;;  %25983 = vrcp.f32 %v17359_v19  ;;  %24843 = vmatmul.mubr.msk.bf16.vlgmr.msra.gmra.mrb[44].mxu0 %vm2348_vm3, %v17382_v54  ;;  %v17356_v49 = vpop.xlane.xlu0 %17355  ;;  %v25705_v44 = vld [vmem:[#allocation4 + $0x5e0] sm:$0xff]  }
0x2fea   : > { %24853 = vmatpush3.bf16.msra.mxu0 %v17494_v38  ;;  %25985 = vrcp.f32 %v17356_v49  ;;  %24854 = vmatprep.mubr.msk.bf16.mxu0 %vm26239_vm0, %v26238_v0 }
0x2feb   : > { %v25980_v51 = vpop.eup %25979  ;;  %24860 = vmatprep.mubr.msk.bf16.mxu1 %vm26239_vm0, %v26238_v0  ;;  %24864 = vmatprep.subr.bf16.mxu0 %v26238_v0 }
0x2fec   : > { %v25982_v20 = vpop.eup %25981  ;;  %v17377_v4 = vmul.f32 %v25980_v51, %v28971_v42  ;;  %24870 = vmatprep.subr.bf16.mxu1 %v26238_v0  ;;  %v17586_v42 = vsel %vm2456_vm2, %v17394_v39, 0 }
0x2fed   : > { %v17376_v60 = vmul.f32 %v25982_v20, %v28973_v2 }
0x2fee   : > { %v17385_v56 = vpack.c.bf16 %v17377_v4, %v17377_v4 }
0x2fef   : > { %v17384_v23 = vpack.c.bf16 %v17376_v60, %v17376_v60  ;;  %v25707_v60 = vld [vmem:[#allocation4 + $0x5f0] sm:$0xff]  }
0x2ff0   : > { %24861 = vmatmul.mubr.msk.bf16.vlgmr.msra.gmra.mrb[72].mxu1 %vm2348_vm3, %v17385_v56  ;;  %v17365_v33 = vpop.xlane.xlu1 %17364 }
0x2ff1   : > { %24871 = vmatpush3.bf16.msra.mxu1 %v17632_v52  ;;  %25987 = vrcp.f32 %v17365_v33  ;;  %24855 = vmatmul.mubr.msk.bf16.vlgmr.msra.gmra.mrb[48].mxu0 %vm2348_vm3, %v17384_v23  ;;  %v17362_v2 = vpop.xlane.xlu0 %17361 }
0x2ff2   : > { %24865 = vmatpush3.bf16.msra.mxu0 %v17586_v42  ;;  %25989 = vrcp.f32 %v17362_v2  ;;  %24866 = vmatprep.mubr.msk.bf16.mxu0 %vm26239_vm0, %v26238_v0 }
0x2ff3   : > { %v25984_v3 = vpop.eup %25983  ;;  %24872 = vmatprep.mubr.msk.bf16.mxu1 %vm26239_vm0, %v26238_v0  ;;  %24876 = vmatprep.subr.bf16.mxu0 %v26238_v0 }
0x2ff4   : > { %v25986_v37 = vpop.eup %25985  ;;  %v17379_v46 = vmul.f32 %v25984_v3, %v28979_v1  ;;  %24882 = vmatprep.subr.bf16.mxu1 %v26238_v0 }
0x2ff5   : > { %v17378_v15 = vmul.f32 %v25986_v37, %v28981_v43 }
0x2ff6   : > { %v17387_v47 = vpack.c.bf16 %v17379_v46, %v17379_v46 }
0x2ff7   : > { %v17386_v8 = vpack.c.bf16 %v17378_v15, %v17378_v15 }
0x2ff8   : > { %24873 = vmatmul.mubr.msk.bf16.vlgmr.msra.gmra.mrb[76].mxu1 %vm2348_vm3, %v17387_v47 }
0x2ff9   : > { %24867 = vmatmul.mubr.msk.bf16.vlgmr.msra.gmra.mrb[52].mxu0 %vm2348_vm3, %v17386_v8  ;;  %24883 = vmatpush3.bf16.msra.mxu1 %v17724_v30 }
0x2ffa   : > { %24877 = vmatpush3.bf16.msra.mxu0 %v17678_v34  ;;  %24878 = vmatprep.mubr.msk.bf16.mxu0 %vm26239_vm0, %v26238_v0 }
0x2ffb   : > { %v25988_v1 = vpop.eup %25987  ;;  %24884 = vmatprep.mubr.msk.bf16.mxu1 %vm26239_vm0, %v26238_v0  ;;  %24888 = vmatprep.subr.bf16.mxu0 %v26238_v0 }
0x2ffc   : > { %v25990_v43 = vpop.eup %25989  ;;  %v17381_v55 = vmul.f32 %v25988_v1, %v28987_v12  ;;  %24894 = vmatprep.subr.bf16.mxu1 %v26238_v0 }
0x2ffd   : > { %v17380_v50 = vmul.f32 %v25990_v43, %v28989_v41  ;;  %v25704_v41 = vld [vmem:[#allocation4 + $0x5d8] sm:$0xff]  }
0x2ffe   : > { %v17389_v32 = vpack.c.bf16 %v17381_v55, %v17381_v55 }
0x2fff   : > { %v17388_v17 = vpack.c.bf16 %v17380_v50, %v17380_v50 }
0x3000   : > { %24885 = vmatmul.mubr.msk.bf16.vlgmr.msra.gmra.mrb[80].mxu1 %vm2348_vm3, %v17389_v32 }
0x3001   : > { %24879 = vmatmul.mubr.msk.bf16.vlgmr.msra.gmra.mrb[56].mxu0 %vm2348_vm3, %v17388_v17  ;;  %24895 = vmatpush3.bf16.msra.mxu1 %v25702_v26 }
0x3002   : > { %24889 = vmatpush3.bf16.msra.mxu0 %v25701_v11  ;;  %24890 = vmatprep.mubr.msk.bf16.mxu0 %vm26239_vm0, %v26238_v0 }
0x3003   : > { %24896 = vmatprep.mubr.msk.bf16.mxu1 %vm26239_vm0, %v26238_v0  ;;  %24900 = vmatprep.subr.bf16.mxu0 %v26238_v0 }
0x3004   : > { %24906 = vmatprep.subr.bf16.mxu1 %v26238_v0 }
0x30bb   : > { %v17484_v12 = vpop.f32.mrb[68].mxu1 }
0x30bc   : > { %v17438_v28 = vpop.f32.mrb[44].mxu0  ;;  %v17767_v29 = vpack.c.bf16 %v17484_v12, %v17484_v12  ;;  %v24850_v22 = vpop.f32.mrb[69].mxu1 }
0x30bd   : > { %v17766_v14 = vpack.c.bf16 %v17438_v28, %v17438_v28  ;;  %v24844_v36 = vpop.f32.mrb[45].mxu0  ;;  %v17487_v16 = vpop.f32.mrb[70].mxu1 }
0x30be   : > { %v17441_v7 = vpop.f32.mrb[46].mxu0  ;;  %v24851_v35 = vpop.f32.mrb[71].mxu1  ;;  %24897 = vmatmul.mubr.msk.bf16.vlgmr.msra.gmra.mrb[84].mxu1 %vm1979_vm1, %v17767_v29 }
0x30bf   : > { %v24845_v6 = vpop.f32.mrb[47].mxu0  ;;  %24891 = vmatmul.mubr.msk.bf16.vlgmr.msra.gmra.mrb[60].mxu0 %vm1979_vm1, %v17766_v14  ;;  %24907 = vmatpush3.bf16.msra.mxu1 %v25704_v41 }
0x30c0   : > { %24901 = vmatpush3.bf16.msra.mxu0 %v25703_v53  ;;  %24902 = vmatprep.mubr.msk.bf16.mxu0 %vm26239_vm0, %v26238_v0 }
0x30c1   : > { %24908 = vmatprep.mubr.msk.bf16.mxu1 %vm26239_vm0, %v26238_v0  ;;  %24912 = vmatprep.subr.bf16.mxu0 %v26238_v0 }
0x30c2   : > { %24918 = vmatprep.subr.bf16.mxu1 %v26238_v0 }
0x30c3   : > { %v17576_v9 = vpop.f32.mrb[72].mxu1 }
0x30c4   : > { %v17530_v61 = vpop.f32.mrb[48].mxu0  ;;  %v17769_v57 = vpack.c.bf16 %v17576_v9, %v17576_v9  ;;  %v24862_v54 = vpop.f32.mrb[73].mxu1 }
0x30c5   : > { %v17768_v10 = vpack.c.bf16 %v17530_v61, %v17530_v61  ;;  %v24856_v19 = vpop.f32.mrb[49].mxu0  ;;  %v17579_v38 = vpop.f32.mrb[74].mxu1 }
0x30c6   : > { %v17533_v62 = vpop.f32.mrb[50].mxu0  ;;  %v24863_v49 = vpop.f32.mrb[75].mxu1  ;;  %24909 = vmatmul.mubr.msk.bf16.vlgmr.msra.gmra.mrb[88].mxu1 %vm1979_vm1, %v17769_v57 }
0x30c7   : > { %v24857_v51 = vpop.f32.mrb[51].mxu0  ;;  %24903 = vmatmul.mubr.msk.bf16.vlgmr.msra.gmra.mrb[64].mxu0 %vm1979_vm1, %v17768_v10  ;;  %24919 = vmatpush3.bf16.msra.mxu1 %v25706_v18 }
0x30c8   : > { %24913 = vmatpush3.bf16.msra.mxu0 %v25705_v44  ;;  %24914 = vmatprep.mubr.msk.bf16.mxu0 %vm26239_vm0, %v26238_v0  ;;  %v22127_v51 = vld [vmem:[%s29500_s8 + $0x37] ss:$0 sm:$0xff] }
0x30c9   : > { %24920 = vmatprep.mubr.msk.bf16.mxu1 %vm26239_vm0, %v26238_v0  ;;  %24924 = vmatprep.subr.bf16.mxu0 %v26238_v0 }
0x30ca   : > { %24930 = vmatprep.subr.bf16.mxu1 %v26238_v0 }
0x30cb   : > { %v17668_v20 = vpop.f32.mrb[76].mxu1 }
0x30cc   : > { %v17622_v4 = vpop.f32.mrb[52].mxu0  ;;  %v17771_v39 = vpack.c.bf16 %v17668_v20, %v17668_v20  ;;  %v24874_v27 = vpop.f32.mrb[77].mxu1 }
0x30cd   : > { %v17770_v13 = vpack.c.bf16 %v17622_v4, %v17622_v4  ;;  %v24868_v56 = vpop.f32.mrb[53].mxu0  ;;  %v17671_v23 = vpop.f32.mrb[78].mxu1  ;;  %v9368_v27 = vld [vmem:[%s29500_s8 + $0x28] ss:$0 sm:$0xff] }
0x30ce   : > { %v17625_v52 = vpop.f32.mrb[54].mxu0  ;;  %v24875_v58 = vpop.f32.mrb[79].mxu1  ;;  %24921 = vmatmul.mubr.msk.bf16.vlgmr.msra.gmra.mrb[92].mxu1 %vm1979_vm1, %v17771_v39 }
0x30cf   : > { %v24869_v33 = vpop.f32.mrb[55].mxu0  ;;  %24915 = vmatmul.mubr.msk.bf16.vlgmr.msra.gmra.mrb[68].mxu0 %vm1979_vm1, %v17770_v13  ;;  %24931 = vmatpush3.bf16.msra.mxu1 %v25708_v63  ;;  %v9500_v13 = vadd.f32 %v27961_v31, %v9368_v27  ;;  %v25709_v52 = vld [vmem:[%s29498_s6 + $0x280] ss:$8 sps:$4 sm:$0xff]   ;;  %v25711_v58 = vld [vmem:[%s29498_s6 + $0x284] ss:$8 sps:$4 sm:$0xff]  }
0x30d0   : > { %24925 = vmatpush3.bf16.msra.mxu0 %v25707_v60  ;;  %24926 = vmatprep.mubr.msk.bf16.mxu0 %vm26239_vm0, %v26238_v0  ;;  %v25714_v33 = vld [vmem:[%s29498_s6 + $0x294] ss:$8 sps:$4 sm:$0xff]   ;;  %v25712_v31 = vld [vmem:[%s29498_s6 + $0x290] ss:$8 sps:$4 sm:$0xff]   ;;  %v9507_v27 = vld [vmem:[%s29500_s8 + $0x21] ss:$0 sm:$0xff] }
0x30d1   : > { %24932 = vmatprep.mubr.msk.bf16.mxu1 %vm26239_vm0, %v26238_v0  ;;  %v9505_v23 = vadd.f32 %v9500_v13, %v27824_v48  ;;  %18301 = vmatprep.subr.bf16.mxu0 %v25711_v58  ;;  %v25717_v48 = vld [vmem:[%s29498_s6 + $0x2a4] ss:$8 sps:$4 sm:$0xff]   ;;  %v25734_v13 = vld [vmem:[#allocation7 + $0x10] sm:$0xff]   ;;  %v25751_v58 = vld [vmem:[#allocation6 + $0x2f8] sm:$0xff]  }
0x30d3   : > { %v17760_v42 = vpop.f32.mrb[80].mxu1 }
0x30d4   : > { %v17714_v40 = vpop.f32.mrb[56].mxu0  ;;  %v17773_v2 = vpack.c.bf16 %v17760_v42, %v17760_v42  ;;  %v24886_v3 = vpop.f32.mrb[81].mxu1  ;;  %v25720_v42 = vld [vmem:[%s29498_s6 + $0x2b4] ss:$8 sps:$4 sm:$0xff]  }
0x30d5   : > { %v17772_v37 = vpack.c.bf16 %v17714_v40, %v17714_v40  ;;  %v24880_v24 = vpop.f32.mrb[57].mxu0  ;;  %v17763_v46 = vpop.f32.mrb[82].mxu1  ;;  %v25718_v40 = vld [vmem:[%s29498_s6 + $0x2b0] ss:$8 sps:$4 sm:$0xff]  }
0x30d6   : > { %v17717_v25 = vpop.f32.mrb[58].mxu0  ;;  %v24887_v15 = vpop.f32.mrb[83].mxu1  ;;  %24933 = vmatmul.mubr.msk.bf16.vlgmr.msra.gmra.mrb[96].mxu1 %vm1979_vm1, %v17773_v2 }
0x30d7   : > { %v24881_v47 = vpop.f32.mrb[59].mxu0  ;;  %24927 = vmatmul.mubr.msk.bf16.vlgmr.msra.gmra.mrb[72].mxu0 %vm1979_vm1, %v17772_v37 }
0x30d8   : > { %18333 = vmatprep.mubr.bf16.mxu0 %v26240_v21  ;;  %18302 = vmatpush1.bf16.msra.mxu0 %v25709_v52  ;;  %v25736_v52 = vld [vmem:[#allocation7 + $0x30] sm:$0xff]  }
0x30d9   : > { %18303 = vmatprep.subr.bf16.mxu0 %v25714_v33  ;;  %v25752_v33 = vld [vmem:[#allocation6 + $0x2b8] sm:$0xff]  }
0x30dc   : > { %18304 = vmatpush1.bf16.msra.mxu0 %v25712_v31  ;;  %v22226_v31 = vld [vmem:[%s29500_s8 + $0x48] ss:$8 sm:$0x3] }
0x30dd   : > { %18305 = vmatprep.subr.bf16.mxu0 %v25717_v48  ;;  %v18214_v48 = vrot.slane %v22226_v31, %v26953_v45 }
0x3191   : > { %v17866_v8 = vpop.f32.mrb[84].mxu1 }
0x3192   : > { %v17817_v30 = vpop.f32.mrb[60].mxu0  ;;  %v24898_v34 = vpop.f32.mrb[85].mxu1 }
0x3193   : > { %v18166_v1 = vadd.f32 %v17866_v8, %v17817_v30  ;;  %v24892_v43 = vpop.f32.mrb[61].mxu0  ;;  %v17869_v55 = vpop.f32.mrb[86].mxu1  ;;  %v25723_v8 = vld [vmem:[%s29498_s6 + $0x2c4] ss:$8 sps:$4 sm:$0xff]   ;;  %v25721_v30 = vld [vmem:[%s29498_s6 + $0x2c0] ss:$8 sps:$4 sm:$0xff]  }
0x3194   : > { %v17820_v50 = vpop.f32.mrb[62].mxu0  ;;  %v24899_v26 = vpop.f32.mrb[87].mxu1  ;;  %v25726_v34 = vld [vmem:[%s29498_s6 + $0x2d4] ss:$8 sps:$4 sm:$0xff]   ;;  %v25729_v43 = vld [vmem:[%s29498_s6 + $0x2e4] ss:$8 sps:$4 sm:$0xff]  }
0x3195   : > { %v24893_v32 = vpop.f32.mrb[63].mxu0  ;;  %v25727_v55 = vld [vmem:[%s29498_s6 + $0x2e0] ss:$8 sps:$4 sm:$0xff]   ;;  %v25732_v50 = vld [vmem:[%s29498_s6 + $0x2f4] ss:$8 sps:$4 sm:$0xff]  }
0x3196   : > { %v25730_v26 = vld [vmem:[%s29498_s6 + $0x2f0] ss:$8 sps:$4 sm:$0xff]   ;;  %v25737_v32 = vld [vmem:[#allocation6 + $0x2c0] sm:$0xff]  }
0x3197   : > { %23050 = vmatprep.subr.bf16.mxu1 %v25737_v32  ;;  %v25755_v32 = vld [vmem:[#allocation7 + $0x28] sm:$0xff]  }
0x3199   : > { %v17964_v11 = vpop.f32.mrb[88].mxu1 }
0x319a   : > { %v17915_v17 = vpop.f32.mrb[64].mxu0  ;;  %v24910_v12 = vpop.f32.mrb[89].mxu1 }
0x319b   : > { %v18167_v41 = vadd.f32 %v18166_v1, %v17915_v17  ;;  %v24904_v28 = vpop.f32.mrb[65].mxu0  ;;  %v17967_v29 = vpop.f32.mrb[90].mxu1  ;;  %v25724_v1 = vld [vmem:[%s29498_s6 + $0x2d0] ss:$8 sps:$4 sm:$0xff]   ;;  %v25739_v17 = vld [vmem:[#allocation6 + $0x2c8] sm:$0xff]  }
0x319c   : > { %v17918_v22 = vpop.f32.mrb[66].mxu0  ;;  %v24911_v53 = vpop.f32.mrb[91].mxu1  ;;  %v25740_v12 = vld [vmem:[#allocation6 + $0x288] sm:$0xff]   ;;  %v25742_v28 = vld [vmem:[#allocation6 + $0x290] sm:$0xff]   ;;  %v25743_v29 = vld [vmem:[#allocation6 + $0x2d8] sm:$0xff]  }
0x319d   : > { %v18168_v14 = vadd.f32 %v18167_v41, %v17964_v11  ;;  %v24905_v36 = vpop.f32.mrb[67].mxu0  ;;  %v25738_v11 = vld [vmem:[#allocation6 + $0x280] sm:$0xff]   ;;  %v25741_v41 = vld [vmem:[#allocation6 + $0x2d0] sm:$0xff]   ;;  %v25744_v22 = vld [vmem:[#allocation6 + $0x298] sm:$0xff]  }
0x319e   : > { %23051 = vmatpush3.bf16.msra.mxu1 %v25738_v11  ;;  %v25745_v53 = vld [vmem:[#allocation6 + $0x2e0] sm:$0xff]   ;;  %v25747_v36 = vld [vmem:[#allocation6 + $0x2e8] sm:$0xff]  }
0x319f   : > { %23052 = vmatprep.subr.bf16.mxu1 %v25739_v17 }
0x31a1   : > { %v18062_v21 = vpop.f32.mrb[92].mxu1 }
0x31a2   : > { %v18013_v16 = vpop.f32.mrb[68].mxu0  ;;  %v24922_v7 = vpop.f32.mrb[93].mxu1  ;;  %23053 = vmatpush3.bf16.msra.mxu1 %v25740_v12 }
0x31a3   : > { %v18169_v35 = vadd.f32 %v18168_v14, %v18013_v16  ;;  %v24916_v6 = vpop.f32.mrb[69].mxu0  ;;  %v18065_v9 = vpop.f32.mrb[94].mxu1  ;;  %23054 = vmatprep.subr.bf16.mxu1 %v25741_v41  ;;  %v25746_v14 = vld [vmem:[#allocation6 + $0x2a0] sm:$0xff]   ;;  %v25749_v16 = vld [vmem:[#allocation6 + $0x2f0] sm:$0xff]  }
0x31a4   : > { %v18016_v18 = vpop.f32.mrb[70].mxu0  ;;  %v24923_v61 = vpop.f32.mrb[95].mxu1  ;;  %v25750_v7 = vld [vmem:[#allocation6 + $0x2b0] sm:$0xff]  }
0x31a5   : > { %v18170_v57 = vadd.f32 %v18169_v35, %v18062_v21  ;;  %v24917_v54 = vpop.f32.mrb[71].mxu0  ;;  %v25748_v21 = vld [vmem:[#allocation6 + $0x2a8] sm:$0xff]  }
0x31a6   : > { %23055 = vmatpush3.bf16.msra.mxu1 %v25742_v28  ;;  %v25756_v28 = vld [vmem:[#allocation7 + $0x38] sm:$0xff]  }
0x31a7   : > { %23056 = vmatprep.subr.bf16.mxu1 %v25743_v29 }
0x31a9   : > { %v18160_v44 = vpop.f32.mrb[96].mxu1 }
0x31aa   : > { %v18111_v10 = vpop.f32.mrb[72].mxu0  ;;  %v24934_v19 = vpop.f32.mrb[97].mxu1  ;;  %23057 = vmatpush3.bf16.msra.mxu1 %v25744_v22 }
0x31ab   : > { %v18171_v38 = vadd.f32 %v18170_v57, %v18111_v10  ;;  %v24928_v62 = vpop.f32.mrb[73].mxu0  ;;  %v18163_v49 = vpop.f32.mrb[98].mxu1  ;;  %23058 = vmatprep.subr.bf16.mxu1 %v25745_v53  ;;  %v22209_v19 = vld [vmem:[%s29500_s8 + $0x47] ss:$0 sm:$0xff] }
0x31ac   : > { %v18114_v20 = vpop.f32.mrb[74].mxu0  ;;  %v24935_v63 = vpop.f32.mrb[99].mxu1  ;;  %v9506_v49 = vld [vmem:[%s29500_s8 + $0x19] ss:$0 sm:$0xff] }
0x31ad   : > { %v18172_v4 = vadd.f32 %v18171_v38, %v18160_v44  ;;  %v24929_v39 = vpop.f32.mrb[75].mxu0  ;;  %v22208_v44 = vld [vmem:[%s29500_s8 + $0x3f] ss:$0 sm:$0xff]  ;;  %v25733_v63 = vld [vmem:[#allocation7] sm:$0xff]  }
0x31ae   : > { %23059 = vmatpush3.bf16.msra.mxu1 %v25746_v14 }
0x31af   : > { %v18173_v60 = vadd.f32 %v22127_v51, %v18172_v4  ;;  %23060 = vmatprep.subr.bf16.mxu1 %v25747_v36 }
0x31b1   : > { %v18174_v56 = vadd.f32 %v18173_v60, %v28733_v5  ;;  %v25715_v5 = vld [vmem:[%s29498_s6 + $0x2a0] ss:$8 sps:$4 sm:$0xff]  }
0x31b2   : > { %18306 = vmatpush1.bf16.msra.mxu0 %v25715_v5  ;;  %23061 = vmatpush3.bf16.msra.mxu1 %v25748_v21  ;;  %v18218_v5 = vrot.slane %v22226_v31, %v26958_v59  ;;  %v25754_v59 = vld [vmem:[#allocation7 + $0x18] sm:$0xff]   ;;  %v25758_v31 = vld [vmem:[#allocation7 + $0x48] sm:$0xff]  }
0x31b3   : > { %18177 = vadd.xlane.f32.xlu0 %v18174_v56  ;;  %18307 = vmatprep.subr.bf16.mxu0 %v25720_v42  ;;  %v22243_v21 = vld [vmem:[%s29500_s8 + $0x58] ss:$0 sm:$0xff] }
0x31b4   : > { %23062 = vmatprep.subr.bf16.mxu1 %v25749_v16 }
0x31b6   : > { %18308 = vmatpush1.bf16.msra.mxu0 %v25718_v40  ;;  %23063 = vmatpush3.bf16.msra.mxu1 %v25750_v7 }
0x31b7   : > { %9508 = vadd.xlane.f32.xlu0 %v9505_v23  ;;  %18309 = vmatprep.subr.bf16.mxu0 %v25723_v8 }
0x31b8   : > { %23064 = vmatprep.subr.bf16.mxu1 %v25751_v58 }
0x31ba   : > { %18310 = vmatpush1.bf16.msra.mxu0 %v25721_v30  ;;  %23065 = vmatpush3.bf16.msra.mxu1 %v25752_v33  ;;  %v25757_v33 = vld [vmem:[#allocation7 + $0x40] sm:$0xff]  }
0x31bb   : > { %18311 = vmatprep.subr.bf16.mxu0 %v25726_v34  ;;  %24942 = vmatprep.subr.bf16.mxu1 %v26238_v0 }
0x31be   : > { %18312 = vmatpush1.bf16.msra.mxu0 %v25724_v1 }
0x31bf   : > { %18313 = vmatprep.subr.bf16.mxu0 %v25729_v43 }
0x31c2   : > { %18314 = vmatpush1.bf16.msra.mxu0 %v25727_v55 }
0x31c3   : > { %18315 = vmatprep.subr.bf16.mxu0 %v25732_v50 }
0x31c6   : > { %18316 = vmatpush1.bf16.msra.mxu0 %v25730_v26 }
0x31c7   : > { %24936 = vmatprep.subr.bf16.mxu0 %v26238_v0 }
0x3240   : > { %v18178_v2 = vpop.xlane.xlu0 %18177 }
0x3241   : > { %v18179_v3 = vmul.f32 0.0078125, %v18178_v2 }
0x3243   : > { %v29121_v37 = vsub.f32 %v18174_v56, %v18179_v3 }
0x3244   : > { %v9509_v24 = vpop.xlane.xlu0 %9508 }
0x3245   : > { %v9510_v46 = vmul.f32 0.0078125, %v9509_v24  ;;  %v18181_v25 = vmul.f32 %v29121_v37, %v29121_v37 }
0x3247   : > { %v29125_v15 = vsub.f32 %v9505_v23, %v9510_v46  ;;  %18182 = vadd.xlane.f32.xlu1 %v18181_v25  ;;  %v25735_v23 = vld [vmem:[#allocation7 + $0x20] sm:$0xff]  }
0x3249   : > { %v9512_v47 = vmul.f32 %v29125_v15, %v29125_v15 }
0x324b   : > { %9513 = vadd.xlane.f32.xlu0 %v9512_v47  ;;  %v25753_v47 = vld [vmem:[#allocation7 + $0x8] sm:$0xff]  }
0x32d4   : > { %v18183_v35 = vpop.xlane.xlu1 %18182 }
0x32d5   : > { %v18184_v6 = vmul.f32 0.0078125, %v18183_v35 }
0x32d7   : > { %v18185_v9 = vadd.f32 1e-05, %v18184_v6 }
0x32d8   : > { %v9514_v18 = vpop.xlane.xlu0 %9513 }
0x32d9   : > { %25991 = vrsqrt.f32 %v18185_v9  ;;  %v9515_v61 = vmul.f32 0.0078125, %v9514_v18 }
0x32db   : > { %v9516_v57 = vadd.f32 1e-05, %v9515_v61 }
0x32dd   : > { %25993 = vrsqrt.f32 %v9516_v57 }
0x32e3   : > { %v25992_v54 = vpop.eup %25991 }
0x32e4   : > { %v18187_v10 = vmul.f32 %v25992_v54, %v29121_v37 }
0x32e6   : > { %v18188_v38 = vmul.f32 %v22208_v44, %v18187_v10 }
0x32e7   : > { %v25994_v62 = vpop.eup %25993 }
0x32e8   : > { %v29164_v51 = vadd.f32 %v22209_v19, %v18188_v38  ;;  %v9518_v20 = vmul.f32 %v25994_v62, %v29125_v15 }
0x32ea   : > { %v18207_v4 = vpack.c.bf16 %v29164_v51, %v29164_v51  ;;  %v9519_v39 = vmul.f32 %v9518_v20, %v9506_v49 }
0x32ec   : > { %18334 = vmatmul.mubr.bf16.vlgmr.msra.gmra.mrb[76].mxu0 %v18207_v4  ;;  %v29174_v60 = vadd.f32 %v9519_v39, %v9507_v27 }
0x32ed   : > { %24937 = vmatpush3.bf16.xpose.msra.mxu0 %v25733_v63  ;;  %24938 = vmatprep.mubr.msk.bf16.mxu0 %vm26239_vm0, %v26238_v0 }
0x32ee   : > { %24948 = vmatprep.subr.bf16.mxu0 %v26238_v0  ;;  %v29179_v56 = vpack.c.bf16 %v29174_v60, %v29174_v60 }
0x32f4   : > { %24939 = vmatmul.mubr.bf16.vlgmr.msra.gmra.mrb[80].mxu0 %v29179_v56 }
0x32f5   : > { %24949 = vmatpush3.bf16.xpose.msra.mxu0 %v25734_v13  ;;  %24950 = vmatprep.mubr.msk.bf16.mxu0 %vm26239_vm0, %v26238_v0 }
0x32f6   : > { %24960 = vmatprep.subr.bf16.mxu0 %v26238_v0 }
0x32fc   : > { %24951 = vmatmul.mubr.bf16.vlgmr.msra.gmra.mrb[84].mxu0 %v29179_v56 }
0x32fd   : > { %24961 = vmatpush3.bf16.xpose.msra.mxu0 %v25735_v23  ;;  %24962 = vmatprep.mubr.msk.bf16.mxu0 %vm26239_vm0, %v26238_v0 }
0x32fe   : > { %24972 = vmatprep.subr.bf16.mxu0 %v26238_v0 }
0x3304   : > { %24963 = vmatmul.mubr.bf16.vlgmr.msra.gmra.mrb[88].mxu0 %v29179_v56 }
0x3305   : > { %24973 = vmatpush3.bf16.xpose.msra.mxu0 %v25736_v52  ;;  %24974 = vmatprep.mubr.msk.bf16.mxu0 %vm26239_vm0, %v26238_v0 }
0x3306   : > { %24984 = vmatprep.subr.bf16.mxu0 %v26238_v0 }
0x330c   : > { %24975 = vmatmul.mubr.bf16.vlgmr.msra.gmra.mrb[92].mxu0 %v29179_v56 }
0x330d   : > { %24986 = vmatprep.mubr.msk.bf16.mxu0 %vm26239_vm0, %v26238_v0  ;;  %24985 = vmatpush3.bf16.xpose.msra.mxu0 %v25757_v33 }
0x330e   : > { %24996 = vmatprep.subr.bf16.mxu0 %v26238_v0 }
0x33bf   : > { %v18335_v42 = vpop.f32.mrb[76].mxu0 }
0x33c0   : > { %v18336_v40 = vadd.f32 %v18335_v42, %v18214_v48  ;;  %v18337_v2 = vpop.f32.mrb[77].mxu0 }
0x33c1   : > { %v18338_v3 = vadd.f32 %v18337_v2, %v18218_v5  ;;  %v18339_v37 = vpop.f32.mrb[78].mxu0  ;;  %v22260_v2 = vld [vmem:[%s29500_s8 + $0x49] ss:$0 sm:$0xff] }
0x33c2   : > { %v18342_v24 = vmax.f32 %v18336_v40, 0.0  ;;  %v18340_v46 = vpop.f32.mrb[79].mxu0  ;;  %v22261_v37 = vld [vmem:[%s29500_s8 + $0x51] ss:$0 sm:$0xff] }
0x33c3   : > { %v18343_v25 = vmax.f32 %v18338_v3, 0.0 }
0x33c4   : > { %v18377_v8 = vpack.c.bf16 %v18342_v24, %v18342_v24 }
0x33c5   : > { %v18378_v15 = vpack.c.bf16 %v18343_v25, %v18343_v25  ;;  %v25759_v25 = vld [vmem:[#allocation7 + $0x50] sm:$0xff]  }
0x33c7   : > { %18508 = vmatprep.mubr.bf16.mxu1 %v18378_v15  ;;  %v29202_v30 = vpop.f32.mrb[80].mxu0  ;;  %v25760_v15 = vld [vmem:[#allocation7 + $0x58] sm:$0xff]  }
0x33c8   : > { %18509 = vmatmul.mubr.bf16.vlgmr.msra.gmra.mrb[100].mxu1 %v18377_v8  ;;  %v24940_v34 = vpop.f32.mrb[81].mxu0  ;;  %v25761_v8 = vld [vmem:[#allocation7 + $0x60] sm:$0xff]  }
0x33c9   : > { %v18719_v1 = vpop.f32.mrb[82].mxu0  ;;  %24943 = vmatpush3.bf16.xpose.msra.mxu1 %v25753_v47  ;;  %24944 = vmatprep.mubr.msk.bf16.mxu1 %vm26239_vm0, %v26238_v0  ;;  %v25762_v34 = vld [vmem:[#allocation7 + $0x68] sm:$0xff]  }
0x33ca   : > { %v24941_v45 = vpop.f32.mrb[83].mxu0  ;;  %24954 = vmatprep.subr.bf16.mxu1 %v26238_v0  ;;  %v25763_v1 = vld [vmem:[#allocation7 + $0x70] sm:$0xff]  }
0x33cb   : > { %v25764_v45 = vld [vmem:[#allocation7 + $0x78] sm:$0xff]  }
0x33cf   : > { %v29207_v43 = vpop.f32.mrb[84].mxu0 }
0x33d0   : > { %24945 = vmatmul.mubr.bf16.vlgmr.msra.gmra.mrb[104].mxu1 %v29179_v56  ;;  %v24952_v55 = vpop.f32.mrb[85].mxu0 }
0x33d1   : > { %v18811_v50 = vpop.f32.mrb[86].mxu0  ;;  %24955 = vmatpush3.bf16.xpose.msra.mxu1 %v25754_v59  ;;  %24956 = vmatprep.mubr.msk.bf16.mxu1 %vm26239_vm0, %v26238_v0  ;;  %v25765_v59 = vld [vmem:[#allocation7 + $0x80] sm:$0xff]   ;;  %v25766_v55 = vld [vmem:[#allocation7 + $0x88] sm:$0xff]  }
0x33d2   : > { %v24953_v26 = vpop.f32.mrb[87].mxu0  ;;  %24966 = vmatprep.subr.bf16.mxu1 %v26238_v0  ;;  %v25767_v50 = vld [vmem:[#allocation7 + $0x90] sm:$0xff]  }
0x33d3   : > { %v25768_v26 = vld [vmem:[#allocation7 + $0x98] sm:$0xff]  }
0x33d7   : > { %v29213_v11 = vpop.f32.mrb[88].mxu0 }
0x33d8   : > { %24957 = vmatmul.mubr.bf16.vlgmr.msra.gmra.mrb[108].mxu1 %v29179_v56  ;;  %v24964_v17 = vpop.f32.mrb[89].mxu0 }
0x33d9   : > { %v18903_v12 = vpop.f32.mrb[90].mxu0  ;;  %24967 = vmatpush3.bf16.xpose.msra.mxu1 %v25755_v32  ;;  %24968 = vmatprep.mubr.msk.bf16.mxu1 %vm26239_vm0, %v26238_v0  ;;  %v25769_v32 = vld [vmem:[#allocation7 + $0xa0] sm:$0xff]   ;;  %v25770_v17 = vld [vmem:[#allocation7 + $0xa8] sm:$0xff]  }
0x33da   : > { %v24965_v41 = vpop.f32.mrb[91].mxu0  ;;  %24978 = vmatprep.subr.bf16.mxu1 %v26238_v0  ;;  %v25771_v12 = vld [vmem:[#allocation7 + $0xb0] sm:$0xff]  }
0x33db   : > { %v25772_v41 = vld [vmem:[#allocation7 + $0xb8] sm:$0xff]  }
0x33df   : > { %v29219_v29 = vpop.f32.mrb[92].mxu0 }
0x33e0   : > { %24969 = vmatmul.mubr.bf16.vlgmr.msra.gmra.mrb[112].mxu1 %v29179_v56  ;;  %v24976_v22 = vpop.f32.mrb[93].mxu0 }
0x33e1   : > { %v18995_v53 = vpop.f32.mrb[94].mxu0  ;;  %24979 = vmatpush3.bf16.xpose.msra.mxu1 %v25756_v28  ;;  %24980 = vmatprep.mubr.msk.bf16.mxu1 %vm26239_vm0, %v26238_v0  ;;  %v22278_v28 = vld [vmem:[#allocation9 + $0x8] ss:$0 sm:$0xff]  ;;  %v22279_v22 = vld [vmem:[#allocation9 + $0x9] ss:$0 sm:$0xff] }
0x33e2   : > { %v24977_v14 = vpop.f32.mrb[95].mxu0  ;;  %24990 = vmatprep.subr.bf16.mxu1 %v26238_v0 }
0x33e8   : > { %24981 = vmatmul.mubr.bf16.vlgmr.msra.gmra.mrb[116].mxu1 %v29179_v56 }
0x33e9   : > { %24992 = vmatprep.mubr.msk.bf16.mxu1 %vm26239_vm0, %v26238_v0  ;;  %24991 = vmatpush3.bf16.xpose.msra.mxu1 %v25758_v31 }
0x33ea   : > { %25002 = vmatprep.subr.bf16.mxu1 %v26238_v0 }
0x349b   : > { %v23066_v36 = vpop.f32.mrb[100].mxu1 }
0x349c   : > { %v23067_v16 = vpop.f32.mrb[101].mxu1 }
0x349d   : > { %v23068_v7 = vadd.f32 %v23067_v16, %v23066_v36  ;;  %v23069_v35 = vpop.f32.mrb[102].mxu1 }
0x349e   : > { %v23070_v6 = vpop.f32.mrb[103].mxu1 }
0x349f   : > { %v18511_v9 = vadd.f32 %v23068_v7, %v22243_v21 }
0x34a1   : > { %v18516_v18 = vadd.f32 %v18511_v9, %v29164_v51 }
0x34a3   : > { %18519 = vadd.xlane.f32.xlu1 %v18516_v18  ;;  %v29232_v61 = vpop.f32.mrb[104].mxu1 }
0x34a4   : > { %v24946_v57 = vpop.f32.mrb[105].mxu1 }
0x34a5   : > { %v18765_v54 = vpop.f32.mrb[106].mxu1 }
0x34a6   : > { %v24947_v44 = vpop.f32.mrb[107].mxu1 }
0x34a7   : > { %v22262_v44 = vld [vmem:[#allocation9] ss:$0 sm:$0xff] }
0x34ab   : > { %v29234_v10 = vpop.f32.mrb[108].mxu1 }
0x34ac   : > { %v24958_v19 = vpop.f32.mrb[109].mxu1 }
0x34ad   : > { %v18857_v38 = vpop.f32.mrb[110].mxu1  ;;  %v22263_v19 = vld [vmem:[#allocation9 + $0x1] ss:$0 sm:$0xff] }
0x34ae   : > { %v24959_v62 = vpop.f32.mrb[111].mxu1 }
0x34b3   : > { %v29236_v49 = vpop.f32.mrb[112].mxu1 }
0x34b4   : > { %v24970_v20 = vpop.f32.mrb[113].mxu1 }
0x34b5   : > { %v18949_v63 = vpop.f32.mrb[114].mxu1  ;;  %v22280_v20 = vld [vmem:[#allocation9 + $0xa] ss:$0 sm:$0xff] }
0x34b6   : > { %v24971_v4 = vpop.f32.mrb[115].mxu1  ;;  %v22281_v63 = vld [vmem:[#allocation9 + $0xb] ss:$0 sm:$0xff] }
0x34b7   : > { %v18717_v4 = vadd.f32 %v22262_v44, %v29202_v30 }
0x34bb   : > { %v29238_v39 = vpop.f32.mrb[116].mxu1 }
0x34bc   : > { %v24982_v27 = vpop.f32.mrb[117].mxu1 }
0x34bd   : > { %v19041_v51 = vpop.f32.mrb[118].mxu1  ;;  %v18763_v27 = vadd.f32 %v22263_v19, %v29232_v61  ;;  %v22265_v61 = vld [vmem:[#allocation9 + $0x3] ss:$0 sm:$0xff] }
0x34be   : > { %v24983_v13 = vpop.f32.mrb[119].mxu1 }
0x3530   : > { %v18520_v56 = vpop.xlane.xlu1 %18519 }
0x3531   : > { %v18521_v23 = vmul.f32 0.0078125, %v18520_v56 }
0x3533   : > { %v18522_v52 = vsub.f32 %v18516_v18, %v18521_v23 }
0x3535   : > { %v18523_v58 = vmul.f32 %v18522_v52, %v18522_v52 }
0x3537   : > { %18524 = vadd.xlane.f32.xlu1 %v18523_v58 }
0x35c4   : > { %v18525_v48 = vpop.xlane.xlu1 %18524 }
0x35c5   : > { %v18526_v5 = vmul.f32 0.0078125, %v18525_v48  ;;  %v19876_v48 = vpack.c.bf16 %v18717_v4, %v18717_v4  ;;  %v22268_v4 = vld [vmem:[#allocation9 + $0x6] ss:$0 sm:$0xff] }
0x35c7   : > { %v18527_v42 = vadd.f32 1e-05, %v18526_v5  ;;  %v19877_v5 = vpack.c.bf16 %v18763_v27, %v18763_v27  ;;  %v22269_v27 = vld [vmem:[#allocation9 + $0x7] ss:$0 sm:$0xff] }
0x35c9   : > { %25995 = vrsqrt.f32 %v18527_v42 }
0x35d3   : > { %v25996_v40 = vpop.eup %25995 }
0x35d4   : > { %v18529_v3 = vmul.f32 %v25996_v40, %v18522_v52 }
0x35d6   : > { %v18530_v24 = vmul.f32 %v22260_v2, %v18529_v3  ;;  %v22264_v3 = vld [vmem:[#allocation9 + $0x2] ss:$0 sm:$0xff] }
0x35d8   : > { %v18531_v46 = vadd.f32 %v22261_v37, %v18530_v24 }
0x35da   : > { %v29248_v47 = vpack.c.bf16 %v18531_v46, %v18531_v46  ;;  %v22282_v46 = vld [vmem:[#allocation9 + $0xc] ss:$0 sm:$0xff] }
0x35dc   : > { %24987 = vmatmul.mubr.bf16.vlgmr.msra.gmra.mrb[96].mxu0 %v29248_v47  ;;  %24993 = vmatmul.mubr.bf16.vlgmr.msra.gmra.mrb[120].mxu1 %v29248_v47 }
0x35dd   : > { %24997 = vmatpush3.bf16.xpose.msra.mxu0 %v25759_v25  ;;  %25003 = vmatpush3.bf16.xpose.msra.mxu1 %v25760_v15  ;;  %v22283_v25 = vld [vmem:[#allocation9 + $0xd] ss:$0 sm:$0xff]  ;;  %v18809_v15 = vadd.f32 %v22264_v3, %v29207_v43 }
0x35de   : > { %24998 = vmatprep.mubr.msk.bf16.mxu0 %vm26239_vm0, %v26238_v0  ;;  %25004 = vmatprep.mubr.msk.bf16.mxu1 %vm26239_vm0, %v26238_v0 }
0x35df   : > { %25008 = vmatprep.subr.bf16.mxu0 %v26238_v0  ;;  %25014 = vmatprep.subr.bf16.mxu1 %v26238_v0 }
0x35e4   : > { %24999 = vmatmul.mubr.bf16.vlgmr.msra.gmra.mrb[100].mxu0 %v29248_v47  ;;  %25005 = vmatmul.mubr.bf16.vlgmr.msra.gmra.mrb[124].mxu1 %v29248_v47 }
0x35e5   : > { %25009 = vmatpush3.bf16.xpose.msra.mxu0 %v25761_v8  ;;  %25015 = vmatpush3.bf16.xpose.msra.mxu1 %v25762_v34 }
0x35e6   : > { %25010 = vmatprep.mubr.msk.bf16.mxu0 %vm26239_vm0, %v26238_v0  ;;  %25016 = vmatprep.mubr.msk.bf16.mxu1 %vm26239_vm0, %v26238_v0 }
0x35e7   : > { %25020 = vmatprep.subr.bf16.mxu0 %v26238_v0  ;;  %25026 = vmatprep.subr.bf16.mxu1 %v26238_v0 }
0x35ec   : > { %25011 = vmatmul.mubr.bf16.vlgmr.msra.gmra.mrb[104].mxu0 %v29248_v47  ;;  %25017 = vmatmul.mubr.bf16.vlgmr.msra.gmra.mrb[128].mxu1 %v29248_v47 }
0x35ed   : > { %25021 = vmatpush3.bf16.xpose.msra.mxu0 %v25763_v1  ;;  %25027 = vmatpush3.bf16.xpose.msra.mxu1 %v25764_v45 }
0x35ee   : > { %25022 = vmatprep.mubr.msk.bf16.mxu0 %vm26239_vm0, %v26238_v0  ;;  %25028 = vmatprep.mubr.msk.bf16.mxu1 %vm26239_vm0, %v26238_v0 }
0x35ef   : > { %25032 = vmatprep.subr.bf16.mxu0 %v26238_v0  ;;  %25038 = vmatprep.subr.bf16.mxu1 %v26238_v0 }
0x35f4   : > { %25023 = vmatmul.mubr.bf16.vlgmr.msra.gmra.mrb[108].mxu0 %v29248_v47  ;;  %25029 = vmatmul.mubr.bf16.vlgmr.msra.gmra.mrb[132].mxu1 %v29248_v47 }
0x35f5   : > { %25033 = vmatpush3.bf16.xpose.msra.mxu0 %v25765_v59  ;;  %25039 = vmatpush3.bf16.xpose.msra.mxu1 %v25766_v55 }
0x35f6   : > { %25034 = vmatprep.mubr.msk.bf16.mxu0 %vm26239_vm0, %v26238_v0  ;;  %25040 = vmatprep.mubr.msk.bf16.mxu1 %vm26239_vm0, %v26238_v0 }
0x35f7   : > { %25044 = vmatprep.subr.bf16.mxu0 %v26238_v0  ;;  %25050 = vmatprep.subr.bf16.mxu1 %v26238_v0 }
0x35fc   : > { %25035 = vmatmul.mubr.bf16.vlgmr.msra.gmra.mrb[112].mxu0 %v29248_v47  ;;  %25041 = vmatmul.mubr.bf16.vlgmr.msra.gmra.mrb[136].mxu1 %v29248_v47 }
0x35fd   : > { %25045 = vmatpush3.bf16.xpose.msra.mxu0 %v25767_v50  ;;  %25051 = vmatpush3.bf16.xpose.msra.mxu1 %v25768_v26  ;;  %v19878_v26 = vpack.c.bf16 %v18809_v15, %v18809_v15 }
0x35fe   : > { %25046 = vmatprep.mubr.msk.bf16.mxu0 %vm26239_vm0, %v26238_v0  ;;  %25052 = vmatprep.mubr.msk.bf16.mxu1 %vm26239_vm0, %v26238_v0 }
0x35ff   : > { %25056 = vmatprep.subr.bf16.mxu0 %v26238_v0  ;;  %25062 = vmatprep.subr.bf16.mxu1 %v26238_v0 }
0x3604   : > { %25047 = vmatmul.mubr.bf16.vlgmr.msra.gmra.mrb[116].mxu0 %v29248_v47  ;;  %25053 = vmatmul.mubr.bf16.vlgmr.msra.gmra.mrb[140].mxu1 %v29248_v47 }
0x3605   : > { %25057 = vmatpush3.bf16.xpose.msra.mxu0 %v25769_v32  ;;  %25063 = vmatpush3.bf16.xpose.msra.mxu1 %v25770_v17 }
0x3606   : > { %25058 = vmatprep.mubr.msk.bf16.mxu0 %vm26239_vm0, %v26238_v0  ;;  %25064 = vmatprep.mubr.msk.bf16.mxu1 %vm26239_vm0, %v26238_v0 }
0x3607   : > { %25068 = vmatprep.subr.bf16.mxu0 %v26238_v0  ;;  %25074 = vmatprep.subr.bf16.mxu1 %v26238_v0 }
0x360c   : > { %25059 = vmatmul.mubr.bf16.vlgmr.msra.gmra.mrb[120].mxu0 %v29248_v47  ;;  %25065 = vmatmul.mubr.bf16.vlgmr.msra.gmra.mrb[144].mxu1 %v29248_v47 }
0x360d   : > { %25069 = vmatpush3.bf16.xpose.msra.mxu0 %v25771_v12  ;;  %25075 = vmatpush3.bf16.xpose.msra.mxu1 %v25772_v41 }
0x360e   : > { %25070 = vmatprep.mubr.msk.bf16.mxu0 %vm26239_vm0, %v26238_v0  ;;  %25076 = vmatprep.mubr.msk.bf16.mxu1 %vm26239_vm0, %v26238_v0 }
0x360f   : > { %25080 = vmatprep.subr.bf16.mxu0 %v26238_v0  ;;  %25086 = vmatprep.subr.bf16.mxu1 %v26238_v0 }
0x3614   : > { %25071 = vmatmul.mubr.bf16.vlgmr.msra.gmra.mrb[124].mxu0 %v29248_v47  ;;  %25077 = vmatmul.mubr.bf16.vlgmr.msra.gmra.mrb[148].mxu1 %v29248_v47  ;;  %v18855_v47 = vadd.f32 %v22265_v61, %v29234_v10 }
0x3615   : > { %25082 = vmatprep.mubr.msk.bf16.mxu0 %vm26239_vm0, %v26238_v0  ;;  %25088 = vmatprep.mubr.msk.bf16.mxu1 %vm26239_vm0, %v26238_v0 }
0x3616   : > { %v19879_v10 = vpack.c.bf16 %v18855_v47, %v18855_v47 }
0x36af   : > { %v19132_v53 = vpop.f32.mrb[96].mxu0  ;;  %v19178_v14 = vpop.f32.mrb[120].mxu1 }
0x36b0   : > { %v19133_v36 = vadd.f32 %v22278_v28, %v19132_v53  ;;  %v19179_v21 = vadd.f32 %v22279_v22, %v19178_v14  ;;  %v24988_v16 = vpop.f32.mrb[97].mxu0  ;;  %v24994_v7 = vpop.f32.mrb[121].mxu1  ;;  %v22266_v28 = vld [vmem:[#allocation9 + $0x4] ss:$0 sm:$0xff]  ;;  %v22267_v22 = vld [vmem:[#allocation9 + $0x5] ss:$0 sm:$0xff] }
0x36b1   : > { %v19135_v35 = vpop.f32.mrb[98].mxu0  ;;  %v19181_v6 = vpop.f32.mrb[122].mxu1  ;;  %v18901_v16 = vadd.f32 %v22266_v28, %v29213_v11  ;;  %v18947_v7 = vadd.f32 %v22267_v22, %v29236_v49 }
0x36b2   : > { %v19884_v9 = vpack.c.bf16 %v19133_v36, %v19133_v36  ;;  %v19885_v18 = vpack.c.bf16 %v19179_v21, %v19179_v21  ;;  %v24989_v57 = vpop.f32.mrb[99].mxu0  ;;  %v24995_v54 = vpop.f32.mrb[123].mxu1  ;;  %v22284_v36 = vld [vmem:[#allocation9 + $0xe] ss:$0 sm:$0xff]  ;;  %v22285_v21 = vld [vmem:[#allocation9 + $0xf] ss:$0 sm:$0xff] }
0x36b3   : > { %v19880_v19 = vpack.c.bf16 %v18901_v16, %v18901_v16  ;;  %v19881_v49 = vpack.c.bf16 %v18947_v7, %v18947_v7 }
0x36b4   : > { %v19896_v38 = vsel %vm1979_vm1, %v19884_v9, 0  ;;  %v19942_v62 = vsel %vm1979_vm1, %v19885_v18, 0 }
0x36b5   : > { %25081 = vmatpush3.bf16.xpose.msra.mxu0 %v19896_v38  ;;  %25087 = vmatpush3.bf16.xpose.msra.mxu1 %v19942_v62 }
0x36b6   : > { %25092 = vmatprep.subr.bf16.mxu0 %v26238_v0  ;;  %25098 = vmatprep.subr.bf16.mxu1 %v26238_v0 }
0x36b7   : > { %v19224_v51 = vpop.f32.mrb[100].mxu0  ;;  %v19270_v13 = vpop.f32.mrb[124].mxu1 }
0x36b8   : > { %v19225_v56 = vadd.f32 %v22280_v20, %v19224_v51  ;;  %v19271_v23 = vadd.f32 %v22281_v63, %v19270_v13  ;;  %v25000_v52 = vpop.f32.mrb[101].mxu0  ;;  %v25006_v58 = vpop.f32.mrb[125].mxu1 }
0x36b9   : > { %v19227_v33 = vpop.f32.mrb[102].mxu0  ;;  %v19273_v31 = vpop.f32.mrb[126].mxu1  ;;  %v18993_v52 = vadd.f32 %v22268_v4, %v29219_v29  ;;  %v19039_v58 = vadd.f32 %v22269_v27, %v29238_v39 }
0x36ba   : > { %v19886_v42 = vpack.c.bf16 %v19225_v56, %v19225_v56  ;;  %v19887_v40 = vpack.c.bf16 %v19271_v23, %v19271_v23  ;;  %v25001_v2 = vpop.f32.mrb[103].mxu0  ;;  %v25007_v30 = vpop.f32.mrb[127].mxu1  ;;  %v22294_v56 = vld [vmem:[#allocation9 + $0x10] ss:$0 sm:$0xff]  ;;  %v22295_v23 = vld [vmem:[#allocation9 + $0x11] ss:$0 sm:$0xff] }
0x36bb   : > { %v19882_v30 = vpack.c.bf16 %v18993_v52, %v18993_v52  ;;  %v19883_v39 = vpack.c.bf16 %v19039_v58, %v19039_v58 }
0x36bc   : > { %v19988_v37 = vsel %vm1979_vm1, %v19886_v42, 0  ;;  %v20034_v24 = vsel %vm1979_vm1, %v19887_v40, 0  ;;  %25083 = vmatmul.mubr.msk.bf16.vlgmr.msra.gmra.mrb[128].mxu0 %vm1979_vm1, %v19876_v48  ;;  %25089 = vmatmul.mubr.msk.bf16.vlgmr.msra.gmra.mrb[152].mxu1 %vm1979_vm1, %v19877_v5 }
0x36bd   : > { %25093 = vmatpush3.bf16.xpose.msra.mxu0 %v19988_v37  ;;  %25099 = vmatpush3.bf16.xpose.msra.mxu1 %v20034_v24 }
0x36be   : > { %25094 = vmatprep.mubr.msk.bf16.mxu0 %vm26239_vm0, %v26238_v0  ;;  %25100 = vmatprep.mubr.msk.bf16.mxu1 %vm26239_vm0, %v26238_v0 }
0x36bf   : > { %v19316_v8 = vpop.f32.mrb[104].mxu0  ;;  %v19362_v34 = vpop.f32.mrb[128].mxu1  ;;  %25104 = vmatprep.subr.bf16.mxu0 %v26238_v0  ;;  %25110 = vmatprep.subr.bf16.mxu1 %v26238_v0 }
0x36c0   : > { %v19317_v1 = vadd.f32 %v22282_v46, %v19316_v8  ;;  %v19363_v45 = vadd.f32 %v22283_v25, %v19362_v34  ;;  %v25012_v59 = vpop.f32.mrb[105].mxu0  ;;  %v25018_v55 = vpop.f32.mrb[129].mxu1 }
0x36c1   : > { %v19319_v50 = vpop.f32.mrb[106].mxu0  ;;  %v19365_v43 = vpop.f32.mrb[130].mxu1 }
0x36c2   : > { %v19888_v32 = vpack.c.bf16 %v19317_v1, %v19317_v1  ;;  %v19889_v17 = vpack.c.bf16 %v19363_v45, %v19363_v45  ;;  %v25013_v12 = vpop.f32.mrb[107].mxu0  ;;  %v25019_v41 = vpop.f32.mrb[131].mxu1 }
0x36c4   : > { %v20080_v53 = vsel %vm1979_vm1, %v19888_v32, 0  ;;  %v20126_v14 = vsel %vm1979_vm1, %v19889_v17, 0  ;;  %25095 = vmatmul.mubr.msk.bf16.vlgmr.msra.gmra.mrb[132].mxu0 %vm1979_vm1, %v19878_v26  ;;  %25101 = vmatmul.mubr.msk.bf16.vlgmr.msra.gmra.mrb[156].mxu1 %vm1979_vm1, %v19879_v10 }
0x36c5   : > { %25105 = vmatpush3.bf16.xpose.msra.mxu0 %v20080_v53  ;;  %25111 = vmatpush3.bf16.xpose.msra.mxu1 %v20126_v14 }
0x36c6   : > { %25106 = vmatprep.mubr.msk.bf16.mxu0 %vm26239_vm0, %v26238_v0  ;;  %25112 = vmatprep.mubr.msk.bf16.mxu1 %vm26239_vm0, %v26238_v0 }
0x36c7   : > { %v19408_v35 = vpop.f32.mrb[108].mxu0  ;;  %v19454_v6 = vpop.f32.mrb[132].mxu1  ;;  %25116 = vmatprep.subr.bf16.mxu0 %v26238_v0  ;;  %25122 = vmatprep.subr.bf16.mxu1 %v26238_v0 }
0x36c8   : > { %v19409_v9 = vadd.f32 %v22284_v36, %v19408_v35  ;;  %v19455_v18 = vadd.f32 %v22285_v21, %v19454_v6  ;;  %v25024_v57 = vpop.f32.mrb[109].mxu0  ;;  %v25030_v54 = vpop.f32.mrb[133].mxu1 }
0x36c9   : > { %v19411_v44 = vpop.f32.mrb[110].mxu0  ;;  %v19457_v11 = vpop.f32.mrb[134].mxu1 }
0x36ca   : > { %v19890_v38 = vpack.c.bf16 %v19409_v9, %v19409_v9  ;;  %v19891_v62 = vpack.c.bf16 %v19455_v18, %v19455_v18  ;;  %v25025_v20 = vpop.f32.mrb[111].mxu0  ;;  %v25031_v63 = vpop.f32.mrb[135].mxu1 }
0x36cc   : > { %v20172_v51 = vsel %vm1979_vm1, %v19890_v38, 0  ;;  %v20218_v13 = vsel %vm1979_vm1, %v19891_v62, 0  ;;  %25107 = vmatmul.mubr.msk.bf16.vlgmr.msra.gmra.mrb[136].mxu0 %vm1979_vm1, %v19880_v19  ;;  %25113 = vmatmul.mubr.msk.bf16.vlgmr.msra.gmra.mrb[160].mxu1 %vm1979_vm1, %v19881_v49 }
0x36cd   : > { %25117 = vmatpush3.bf16.xpose.msra.mxu0 %v20172_v51  ;;  %25123 = vmatpush3.bf16.xpose.msra.mxu1 %v20218_v13 }
0x36ce   : > { %25118 = vmatprep.mubr.msk.bf16.mxu0 %vm26239_vm0, %v26238_v0  ;;  %25124 = vmatprep.mubr.msk.bf16.mxu1 %vm26239_vm0, %v26238_v0 }
0x36cf   : > { %v19548_v33 = vpop.f32.mrb[112].mxu0  ;;  %v19594_v31 = vpop.f32.mrb[136].mxu1  ;;  %25128 = vmatprep.subr.bf16.mxu0 %v26238_v0  ;;  %25134 = vmatprep.subr.bf16.mxu1 %v26238_v0 }
0x36d0   : > { %v19549_v48 = vadd.f32 %v22294_v56, %v19548_v33  ;;  %v19595_v5 = vadd.f32 %v22295_v23, %v19594_v31  ;;  %v25036_v42 = vpop.f32.mrb[113].mxu0  ;;  %v25042_v40 = vpop.f32.mrb[137].mxu1 }
0x36d1   : > { %v19551_v2 = vpop.f32.mrb[114].mxu0  ;;  %v19597_v29 = vpop.f32.mrb[138].mxu1 }
0x36d2   : > { %v20356_v3 = vpack.c.bf16 %v19549_v48, %v19549_v48  ;;  %v20357_v61 = vpack.c.bf16 %v19595_v5, %v19595_v5  ;;  %v25037_v37 = vpop.f32.mrb[115].mxu0  ;;  %v25043_v24 = vpop.f32.mrb[139].mxu1 }
0x36d4   : > { %v20368_v46 = vsel %vm2456_vm2, %v20356_v3, 0  ;;  %v20414_v25 = vsel %vm2456_vm2, %v20357_v61, 0  ;;  %25119 = vmatmul.mubr.msk.bf16.vlgmr.msra.gmra.mrb[140].mxu0 %vm1979_vm1, %v19882_v30  ;;  %25125 = vmatmul.mubr.msk.bf16.vlgmr.msra.gmra.mrb[164].mxu1 %vm1979_vm1, %v19883_v39 }
0x36d5   : > { %25129 = vmatpush3.bf16.msra.mxu0 %v20368_v46  ;;  %25135 = vmatpush3.bf16.msra.mxu1 %v20414_v25 }
0x36d6   : > { %25130 = vmatprep.mubr.msk.bf16.mxu0 %vm26239_vm0, %v26238_v0  ;;  %25136 = vmatprep.mubr.msk.bf16.mxu1 %vm26239_vm0, %v26238_v0 }
0x36d7   : > { %v29362_v15 = vpop.f32.mrb[116].mxu0  ;;  %v29364_v47 = vpop.f32.mrb[140].mxu1  ;;  %25140 = vmatprep.subr.bf16.mxu0 %v26238_v0  ;;  %25146 = vmatprep.subr.bf16.mxu1 %v26238_v0 }
0x36d8   : > { %v25048_v8 = vpop.f32.mrb[117].mxu0  ;;  %v25054_v34 = vpop.f32.mrb[141].mxu1 }
0x36d9   : > { %v19643_v1 = vpop.f32.mrb[118].mxu0  ;;  %v19689_v45 = vpop.f32.mrb[142].mxu1 }
0x36da   : > { %v25049_v59 = vpop.f32.mrb[119].mxu0  ;;  %v25055_v55 = vpop.f32.mrb[143].mxu1 }
0x36df   : > { %v29368_v50 = vpop.f32.mrb[120].mxu0  ;;  %v29370_v43 = vpop.f32.mrb[144].mxu1 }
0x36e0   : > { %v25060_v26 = vpop.f32.mrb[121].mxu0  ;;  %v25066_v10 = vpop.f32.mrb[145].mxu1 }
0x36e1   : > { %v19735_v32 = vpop.f32.mrb[122].mxu0  ;;  %v19781_v17 = vpop.f32.mrb[146].mxu1 }
0x36e2   : > { %v25061_v12 = vpop.f32.mrb[123].mxu0  ;;  %v25067_v41 = vpop.f32.mrb[147].mxu1 }
0x36e7   : > { %v29372_v28 = vpop.f32.mrb[124].mxu0  ;;  %v29374_v22 = vpop.f32.mrb[148].mxu1 }
0x36e8   : > { %v25072_v53 = vpop.f32.mrb[125].mxu0  ;;  %v25078_v14 = vpop.f32.mrb[149].mxu1 }
0x36e9   : > { %v19827_v36 = vpop.f32.mrb[126].mxu0  ;;  %v19873_v21 = vpop.f32.mrb[150].mxu1 }
0x36ea   : > { %v25073_v16 = vpop.f32.mrb[127].mxu0  ;;  %v25079_v7 = vpop.f32.mrb[151].mxu1 }
0x378f   : > { %v19932_v35 = vpop.f32.mrb[128].mxu0  ;;  %v19978_v6 = vpop.f32.mrb[152].mxu1 }
0x3790   : > { %v25084_v9 = vpop.f32.mrb[129].mxu0  ;;  %v25090_v18 = vpop.f32.mrb[153].mxu1  ;;  %v20263_v57 = vsel %vm2348_vm3, %v19978_v6, -inf  ;;  %v20260_v54 = vsel %vm2348_vm3, %v19932_v35, -inf }
0x3791   : > { %20264 = vmax.xlane.f32.xlu1 %v20263_v57  ;;  %v19981_v44 = vpop.f32.mrb[154].mxu1  ;;  %20261 = vmax.xlane.f32.xlu0 %v20260_v54  ;;  %v19935_v11 = vpop.f32.mrb[130].mxu0 }
0x3792   : > { %v25085_v19 = vpop.f32.mrb[131].mxu0  ;;  %v25091_v49 = vpop.f32.mrb[155].mxu1 }
0x3797   : > { %v20024_v38 = vpop.f32.mrb[132].mxu0  ;;  %v20070_v62 = vpop.f32.mrb[156].mxu1 }
0x3798   : > { %v25096_v20 = vpop.f32.mrb[133].mxu0  ;;  %v25102_v63 = vpop.f32.mrb[157].mxu1  ;;  %v20269_v4 = vsel %vm2348_vm3, %v20070_v62, -inf  ;;  %v20266_v27 = vsel %vm2348_vm3, %v20024_v38, -inf }
0x3799   : > { %20270 = vmax.xlane.f32.xlu1 %v20269_v4  ;;  %v20073_v51 = vpop.f32.mrb[158].mxu1  ;;  %20267 = vmax.xlane.f32.xlu0 %v20266_v27  ;;  %v20027_v13 = vpop.f32.mrb[134].mxu0 }
0x379a   : > { %v25097_v56 = vpop.f32.mrb[135].mxu0  ;;  %v25103_v23 = vpop.f32.mrb[159].mxu1 }
0x379f   : > { %v20116_v52 = vpop.f32.mrb[136].mxu0  ;;  %v20162_v58 = vpop.f32.mrb[160].mxu1 }
0x37a0   : > { %v25108_v33 = vpop.f32.mrb[137].mxu0  ;;  %v25114_v31 = vpop.f32.mrb[161].mxu1  ;;  %v20275_v48 = vsel %vm2348_vm3, %v20162_v58, -inf  ;;  %v20272_v5 = vsel %vm2348_vm3, %v20116_v52, -inf }
0x37a1   : > { %20276 = vmax.xlane.f32.xlu1 %v20275_v48  ;;  %v20165_v42 = vpop.f32.mrb[162].mxu1  ;;  %20273 = vmax.xlane.f32.xlu0 %v20272_v5  ;;  %v20119_v40 = vpop.f32.mrb[138].mxu0 }
0x37a2   : > { %v25109_v2 = vpop.f32.mrb[139].mxu0  ;;  %v25115_v29 = vpop.f32.mrb[163].mxu1  ;;  %v22297_v42 = vld [vmem:[#allocation9 + $0x13] ss:$0 sm:$0xff]  ;;  %v22296_v40 = vld [vmem:[#allocation9 + $0x12] ss:$0 sm:$0xff] }
0x37a3   : > { %v19687_v2 = vadd.f32 %v22297_v42, %v29364_v47 }
0x37a7   : > { %v20208_v30 = vpop.f32.mrb[140].mxu0  ;;  %v20254_v39 = vpop.f32.mrb[164].mxu1 }
0x37a8   : > { %v25120_v3 = vpop.f32.mrb[141].mxu0  ;;  %v25126_v61 = vpop.f32.mrb[165].mxu1  ;;  %v20281_v37 = vsel %vm2348_vm3, %v20254_v39, -inf  ;;  %v20278_v24 = vsel %vm2348_vm3, %v20208_v30, -inf }
0x37a9   : > { %20282 = vmax.xlane.f32.xlu1 %v20281_v37  ;;  %v20257_v46 = vpop.f32.mrb[166].mxu1  ;;  %20279 = vmax.xlane.f32.xlu0 %v20278_v24  ;;  %v20211_v25 = vpop.f32.mrb[142].mxu0  ;;  %v20359_v37 = vpack.c.bf16 %v19687_v2, %v19687_v2 }
0x37aa   : > { %v25121_v8 = vpop.f32.mrb[143].mxu0  ;;  %v25127_v34 = vpop.f32.mrb[167].mxu1  ;;  %v22299_v25 = vld [vmem:[#allocation9 + $0x15] ss:$0 sm:$0xff] }
0x37ab   : > { %v22298_v34 = vld [vmem:[#allocation9 + $0x14] ss:$0 sm:$0xff]  ;;  %v19779_v47 = vadd.f32 %v22299_v25, %v29370_v43  ;;  %v25777_v25 = vld [vmem:[#allocation7 + $0xe0] sm:$0xff]  }
0x381e   : > { %v20265_v1 = vpop.xlane.xlu1 %20264  ;;  %v20262_v45 = vpop.xlane.xlu0 %20261 }
0x381f   : > { %v20285_v59 = vsub.f32 %v19978_v6, %v20265_v1  ;;  %v20284_v55 = vsub.f32 %v19932_v35, %v20262_v45 }
0x3821   : > { %v20294_v26 = vmul.f32 1.442695, %v20285_v59  ;;  %v20292_v10 = vmul.f32 1.442695, %v20284_v55  ;;  %v20506_v59 = vsel %vm2456_vm2, %v20359_v37, 0 }
0x3823   : > { %25997 = vpow2.f32 %v20294_v26  ;;  %v19733_v26 = vadd.f32 %v22298_v34, %v29368_v50 }
0x3824   : > { %25999 = vpow2.f32 %v20292_v10 }
0x3826   : > { %v20271_v32 = vpop.xlane.xlu1 %20270  ;;  %v20268_v17 = vpop.xlane.xlu0 %20267 }
0x3827   : > { %v20287_v12 = vsub.f32 %v20070_v62, %v20271_v32  ;;  %v20286_v41 = vsub.f32 %v20024_v38, %v20268_v17  ;;  %v20361_v17 = vpack.c.bf16 %v19779_v47, %v19779_v47 }
0x3829   : > { %v20298_v53 = vmul.f32 1.442695, %v20287_v12  ;;  %v20296_v14 = vmul.f32 1.442695, %v20286_v41  ;;  %v20360_v12 = vpack.c.bf16 %v19733_v26, %v19733_v26  ;;  %v22301_v41 = vld [vmem:[#allocation9 + $0x17] ss:$0 sm:$0xff] }
0x382b   : > { %26001 = vpow2.f32 %v20298_v53 }
0x382c   : > { %26003 = vpow2.f32 %v20296_v14  ;;  %v22300_v14 = vld [vmem:[#allocation9 + $0x16] ss:$0 sm:$0xff] }
0x382d   : > { %v25998_v36 = vpop.eup %25997 }
0x382e   : > { %v26000_v21 = vpop.eup %25999  ;;  %v20277_v16 = vpop.xlane.xlu1 %20276  ;;  %v20311_v9 = vsel %vm2348_vm3, %v25998_v36, 0.0 }
0x382f   : > { %v20274_v7 = vpop.xlane.xlu0 %20273  ;;  %v20289_v6 = vsub.f32 %v20162_v58, %v20277_v16  ;;  %20312 = vadd.xlane.f32.xlu1 %v20311_v9  ;;  %v20308_v18 = vsel %vm2348_vm3, %v26000_v21, 0.0  ;;  %v20598_v16 = vsel %vm2456_vm2, %v20361_v17, 0 }
0x3830   : > { %v20288_v35 = vsub.f32 %v20116_v52, %v20274_v7  ;;  %20309 = vadd.xlane.f32.xlu0 %v20308_v18  ;;  %v19871_v7 = vadd.f32 %v22301_v41, %v29374_v22 }
0x3831   : > { %v20302_v57 = vmul.f32 1.442695, %v20289_v6  ;;  %v20552_v6 = vsel %vm2456_vm2, %v20360_v12, 0 }
0x3832   : > { %v20300_v54 = vmul.f32 1.442695, %v20288_v35  ;;  %v19825_v35 = vadd.f32 %v22300_v14, %v29372_v28 }
0x3833   : > { %26005 = vpow2.f32 %v20302_v57 }
0x3834   : > { %26007 = vpow2.f32 %v20300_v54  ;;  %v20363_v54 = vpack.c.bf16 %v19871_v7, %v19871_v7 }
0x3835   : > { %v29386_v44 = vpop.eup %26001 }
0x3836   : > { %v29388_v11 = vpop.eup %26003  ;;  %v20283_v19 = vpop.xlane.xlu1 %20282  ;;  %v20317_v38 = vsel %vm2348_vm3, %v29386_v44, 0.0 }
0x3837   : > { %v20280_v49 = vpop.xlane.xlu0 %20279  ;;  %v20291_v62 = vsub.f32 %v20254_v39, %v20283_v19  ;;  %20318 = vadd.xlane.f32.xlu1 %v20317_v38  ;;  %v20314_v63 = vsel %vm2348_vm3, %v29388_v11, 0.0  ;;  %v20690_v38 = vsel %vm2456_vm2, %v20363_v54, 0 }
0x3838   : > { %v20290_v20 = vsub.f32 %v20208_v30, %v20280_v49  ;;  %20315 = vadd.xlane.f32.xlu0 %v20314_v63  ;;  %v19641_v30 = vadd.f32 %v22296_v40, %v29362_v15 }
0x3839   : > { %v20306_v4 = vmul.f32 1.442695, %v20291_v62 }
0x383a   : > { %v20304_v27 = vmul.f32 1.442695, %v20290_v20  ;;  %v20358_v46 = vpack.c.bf16 %v19641_v30, %v19641_v30 }
0x383b   : > { %26009 = vpow2.f32 %v20306_v4 }
0x383c   : > { %26011 = vpow2.f32 %v20304_v27  ;;  %v20460_v55 = vsel %vm2456_vm2, %v20358_v46, 0 }
0x383d   : > { %v29394_v51 = vpop.eup %26005 }
0x383e   : > { %v29396_v13 = vpop.eup %26007  ;;  %v20323_v56 = vsel %vm2348_vm3, %v29394_v51, 0.0 }
0x383f   : > { %20324 = vadd.xlane.f32.xlu1 %v20323_v56  ;;  %v20320_v23 = vsel %vm2348_vm3, %v29396_v13, 0.0  ;;  %v25773_v56 = vld [vmem:[#allocation7 + $0xc0] sm:$0xff]  }
0x3840   : > { %20321 = vadd.xlane.f32.xlu0 %v20320_v23 }
0x3845   : > { %v29402_v52 = vpop.eup %26009 }
0x3846   : > { %v29404_v58 = vpop.eup %26011  ;;  %v20329_v33 = vsel %vm2348_vm3, %v29402_v52, 0.0 }
0x3847   : > { %20330 = vadd.xlane.f32.xlu1 %v20329_v33  ;;  %v20326_v31 = vsel %vm2348_vm3, %v29404_v58, 0.0 }
0x3848   : > { %20327 = vadd.xlane.f32.xlu0 %v20326_v31 }
0x38bc   : > { %v20313_v48 = vpop.xlane.xlu1 %20312 }
0x38bd   : > { %26013 = vrcp.f32 %v20313_v48  ;;  %v20310_v5 = vpop.xlane.xlu0 %20309 }
0x38be   : > { %26015 = vrcp.f32 %v20310_v5  ;;  %v25775_v5 = vld [vmem:[#allocation7 + $0xd0] sm:$0xff]  }
0x38c4   : > { %v20319_v29 = vpop.xlane.xlu1 %20318 }
0x38c5   : > { %26017 = vrcp.f32 %v20319_v29  ;;  %v20316_v39 = vpop.xlane.xlu0 %20315 }
0x38c6   : > { %26019 = vrcp.f32 %v20316_v39 }
0x38c7   : > { %v26014_v3 = vpop.eup %26013 }
0x38c8   : > { %v26016_v61 = vpop.eup %26015  ;;  %v20341_v24 = vmul.f32 %v26014_v3, %v25998_v36 }
0x38c9   : > { %v20340_v8 = vmul.f32 %v26016_v61, %v26000_v21  ;;  %v25778_v61 = vld [vmem:[#allocation7 + $0xe8] sm:$0xff]  }
0x38ca   : > { %v20349_v1 = vpack.c.bf16 %v20341_v24, %v20341_v24 }
0x38cb   : > { %v20348_v45 = vpack.c.bf16 %v20340_v8, %v20340_v8 }
0x38cc   : > { %25137 = vmatmul.mubr.msk.bf16.vlgmr.msra.gmra.mrb[168].mxu1 %vm2348_vm3, %v20349_v1  ;;  %v20325_v15 = vpop.xlane.xlu1 %20324 }
0x38cd   : > { %25147 = vmatpush3.bf16.msra.mxu1 %v20506_v59  ;;  %26021 = vrcp.f32 %v20325_v15  ;;  %25131 = vmatmul.mubr.msk.bf16.vlgmr.msra.gmra.mrb[144].mxu0 %vm2348_vm3, %v20348_v45  ;;  %v20322_v10 = vpop.xlane.xlu0 %20321 }
0x38ce   : > { %25141 = vmatpush3.bf16.msra.mxu0 %v20460_v55  ;;  %26023 = vrcp.f32 %v20322_v10  ;;  %25142 = vmatprep.mubr.msk.bf16.mxu0 %vm26239_vm0, %v26238_v0  ;;  %v25780_v55 = vld [vmem:[#allocation7 + $0xf8] sm:$0xff]  }
0x38cf   : > { %v26018_v32 = vpop.eup %26017  ;;  %25148 = vmatprep.mubr.msk.bf16.mxu1 %vm26239_vm0, %v26238_v0  ;;  %25152 = vmatprep.subr.bf16.mxu0 %v26238_v0 }
0x38d0   : > { %v26020_v43 = vpop.eup %26019  ;;  %v20343_v50 = vmul.f32 %v26018_v32, %v29386_v44  ;;  %25158 = vmatprep.subr.bf16.mxu1 %v26238_v0  ;;  %v20362_v44 = vpack.c.bf16 %v19825_v35, %v19825_v35 }
0x38d1   : > { %v20342_v53 = vmul.f32 %v26020_v43, %v29388_v11  ;;  %v25779_v43 = vld [vmem:[#allocation7 + $0xf0] sm:$0xff]  }
0x38d2   : > { %v20351_v36 = vpack.c.bf16 %v20343_v50, %v20343_v50  ;;  %v20644_v62 = vsel %vm2456_vm2, %v20362_v44, 0 }
0x38d3   : > { %v20350_v21 = vpack.c.bf16 %v20342_v53, %v20342_v53 }
0x38d4   : > { %25149 = vmatmul.mubr.msk.bf16.vlgmr.msra.gmra.mrb[172].mxu1 %vm2348_vm3, %v20351_v36  ;;  %v20331_v9 = vpop.xlane.xlu1 %20330 }
0x38d5   : > { %25159 = vmatpush3.bf16.msra.mxu1 %v20598_v16  ;;  %26025 = vrcp.f32 %v20331_v9  ;;  %25143 = vmatmul.mubr.msk.bf16.vlgmr.msra.gmra.mrb[148].mxu0 %vm2348_vm3, %v20350_v21  ;;  %v20328_v18 = vpop.xlane.xlu0 %20327 }
0x38d6   : > { %25153 = vmatpush3.bf16.msra.mxu0 %v20552_v6  ;;  %26027 = vrcp.f32 %v20328_v18  ;;  %25154 = vmatprep.mubr.msk.bf16.mxu0 %vm26239_vm0, %v26238_v0 }
0x38d7   : > { %v26022_v57 = vpop.eup %26021  ;;  %25160 = vmatprep.mubr.msk.bf16.mxu1 %vm26239_vm0, %v26238_v0  ;;  %25164 = vmatprep.subr.bf16.mxu0 %v26238_v0 }
0x38d8   : > { %v26024_v22 = vpop.eup %26023  ;;  %v20345_v28 = vmul.f32 %v26022_v57, %v29394_v51  ;;  %25170 = vmatprep.subr.bf16.mxu1 %v26238_v0  ;;  %v25774_v51 = vld [vmem:[#allocation7 + $0xc8] sm:$0xff]  }
0x38d9   : > { %v20344_v11 = vmul.f32 %v26024_v22, %v29396_v13 }
0x38da   : > { %v20353_v19 = vpack.c.bf16 %v20345_v28, %v20345_v28 }
0x38db   : > { %v20352_v49 = vpack.c.bf16 %v20344_v11, %v20344_v11 }
0x38dc   : > { %25161 = vmatmul.mubr.msk.bf16.vlgmr.msra.gmra.mrb[176].mxu1 %vm2348_vm3, %v20353_v19 }
0x38dd   : > { %25155 = vmatmul.mubr.msk.bf16.vlgmr.msra.gmra.mrb[152].mxu0 %vm2348_vm3, %v20352_v49  ;;  %25171 = vmatpush3.bf16.msra.mxu1 %v20690_v38 }
0x38de   : > { %25165 = vmatpush3.bf16.msra.mxu0 %v20644_v62  ;;  %25166 = vmatprep.mubr.msk.bf16.mxu0 %vm26239_vm0, %v26238_v0 }
0x38df   : > { %v26026_v20 = vpop.eup %26025  ;;  %25172 = vmatprep.mubr.msk.bf16.mxu1 %vm26239_vm0, %v26238_v0  ;;  %25176 = vmatprep.subr.bf16.mxu0 %v26238_v0 }
0x38e0   : > { %v26028_v63 = vpop.eup %26027  ;;  %v20347_v4 = vmul.f32 %v26026_v20, %v29402_v52  ;;  %25182 = vmatprep.subr.bf16.mxu1 %v26238_v0 }
0x38e1   : > { %v20346_v27 = vmul.f32 %v26028_v63, %v29404_v58  ;;  %v25776_v58 = vld [vmem:[#allocation7 + $0xd8] sm:$0xff]  }
0x38e2   : > { %v20355_v13 = vpack.c.bf16 %v20347_v4, %v20347_v4 }
0x38e3   : > { %v20354_v23 = vpack.c.bf16 %v20346_v27, %v20346_v27 }
0x38e4   : > { %25173 = vmatmul.mubr.msk.bf16.vlgmr.msra.gmra.mrb[180].mxu1 %vm2348_vm3, %v20355_v13 }
0x38e5   : > { %25167 = vmatmul.mubr.msk.bf16.vlgmr.msra.gmra.mrb[156].mxu0 %vm2348_vm3, %v20354_v23  ;;  %25183 = vmatpush3.bf16.msra.mxu1 %v25774_v51 }
0x38e6   : > { %25177 = vmatpush3.bf16.msra.mxu0 %v25773_v56  ;;  %25178 = vmatprep.mubr.msk.bf16.mxu0 %vm26239_vm0, %v26238_v0 }
0x38e7   : > { %25184 = vmatprep.mubr.msk.bf16.mxu1 %vm26239_vm0, %v26238_v0  ;;  %25188 = vmatprep.subr.bf16.mxu0 %v26238_v0 }
0x38e8   : > { %25194 = vmatprep.subr.bf16.mxu1 %v26238_v0 }
0x399f   : > { %v20450_v52 = vpop.f32.mrb[168].mxu1 }
0x39a0   : > { %v20404_v33 = vpop.f32.mrb[144].mxu0  ;;  %v20733_v31 = vpack.c.bf16 %v20450_v52, %v20450_v52  ;;  %v25138_v48 = vpop.f32.mrb[169].mxu1 }
0x39a1   : > { %v20732_v42 = vpack.c.bf16 %v20404_v33, %v20404_v33  ;;  %v25132_v40 = vpop.f32.mrb[145].mxu0  ;;  %v20453_v2 = vpop.f32.mrb[170].mxu1 }
0x39a2   : > { %v20407_v29 = vpop.f32.mrb[146].mxu0  ;;  %v25139_v30 = vpop.f32.mrb[171].mxu1  ;;  %25185 = vmatmul.mubr.msk.bf16.vlgmr.msra.gmra.mrb[184].mxu1 %vm1979_vm1, %v20733_v31 }
0x39a3   : > { %v25133_v39 = vpop.f32.mrb[147].mxu0  ;;  %25179 = vmatmul.mubr.msk.bf16.vlgmr.msra.gmra.mrb[160].mxu0 %vm1979_vm1, %v20732_v42  ;;  %25195 = vmatpush3.bf16.msra.mxu1 %v25776_v58 }
0x39a4   : > { %25189 = vmatpush3.bf16.msra.mxu0 %v25775_v5  ;;  %25190 = vmatprep.mubr.msk.bf16.mxu0 %vm26239_vm0, %v26238_v0 }
0x39a5   : > { %25196 = vmatprep.mubr.msk.bf16.mxu1 %vm26239_vm0, %v26238_v0  ;;  %25200 = vmatprep.subr.bf16.mxu0 %v26238_v0 }
0x39a6   : > { %25206 = vmatprep.subr.bf16.mxu1 %v26238_v0 }
0x39a7   : > { %v20542_v3 = vpop.f32.mrb[172].mxu1 }
0x39a8   : > { %v20496_v37 = vpop.f32.mrb[148].mxu0  ;;  %v20735_v24 = vpack.c.bf16 %v20542_v3, %v20542_v3  ;;  %v25150_v46 = vpop.f32.mrb[173].mxu1 }
0x39a9   : > { %v20734_v8 = vpack.c.bf16 %v20496_v37, %v20496_v37  ;;  %v25144_v34 = vpop.f32.mrb[149].mxu0  ;;  %v20545_v1 = vpop.f32.mrb[174].mxu1 }
0x39aa   : > { %v20499_v45 = vpop.f32.mrb[150].mxu0  ;;  %v25151_v59 = vpop.f32.mrb[175].mxu1  ;;  %25197 = vmatmul.mubr.msk.bf16.vlgmr.msra.gmra.mrb[188].mxu1 %vm1979_vm1, %v20735_v24 }
0x39ab   : > { %v25145_v47 = vpop.f32.mrb[151].mxu0  ;;  %25191 = vmatmul.mubr.msk.bf16.vlgmr.msra.gmra.mrb[164].mxu0 %vm1979_vm1, %v20734_v8  ;;  %25207 = vmatpush3.bf16.msra.mxu1 %v25778_v61  ;;  %v22342_v8 = vld [vmem:[#allocation10] ss:$0 sm:$0xff] }
0x39ac   : > { %25201 = vmatpush3.bf16.msra.mxu0 %v25777_v25  ;;  %25202 = vmatprep.mubr.msk.bf16.mxu0 %vm26239_vm0, %v26238_v0 }
0x39ad   : > { %25208 = vmatprep.mubr.msk.bf16.mxu1 %vm26239_vm0, %v26238_v0  ;;  %25212 = vmatprep.subr.bf16.mxu0 %v26238_v0 }
0x39ae   : > { %25218 = vmatprep.subr.bf16.mxu1 %v26238_v0 }
0x39af   : > { %v20634_v15 = vpop.f32.mrb[176].mxu1 }
0x39b0   : > { %v20588_v26 = vpop.f32.mrb[152].mxu0  ;;  %v20737_v10 = vpack.c.bf16 %v20634_v15, %v20634_v15  ;;  %v25162_v32 = vpop.f32.mrb[177].mxu1 }
0x39b1   : > { %v20736_v17 = vpack.c.bf16 %v20588_v26, %v20588_v26  ;;  %v25156_v50 = vpop.f32.mrb[153].mxu0  ;;  %v20637_v12 = vpop.f32.mrb[178].mxu1 }
0x39b2   : > { %v20591_v41 = vpop.f32.mrb[154].mxu0  ;;  %v25163_v53 = vpop.f32.mrb[179].mxu1  ;;  %25209 = vmatmul.mubr.msk.bf16.vlgmr.msra.gmra.mrb[192].mxu1 %vm1979_vm1, %v20737_v10 }
0x39b3   : > { %v25157_v14 = vpop.f32.mrb[155].mxu0  ;;  %25203 = vmatmul.mubr.msk.bf16.vlgmr.msra.gmra.mrb[168].mxu0 %vm1979_vm1, %v20736_v17  ;;  %25219 = vmatpush3.bf16.msra.mxu1 %v25780_v55  ;;  %v22343_v55 = vld [vmem:[#allocation10 + $0x2] ss:$0 sm:$0xff] }
0x39b4   : > { %25213 = vmatpush3.bf16.msra.mxu0 %v25779_v43  ;;  %25214 = vmatprep.mubr.msk.bf16.mxu0 %vm26239_vm0, %v26238_v0 }
0x39b5   : > { %25220 = vmatprep.mubr.msk.bf16.mxu1 %vm26239_vm0, %v26238_v0 }
0x39b7   : > { %v20726_v36 = vpop.f32.mrb[180].mxu1 }
0x39b8   : > { %v20680_v21 = vpop.f32.mrb[156].mxu0  ;;  %v20739_v16 = vpack.c.bf16 %v20726_v36, %v20726_v36  ;;  %v25174_v7 = vpop.f32.mrb[181].mxu1 }
0x39b9   : > { %v20738_v9 = vpack.c.bf16 %v20680_v21, %v20680_v21  ;;  %v25168_v6 = vpop.f32.mrb[157].mxu0  ;;  %v20729_v35 = vpop.f32.mrb[182].mxu1 }
0x39ba   : > { %v20683_v18 = vpop.f32.mrb[158].mxu0  ;;  %v25175_v57 = vpop.f32.mrb[183].mxu1  ;;  %25221 = vmatmul.mubr.msk.bf16.vlgmr.msra.gmra.mrb[196].mxu1 %vm1979_vm1, %v20739_v16 }
0x39bb   : > { %v25169_v22 = vpop.f32.mrb[159].mxu0  ;;  %25215 = vmatmul.mubr.msk.bf16.vlgmr.msra.gmra.mrb[172].mxu0 %vm1979_vm1, %v20738_v9 }
0x3a75   : > { %v20832_v54 = vpop.f32.mrb[184].mxu1 }
0x3a76   : > { %v20783_v28 = vpop.f32.mrb[160].mxu0  ;;  %v25186_v44 = vpop.f32.mrb[185].mxu1 }
0x3a77   : > { %v21132_v11 = vadd.f32 %v20832_v54, %v20783_v28  ;;  %v25180_v19 = vpop.f32.mrb[161].mxu0  ;;  %v20835_v0 = vpop.f32.mrb[186].mxu1 }
0x3a78   : > { %v20786_v49 = vpop.f32.mrb[162].mxu0  ;;  %v25187_v38 = vpop.f32.mrb[187].mxu1  ;;  %v21178_v0 = vld [vmem:[#allocation10 + $0x4] sm:$0x1] }
0x3a79   : > { %v25181_v62 = vpop.f32.mrb[163].mxu0 }
0x3a7d   : > { %v20930_v20 = vpop.f32.mrb[188].mxu1 }
0x3a7e   : > { %v20881_v63 = vpop.f32.mrb[164].mxu0  ;;  %v25198_v4 = vpop.f32.mrb[189].mxu1 }
0x3a7f   : > { %v21133_v27 = vadd.f32 %v21132_v11, %v20881_v63  ;;  %v25192_v51 = vpop.f32.mrb[165].mxu0  ;;  %v20933_v13 = vpop.f32.mrb[190].mxu1 }
0x3a80   : > { %v20884_v56 = vpop.f32.mrb[166].mxu0  ;;  %v25199_v23 = vpop.f32.mrb[191].mxu1 }
0x3a81   : > { %v21134_v52 = vadd.f32 %v21133_v27, %v20930_v20  ;;  %v25193_v58 = vpop.f32.mrb[167].mxu0  ;;  %v21184_v20 = vld [vmem:[#allocation10 + $0x1] sm:$0x1] }
0x3a85   : > { %v21028_v33 = vpop.f32.mrb[192].mxu1 }
0x3a86   : > { %v20979_v31 = vpop.f32.mrb[168].mxu0  ;;  %v25210_v48 = vpop.f32.mrb[193].mxu1 }
0x3a87   : > { %v21135_v5 = vadd.f32 %v21134_v52, %v20979_v31  ;;  %v25204_v42 = vpop.f32.mrb[169].mxu0  ;;  %v21031_v40 = vpop.f32.mrb[194].mxu1 }
0x3a88   : > { %v20982_v2 = vpop.f32.mrb[170].mxu0  ;;  %v25211_v29 = vpop.f32.mrb[195].mxu1 }
0x3a89   : > { %v21136_v30 = vadd.f32 %v21135_v5, %v21028_v33  ;;  %v25205_v39 = vpop.f32.mrb[171].mxu0 }
0x3a8d   : > { %v21126_v3 = vpop.f32.mrb[196].mxu1 }
0x3a8e   : > { %v21077_v61 = vpop.f32.mrb[172].mxu0  ;;  %v25222_v37 = vpop.f32.mrb[197].mxu1 }
0x3a8f   : > { %v21137_v24 = vadd.f32 %v21136_v30, %v21077_v61  ;;  %v25216_v46 = vpop.f32.mrb[173].mxu0  ;;  %v21129_v25 = vpop.f32.mrb[198].mxu1 }
0x3a90   : > { %v21080_v34 = vpop.f32.mrb[174].mxu0  ;;  %v25223_v1 = vpop.f32.mrb[199].mxu1 }
0x3a91   : > { %v21138_v45 = vadd.f32 %v21137_v24, %v21126_v3  ;;  %v25217_v59 = vpop.f32.mrb[175].mxu0 }
0x3a93   : > { %v21143_v47 = vadd.f32 %v22342_v8, %v21138_v45 }
0x3a95   : > { %v21144_v15 = vadd.f32 %v21143_v47, %v29174_v60 }
0x3a97   : > { %26029 = vtanh.f32 %v21144_v15 }
0x3aa1   : > { %v26030_v26 = vpop.eup %26029 }
0x3aa2   : > { %v21151_v10 = vmul.f32 %v26030_v26, %v22343_v55 }
0x3aa4   : > { %21152 = vadd.xlane.f32.xlu0 %v21151_v10 }
0x3b31   : > { %v21153_v32 = vpop.xlane.xlu0 %21152 }
0x3b32   : > { %v21154_v43 = vrot.slane %v21153_v32, 4 }
0x3b34   : > { %v21155_v17 = vmax.f32 %v21153_v32, %v21154_v43 }
0x3b36   : > { %v21156_v50 = vrot.slane %v21155_v17, 2 }
0x3b38   : > { %v21157_v12 = vmax.f32 %v21155_v17, %v21156_v50 }
0x3b3a   : > { %v21158_v41 = vrot.slane %v21157_v12, 1 }
0x3b3c   : > { %v21159_v53 = vmax.f32 %v21157_v12, %v21158_v41 }
0x3b3e   : > { %v21160_v14 = vsub.f32 %v21153_v32, %v21159_v53 }
0x3b40   : > { %v21161_v36 = vmul.f32 1.442695, %v21160_v14 }
0x3b42   : > { %26031 = vpow2.f32 %v21161_v36 }
0x3b4c   : > { %v26032_v21 = vpop.eup %26031 }
0x3b4d   : > { %v21163_v16 = vrot.slane %v26032_v21, 4 }
0x3b4f   : > { %v21164_v7 = vadd.f32 %v26032_v21, %v21163_v16 }
0x3b51   : > { %v21165_v9 = vrot.slane %v21164_v7, 2 }
0x3b53   : > { %v21166_v60 = vadd.f32 %v21165_v9, %v21164_v7 }
0x3b55   : > { %v21167_v6 = vrot.slane %v21166_v60, 1 }
0x3b57   : > { %v21168_v35 = vadd.f32 %v21167_v6, %v21166_v60 }
0x3b59   : > { %26033 = vrcp.f32 %v21168_v35 }
0x3b63   : > { %v26034_v18 = vpop.eup %26033 }
0x3b64   : > { %v21170_v57 = vmul.f32 %v26034_v18, %v26032_v21 }
0x3b66   : > { %v21171_v22 = vmul.f32 %v26030_v26, %v21170_v57 }
0x3b68   : > { %v21172_v54 = vrot.slane %v21171_v22, 4 }
0x3b6a   : > { %v21173_v28 = vadd.f32 %v21172_v54, %v21171_v22 }
0x3b6c   : > { %v21174_v44 = vrot.slane %v21173_v28, 2 }
0x3b6e   : > { %v21175_v11 = vadd.f32 %v21174_v44, %v21173_v28 }
0x3b70   : > { %v21176_v19 = vrot.slane %v21175_v11, 1 }
0x3b72   : > { %v21177_v49 = vadd.f32 %v21176_v19, %v21175_v11 }
0x3b74   : > { %v21179_v38 = vmul.f32 %v21178_v0, %v21177_v49 }
0x3b76   : > { %v21181_v62 = vsel %vm21180_vm4, %v21179_v38, 0.0 }
0x3b77   : > { %21182 = vadd.xlane.f32.xlu1 %v21181_v62 }
0x3c04   : > { %v21183_v63 = vpop.xlane.xlu1 %21182 }
0x3c05   : > { %v21185_v4 = vadd.f32 %v21184_v20, %v21183_v63 }
0x3c07   : > { %21188 = vperm.xlu0 %25300, %v21185_v4  }
0x3c86   : > { %v21189_v27 = vpop.permute.xlu0 %21188 }
0x3c87   : > { %21191 = vst [vmem:[%s509_s29] sm:$0x1] %v21189_v27 }
0x3c88 PF: > { %s29523_s30 = sld [smem:[#allocation16_spill]] }
0x3c8e   : > { %s26_s21 = sadd.s32 1, %s29523_s30  }
0x3c8f   : > { %p23_p9 = scmp.ge.s32.totalorder %s26_s21, 4  }
0x3c91   :  { %25 = sbr.rel (!%p23_p9) target bundleno = 6 (0x6), region = 189 }
0x3c98   :  { %21209 = vsyncpa [#allocation3], 1 }
0x3c99   :  { %21211 = vsyncpa [#allocation3 + $0x1], 1 }
0x3c9a   :  { %21212 = vsyncpa [#allocation5], 1 }
0x3c9b   :  { %21213 = vsyncpa [#allocation8], 1 }
0x3c9c   :  { %21214 = vsyncpa [#allocation11], 1 }

</bundles_post_ra>
